<compile_context>
chip_gen: v7x
topology: tpu7x:2x2x1
jax: 0.10.0
libtpu: 0.0.40
codegen_flags: <defaults>
</compile_context>

<pallas_src>
import functools

import jax
import jax.numpy as jnp
from jax.experimental import pallas as pl
from jax.experimental.pallas import tpu as pltpu

BN_EPS = 1e-5
LANE = 128           # lane width; all channel dims are padded to a multiple
SUBLANE_BF16 = 16    # bf16 packs [16, 128] per vreg -> M-tile quantum


def _ceil_to(v, q):
    return ((v + q - 1) // q) * q


@functools.lru_cache(maxsize=None)
def _vmem_limit_bytes():
    # v5e/v6e: 128 MiB VMEM per core; v7x: 64 MiB.  Use ~75% of the physical
    # budget (capped at 96 MiB) so larger tiles amortize per-grid-step overhead
    # without over-subscribing v7x.
    try:
        cap = int(pltpu.get_tpu_info().vmem_capacity_bytes)
    except Exception:
        cap = 64 * 1024 * 1024
    return int(min(cap * 3 // 4, 96 * 1024 * 1024))


def _pick_tile(dim, target, quantum, min_blocks=1):
    """Largest tile that divides `dim`, is a multiple of `quantum`, is <= target
    and (when `dim` allows) leaves at least `min_blocks` grid blocks so both
    v7x TensorCores get a parallel tile.  Falls back to the full dimension
    (always legal: block dim == full array dim)."""
    cap = min(target, dim)
    if min_blocks > 1 and dim // min_blocks >= quantum:
        cap = min(cap, dim // min_blocks)
    t = (cap // quantum) * quantum
    while t >= quantum:
        if dim % t == 0:
            return t
        t -= quantum
    return dim


# ----------------------------------------------------------------------------
# Pallas kernels
# ----------------------------------------------------------------------------
def _gemm_bn_kernel(*refs, relu, has_res):
    """Tiled GEMM with K-reduction accumulator; epilogue = BN scale/bias,
    optional fused residual add, optional ReLU.  o = act(A@W * s + b [+ res])."""
    if has_res:
        a_ref, w_ref, s_ref, b_ref, r_ref, o_ref, acc_ref = refs
    else:
        a_ref, w_ref, s_ref, b_ref, o_ref, acc_ref = refs
        r_ref = None
    k = pl.program_id(2)

    @pl.when(k == 0)
    def _init():
        acc_ref[...] = jnp.zeros_like(acc_ref)

    acc_ref[...] += jnp.dot(a_ref[...], w_ref[...],
                            preferred_element_type=jnp.float32)

    @pl.when(k == pl.num_programs(2) - 1)
    def _finalize():
        out = acc_ref[...] * s_ref[...] + b_ref[...]
        if has_res:
            out = out + r_ref[...].astype(jnp.float32)
        if relu:
            out = jnp.maximum(out, 0.0)
        o_ref[...] = out.astype(o_ref.dtype)


def _maxpool_kernel(x_ref, o_ref):
    """Single-pass max over the 9 shifted 3x3 window taps (leading axis)."""
    o_ref[...] = jnp.max(x_ref[...], axis=0)


def _head_kernel(x_ref, w1_ref, b1_ref, w2_ref, b2_ref, z_ref):
    """Fused: global avg-pool -> F.normalize(dim=1) -> Linear -> ReLU ->
    Dropout(p=0) -> Linear.  Matmuls run bf16 with f32 accumulation."""
    h = jnp.mean(x_ref[...].astype(jnp.float32), axis=1)            # (bb, C)
    ssq = jnp.sum(h * h, axis=1, keepdims=True)
    hn = h * jax.lax.rsqrt(jnp.maximum(ssq, 1e-24))                  # eps clamp
    y = jnp.dot(hn.astype(jnp.bfloat16), w1_ref[...],
                preferred_element_type=jnp.float32) + b1_ref[...]
    y = jnp.maximum(y, 0.0)
    # Dropout(p=0.0) is the identity.
    z = jnp.dot(y.astype(jnp.bfloat16), w2_ref[...],
                preferred_element_type=jnp.float32) + b2_ref[...]
    z_ref[...] = z


# ----------------------------------------------------------------------------
# Pallas-call wrappers (padding / patch extraction / reshapes stay in plain JAX)
# ----------------------------------------------------------------------------
def matmul_bn_act(a, w, scale, bias, residual=None, relu=True,
                  out_dtype=jnp.bfloat16):
    M, K = a.shape
    K2, N = w.shape
    assert K == K2 and N % LANE == 0 and K % LANE == 0
    # Full-N weight tile (avoids re-streaming A across N tiles); bf16-aligned
    # M tile; large aligned K tile.
    tn = N if N <= 512 else _pick_tile(N, 512, LANE)
    tm = _pick_tile(M, 1024, SUBLANE_BF16, min_blocks=2)
    tk = _pick_tile(K, 2048, LANE)
    grid = (M // tm, N // tn, K // tk)

    in_specs = [
        pl.BlockSpec((tm, tk), lambda i, j, k: (i, k)),
        pl.BlockSpec((tk, tn), lambda i, j, k: (k, j)),
        pl.BlockSpec((1, tn), lambda i, j, k: (0, j)),   # BN scale, resident
        pl.BlockSpec((1, tn), lambda i, j, k: (0, j)),   # BN bias, resident
    ]
    args = [a, w,
            scale.reshape(1, N).astype(jnp.float32),
            bias.reshape(1, N).astype(jnp.float32)]
    if residual is not None:
        in_specs.append(pl.BlockSpec((tm, tn), lambda i, j, k: (i, j)))
        args.append(residual)

    kernel = functools.partial(_gemm_bn_kernel, relu=relu,
                               has_res=residual is not None)
    return pl.pallas_call(
        kernel,
        out_shape=jax.ShapeDtypeStruct((M, N), out_dtype),
        grid_spec=pltpu.PrefetchScalarGridSpec(
            num_scalar_prefetch=0,
            grid=grid,
            in_specs=in_specs,
            out_specs=pl.BlockSpec((tm, tn), lambda i, j, k: (i, j)),
            scratch_shapes=[pltpu.VMEM((tm, tn), jnp.float32)],
        ),
        compiler_params=pltpu.CompilerParams(
            dimension_semantics=("parallel", "parallel", "arbitrary"),
            vmem_limit_bytes=_vmem_limit_bytes(),
        ),
    )(*args)


def im2col(x, kh, kw, stride, pad):
    B, H, W, C = x.shape
    xp = jnp.pad(x, ((0, 0), (pad, pad), (pad, pad), (0, 0)))
    Ho = (H + 2 * pad - kh) // stride + 1
    Wo = (W + 2 * pad - kw) // stride + 1
    cols = [xp[:, dy:dy + stride * Ho:stride, dx:dx + stride * Wo:stride, :]
            for dy in range(kh) for dx in range(kw)]
    patches = jnp.concatenate(cols, axis=-1)              # (B, Ho, Wo, kh*kw*C)
    a = patches.reshape(B * Ho * Wo, kh * kw * C)
    k_pad = _ceil_to(a.shape[1], LANE)                    # align K (stem: 147->256)
    if k_pad != a.shape[1]:
        a = jnp.pad(a, ((0, 0), (0, k_pad - a.shape[1])))
    return a, (B, Ho, Wo)


def conv_bn_act(x, w_hwio, bn, stride, pad, relu, residual=None):
    kh, kw, cin, cout = w_hwio.shape
    assert x.shape[-1] == cin and cout % LANE == 0
    gamma, beta, mean, var = bn
    scale = gamma / jnp.sqrt(var + BN_EPS)
    bias = beta - mean * scale
    a, (B, Ho, Wo) = im2col(x, kh, kw, stride, pad)
    w2d = w_hwio.reshape(kh * kw * cin, cout).astype(jnp.bfloat16)
    if a.shape[1] != w2d.shape[0]:     # im2col K was zero-padded -> zero W rows
        w2d = jnp.pad(w2d, ((0, a.shape[1] - w2d.shape[0]), (0, 0)))
    res2d = None if residual is None else residual.reshape(B * Ho * Wo, cout)
    out = matmul_bn_act(a, w2d, scale, bias, residual=res2d, relu=relu)
    return out.reshape(B, Ho, Wo, cout)


def maxpool_3x3_s2_p1(x):
    B, H, W, C = x.shape
    neg = float(jnp.finfo(x.dtype).min)                   # dtype-correct -inf-ish pad
    xp = jnp.pad(x, ((0, 0), (1, 1), (1, 1), (0, 0)), constant_values=neg)
    Ho = (H + 2 - 3) // 2 + 1
    Wo = (W + 2 - 3) // 2 + 1
    wins = [xp[:, dy:dy + 2 * Ho:2, dx:dx + 2 * Wo:2, :]
            for dy in range(3) for dx in range(3)]
    stacked = jnp.stack(wins, axis=0).reshape(9, B * Ho * Wo, C)
    M = B * Ho * Wo
    tm = _pick_tile(M, 512, SUBLANE_BF16, min_blocks=2)
    out = pl.pallas_call(
        _maxpool_kernel,
        out_shape=jax.ShapeDtypeStruct((M, C), x.dtype),
        grid_spec=pltpu.PrefetchScalarGridSpec(
            num_scalar_prefetch=0,
            grid=(M // tm,),
            in_specs=[pl.BlockSpec((9, tm, C), lambda i: (0, i, 0))],
            out_specs=pl.BlockSpec((tm, C), lambda i: (i, 0)),
        ),
        compiler_params=pltpu.CompilerParams(
            dimension_semantics=("parallel",),
            vmem_limit_bytes=_vmem_limit_bytes(),
        ),
    )(stacked)
    return out.reshape(B, Ho, Wo, C)


def head(x, w1, b1, w2, b2):
    B, H, W, C = x.shape
    d_hidden = w1.shape[1]
    d_out = w2.shape[1]
    xf = x.reshape(B, H * W, C)
    bb = _pick_tile(B, 256, 8)                            # batch tile; weights resident
    return pl.pallas_call(
        _head_kernel,
        out_shape=jax.ShapeDtypeStruct((B, d_out), jnp.float32),
        grid_spec=pltpu.PrefetchScalarGridSpec(
            num_scalar_prefetch=0,
            grid=(B // bb,),
            in_specs=[
                pl.BlockSpec((bb, H * W, C), lambda i: (i, 0, 0)),
                pl.BlockSpec((C, d_hidden), lambda i: (0, 0)),
                pl.BlockSpec((1, d_hidden), lambda i: (0, 0)),
                pl.BlockSpec((d_hidden, d_out), lambda i: (0, 0)),
                pl.BlockSpec((1, d_out), lambda i: (0, 0)),
            ],
            out_specs=pl.BlockSpec((bb, d_out), lambda i: (i, 0)),
        ),
        compiler_params=pltpu.CompilerParams(
            dimension_semantics=("parallel",),
            vmem_limit_bytes=_vmem_limit_bytes(),
        ),
    )(xf, w1, b1.reshape(1, -1), w2, b2.reshape(1, -1))


# ----------------------------------------------------------------------------
# ResNet18-style backbone + SimCLR head
# ----------------------------------------------------------------------------
def basic_block(x, p, stride):
    if "down_w" in p:
        identity = conv_bn_act(x, p["down_w"], p["down_bn"],
                               stride=stride, pad=0, relu=False)
    else:
        identity = x
    out = conv_bn_act(x, p["conv1_w"], p["bn1"], stride=stride, pad=1, relu=True)
    # Second conv: BN + residual add + ReLU fused into the GEMM epilogue.
    out = conv_bn_act(out, p["conv2_w"], p["bn2"], stride=1, pad=1,
                      relu=True, residual=identity)
    return out


def resnet_simclr_forward(x_nchw, params, *, out_dim):
    # PyTorch NCHW input -> kernel NHWC layout, bf16 activations.
    x = jnp.transpose(x_nchw, (0, 2, 3, 1)).astype(jnp.bfloat16)
    x = conv_bn_act(x, params["conv1_w"], params["bn1"], stride=2, pad=3, relu=True)
    x = maxpool_3x3_s2_p1(x)
    strides = [1, 2, 2, 2]
    for li, blocks in enumerate(params["layers"]):
        for bi, bp in enumerate(blocks):
            s = strides[li] if bi == 0 else 1
            x = basic_block(x, bp, s)
    w1, b1 = params["proj1"]
    w2, b2 = params["proj2"]
    # backbone.fc = Identity(); z = projector(F.normalize(h, dim=1))
    z = head(x, w1, b1, w2, b2)
    return z[:, :out_dim]                                  # drop lane-padding cols


# ----------------------------------------------------------------------------
# Channel padding: make every channel dim a multiple of 128 with exact zeros.
# ----------------------------------------------------------------------------
def _pad_axis(a, axis, size, value=0.0):
    if a.shape[axis] == size:
        return a
    widths = [(0, 0)] * a.ndim
    widths[axis] = (0, size - a.shape[axis])
    return jnp.pad(a, widths, constant_values=value)


def _pad_bn(bn, c_pad):
    gamma, beta, mean, var = bn
    return (_pad_axis(gamma, 0, c_pad, 1.0), _pad_axis(beta, 0, c_pad, 0.0),
            _pad_axis(mean, 0, c_pad, 0.0), _pad_axis(var, 0, c_pad, 1.0))


def pad_params(params, out_dim):
    """Zero-pad all channel dims to multiples of 128 so every GEMM output,
    residual, BN vector and the K=kh*kw*cin contraction are lane-dense/aligned.
    Padded channels carry exact zeros end-to-end, so the result is unchanged."""
    p = {}
    c1p = _ceil_to(params["conv1_w"].shape[-1], LANE)
    p["conv1_w"] = _pad_axis(params["conv1_w"], 3, c1p)
    p["bn1"] = _pad_bn(params["bn1"], c1p)
    layers = []
    in_p = c1p
    for blocks in params["layers"]:
        nbs = []
        for bp in blocks:
            coutp = _ceil_to(bp["conv1_w"].shape[-1], LANE)
            nb = {
                "conv1_w": _pad_axis(_pad_axis(bp["conv1_w"], 2, in_p), 3, coutp),
                "bn1": _pad_bn(bp["bn1"], coutp),
                "conv2_w": _pad_axis(_pad_axis(bp["conv2_w"], 2, coutp), 3, coutp),
                "bn2": _pad_bn(bp["bn2"], coutp),
            }
            if "down_w" in bp:
                nb["down_w"] = _pad_axis(_pad_axis(bp["down_w"], 2, in_p), 3, coutp)
                nb["down_bn"] = _pad_bn(bp["down_bn"], coutp)
            nbs.append(nb)
            in_p = coutp
        layers.append(nbs)
    p["layers"] = layers
    w1, b1 = params["proj1"]
    w2, b2 = params["proj2"]
    hidp = _ceil_to(w1.shape[1], LANE)
    outp = _ceil_to(out_dim, LANE)
    p["proj1"] = (_pad_axis(_pad_axis(w1, 0, in_p), 1, hidp).astype(jnp.bfloat16),
                  _pad_axis(b1, 0, hidp))
    p["proj2"] = (_pad_axis(_pad_axis(w2, 0, hidp), 1, outp).astype(jnp.bfloat16),
                  _pad_axis(b2, 0, outp))
    return p


# ----------------------------------------------------------------------------
# Deterministic parameter initialisation (torchvision resnet18 shapes with a
# reduced width multiplier for a small runnable example; dim_mlp = 8 * width).
# ----------------------------------------------------------------------------
def init_bn(c):
    return (jnp.ones((c,), jnp.float32),   # gamma
            jnp.zeros((c,), jnp.float32),  # beta
            jnp.zeros((c,), jnp.float32),  # running_mean
            jnp.ones((c,), jnp.float32))   # running_var


def init_conv(key, kh, kw, cin, cout):
    fan_in = kh * kw * cin
    w = jax.random.normal(key, (kh, kw, cin, cout), jnp.float32) * jnp.sqrt(2.0 / fan_in)
    return w.astype(jnp.bfloat16)


def init_linear(key, fan_in, fan_out):
    k1, k2 = jax.random.split(key)
    bound = 1.0 / jnp.sqrt(fan_in)
    w = jax.random.uniform(k1, (fan_in, fan_out), jnp.float32, -bound, bound)
    b = jax.random.uniform(k2, (fan_out,), jnp.float32, -bound, bound)
    return w, b


def init_resnet18(key, width, in_ch=3):
    keys = iter(jax.random.split(key, 64))
    p = {"conv1_w": init_conv(next(keys), 7, 7, in_ch, width), "bn1": init_bn(width)}
    stage_channels = [width, 2 * width, 4 * width, 8 * width]
    layers = []
    in_c = width
    for out_c in stage_channels:
        blocks = []
        for bi in range(2):
            bp = {
                "conv1_w": init_conv(next(keys), 3, 3, in_c, out_c),
                "bn1": init_bn(out_c),
                "conv2_w": init_conv(next(keys), 3, 3, out_c, out_c),
                "bn2": init_bn(out_c),
            }
            if bi == 0 and out_c != in_c:
                bp["down_w"] = init_conv(next(keys), 1, 1, in_c, out_c)
                bp["down_bn"] = init_bn(out_c)
            blocks.append(bp)
            in_c = out_c
        layers.append(blocks)
    p["layers"] = layers
    return p, 8 * width  # dim_mlp = backbone.fc.in_features


# ----------------------------------------------------------------------------
if __name__ == "__main__":
    key = jax.random.PRNGKey(0)
    k_x, k_bb, k_l1, k_l2 = jax.random.split(key, 4)

    width = 16        # resnet18 uses 64; scaled down.  dim_mlp = 8*width = 128
    out_dim = 128     # projector output dim
    B, C, H, W = 2, 3, 32, 32

    x = jax.random.normal(k_x, (B, C, H, W), jnp.float32)   # PyTorch-style NCHW input

    params, dim_mlp = init_resnet18(k_bb, width, in_ch=C)
    params["proj1"] = init_linear(k_l1, dim_mlp, dim_mlp)    # nn.Linear(dim_mlp, dim_mlp)
    params["proj2"] = init_linear(k_l2, dim_mlp, out_dim)    # nn.Linear(dim_mlp, out_dim)

    padded = pad_params(params, out_dim)                     # lane-dense channel padding
    fwd = jax.jit(functools.partial(resnet_simclr_forward, out_dim=out_dim))
    z = jax.block_until_ready(fwd(x, padded))
    assert z.shape == (B, out_dim) and bool(jnp.all(jnp.isfinite(z)))
    print("KERNEL_OK")
</pallas_src>

<mosaic_0001>
module attributes {stable_mosaic.version = 11 : i64} {
  func.func @_gemm_bn_kernel(%arg0: i32, %arg1: i32, %arg2: i32, %arg3: memref<256x256xbf16, #tpu.memory_space<vmem>>, %arg4: memref<256x128xbf16, #tpu.memory_space<vmem>>, %arg5: memref<1x128xf32, #tpu.memory_space<vmem>>, %arg6: memref<1x128xf32, #tpu.memory_space<vmem>>, %arg7: memref<256x128xbf16, #tpu.memory_space<vmem>>, %arg8: memref<256x128xf32, #tpu.memory_space<vmem>>) attributes {dimension_semantics = [#tpu.dimension_semantics<parallel>, #tpu.dimension_semantics<parallel>, #tpu.dimension_semantics<arbitrary>], iteration_bounds = array<i64: 2, 1, 1>, scalar_prefetch = 0 : i64, scratch_operands = 1 : i64, tpu.core_type = #tpu.core_type<tc>, window_params = [{transform_indices = @transform_0, window_bounds = array<i64: 256, 256>}, {transform_indices = @transform_1, window_bounds = array<i64: 256, 128>}, {transform_indices = @transform_2, window_bounds = array<i64: 1, 128>}, {transform_indices = @transform_3, window_bounds = array<i64: 1, 128>}, {transform_indices = @transform_4, window_bounds = array<i64: 256, 128>}]} {
    %c0_i32 = arith.constant 0 : i32
    %0 = arith.cmpi eq, %arg2, %c0_i32 : i32
    %1 = arith.extui %0 : i1 to i32
    %c0_i32_0 = arith.constant 0 : i32
    %2 = arith.cmpi ne, %1, %c0_i32_0 : i32
    scf.if %2 {
      %cst_10 = arith.constant 0.000000e+00 : f32
      %12 = vector.broadcast %cst_10 : f32 to vector<256x128xf32>
      %c0_11 = arith.constant 0 : index
      %c0_12 = arith.constant 0 : index
      %13 = vector.load %arg8[%c0_11, %c0_12] : memref<256x128xf32, #tpu.memory_space<vmem>>, vector<256x128xf32>
      tpu.vector_store %arg8[%c0_11, %c0_12], %12 {strides = array<i32>} : memref<256x128xf32, #tpu.memory_space<vmem>>, vector<256x128xf32>,
    } else {
    }
    %c0 = arith.constant 0 : index
    %c0_1 = arith.constant 0 : index
    %3 = vector.load %arg8[%c0, %c0_1] : memref<256x128xf32, #tpu.memory_space<vmem>>, vector<256x128xf32>
    %c0_2 = arith.constant 0 : index
    %c0_3 = arith.constant 0 : index
    %4 = vector.load %arg3[%c0_2, %c0_3] : memref<256x256xbf16, #tpu.memory_space<vmem>>, vector<256x256xbf16>
    %c0_4 = arith.constant 0 : index
    %c0_5 = arith.constant 0 : index
    %5 = vector.load %arg4[%c0_4, %c0_5] : memref<256x128xbf16, #tpu.memory_space<vmem>>, vector<256x128xbf16>
    %cst = arith.constant dense<0.000000e+00> : vector<256x128xf32>
    %6 = tpu.matmul %4, %5, %cst {dimension_numbers = #tpu.dot_dimension_numbers<[1], [0], [0], [1], [0, 0, 1, 1], [], []>} : vector<256x256xbf16>, vector<256x128xbf16>, vector<256x128xf32> -> vector<256x128xf32>
    %7 = arith.addf %3, %6 : vector<256x128xf32>
    %c0_6 = arith.constant 0 : index
    %c0_7 = arith.constant 0 : index
    %8 = vector.load %arg8[%c0_6, %c0_7] : memref<256x128xf32, #tpu.memory_space<vmem>>, vector<256x128xf32>
    tpu.vector_store %arg8[%c0_6, %c0_7], %7 {strides = array<i32>} : memref<256x128xf32, #tpu.memory_space<vmem>>, vector<256x128xf32>,
    %c0_i32_8 = arith.constant 0 : i32
    %9 = arith.cmpi eq, %arg2, %c0_i32_8 : i32
    %10 = arith.extui %9 : i1 to i32
    %c0_i32_9 = arith.constant 0 : i32
    %11 = arith.cmpi ne, %10, %c0_i32_9 : i32
    scf.if %11 {
      %c0_10 = arith.constant 0 : index
      %c0_11 = arith.constant 0 : index
      %12 = vector.load %arg8[%c0_10, %c0_11] : memref<256x128xf32, #tpu.memory_space<vmem>>, vector<256x128xf32>
      %c0_12 = arith.constant 0 : index
      %c0_13 = arith.constant 0 : index
      %13 = vector.load %arg5[%c0_12, %c0_13] : memref<1x128xf32, #tpu.memory_space<vmem>>, vector<1x128xf32>
      %14 = vector.broadcast %13 : vector<1x128xf32> to vector<256x128xf32>
      %15 = arith.mulf %12, %14 : vector<256x128xf32>
      %c0_14 = arith.constant 0 : index
      %c0_15 = arith.constant 0 : index
      %16 = vector.load %arg6[%c0_14, %c0_15] : memref<1x128xf32, #tpu.memory_space<vmem>>, vector<1x128xf32>
      %17 = vector.broadcast %16 : vector<1x128xf32> to vector<256x128xf32>
      %18 = arith.addf %15, %17 : vector<256x128xf32>
      %cst_16 = arith.constant 0.000000e+00 : f32
      %19 = vector.broadcast %cst_16 : f32 to vector<256x128xf32>
      %20 = arith.maximumf %18, %19 : vector<256x128xf32>
      %21 = arith.truncf %20 : vector<256x128xf32> to vector<256x128xbf16>
      %c0_17 = arith.constant 0 : index
      %c0_18 = arith.constant 0 : index
      %22 = vector.load %arg7[%c0_17, %c0_18] : memref<256x128xbf16, #tpu.memory_space<vmem>>, vector<256x128xbf16>
      tpu.vector_store %arg7[%c0_17, %c0_18], %21 {strides = array<i32>} : memref<256x128xbf16, #tpu.memory_space<vmem>>, vector<256x128xbf16>,
    } else {
    }
    return
  }
  func.func @transform_0(%arg0: i32, %arg1: i32, %arg2: i32) -> (i32, i32) {
    %c0_i32 = arith.constant 0 : i32
    return %arg0, %arg2 : i32, i32
  }
  func.func @transform_1(%arg0: i32, %arg1: i32, %arg2: i32) -> (i32, i32) {
    %c0_i32 = arith.constant 0 : i32
    return %arg2, %arg1 : i32, i32
  }
  func.func @transform_2(%arg0: i32, %arg1: i32, %arg2: i32) -> (i32, i32) {
    %c0_i32 = arith.constant 0 : i32
    %c0_i32_0 = arith.constant 0 : i32
    return %c0_i32, %arg1 : i32, i32
  }
  func.func @transform_3(%arg0: i32, %arg1: i32, %arg2: i32) -> (i32, i32) {
    %c0_i32 = arith.constant 0 : i32
    %c0_i32_0 = arith.constant 0 : i32
    return %c0_i32, %arg1 : i32, i32
  }
  func.func @transform_4(%arg0: i32, %arg1: i32, %arg2: i32) -> (i32, i32) {
    %c0_i32 = arith.constant 0 : i32
    return %arg0, %arg1 : i32, i32
  }
}

module attributes {stable_mosaic.version = 11 : i64} {
  func.func @_maxpool_kernel(%arg0: i32, %arg1: memref<9x64x128xbf16, #tpu.memory_space<vmem>>, %arg2: memref<64x128xbf16, #tpu.memory_space<vmem>>) attributes {dimension_semantics = [#tpu.dimension_semantics<parallel>], iteration_bounds = array<i64: 2>, scalar_prefetch = 0 : i64, scratch_operands = 0 : i64, tpu.core_type = #tpu.core_type<tc>, window_params = [{transform_indices = @transform_0, window_bounds = array<i64: 9, 64, 128>}, {transform_indices = @transform_1, window_bounds = array<i64: 64, 128>}]} {
    %c0 = arith.constant 0 : index
    %c0_0 = arith.constant 0 : index
    %c0_1 = arith.constant 0 : index
    %0 = vector.load %arg1[%c0, %c0_0, %c0_1] : memref<9x64x128xbf16, #tpu.memory_space<vmem>>, vector<9x64x128xbf16>
    %cst = arith.constant dense<0xFF80> : vector<64x128xbf16>
    %1 = vector.multi_reduction <maximumf>, %0, %cst [0] : vector<9x64x128xbf16> to vector<64x128xbf16>
    %c0_2 = arith.constant 0 : index
    %c0_3 = arith.constant 0 : index
    %2 = vector.load %arg2[%c0_2, %c0_3] : memref<64x128xbf16, #tpu.memory_space<vmem>>, vector<64x128xbf16>
    tpu.vector_store %arg2[%c0_2, %c0_3], %1 {strides = array<i32>} : memref<64x128xbf16, #tpu.memory_space<vmem>>, vector<64x128xbf16>,
    return
  }
  func.func @transform_0(%arg0: i32) -> (i32, i32, i32) {
    %c0_i32 = arith.constant 0 : i32
    %c0_i32_0 = arith.constant 0 : i32
    %c0_i32_1 = arith.constant 0 : i32
    return %c0_i32, %arg0, %c0_i32_0 : i32, i32, i32
  }
  func.func @transform_1(%arg0: i32) -> (i32, i32) {
    %c0_i32 = arith.constant 0 : i32
    %c0_i32_0 = arith.constant 0 : i32
    return %arg0, %c0_i32 : i32, i32
  }
}

module attributes {stable_mosaic.version = 11 : i64} {
  func.func @_gemm_bn_kernel(%arg0: i32, %arg1: i32, %arg2: i32, %arg3: memref<64x1152xbf16, #tpu.memory_space<vmem>>, %arg4: memref<1152x128xbf16, #tpu.memory_space<vmem>>, %arg5: memref<1x128xf32, #tpu.memory_space<vmem>>, %arg6: memref<1x128xf32, #tpu.memory_space<vmem>>, %arg7: memref<64x128xbf16, #tpu.memory_space<vmem>>, %arg8: memref<64x128xbf16, #tpu.memory_space<vmem>>, %arg9: memref<64x128xf32, #tpu.memory_space<vmem>>) attributes {dimension_semantics = [#tpu.dimension_semantics<parallel>, #tpu.dimension_semantics<parallel>, #tpu.dimension_semantics<arbitrary>], iteration_bounds = array<i64: 2, 1, 1>, scalar_prefetch = 0 : i64, scratch_operands = 1 : i64, tpu.core_type = #tpu.core_type<tc>, window_params = [{transform_indices = @transform_0, window_bounds = array<i64: 64, 1152>}, {transform_indices = @transform_1, window_bounds = array<i64: 1152, 128>}, {transform_indices = @transform_2, window_bounds = array<i64: 1, 128>}, {transform_indices = @transform_3, window_bounds = array<i64: 1, 128>}, {transform_indices = @transform_4, window_bounds = array<i64: 64, 128>}, {transform_indices = @transform_5, window_bounds = array<i64: 64, 128>}]} {
    %c0_i32 = arith.constant 0 : i32
    %0 = arith.cmpi eq, %arg2, %c0_i32 : i32
    %1 = arith.extui %0 : i1 to i32
    %c0_i32_0 = arith.constant 0 : i32
    %2 = arith.cmpi ne, %1, %c0_i32_0 : i32
    scf.if %2 {
      %cst_10 = arith.constant 0.000000e+00 : f32
      %12 = vector.broadcast %cst_10 : f32 to vector<64x128xf32>
      %c0_11 = arith.constant 0 : index
      %c0_12 = arith.constant 0 : index
      %13 = vector.load %arg9[%c0_11, %c0_12] : memref<64x128xf32, #tpu.memory_space<vmem>>, vector<64x128xf32>
      tpu.vector_store %arg9[%c0_11, %c0_12], %12 {strides = array<i32>} : memref<64x128xf32, #tpu.memory_space<vmem>>, vector<64x128xf32>,
    } else {
    }
    %c0 = arith.constant 0 : index
    %c0_1 = arith.constant 0 : index
    %3 = vector.load %arg9[%c0, %c0_1] : memref<64x128xf32, #tpu.memory_space<vmem>>, vector<64x128xf32>
    %c0_2 = arith.constant 0 : index
    %c0_3 = arith.constant 0 : index
    %4 = vector.load %arg3[%c0_2, %c0_3] : memref<64x1152xbf16, #tpu.memory_space<vmem>>, vector<64x1152xbf16>
    %c0_4 = arith.constant 0 : index
    %c0_5 = arith.constant 0 : index
    %5 = vector.load %arg4[%c0_4, %c0_5] : memref<1152x128xbf16, #tpu.memory_space<vmem>>, vector<1152x128xbf16>
    %cst = arith.constant dense<0.000000e+00> : vector<64x128xf32>
    %6 = tpu.matmul %4, %5, %cst {dimension_numbers = #tpu.dot_dimension_numbers<[1], [0], [0], [1], [0, 0, 1, 1], [], []>} : vector<64x1152xbf16>, vector<1152x128xbf16>, vector<64x128xf32> -> vector<64x128xf32>
    %7 = arith.addf %3, %6 : vector<64x128xf32>
    %c0_6 = arith.constant 0 : index
    %c0_7 = arith.constant 0 : index
    %8 = vector.load %arg9[%c0_6, %c0_7] : memref<64x128xf32, #tpu.memory_space<vmem>>, vector<64x128xf32>
    tpu.vector_store %arg9[%c0_6, %c0_7], %7 {strides = array<i32>} : memref<64x128xf32, #tpu.memory_space<vmem>>, vector<64x128xf32>,
    %c0_i32_8 = arith.constant 0 : i32
    %9 = arith.cmpi eq, %arg2, %c0_i32_8 : i32
    %10 = arith.extui %9 : i1 to i32
    %c0_i32_9 = arith.constant 0 : i32
    %11 = arith.cmpi ne, %10, %c0_i32_9 : i32
    scf.if %11 {
      %c0_10 = arith.constant 0 : index
      %c0_11 = arith.constant 0 : index
      %12 = vector.load %arg9[%c0_10, %c0_11] : memref<64x128xf32, #tpu.memory_space<vmem>>, vector<64x128xf32>
      %c0_12 = arith.constant 0 : index
      %c0_13 = arith.constant 0 : index
      %13 = vector.load %arg5[%c0_12, %c0_13] : memref<1x128xf32, #tpu.memory_space<vmem>>, vector<1x128xf32>
      %14 = vector.broadcast %13 : vector<1x128xf32> to vector<64x128xf32>
      %15 = arith.mulf %12, %14 : vector<64x128xf32>
      %c0_14 = arith.constant 0 : index
      %c0_15 = arith.constant 0 : index
      %16 = vector.load %arg6[%c0_14, %c0_15] : memref<1x128xf32, #tpu.memory_space<vmem>>, vector<1x128xf32>
      %17 = vector.broadcast %16 : vector<1x128xf32> to vector<64x128xf32>
      %18 = arith.addf %15, %17 : vector<64x128xf32>
      %c0_16 = arith.constant 0 : index
      %c0_17 = arith.constant 0 : index
      %19 = vector.load %arg7[%c0_16, %c0_17] : memref<64x128xbf16, #tpu.memory_space<vmem>>, vector<64x128xbf16>
      %20 = arith.extf %19 : vector<64x128xbf16> to vector<64x128xf32>
      %21 = arith.addf %18, %20 : vector<64x128xf32>
      %cst_18 = arith.constant 0.000000e+00 : f32
      %22 = vector.broadcast %cst_18 : f32 to vector<64x128xf32>
      %23 = arith.maximumf %21, %22 : vector<64x128xf32>
      %24 = arith.truncf %23 : vector<64x128xf32> to vector<64x128xbf16>
      %c0_19 = arith.constant 0 : index
      %c0_20 = arith.constant 0 : index
      %25 = vector.load %arg8[%c0_19, %c0_20] : memref<64x128xbf16, #tpu.memory_space<vmem>>, vector<64x128xbf16>
      tpu.vector_store %arg8[%c0_19, %c0_20], %24 {strides = array<i32>} : memref<64x128xbf16, #tpu.memory_space<vmem>>, vector<64x128xbf16>,
    } else {
    }
    return
  }
  func.func @transform_0(%arg0: i32, %arg1: i32, %arg2: i32) -> (i32, i32) {
    %c0_i32 = arith.constant 0 : i32
    return %arg0, %arg2 : i32, i32
  }
  func.func @transform_1(%arg0: i32, %arg1: i32, %arg2: i32) -> (i32, i32) {
    %c0_i32 = arith.constant 0 : i32
    return %arg2, %arg1 : i32, i32
  }
  func.func @transform_2(%arg0: i32, %arg1: i32, %arg2: i32) -> (i32, i32) {
    %c0_i32 = arith.constant 0 : i32
    %c0_i32_0 = arith.constant 0 : i32
    return %c0_i32, %arg1 : i32, i32
  }
  func.func @transform_3(%arg0: i32, %arg1: i32, %arg2: i32) -> (i32, i32) {
    %c0_i32 = arith.constant 0 : i32
    %c0_i32_0 = arith.constant 0 : i32
    return %c0_i32, %arg1 : i32, i32
  }
  func.func @transform_4(%arg0: i32, %arg1: i32, %arg2: i32) -> (i32, i32) {
    %c0_i32 = arith.constant 0 : i32
    return %arg0, %arg1 : i32, i32
  }
  func.func @transform_5(%arg0: i32, %arg1: i32, %arg2: i32) -> (i32, i32) {
    %c0_i32 = arith.constant 0 : i32
    return %arg0, %arg1 : i32, i32
  }
}

module attributes {stable_mosaic.version = 11 : i64} {
  func.func @_gemm_bn_kernel(%arg0: i32, %arg1: i32, %arg2: i32, %arg3: memref<64x1152xbf16, #tpu.memory_space<vmem>>, %arg4: memref<1152x128xbf16, #tpu.memory_space<vmem>>, %arg5: memref<1x128xf32, #tpu.memory_space<vmem>>, %arg6: memref<1x128xf32, #tpu.memory_space<vmem>>, %arg7: memref<64x128xbf16, #tpu.memory_space<vmem>>, %arg8: memref<64x128xf32, #tpu.memory_space<vmem>>) attributes {dimension_semantics = [#tpu.dimension_semantics<parallel>, #tpu.dimension_semantics<parallel>, #tpu.dimension_semantics<arbitrary>], iteration_bounds = array<i64: 2, 1, 1>, scalar_prefetch = 0 : i64, scratch_operands = 1 : i64, tpu.core_type = #tpu.core_type<tc>, window_params = [{transform_indices = @transform_0, window_bounds = array<i64: 64, 1152>}, {transform_indices = @transform_1, window_bounds = array<i64: 1152, 128>}, {transform_indices = @transform_2, window_bounds = array<i64: 1, 128>}, {transform_indices = @transform_3, window_bounds = array<i64: 1, 128>}, {transform_indices = @transform_4, window_bounds = array<i64: 64, 128>}]} {
    %c0_i32 = arith.constant 0 : i32
    %0 = arith.cmpi eq, %arg2, %c0_i32 : i32
    %1 = arith.extui %0 : i1 to i32
    %c0_i32_0 = arith.constant 0 : i32
    %2 = arith.cmpi ne, %1, %c0_i32_0 : i32
    scf.if %2 {
      %cst_10 = arith.constant 0.000000e+00 : f32
      %12 = vector.broadcast %cst_10 : f32 to vector<64x128xf32>
      %c0_11 = arith.constant 0 : index
      %c0_12 = arith.constant 0 : index
      %13 = vector.load %arg8[%c0_11, %c0_12] : memref<64x128xf32, #tpu.memory_space<vmem>>, vector<64x128xf32>
      tpu.vector_store %arg8[%c0_11, %c0_12], %12 {strides = array<i32>} : memref<64x128xf32, #tpu.memory_space<vmem>>, vector<64x128xf32>,
    } else {
    }
    %c0 = arith.constant 0 : index
    %c0_1 = arith.constant 0 : index
    %3 = vector.load %arg8[%c0, %c0_1] : memref<64x128xf32, #tpu.memory_space<vmem>>, vector<64x128xf32>
    %c0_2 = arith.constant 0 : index
    %c0_3 = arith.constant 0 : index
    %4 = vector.load %arg3[%c0_2, %c0_3] : memref<64x1152xbf16, #tpu.memory_space<vmem>>, vector<64x1152xbf16>
    %c0_4 = arith.constant 0 : index
    %c0_5 = arith.constant 0 : index
    %5 = vector.load %arg4[%c0_4, %c0_5] : memref<1152x128xbf16, #tpu.memory_space<vmem>>, vector<1152x128xbf16>
    %cst = arith.constant dense<0.000000e+00> : vector<64x128xf32>
    %6 = tpu.matmul %4, %5, %cst {dimension_numbers = #tpu.dot_dimension_numbers<[1], [0], [0], [1], [0, 0, 1, 1], [], []>} : vector<64x1152xbf16>, vector<1152x128xbf16>, vector<64x128xf32> -> vector<64x128xf32>
    %7 = arith.addf %3, %6 : vector<64x128xf32>
    %c0_6 = arith.constant 0 : index
    %c0_7 = arith.constant 0 : index
    %8 = vector.load %arg8[%c0_6, %c0_7] : memref<64x128xf32, #tpu.memory_space<vmem>>, vector<64x128xf32>
    tpu.vector_store %arg8[%c0_6, %c0_7], %7 {strides = array<i32>} : memref<64x128xf32, #tpu.memory_space<vmem>>, vector<64x128xf32>,
    %c0_i32_8 = arith.constant 0 : i32
    %9 = arith.cmpi eq, %arg2, %c0_i32_8 : i32
    %10 = arith.extui %9 : i1 to i32
    %c0_i32_9 = arith.constant 0 : i32
    %11 = arith.cmpi ne, %10, %c0_i32_9 : i32
    scf.if %11 {
      %c0_10 = arith.constant 0 : index
      %c0_11 = arith.constant 0 : index
      %12 = vector.load %arg8[%c0_10, %c0_11] : memref<64x128xf32, #tpu.memory_space<vmem>>, vector<64x128xf32>
      %c0_12 = arith.constant 0 : index
      %c0_13 = arith.constant 0 : index
      %13 = vector.load %arg5[%c0_12, %c0_13] : memref<1x128xf32, #tpu.memory_space<vmem>>, vector<1x128xf32>
      %14 = vector.broadcast %13 : vector<1x128xf32> to vector<64x128xf32>
      %15 = arith.mulf %12, %14 : vector<64x128xf32>
      %c0_14 = arith.constant 0 : index
      %c0_15 = arith.constant 0 : index
      %16 = vector.load %arg6[%c0_14, %c0_15] : memref<1x128xf32, #tpu.memory_space<vmem>>, vector<1x128xf32>
      %17 = vector.broadcast %16 : vector<1x128xf32> to vector<64x128xf32>
      %18 = arith.addf %15, %17 : vector<64x128xf32>
      %cst_16 = arith.constant 0.000000e+00 : f32
      %19 = vector.broadcast %cst_16 : f32 to vector<64x128xf32>
      %20 = arith.maximumf %18, %19 : vector<64x128xf32>
      %21 = arith.truncf %20 : vector<64x128xf32> to vector<64x128xbf16>
      %c0_17 = arith.constant 0 : index
      %c0_18 = arith.constant 0 : index
      %22 = vector.load %arg7[%c0_17, %c0_18] : memref<64x128xbf16, #tpu.memory_space<vmem>>, vector<64x128xbf16>
      tpu.vector_store %arg7[%c0_17, %c0_18], %21 {strides = array<i32>} : memref<64x128xbf16, #tpu.memory_space<vmem>>, vector<64x128xbf16>,
    } else {
    }
    return
  }
  func.func @transform_0(%arg0: i32, %arg1: i32, %arg2: i32) -> (i32, i32) {
    %c0_i32 = arith.constant 0 : i32
    return %arg0, %arg2 : i32, i32
  }
  func.func @transform_1(%arg0: i32, %arg1: i32, %arg2: i32) -> (i32, i32) {
    %c0_i32 = arith.constant 0 : i32
    return %arg2, %arg1 : i32, i32
  }
  func.func @transform_2(%arg0: i32, %arg1: i32, %arg2: i32) -> (i32, i32) {
    %c0_i32 = arith.constant 0 : i32
    %c0_i32_0 = arith.constant 0 : i32
    return %c0_i32, %arg1 : i32, i32
  }
  func.func @transform_3(%arg0: i32, %arg1: i32, %arg2: i32) -> (i32, i32) {
    %c0_i32 = arith.constant 0 : i32
    %c0_i32_0 = arith.constant 0 : i32
    return %c0_i32, %arg1 : i32, i32
  }
  func.func @transform_4(%arg0: i32, %arg1: i32, %arg2: i32) -> (i32, i32) {
    %c0_i32 = arith.constant 0 : i32
    return %arg0, %arg1 : i32, i32
  }
}

module attributes {stable_mosaic.version = 11 : i64} {
  func.func @_gemm_bn_kernel(%arg0: i32, %arg1: i32, %arg2: i32, %arg3: memref<16x128xbf16, #tpu.memory_space<vmem>>, %arg4: memref<128x128xbf16, #tpu.memory_space<vmem>>, %arg5: memref<1x128xf32, #tpu.memory_space<vmem>>, %arg6: memref<1x128xf32, #tpu.memory_space<vmem>>, %arg7: memref<16x128xbf16, #tpu.memory_space<vmem>>, %arg8: memref<16x128xf32, #tpu.memory_space<vmem>>) attributes {dimension_semantics = [#tpu.dimension_semantics<parallel>, #tpu.dimension_semantics<parallel>, #tpu.dimension_semantics<arbitrary>], iteration_bounds = array<i64: 2, 1, 1>, scalar_prefetch = 0 : i64, scratch_operands = 1 : i64, tpu.core_type = #tpu.core_type<tc>, window_params = [{transform_indices = @transform_0, window_bounds = array<i64: 16, 128>}, {transform_indices = @transform_1, window_bounds = array<i64: 128, 128>}, {transform_indices = @transform_2, window_bounds = array<i64: 1, 128>}, {transform_indices = @transform_3, window_bounds = array<i64: 1, 128>}, {transform_indices = @transform_4, window_bounds = array<i64: 16, 128>}]} {
    %c0_i32 = arith.constant 0 : i32
    %0 = arith.cmpi eq, %arg2, %c0_i32 : i32
    %1 = arith.extui %0 : i1 to i32
    %c0_i32_0 = arith.constant 0 : i32
    %2 = arith.cmpi ne, %1, %c0_i32_0 : i32
    scf.if %2 {
      %cst_10 = arith.constant 0.000000e+00 : f32
      %12 = vector.broadcast %cst_10 : f32 to vector<16x128xf32>
      %c0_11 = arith.constant 0 : index
      %c0_12 = arith.constant 0 : index
      %13 = vector.load %arg8[%c0_11, %c0_12] : memref<16x128xf32, #tpu.memory_space<vmem>>, vector<16x128xf32>
      tpu.vector_store %arg8[%c0_11, %c0_12], %12 {strides = array<i32>} : memref<16x128xf32, #tpu.memory_space<vmem>>, vector<16x128xf32>,
    } else {
    }
    %c0 = arith.constant 0 : index
    %c0_1 = arith.constant 0 : index
    %3 = vector.load %arg8[%c0, %c0_1] : memref<16x128xf32, #tpu.memory_space<vmem>>, vector<16x128xf32>
    %c0_2 = arith.constant 0 : index
    %c0_3 = arith.constant 0 : index
    %4 = vector.load %arg3[%c0_2, %c0_3] : memref<16x128xbf16, #tpu.memory_space<vmem>>, vector<16x128xbf16>
    %c0_4 = arith.constant 0 : index
    %c0_5 = arith.constant 0 : index
    %5 = vector.load %arg4[%c0_4, %c0_5] : memref<128x128xbf16, #tpu.memory_space<vmem>>, vector<128x128xbf16>
    %cst = arith.constant dense<0.000000e+00> : vector<16x128xf32>
    %6 = tpu.matmul %4, %5, %cst {dimension_numbers = #tpu.dot_dimension_numbers<[1], [0], [0], [1], [0, 0, 1, 1], [], []>} : vector<16x128xbf16>, vector<128x128xbf16>, vector<16x128xf32> -> vector<16x128xf32>
    %7 = arith.addf %3, %6 : vector<16x128xf32>
    %c0_6 = arith.constant 0 : index
    %c0_7 = arith.constant 0 : index
    %8 = vector.load %arg8[%c0_6, %c0_7] : memref<16x128xf32, #tpu.memory_space<vmem>>, vector<16x128xf32>
    tpu.vector_store %arg8[%c0_6, %c0_7], %7 {strides = array<i32>} : memref<16x128xf32, #tpu.memory_space<vmem>>, vector<16x128xf32>,
    %c0_i32_8 = arith.constant 0 : i32
    %9 = arith.cmpi eq, %arg2, %c0_i32_8 : i32
    %10 = arith.extui %9 : i1 to i32
    %c0_i32_9 = arith.constant 0 : i32
    %11 = arith.cmpi ne, %10, %c0_i32_9 : i32
    scf.if %11 {
      %c0_10 = arith.constant 0 : index
      %c0_11 = arith.constant 0 : index
      %12 = vector.load %arg8[%c0_10, %c0_11] : memref<16x128xf32, #tpu.memory_space<vmem>>, vector<16x128xf32>
      %c0_12 = arith.constant 0 : index
      %c0_13 = arith.constant 0 : index
      %13 = vector.load %arg5[%c0_12, %c0_13] : memref<1x128xf32, #tpu.memory_space<vmem>>, vector<1x128xf32>
      %14 = vector.broadcast %13 : vector<1x128xf32> to vector<16x128xf32>
      %15 = arith.mulf %12, %14 : vector<16x128xf32>
      %c0_14 = arith.constant 0 : index
      %c0_15 = arith.constant 0 : index
      %16 = vector.load %arg6[%c0_14, %c0_15] : memref<1x128xf32, #tpu.memory_space<vmem>>, vector<1x128xf32>
      %17 = vector.broadcast %16 : vector<1x128xf32> to vector<16x128xf32>
      %18 = arith.addf %15, %17 : vector<16x128xf32>
      %19 = arith.truncf %18 : vector<16x128xf32> to vector<16x128xbf16>
      %c0_16 = arith.constant 0 : index
      %c0_17 = arith.constant 0 : index
      %20 = vector.load %arg7[%c0_16, %c0_17] : memref<16x128xbf16, #tpu.memory_space<vmem>>, vector<16x128xbf16>
      tpu.vector_store %arg7[%c0_16, %c0_17], %19 {strides = array<i32>} : memref<16x128xbf16, #tpu.memory_space<vmem>>, vector<16x128xbf16>,
    } else {
    }
    return
  }
  func.func @transform_0(%arg0: i32, %arg1: i32, %arg2: i32) -> (i32, i32) {
    %c0_i32 = arith.constant 0 : i32
    return %arg0, %arg2 : i32, i32
  }
  func.func @transform_1(%arg0: i32, %arg1: i32, %arg2: i32) -> (i32, i32) {
    %c0_i32 = arith.constant 0 : i32
    return %arg2, %arg1 : i32, i32
  }
  func.func @transform_2(%arg0: i32, %arg1: i32, %arg2: i32) -> (i32, i32) {
    %c0_i32 = arith.constant 0 : i32
    %c0_i32_0 = arith.constant 0 : i32
    return %c0_i32, %arg1 : i32, i32
  }
  func.func @transform_3(%arg0: i32, %arg1: i32, %arg2: i32) -> (i32, i32) {
    %c0_i32 = arith.constant 0 : i32
    %c0_i32_0 = arith.constant 0 : i32
    return %c0_i32, %arg1 : i32, i32
  }
  func.func @transform_4(%arg0: i32, %arg1: i32, %arg2: i32) -> (i32, i32) {
    %c0_i32 = arith.constant 0 : i32
    return %arg0, %arg1 : i32, i32
  }
}

module attributes {stable_mosaic.version = 11 : i64} {
  func.func @_gemm_bn_kernel(%arg0: i32, %arg1: i32, %arg2: i32, %arg3: memref<16x1152xbf16, #tpu.memory_space<vmem>>, %arg4: memref<1152x128xbf16, #tpu.memory_space<vmem>>, %arg5: memref<1x128xf32, #tpu.memory_space<vmem>>, %arg6: memref<1x128xf32, #tpu.memory_space<vmem>>, %arg7: memref<16x128xbf16, #tpu.memory_space<vmem>>, %arg8: memref<16x128xf32, #tpu.memory_space<vmem>>) attributes {dimension_semantics = [#tpu.dimension_semantics<parallel>, #tpu.dimension_semantics<parallel>, #tpu.dimension_semantics<arbitrary>], iteration_bounds = array<i64: 2, 1, 1>, scalar_prefetch = 0 : i64, scratch_operands = 1 : i64, tpu.core_type = #tpu.core_type<tc>, window_params = [{transform_indices = @transform_0, window_bounds = array<i64: 16, 1152>}, {transform_indices = @transform_1, window_bounds = array<i64: 1152, 128>}, {transform_indices = @transform_2, window_bounds = array<i64: 1, 128>}, {transform_indices = @transform_3, window_bounds = array<i64: 1, 128>}, {transform_indices = @transform_4, window_bounds = array<i64: 16, 128>}]} {
    %c0_i32 = arith.constant 0 : i32
    %0 = arith.cmpi eq, %arg2, %c0_i32 : i32
    %1 = arith.extui %0 : i1 to i32
    %c0_i32_0 = arith.constant 0 : i32
    %2 = arith.cmpi ne, %1, %c0_i32_0 : i32
    scf.if %2 {
      %cst_10 = arith.constant 0.000000e+00 : f32
      %12 = vector.broadcast %cst_10 : f32 to vector<16x128xf32>
      %c0_11 = arith.constant 0 : index
      %c0_12 = arith.constant 0 : index
      %13 = vector.load %arg8[%c0_11, %c0_12] : memref<16x128xf32, #tpu.memory_space<vmem>>, vector<16x128xf32>
      tpu.vector_store %arg8[%c0_11, %c0_12], %12 {strides = array<i32>} : memref<16x128xf32, #tpu.memory_space<vmem>>, vector<16x128xf32>,
    } else {
    }
    %c0 = arith.constant 0 : index
    %c0_1 = arith.constant 0 : index
    %3 = vector.load %arg8[%c0, %c0_1] : memref<16x128xf32, #tpu.memory_space<vmem>>, vector<16x128xf32>
    %c0_2 = arith.constant 0 : index
    %c0_3 = arith.constant 0 : index
    %4 = vector.load %arg3[%c0_2, %c0_3] : memref<16x1152xbf16, #tpu.memory_space<vmem>>, vector<16x1152xbf16>
    %c0_4 = arith.constant 0 : index
    %c0_5 = arith.constant 0 : index
    %5 = vector.load %arg4[%c0_4, %c0_5] : memref<1152x128xbf16, #tpu.memory_space<vmem>>, vector<1152x128xbf16>
    %cst = arith.constant dense<0.000000e+00> : vector<16x128xf32>
    %6 = tpu.matmul %4, %5, %cst {dimension_numbers = #tpu.dot_dimension_numbers<[1], [0], [0], [1], [0, 0, 1, 1], [], []>} : vector<16x1152xbf16>, vector<1152x128xbf16>, vector<16x128xf32> -> vector<16x128xf32>
    %7 = arith.addf %3, %6 : vector<16x128xf32>
    %c0_6 = arith.constant 0 : index
    %c0_7 = arith.constant 0 : index
    %8 = vector.load %arg8[%c0_6, %c0_7] : memref<16x128xf32, #tpu.memory_space<vmem>>, vector<16x128xf32>
    tpu.vector_store %arg8[%c0_6, %c0_7], %7 {strides = array<i32>} : memref<16x128xf32, #tpu.memory_space<vmem>>, vector<16x128xf32>,
    %c0_i32_8 = arith.constant 0 : i32
    %9 = arith.cmpi eq, %arg2, %c0_i32_8 : i32
    %10 = arith.extui %9 : i1 to i32
    %c0_i32_9 = arith.constant 0 : i32
    %11 = arith.cmpi ne, %10, %c0_i32_9 : i32
    scf.if %11 {
      %c0_10 = arith.constant 0 : index
      %c0_11 = arith.constant 0 : index
      %12 = vector.load %arg8[%c0_10, %c0_11] : memref<16x128xf32, #tpu.memory_space<vmem>>, vector<16x128xf32>
      %c0_12 = arith.constant 0 : index
      %c0_13 = arith.constant 0 : index
      %13 = vector.load %arg5[%c0_12, %c0_13] : memref<1x128xf32, #tpu.memory_space<vmem>>, vector<1x128xf32>
      %14 = vector.broadcast %13 : vector<1x128xf32> to vector<16x128xf32>
      %15 = arith.mulf %12, %14 : vector<16x128xf32>
      %c0_14 = arith.constant 0 : index
      %c0_15 = arith.constant 0 : index
      %16 = vector.load %arg6[%c0_14, %c0_15] : memref<1x128xf32, #tpu.memory_space<vmem>>, vector<1x128xf32>
      %17 = vector.broadcast %16 : vector<1x128xf32> to vector<16x128xf32>
      %18 = arith.addf %15, %17 : vector<16x128xf32>
      %cst_16 = arith.constant 0.000000e+00 : f32
      %19 = vector.broadcast %cst_16 : f32 to vector<16x128xf32>
      %20 = arith.maximumf %18, %19 : vector<16x128xf32>
      %21 = arith.truncf %20 : vector<16x128xf32> to vector<16x128xbf16>
      %c0_17 = arith.constant 0 : index
      %c0_18 = arith.constant 0 : index
      %22 = vector.load %arg7[%c0_17, %c0_18] : memref<16x128xbf16, #tpu.memory_space<vmem>>, vector<16x128xbf16>
      tpu.vector_store %arg7[%c0_17, %c0_18], %21 {strides = array<i32>} : memref<16x128xbf16, #tpu.memory_space<vmem>>, vector<16x128xbf16>,
    } else {
    }
    return
  }
  func.func @transform_0(%arg0: i32, %arg1: i32, %arg2: i32) -> (i32, i32) {
    %c0_i32 = arith.constant 0 : i32
    return %arg0, %arg2 : i32, i32
  }
  func.func @transform_1(%arg0: i32, %arg1: i32, %arg2: i32) -> (i32, i32) {
    %c0_i32 = arith.constant 0 : i32
    return %arg2, %arg1 : i32, i32
  }
  func.func @transform_2(%arg0: i32, %arg1: i32, %arg2: i32) -> (i32, i32) {
    %c0_i32 = arith.constant 0 : i32
    %c0_i32_0 = arith.constant 0 : i32
    return %c0_i32, %arg1 : i32, i32
  }
  func.func @transform_3(%arg0: i32, %arg1: i32, %arg2: i32) -> (i32, i32) {
    %c0_i32 = arith.constant 0 : i32
    %c0_i32_0 = arith.constant 0 : i32
    return %c0_i32, %arg1 : i32, i32
  }
  func.func @transform_4(%arg0: i32, %arg1: i32, %arg2: i32) -> (i32, i32) {
    %c0_i32 = arith.constant 0 : i32
    return %arg0, %arg1 : i32, i32
  }
}

module attributes {stable_mosaic.version = 11 : i64} {
  func.func @_gemm_bn_kernel(%arg0: i32, %arg1: i32, %arg2: i32, %arg3: memref<16x1152xbf16, #tpu.memory_space<vmem>>, %arg4: memref<1152x128xbf16, #tpu.memory_space<vmem>>, %arg5: memref<1x128xf32, #tpu.memory_space<vmem>>, %arg6: memref<1x128xf32, #tpu.memory_space<vmem>>, %arg7: memref<16x128xbf16, #tpu.memory_space<vmem>>, %arg8: memref<16x128xbf16, #tpu.memory_space<vmem>>, %arg9: memref<16x128xf32, #tpu.memory_space<vmem>>) attributes {dimension_semantics = [#tpu.dimension_semantics<parallel>, #tpu.dimension_semantics<parallel>, #tpu.dimension_semantics<arbitrary>], iteration_bounds = array<i64: 2, 1, 1>, scalar_prefetch = 0 : i64, scratch_operands = 1 : i64, tpu.core_type = #tpu.core_type<tc>, window_params = [{transform_indices = @transform_0, window_bounds = array<i64: 16, 1152>}, {transform_indices = @transform_1, window_bounds = array<i64: 1152, 128>}, {transform_indices = @transform_2, window_bounds = array<i64: 1, 128>}, {transform_indices = @transform_3, window_bounds = array<i64: 1, 128>}, {transform_indices = @transform_4, window_bounds = array<i64: 16, 128>}, {transform_indices = @transform_5, window_bounds = array<i64: 16, 128>}]} {
    %c0_i32 = arith.constant 0 : i32
    %0 = arith.cmpi eq, %arg2, %c0_i32 : i32
    %1 = arith.extui %0 : i1 to i32
    %c0_i32_0 = arith.constant 0 : i32
    %2 = arith.cmpi ne, %1, %c0_i32_0 : i32
    scf.if %2 {
      %cst_10 = arith.constant 0.000000e+00 : f32
      %12 = vector.broadcast %cst_10 : f32 to vector<16x128xf32>
      %c0_11 = arith.constant 0 : index
      %c0_12 = arith.constant 0 : index
      %13 = vector.load %arg9[%c0_11, %c0_12] : memref<16x128xf32, #tpu.memory_space<vmem>>, vector<16x128xf32>
      tpu.vector_store %arg9[%c0_11, %c0_12], %12 {strides = array<i32>} : memref<16x128xf32, #tpu.memory_space<vmem>>, vector<16x128xf32>,
    } else {
    }
    %c0 = arith.constant 0 : index
    %c0_1 = arith.constant 0 : index
    %3 = vector.load %arg9[%c0, %c0_1] : memref<16x128xf32, #tpu.memory_space<vmem>>, vector<16x128xf32>
    %c0_2 = arith.constant 0 : index
    %c0_3 = arith.constant 0 : index
    %4 = vector.load %arg3[%c0_2, %c0_3] : memref<16x1152xbf16, #tpu.memory_space<vmem>>, vector<16x1152xbf16>
    %c0_4 = arith.constant 0 : index
    %c0_5 = arith.constant 0 : index
    %5 = vector.load %arg4[%c0_4, %c0_5] : memref<1152x128xbf16, #tpu.memory_space<vmem>>, vector<1152x128xbf16>
    %cst = arith.constant dense<0.000000e+00> : vector<16x128xf32>
    %6 = tpu.matmul %4, %5, %cst {dimension_numbers = #tpu.dot_dimension_numbers<[1], [0], [0], [1], [0, 0, 1, 1], [], []>} : vector<16x1152xbf16>, vector<1152x128xbf16>, vector<16x128xf32> -> vector<16x128xf32>
    %7 = arith.addf %3, %6 : vector<16x128xf32>
    %c0_6 = arith.constant 0 : index
    %c0_7 = arith.constant 0 : index
    %8 = vector.load %arg9[%c0_6, %c0_7] : memref<16x128xf32, #tpu.memory_space<vmem>>, vector<16x128xf32>
    tpu.vector_store %arg9[%c0_6, %c0_7], %7 {strides = array<i32>} : memref<16x128xf32, #tpu.memory_space<vmem>>, vector<16x128xf32>,
    %c0_i32_8 = arith.constant 0 : i32
    %9 = arith.cmpi eq, %arg2, %c0_i32_8 : i32
    %10 = arith.extui %9 : i1 to i32
    %c0_i32_9 = arith.constant 0 : i32
    %11 = arith.cmpi ne, %10, %c0_i32_9 : i32
    scf.if %11 {
      %c0_10 = arith.constant 0 : index
      %c0_11 = arith.constant 0 : index
      %12 = vector.load %arg9[%c0_10, %c0_11] : memref<16x128xf32, #tpu.memory_space<vmem>>, vector<16x128xf32>
      %c0_12 = arith.constant 0 : index
      %c0_13 = arith.constant 0 : index
      %13 = vector.load %arg5[%c0_12, %c0_13] : memref<1x128xf32, #tpu.memory_space<vmem>>, vector<1x128xf32>
      %14 = vector.broadcast %13 : vector<1x128xf32> to vector<16x128xf32>
      %15 = arith.mulf %12, %14 : vector<16x128xf32>
      %c0_14 = arith.constant 0 : index
      %c0_15 = arith.constant 0 : index
      %16 = vector.load %arg6[%c0_14, %c0_15] : memref<1x128xf32, #tpu.memory_space<vmem>>, vector<1x128xf32>
      %17 = vector.broadcast %16 : vector<1x128xf32> to vector<16x128xf32>
      %18 = arith.addf %15, %17 : vector<16x128xf32>
      %c0_16 = arith.constant 0 : index
      %c0_17 = arith.constant 0 : index
      %19 = vector.load %arg7[%c0_16, %c0_17] : memref<16x128xbf16, #tpu.memory_space<vmem>>, vector<16x128xbf16>
      %20 = arith.extf %19 : vector<16x128xbf16> to vector<16x128xf32>
      %21 = arith.addf %18, %20 : vector<16x128xf32>
      %cst_18 = arith.constant 0.000000e+00 : f32
      %22 = vector.broadcast %cst_18 : f32 to vector<16x128xf32>
      %23 = arith.maximumf %21, %22 : vector<16x128xf32>
      %24 = arith.truncf %23 : vector<16x128xf32> to vector<16x128xbf16>
      %c0_19 = arith.constant 0 : index
      %c0_20 = arith.constant 0 : index
      %25 = vector.load %arg8[%c0_19, %c0_20] : memref<16x128xbf16, #tpu.memory_space<vmem>>, vector<16x128xbf16>
      tpu.vector_store %arg8[%c0_19, %c0_20], %24 {strides = array<i32>} : memref<16x128xbf16, #tpu.memory_space<vmem>>, vector<16x128xbf16>,
    } else {
    }
    return
  }
  func.func @transform_0(%arg0: i32, %arg1: i32, %arg2: i32) -> (i32, i32) {
    %c0_i32 = arith.constant 0 : i32
    return %arg0, %arg2 : i32, i32
  }
  func.func @transform_1(%arg0: i32, %arg1: i32, %arg2: i32) -> (i32, i32) {
    %c0_i32 = arith.constant 0 : i32
    return %arg2, %arg1 : i32, i32
  }
  func.func @transform_2(%arg0: i32, %arg1: i32, %arg2: i32) -> (i32, i32) {
    %c0_i32 = arith.constant 0 : i32
    %c0_i32_0 = arith.constant 0 : i32
    return %c0_i32, %arg1 : i32, i32
  }
  func.func @transform_3(%arg0: i32, %arg1: i32, %arg2: i32) -> (i32, i32) {
    %c0_i32 = arith.constant 0 : i32
    %c0_i32_0 = arith.constant 0 : i32
    return %c0_i32, %arg1 : i32, i32
  }
  func.func @transform_4(%arg0: i32, %arg1: i32, %arg2: i32) -> (i32, i32) {
    %c0_i32 = arith.constant 0 : i32
    return %arg0, %arg1 : i32, i32
  }
  func.func @transform_5(%arg0: i32, %arg1: i32, %arg2: i32) -> (i32, i32) {
    %c0_i32 = arith.constant 0 : i32
    return %arg0, %arg1 : i32, i32
  }
}

module attributes {stable_mosaic.version = 11 : i64} {
  func.func @_gemm_bn_kernel(%arg0: i32, %arg1: i32, %arg2: i32, %arg3: memref<8x1152xbf16, #tpu.memory_space<vmem>>, %arg4: memref<1152x128xbf16, #tpu.memory_space<vmem>>, %arg5: memref<1x128xf32, #tpu.memory_space<vmem>>, %arg6: memref<1x128xf32, #tpu.memory_space<vmem>>, %arg7: memref<8x128xbf16, #tpu.memory_space<vmem>>, %arg8: memref<8x128xf32, #tpu.memory_space<vmem>>) attributes {dimension_semantics = [#tpu.dimension_semantics<parallel>, #tpu.dimension_semantics<parallel>, #tpu.dimension_semantics<arbitrary>], iteration_bounds = array<i64: 1, 1, 1>, scalar_prefetch = 0 : i64, scratch_operands = 1 : i64, tpu.core_type = #tpu.core_type<tc>, window_params = [{transform_indices = @transform_0, window_bounds = array<i64: 8, 1152>}, {transform_indices = @transform_1, window_bounds = array<i64: 1152, 128>}, {transform_indices = @transform_2, window_bounds = array<i64: 1, 128>}, {transform_indices = @transform_3, window_bounds = array<i64: 1, 128>}, {transform_indices = @transform_4, window_bounds = array<i64: 8, 128>}]} {
    %c0_i32 = arith.constant 0 : i32
    %0 = arith.cmpi eq, %arg2, %c0_i32 : i32
    %1 = arith.extui %0 : i1 to i32
    %c0_i32_0 = arith.constant 0 : i32
    %2 = arith.cmpi ne, %1, %c0_i32_0 : i32
    scf.if %2 {
      %cst_10 = arith.constant 0.000000e+00 : f32
      %12 = vector.broadcast %cst_10 : f32 to vector<8x128xf32>
      %c0_11 = arith.constant 0 : index
      %c0_12 = arith.constant 0 : index
      %13 = vector.load %arg8[%c0_11, %c0_12] : memref<8x128xf32, #tpu.memory_space<vmem>>, vector<8x128xf32>
      tpu.vector_store %arg8[%c0_11, %c0_12], %12 {strides = array<i32>} : memref<8x128xf32, #tpu.memory_space<vmem>>, vector<8x128xf32>,
    } else {
    }
    %c0 = arith.constant 0 : index
    %c0_1 = arith.constant 0 : index
    %3 = vector.load %arg8[%c0, %c0_1] : memref<8x128xf32, #tpu.memory_space<vmem>>, vector<8x128xf32>
    %c0_2 = arith.constant 0 : index
    %c0_3 = arith.constant 0 : index
    %4 = vector.load %arg3[%c0_2, %c0_3] : memref<8x1152xbf16, #tpu.memory_space<vmem>>, vector<8x1152xbf16>
    %c0_4 = arith.constant 0 : index
    %c0_5 = arith.constant 0 : index
    %5 = vector.load %arg4[%c0_4, %c0_5] : memref<1152x128xbf16, #tpu.memory_space<vmem>>, vector<1152x128xbf16>
    %cst = arith.constant dense<0.000000e+00> : vector<8x128xf32>
    %6 = tpu.matmul %4, %5, %cst {dimension_numbers = #tpu.dot_dimension_numbers<[1], [0], [0], [1], [0, 0, 1, 1], [], []>} : vector<8x1152xbf16>, vector<1152x128xbf16>, vector<8x128xf32> -> vector<8x128xf32>
    %7 = arith.addf %3, %6 : vector<8x128xf32>
    %c0_6 = arith.constant 0 : index
    %c0_7 = arith.constant 0 : index
    %8 = vector.load %arg8[%c0_6, %c0_7] : memref<8x128xf32, #tpu.memory_space<vmem>>, vector<8x128xf32>
    tpu.vector_store %arg8[%c0_6, %c0_7], %7 {strides = array<i32>} : memref<8x128xf32, #tpu.memory_space<vmem>>, vector<8x128xf32>,
    %c0_i32_8 = arith.constant 0 : i32
    %9 = arith.cmpi eq, %arg2, %c0_i32_8 : i32
    %10 = arith.extui %9 : i1 to i32
    %c0_i32_9 = arith.constant 0 : i32
    %11 = arith.cmpi ne, %10, %c0_i32_9 : i32
    scf.if %11 {
      %c0_10 = arith.constant 0 : index
      %c0_11 = arith.constant 0 : index
      %12 = vector.load %arg8[%c0_10, %c0_11] : memref<8x128xf32, #tpu.memory_space<vmem>>, vector<8x128xf32>
      %c0_12 = arith.constant 0 : index
      %c0_13 = arith.constant 0 : index
      %13 = vector.load %arg5[%c0_12, %c0_13] : memref<1x128xf32, #tpu.memory_space<vmem>>, vector<1x128xf32>
      %14 = vector.broadcast %13 : vector<1x128xf32> to vector<8x128xf32>
      %15 = arith.mulf %12, %14 : vector<8x128xf32>
      %c0_14 = arith.constant 0 : index
      %c0_15 = arith.constant 0 : index
      %16 = vector.load %arg6[%c0_14, %c0_15] : memref<1x128xf32, #tpu.memory_space<vmem>>, vector<1x128xf32>
      %17 = vector.broadcast %16 : vector<1x128xf32> to vector<8x128xf32>
      %18 = arith.addf %15, %17 : vector<8x128xf32>
      %cst_16 = arith.constant 0.000000e+00 : f32
      %19 = vector.broadcast %cst_16 : f32 to vector<8x128xf32>
      %20 = arith.maximumf %18, %19 : vector<8x128xf32>
      %21 = arith.truncf %20 : vector<8x128xf32> to vector<8x128xbf16>
      %c0_17 = arith.constant 0 : index
      %c0_18 = arith.constant 0 : index
      %22 = vector.load %arg7[%c0_17, %c0_18] : memref<8x128xbf16, #tpu.memory_space<vmem>>, vector<8x128xbf16>
      tpu.vector_store %arg7[%c0_17, %c0_18], %21 {strides = array<i32>} : memref<8x128xbf16, #tpu.memory_space<vmem>>, vector<8x128xbf16>,
    } else {
    }
    return
  }
  func.func @transform_0(%arg0: i32, %arg1: i32, %arg2: i32) -> (i32, i32) {
    %c0_i32 = arith.constant 0 : i32
    return %arg0, %arg2 : i32, i32
  }
  func.func @transform_1(%arg0: i32, %arg1: i32, %arg2: i32) -> (i32, i32) {
    %c0_i32 = arith.constant 0 : i32
    return %arg2, %arg1 : i32, i32
  }
  func.func @transform_2(%arg0: i32, %arg1: i32, %arg2: i32) -> (i32, i32) {
    %c0_i32 = arith.constant 0 : i32
    %c0_i32_0 = arith.constant 0 : i32
    return %c0_i32, %arg1 : i32, i32
  }
  func.func @transform_3(%arg0: i32, %arg1: i32, %arg2: i32) -> (i32, i32) {
    %c0_i32 = arith.constant 0 : i32
    %c0_i32_0 = arith.constant 0 : i32
    return %c0_i32, %arg1 : i32, i32
  }
  func.func @transform_4(%arg0: i32, %arg1: i32, %arg2: i32) -> (i32, i32) {
    %c0_i32 = arith.constant 0 : i32
    return %arg0, %arg1 : i32, i32
  }
}

module attributes {stable_mosaic.version = 11 : i64} {
  func.func @_gemm_bn_kernel(%arg0: i32, %arg1: i32, %arg2: i32, %arg3: memref<8x1152xbf16, #tpu.memory_space<vmem>>, %arg4: memref<1152x128xbf16, #tpu.memory_space<vmem>>, %arg5: memref<1x128xf32, #tpu.memory_space<vmem>>, %arg6: memref<1x128xf32, #tpu.memory_space<vmem>>, %arg7: memref<8x128xbf16, #tpu.memory_space<vmem>>, %arg8: memref<8x128xbf16, #tpu.memory_space<vmem>>, %arg9: memref<8x128xf32, #tpu.memory_space<vmem>>) attributes {dimension_semantics = [#tpu.dimension_semantics<parallel>, #tpu.dimension_semantics<parallel>, #tpu.dimension_semantics<arbitrary>], iteration_bounds = array<i64: 1, 1, 1>, scalar_prefetch = 0 : i64, scratch_operands = 1 : i64, tpu.core_type = #tpu.core_type<tc>, window_params = [{transform_indices = @transform_0, window_bounds = array<i64: 8, 1152>}, {transform_indices = @transform_1, window_bounds = array<i64: 1152, 128>}, {transform_indices = @transform_2, window_bounds = array<i64: 1, 128>}, {transform_indices = @transform_3, window_bounds = array<i64: 1, 128>}, {transform_indices = @transform_4, window_bounds = array<i64: 8, 128>}, {transform_indices = @transform_5, window_bounds = array<i64: 8, 128>}]} {
    %c0_i32 = arith.constant 0 : i32
    %0 = arith.cmpi eq, %arg2, %c0_i32 : i32
    %1 = arith.extui %0 : i1 to i32
    %c0_i32_0 = arith.constant 0 : i32
    %2 = arith.cmpi ne, %1, %c0_i32_0 : i32
    scf.if %2 {
      %cst_10 = arith.constant 0.000000e+00 : f32
      %12 = vector.broadcast %cst_10 : f32 to vector<8x128xf32>
      %c0_11 = arith.constant 0 : index
      %c0_12 = arith.constant 0 : index
      %13 = vector.load %arg9[%c0_11, %c0_12] : memref<8x128xf32, #tpu.memory_space<vmem>>, vector<8x128xf32>
      tpu.vector_store %arg9[%c0_11, %c0_12], %12 {strides = array<i32>} : memref<8x128xf32, #tpu.memory_space<vmem>>, vector<8x128xf32>,
    } else {
    }
    %c0 = arith.constant 0 : index
    %c0_1 = arith.constant 0 : index
    %3 = vector.load %arg9[%c0, %c0_1] : memref<8x128xf32, #tpu.memory_space<vmem>>, vector<8x128xf32>
    %c0_2 = arith.constant 0 : index
    %c0_3 = arith.constant 0 : index
    %4 = vector.load %arg3[%c0_2, %c0_3] : memref<8x1152xbf16, #tpu.memory_space<vmem>>, vector<8x1152xbf16>
    %c0_4 = arith.constant 0 : index
    %c0_5 = arith.constant 0 : index
    %5 = vector.load %arg4[%c0_4, %c0_5] : memref<1152x128xbf16, #tpu.memory_space<vmem>>, vector<1152x128xbf16>
    %cst = arith.constant dense<0.000000e+00> : vector<8x128xf32>
    %6 = tpu.matmul %4, %5, %cst {dimension_numbers = #tpu.dot_dimension_numbers<[1], [0], [0], [1], [0, 0, 1, 1], [], []>} : vector<8x1152xbf16>, vector<1152x128xbf16>, vector<8x128xf32> -> vector<8x128xf32>
    %7 = arith.addf %3, %6 : vector<8x128xf32>
    %c0_6 = arith.constant 0 : index
    %c0_7 = arith.constant 0 : index
    %8 = vector.load %arg9[%c0_6, %c0_7] : memref<8x128xf32, #tpu.memory_space<vmem>>, vector<8x128xf32>
    tpu.vector_store %arg9[%c0_6, %c0_7], %7 {strides = array<i32>} : memref<8x128xf32, #tpu.memory_space<vmem>>, vector<8x128xf32>,
    %c0_i32_8 = arith.constant 0 : i32
    %9 = arith.cmpi eq, %arg2, %c0_i32_8 : i32
    %10 = arith.extui %9 : i1 to i32
    %c0_i32_9 = arith.constant 0 : i32
    %11 = arith.cmpi ne, %10, %c0_i32_9 : i32
    scf.if %11 {
      %c0_10 = arith.constant 0 : index
      %c0_11 = arith.constant 0 : index
      %12 = vector.load %arg9[%c0_10, %c0_11] : memref<8x128xf32, #tpu.memory_space<vmem>>, vector<8x128xf32>
      %c0_12 = arith.constant 0 : index
      %c0_13 = arith.constant 0 : index
      %13 = vector.load %arg5[%c0_12, %c0_13] : memref<1x128xf32, #tpu.memory_space<vmem>>, vector<1x128xf32>
      %14 = vector.broadcast %13 : vector<1x128xf32> to vector<8x128xf32>
      %15 = arith.mulf %12, %14 : vector<8x128xf32>
      %c0_14 = arith.constant 0 : index
      %c0_15 = arith.constant 0 : index
      %16 = vector.load %arg6[%c0_14, %c0_15] : memref<1x128xf32, #tpu.memory_space<vmem>>, vector<1x128xf32>
      %17 = vector.broadcast %16 : vector<1x128xf32> to vector<8x128xf32>
      %18 = arith.addf %15, %17 : vector<8x128xf32>
      %c0_16 = arith.constant 0 : index
      %c0_17 = arith.constant 0 : index
      %19 = vector.load %arg7[%c0_16, %c0_17] : memref<8x128xbf16, #tpu.memory_space<vmem>>, vector<8x128xbf16>
      %20 = arith.extf %19 : vector<8x128xbf16> to vector<8x128xf32>
      %21 = arith.addf %18, %20 : vector<8x128xf32>
      %cst_18 = arith.constant 0.000000e+00 : f32
      %22 = vector.broadcast %cst_18 : f32 to vector<8x128xf32>
      %23 = arith.maximumf %21, %22 : vector<8x128xf32>
      %24 = arith.truncf %23 : vector<8x128xf32> to vector<8x128xbf16>
      %c0_19 = arith.constant 0 : index
      %c0_20 = arith.constant 0 : index
      %25 = vector.load %arg8[%c0_19, %c0_20] : memref<8x128xbf16, #tpu.memory_space<vmem>>, vector<8x128xbf16>
      tpu.vector_store %arg8[%c0_19, %c0_20], %24 {strides = array<i32>} : memref<8x128xbf16, #tpu.memory_space<vmem>>, vector<8x128xbf16>,
    } else {
    }
    return
  }
  func.func @transform_0(%arg0: i32, %arg1: i32, %arg2: i32) -> (i32, i32) {
    %c0_i32 = arith.constant 0 : i32
    return %arg0, %arg2 : i32, i32
  }
  func.func @transform_1(%arg0: i32, %arg1: i32, %arg2: i32) -> (i32, i32) {
    %c0_i32 = arith.constant 0 : i32
    return %arg2, %arg1 : i32, i32
  }
  func.func @transform_2(%arg0: i32, %arg1: i32, %arg2: i32) -> (i32, i32) {
    %c0_i32 = arith.constant 0 : i32
    %c0_i32_0 = arith.constant 0 : i32
    return %c0_i32, %arg1 : i32, i32
  }
  func.func @transform_3(%arg0: i32, %arg1: i32, %arg2: i32) -> (i32, i32) {
    %c0_i32 = arith.constant 0 : i32
    %c0_i32_0 = arith.constant 0 : i32
    return %c0_i32, %arg1 : i32, i32
  }
  func.func @transform_4(%arg0: i32, %arg1: i32, %arg2: i32) -> (i32, i32) {
    %c0_i32 = arith.constant 0 : i32
    return %arg0, %arg1 : i32, i32
  }
  func.func @transform_5(%arg0: i32, %arg1: i32, %arg2: i32) -> (i32, i32) {
    %c0_i32 = arith.constant 0 : i32
    return %arg0, %arg1 : i32, i32
  }
}

module attributes {stable_mosaic.version = 11 : i64} {
  func.func @_gemm_bn_kernel(%arg0: i32, %arg1: i32, %arg2: i32, %arg3: memref<8x128xbf16, #tpu.memory_space<vmem>>, %arg4: memref<128x128xbf16, #tpu.memory_space<vmem>>, %arg5: memref<1x128xf32, #tpu.memory_space<vmem>>, %arg6: memref<1x128xf32, #tpu.memory_space<vmem>>, %arg7: memref<8x128xbf16, #tpu.memory_space<vmem>>, %arg8: memref<8x128xf32, #tpu.memory_space<vmem>>) attributes {dimension_semantics = [#tpu.dimension_semantics<parallel>, #tpu.dimension_semantics<parallel>, #tpu.dimension_semantics<arbitrary>], iteration_bounds = array<i64: 1, 1, 1>, scalar_prefetch = 0 : i64, scratch_operands = 1 : i64, tpu.core_type = #tpu.core_type<tc>, window_params = [{transform_indices = @transform_0, window_bounds = array<i64: 8, 128>}, {transform_indices = @transform_1, window_bounds = array<i64: 128, 128>}, {transform_indices = @transform_2, window_bounds = array<i64: 1, 128>}, {transform_indices = @transform_3, window_bounds = array<i64: 1, 128>}, {transform_indices = @transform_4, window_bounds = array<i64: 8, 128>}]} {
    %c0_i32 = arith.constant 0 : i32
    %0 = arith.cmpi eq, %arg2, %c0_i32 : i32
    %1 = arith.extui %0 : i1 to i32
    %c0_i32_0 = arith.constant 0 : i32
    %2 = arith.cmpi ne, %1, %c0_i32_0 : i32
    scf.if %2 {
      %cst_10 = arith.constant 0.000000e+00 : f32
      %12 = vector.broadcast %cst_10 : f32 to vector<8x128xf32>
      %c0_11 = arith.constant 0 : index
      %c0_12 = arith.constant 0 : index
      %13 = vector.load %arg8[%c0_11, %c0_12] : memref<8x128xf32, #tpu.memory_space<vmem>>, vector<8x128xf32>
      tpu.vector_store %arg8[%c0_11, %c0_12], %12 {strides = array<i32>} : memref<8x128xf32, #tpu.memory_space<vmem>>, vector<8x128xf32>,
    } else {
    }
    %c0 = arith.constant 0 : index
    %c0_1 = arith.constant 0 : index
    %3 = vector.load %arg8[%c0, %c0_1] : memref<8x128xf32, #tpu.memory_space<vmem>>, vector<8x128xf32>
    %c0_2 = arith.constant 0 : index
    %c0_3 = arith.constant 0 : index
    %4 = vector.load %arg3[%c0_2, %c0_3] : memref<8x128xbf16, #tpu.memory_space<vmem>>, vector<8x128xbf16>
    %c0_4 = arith.constant 0 : index
    %c0_5 = arith.constant 0 : index
    %5 = vector.load %arg4[%c0_4, %c0_5] : memref<128x128xbf16, #tpu.memory_space<vmem>>, vector<128x128xbf16>
    %cst = arith.constant dense<0.000000e+00> : vector<8x128xf32>
    %6 = tpu.matmul %4, %5, %cst {dimension_numbers = #tpu.dot_dimension_numbers<[1], [0], [0], [1], [0, 0, 1, 1], [], []>} : vector<8x128xbf16>, vector<128x128xbf16>, vector<8x128xf32> -> vector<8x128xf32>
    %7 = arith.addf %3, %6 : vector<8x128xf32>
    %c0_6 = arith.constant 0 : index
    %c0_7 = arith.constant 0 : index
    %8 = vector.load %arg8[%c0_6, %c0_7] : memref<8x128xf32, #tpu.memory_space<vmem>>, vector<8x128xf32>
    tpu.vector_store %arg8[%c0_6, %c0_7], %7 {strides = array<i32>} : memref<8x128xf32, #tpu.memory_space<vmem>>, vector<8x128xf32>,
    %c0_i32_8 = arith.constant 0 : i32
    %9 = arith.cmpi eq, %arg2, %c0_i32_8 : i32
    %10 = arith.extui %9 : i1 to i32
    %c0_i32_9 = arith.constant 0 : i32
    %11 = arith.cmpi ne, %10, %c0_i32_9 : i32
    scf.if %11 {
      %c0_10 = arith.constant 0 : index
      %c0_11 = arith.constant 0 : index
      %12 = vector.load %arg8[%c0_10, %c0_11] : memref<8x128xf32, #tpu.memory_space<vmem>>, vector<8x128xf32>
      %c0_12 = arith.constant 0 : index
      %c0_13 = arith.constant 0 : index
      %13 = vector.load %arg5[%c0_12, %c0_13] : memref<1x128xf32, #tpu.memory_space<vmem>>, vector<1x128xf32>
      %14 = vector.broadcast %13 : vector<1x128xf32> to vector<8x128xf32>
      %15 = arith.mulf %12, %14 : vector<8x128xf32>
      %c0_14 = arith.constant 0 : index
      %c0_15 = arith.constant 0 : index
      %16 = vector.load %arg6[%c0_14, %c0_15] : memref<1x128xf32, #tpu.memory_space<vmem>>, vector<1x128xf32>
      %17 = vector.broadcast %16 : vector<1x128xf32> to vector<8x128xf32>
      %18 = arith.addf %15, %17 : vector<8x128xf32>
      %19 = arith.truncf %18 : vector<8x128xf32> to vector<8x128xbf16>
      %c0_16 = arith.constant 0 : index
      %c0_17 = arith.constant 0 : index
      %20 = vector.load %arg7[%c0_16, %c0_17] : memref<8x128xbf16, #tpu.memory_space<vmem>>, vector<8x128xbf16>
      tpu.vector_store %arg7[%c0_16, %c0_17], %19 {strides = array<i32>} : memref<8x128xbf16, #tpu.memory_space<vmem>>, vector<8x128xbf16>,
    } else {
    }
    return
  }
  func.func @transform_0(%arg0: i32, %arg1: i32, %arg2: i32) -> (i32, i32) {
    %c0_i32 = arith.constant 0 : i32
    return %arg0, %arg2 : i32, i32
  }
  func.func @transform_1(%arg0: i32, %arg1: i32, %arg2: i32) -> (i32, i32) {
    %c0_i32 = arith.constant 0 : i32
    return %arg2, %arg1 : i32, i32
  }
  func.func @transform_2(%arg0: i32, %arg1: i32, %arg2: i32) -> (i32, i32) {
    %c0_i32 = arith.constant 0 : i32
    %c0_i32_0 = arith.constant 0 : i32
    return %c0_i32, %arg1 : i32, i32
  }
  func.func @transform_3(%arg0: i32, %arg1: i32, %arg2: i32) -> (i32, i32) {
    %c0_i32 = arith.constant 0 : i32
    %c0_i32_0 = arith.constant 0 : i32
    return %c0_i32, %arg1 : i32, i32
  }
  func.func @transform_4(%arg0: i32, %arg1: i32, %arg2: i32) -> (i32, i32) {
    %c0_i32 = arith.constant 0 : i32
    return %arg0, %arg1 : i32, i32
  }
}

module attributes {stable_mosaic.version = 11 : i64} {
  func.func @_gemm_bn_kernel(%arg0: i32, %arg1: i32, %arg2: i32, %arg3: memref<2x1152xbf16, #tpu.memory_space<vmem>>, %arg4: memref<1152x128xbf16, #tpu.memory_space<vmem>>, %arg5: memref<1x128xf32, #tpu.memory_space<vmem>>, %arg6: memref<1x128xf32, #tpu.memory_space<vmem>>, %arg7: memref<2x128xbf16, #tpu.memory_space<vmem>>, %arg8: memref<2x128xf32, #tpu.memory_space<vmem>>) attributes {dimension_semantics = [#tpu.dimension_semantics<parallel>, #tpu.dimension_semantics<parallel>, #tpu.dimension_semantics<arbitrary>], iteration_bounds = array<i64: 1, 1, 1>, scalar_prefetch = 0 : i64, scratch_operands = 1 : i64, tpu.core_type = #tpu.core_type<tc>, window_params = [{transform_indices = @transform_0, window_bounds = array<i64: 2, 1152>}, {transform_indices = @transform_1, window_bounds = array<i64: 1152, 128>}, {transform_indices = @transform_2, window_bounds = array<i64: 1, 128>}, {transform_indices = @transform_3, window_bounds = array<i64: 1, 128>}, {transform_indices = @transform_4, window_bounds = array<i64: 2, 128>}]} {
    %c0_i32 = arith.constant 0 : i32
    %0 = arith.cmpi eq, %arg2, %c0_i32 : i32
    %1 = arith.extui %0 : i1 to i32
    %c0_i32_0 = arith.constant 0 : i32
    %2 = arith.cmpi ne, %1, %c0_i32_0 : i32
    scf.if %2 {
      %cst_10 = arith.constant 0.000000e+00 : f32
      %12 = vector.broadcast %cst_10 : f32 to vector<2x128xf32>
      %c0_11 = arith.constant 0 : index
      %c0_12 = arith.constant 0 : index
      %13 = vector.load %arg8[%c0_11, %c0_12] : memref<2x128xf32, #tpu.memory_space<vmem>>, vector<2x128xf32>
      tpu.vector_store %arg8[%c0_11, %c0_12], %12 {strides = array<i32>} : memref<2x128xf32, #tpu.memory_space<vmem>>, vector<2x128xf32>,
    } else {
    }
    %c0 = arith.constant 0 : index
    %c0_1 = arith.constant 0 : index
    %3 = vector.load %arg8[%c0, %c0_1] : memref<2x128xf32, #tpu.memory_space<vmem>>, vector<2x128xf32>
    %c0_2 = arith.constant 0 : index
    %c0_3 = arith.constant 0 : index
    %4 = vector.load %arg3[%c0_2, %c0_3] : memref<2x1152xbf16, #tpu.memory_space<vmem>>, vector<2x1152xbf16>
    %c0_4 = arith.constant 0 : index
    %c0_5 = arith.constant 0 : index
    %5 = vector.load %arg4[%c0_4, %c0_5] : memref<1152x128xbf16, #tpu.memory_space<vmem>>, vector<1152x128xbf16>
    %cst = arith.constant dense<0.000000e+00> : vector<2x128xf32>
    %6 = tpu.matmul %4, %5, %cst {dimension_numbers = #tpu.dot_dimension_numbers<[1], [0], [0], [1], [0, 0, 1, 1], [], []>} : vector<2x1152xbf16>, vector<1152x128xbf16>, vector<2x128xf32> -> vector<2x128xf32>
    %7 = arith.addf %3, %6 : vector<2x128xf32>
    %c0_6 = arith.constant 0 : index
    %c0_7 = arith.constant 0 : index
    %8 = vector.load %arg8[%c0_6, %c0_7] : memref<2x128xf32, #tpu.memory_space<vmem>>, vector<2x128xf32>
    tpu.vector_store %arg8[%c0_6, %c0_7], %7 {strides = array<i32>} : memref<2x128xf32, #tpu.memory_space<vmem>>, vector<2x128xf32>,
    %c0_i32_8 = arith.constant 0 : i32
    %9 = arith.cmpi eq, %arg2, %c0_i32_8 : i32
    %10 = arith.extui %9 : i1 to i32
    %c0_i32_9 = arith.constant 0 : i32
    %11 = arith.cmpi ne, %10, %c0_i32_9 : i32
    scf.if %11 {
      %c0_10 = arith.constant 0 : index
      %c0_11 = arith.constant 0 : index
      %12 = vector.load %arg8[%c0_10, %c0_11] : memref<2x128xf32, #tpu.memory_space<vmem>>, vector<2x128xf32>
      %c0_12 = arith.constant 0 : index
      %c0_13 = arith.constant 0 : index
      %13 = vector.load %arg5[%c0_12, %c0_13] : memref<1x128xf32, #tpu.memory_space<vmem>>, vector<1x128xf32>
      %14 = vector.broadcast %13 : vector<1x128xf32> to vector<2x128xf32>
      %15 = arith.mulf %12, %14 : vector<2x128xf32>
      %c0_14 = arith.constant 0 : index
      %c0_15 = arith.constant 0 : index
      %16 = vector.load %arg6[%c0_14, %c0_15] : memref<1x128xf32, #tpu.memory_space<vmem>>, vector<1x128xf32>
      %17 = vector.broadcast %16 : vector<1x128xf32> to vector<2x128xf32>
      %18 = arith.addf %15, %17 : vector<2x128xf32>
      %cst_16 = arith.constant 0.000000e+00 : f32
      %19 = vector.broadcast %cst_16 : f32 to vector<2x128xf32>
      %20 = arith.maximumf %18, %19 : vector<2x128xf32>
      %21 = arith.truncf %20 : vector<2x128xf32> to vector<2x128xbf16>
      %c0_17 = arith.constant 0 : index
      %c0_18 = arith.constant 0 : index
      %22 = vector.load %arg7[%c0_17, %c0_18] : memref<2x128xbf16, #tpu.memory_space<vmem>>, vector<2x128xbf16>
      tpu.vector_store %arg7[%c0_17, %c0_18], %21 {strides = array<i32>} : memref<2x128xbf16, #tpu.memory_space<vmem>>, vector<2x128xbf16>,
    } else {
    }
    return
  }
  func.func @transform_0(%arg0: i32, %arg1: i32, %arg2: i32) -> (i32, i32) {
    %c0_i32 = arith.constant 0 : i32
    return %arg0, %arg2 : i32, i32
  }
  func.func @transform_1(%arg0: i32, %arg1: i32, %arg2: i32) -> (i32, i32) {
    %c0_i32 = arith.constant 0 : i32
    return %arg2, %arg1 : i32, i32
  }
  func.func @transform_2(%arg0: i32, %arg1: i32, %arg2: i32) -> (i32, i32) {
    %c0_i32 = arith.constant 0 : i32
    %c0_i32_0 = arith.constant 0 : i32
    return %c0_i32, %arg1 : i32, i32
  }
  func.func @transform_3(%arg0: i32, %arg1: i32, %arg2: i32) -> (i32, i32) {
    %c0_i32 = arith.constant 0 : i32
    %c0_i32_0 = arith.constant 0 : i32
    return %c0_i32, %arg1 : i32, i32
  }
  func.func @transform_4(%arg0: i32, %arg1: i32, %arg2: i32) -> (i32, i32) {
    %c0_i32 = arith.constant 0 : i32
    return %arg0, %arg1 : i32, i32
  }
}

module attributes {stable_mosaic.version = 11 : i64} {
  func.func @_gemm_bn_kernel(%arg0: i32, %arg1: i32, %arg2: i32, %arg3: memref<2x128xbf16, #tpu.memory_space<vmem>>, %arg4: memref<128x128xbf16, #tpu.memory_space<vmem>>, %arg5: memref<1x128xf32, #tpu.memory_space<vmem>>, %arg6: memref<1x128xf32, #tpu.memory_space<vmem>>, %arg7: memref<2x128xbf16, #tpu.memory_space<vmem>>, %arg8: memref<2x128xf32, #tpu.memory_space<vmem>>) attributes {dimension_semantics = [#tpu.dimension_semantics<parallel>, #tpu.dimension_semantics<parallel>, #tpu.dimension_semantics<arbitrary>], iteration_bounds = array<i64: 1, 1, 1>, scalar_prefetch = 0 : i64, scratch_operands = 1 : i64, tpu.core_type = #tpu.core_type<tc>, window_params = [{transform_indices = @transform_0, window_bounds = array<i64: 2, 128>}, {transform_indices = @transform_1, window_bounds = array<i64: 128, 128>}, {transform_indices = @transform_2, window_bounds = array<i64: 1, 128>}, {transform_indices = @transform_3, window_bounds = array<i64: 1, 128>}, {transform_indices = @transform_4, window_bounds = array<i64: 2, 128>}]} {
    %c0_i32 = arith.constant 0 : i32
    %0 = arith.cmpi eq, %arg2, %c0_i32 : i32
    %1 = arith.extui %0 : i1 to i32
    %c0_i32_0 = arith.constant 0 : i32
    %2 = arith.cmpi ne, %1, %c0_i32_0 : i32
    scf.if %2 {
      %cst_10 = arith.constant 0.000000e+00 : f32
      %12 = vector.broadcast %cst_10 : f32 to vector<2x128xf32>
      %c0_11 = arith.constant 0 : index
      %c0_12 = arith.constant 0 : index
      %13 = vector.load %arg8[%c0_11, %c0_12] : memref<2x128xf32, #tpu.memory_space<vmem>>, vector<2x128xf32>
      tpu.vector_store %arg8[%c0_11, %c0_12], %12 {strides = array<i32>} : memref<2x128xf32, #tpu.memory_space<vmem>>, vector<2x128xf32>,
    } else {
    }
    %c0 = arith.constant 0 : index
    %c0_1 = arith.constant 0 : index
    %3 = vector.load %arg8[%c0, %c0_1] : memref<2x128xf32, #tpu.memory_space<vmem>>, vector<2x128xf32>
    %c0_2 = arith.constant 0 : index
    %c0_3 = arith.constant 0 : index
    %4 = vector.load %arg3[%c0_2, %c0_3] : memref<2x128xbf16, #tpu.memory_space<vmem>>, vector<2x128xbf16>
    %c0_4 = arith.constant 0 : index
    %c0_5 = arith.constant 0 : index
    %5 = vector.load %arg4[%c0_4, %c0_5] : memref<128x128xbf16, #tpu.memory_space<vmem>>, vector<128x128xbf16>
    %cst = arith.constant dense<0.000000e+00> : vector<2x128xf32>
    %6 = tpu.matmul %4, %5, %cst {dimension_numbers = #tpu.dot_dimension_numbers<[1], [0], [0], [1], [0, 0, 1, 1], [], []>} : vector<2x128xbf16>, vector<128x128xbf16>, vector<2x128xf32> -> vector<2x128xf32>
    %7 = arith.addf %3, %6 : vector<2x128xf32>
    %c0_6 = arith.constant 0 : index
    %c0_7 = arith.constant 0 : index
    %8 = vector.load %arg8[%c0_6, %c0_7] : memref<2x128xf32, #tpu.memory_space<vmem>>, vector<2x128xf32>
    tpu.vector_store %arg8[%c0_6, %c0_7], %7 {strides = array<i32>} : memref<2x128xf32, #tpu.memory_space<vmem>>, vector<2x128xf32>,
    %c0_i32_8 = arith.constant 0 : i32
    %9 = arith.cmpi eq, %arg2, %c0_i32_8 : i32
    %10 = arith.extui %9 : i1 to i32
    %c0_i32_9 = arith.constant 0 : i32
    %11 = arith.cmpi ne, %10, %c0_i32_9 : i32
    scf.if %11 {
      %c0_10 = arith.constant 0 : index
      %c0_11 = arith.constant 0 : index
      %12 = vector.load %arg8[%c0_10, %c0_11] : memref<2x128xf32, #tpu.memory_space<vmem>>, vector<2x128xf32>
      %c0_12 = arith.constant 0 : index
      %c0_13 = arith.constant 0 : index
      %13 = vector.load %arg5[%c0_12, %c0_13] : memref<1x128xf32, #tpu.memory_space<vmem>>, vector<1x128xf32>
      %14 = vector.broadcast %13 : vector<1x128xf32> to vector<2x128xf32>
      %15 = arith.mulf %12, %14 : vector<2x128xf32>
      %c0_14 = arith.constant 0 : index
      %c0_15 = arith.constant 0 : index
      %16 = vector.load %arg6[%c0_14, %c0_15] : memref<1x128xf32, #tpu.memory_space<vmem>>, vector<1x128xf32>
      %17 = vector.broadcast %16 : vector<1x128xf32> to vector<2x128xf32>
      %18 = arith.addf %15, %17 : vector<2x128xf32>
      %19 = arith.truncf %18 : vector<2x128xf32> to vector<2x128xbf16>
      %c0_16 = arith.constant 0 : index
      %c0_17 = arith.constant 0 : index
      %20 = vector.load %arg7[%c0_16, %c0_17] : memref<2x128xbf16, #tpu.memory_space<vmem>>, vector<2x128xbf16>
      tpu.vector_store %arg7[%c0_16, %c0_17], %19 {strides = array<i32>} : memref<2x128xbf16, #tpu.memory_space<vmem>>, vector<2x128xbf16>,
    } else {
    }
    return
  }
  func.func @transform_0(%arg0: i32, %arg1: i32, %arg2: i32) -> (i32, i32) {
    %c0_i32 = arith.constant 0 : i32
    return %arg0, %arg2 : i32, i32
  }
  func.func @transform_1(%arg0: i32, %arg1: i32, %arg2: i32) -> (i32, i32) {
    %c0_i32 = arith.constant 0 : i32
    return %arg2, %arg1 : i32, i32
  }
  func.func @transform_2(%arg0: i32, %arg1: i32, %arg2: i32) -> (i32, i32) {
    %c0_i32 = arith.constant 0 : i32
    %c0_i32_0 = arith.constant 0 : i32
    return %c0_i32, %arg1 : i32, i32
  }
  func.func @transform_3(%arg0: i32, %arg1: i32, %arg2: i32) -> (i32, i32) {
    %c0_i32 = arith.constant 0 : i32
    %c0_i32_0 = arith.constant 0 : i32
    return %c0_i32, %arg1 : i32, i32
  }
  func.func @transform_4(%arg0: i32, %arg1: i32, %arg2: i32) -> (i32, i32) {
    %c0_i32 = arith.constant 0 : i32
    return %arg0, %arg1 : i32, i32
  }
}

module attributes {stable_mosaic.version = 11 : i64} {
  func.func @_gemm_bn_kernel(%arg0: i32, %arg1: i32, %arg2: i32, %arg3: memref<2x1152xbf16, #tpu.memory_space<vmem>>, %arg4: memref<1152x128xbf16, #tpu.memory_space<vmem>>, %arg5: memref<1x128xf32, #tpu.memory_space<vmem>>, %arg6: memref<1x128xf32, #tpu.memory_space<vmem>>, %arg7: memref<2x128xbf16, #tpu.memory_space<vmem>>, %arg8: memref<2x128xbf16, #tpu.memory_space<vmem>>, %arg9: memref<2x128xf32, #tpu.memory_space<vmem>>) attributes {dimension_semantics = [#tpu.dimension_semantics<parallel>, #tpu.dimension_semantics<parallel>, #tpu.dimension_semantics<arbitrary>], iteration_bounds = array<i64: 1, 1, 1>, scalar_prefetch = 0 : i64, scratch_operands = 1 : i64, tpu.core_type = #tpu.core_type<tc>, window_params = [{transform_indices = @transform_0, window_bounds = array<i64: 2, 1152>}, {transform_indices = @transform_1, window_bounds = array<i64: 1152, 128>}, {transform_indices = @transform_2, window_bounds = array<i64: 1, 128>}, {transform_indices = @transform_3, window_bounds = array<i64: 1, 128>}, {transform_indices = @transform_4, window_bounds = array<i64: 2, 128>}, {transform_indices = @transform_5, window_bounds = array<i64: 2, 128>}]} {
    %c0_i32 = arith.constant 0 : i32
    %0 = arith.cmpi eq, %arg2, %c0_i32 : i32
    %1 = arith.extui %0 : i1 to i32
    %c0_i32_0 = arith.constant 0 : i32
    %2 = arith.cmpi ne, %1, %c0_i32_0 : i32
    scf.if %2 {
      %cst_10 = arith.constant 0.000000e+00 : f32
      %12 = vector.broadcast %cst_10 : f32 to vector<2x128xf32>
      %c0_11 = arith.constant 0 : index
      %c0_12 = arith.constant 0 : index
      %13 = vector.load %arg9[%c0_11, %c0_12] : memref<2x128xf32, #tpu.memory_space<vmem>>, vector<2x128xf32>
      tpu.vector_store %arg9[%c0_11, %c0_12], %12 {strides = array<i32>} : memref<2x128xf32, #tpu.memory_space<vmem>>, vector<2x128xf32>,
    } else {
    }
    %c0 = arith.constant 0 : index
    %c0_1 = arith.constant 0 : index
    %3 = vector.load %arg9[%c0, %c0_1] : memref<2x128xf32, #tpu.memory_space<vmem>>, vector<2x128xf32>
    %c0_2 = arith.constant 0 : index
    %c0_3 = arith.constant 0 : index
    %4 = vector.load %arg3[%c0_2, %c0_3] : memref<2x1152xbf16, #tpu.memory_space<vmem>>, vector<2x1152xbf16>
    %c0_4 = arith.constant 0 : index
    %c0_5 = arith.constant 0 : index
    %5 = vector.load %arg4[%c0_4, %c0_5] : memref<1152x128xbf16, #tpu.memory_space<vmem>>, vector<1152x128xbf16>
    %cst = arith.constant dense<0.000000e+00> : vector<2x128xf32>
    %6 = tpu.matmul %4, %5, %cst {dimension_numbers = #tpu.dot_dimension_numbers<[1], [0], [0], [1], [0, 0, 1, 1], [], []>} : vector<2x1152xbf16>, vector<1152x128xbf16>, vector<2x128xf32> -> vector<2x128xf32>
    %7 = arith.addf %3, %6 : vector<2x128xf32>
    %c0_6 = arith.constant 0 : index
    %c0_7 = arith.constant 0 : index
    %8 = vector.load %arg9[%c0_6, %c0_7] : memref<2x128xf32, #tpu.memory_space<vmem>>, vector<2x128xf32>
    tpu.vector_store %arg9[%c0_6, %c0_7], %7 {strides = array<i32>} : memref<2x128xf32, #tpu.memory_space<vmem>>, vector<2x128xf32>,
    %c0_i32_8 = arith.constant 0 : i32
    %9 = arith.cmpi eq, %arg2, %c0_i32_8 : i32
    %10 = arith.extui %9 : i1 to i32
    %c0_i32_9 = arith.constant 0 : i32
    %11 = arith.cmpi ne, %10, %c0_i32_9 : i32
    scf.if %11 {
      %c0_10 = arith.constant 0 : index
      %c0_11 = arith.constant 0 : index
      %12 = vector.load %arg9[%c0_10, %c0_11] : memref<2x128xf32, #tpu.memory_space<vmem>>, vector<2x128xf32>
      %c0_12 = arith.constant 0 : index
      %c0_13 = arith.constant 0 : index
      %13 = vector.load %arg5[%c0_12, %c0_13] : memref<1x128xf32, #tpu.memory_space<vmem>>, vector<1x128xf32>
      %14 = vector.broadcast %13 : vector<1x128xf32> to vector<2x128xf32>
      %15 = arith.mulf %12, %14 : vector<2x128xf32>
      %c0_14 = arith.constant 0 : index
      %c0_15 = arith.constant 0 : index
      %16 = vector.load %arg6[%c0_14, %c0_15] : memref<1x128xf32, #tpu.memory_space<vmem>>, vector<1x128xf32>
      %17 = vector.broadcast %16 : vector<1x128xf32> to vector<2x128xf32>
      %18 = arith.addf %15, %17 : vector<2x128xf32>
      %c0_16 = arith.constant 0 : index
      %c0_17 = arith.constant 0 : index
      %19 = vector.load %arg7[%c0_16, %c0_17] : memref<2x128xbf16, #tpu.memory_space<vmem>>, vector<2x128xbf16>
      %20 = arith.extf %19 : vector<2x128xbf16> to vector<2x128xf32>
      %21 = arith.addf %18, %20 : vector<2x128xf32>
      %cst_18 = arith.constant 0.000000e+00 : f32
      %22 = vector.broadcast %cst_18 : f32 to vector<2x128xf32>
      %23 = arith.maximumf %21, %22 : vector<2x128xf32>
      %24 = arith.truncf %23 : vector<2x128xf32> to vector<2x128xbf16>
      %c0_19 = arith.constant 0 : index
      %c0_20 = arith.constant 0 : index
      %25 = vector.load %arg8[%c0_19, %c0_20] : memref<2x128xbf16, #tpu.memory_space<vmem>>, vector<2x128xbf16>
      tpu.vector_store %arg8[%c0_19, %c0_20], %24 {strides = array<i32>} : memref<2x128xbf16, #tpu.memory_space<vmem>>, vector<2x128xbf16>,
    } else {
    }
    return
  }
  func.func @transform_0(%arg0: i32, %arg1: i32, %arg2: i32) -> (i32, i32) {
    %c0_i32 = arith.constant 0 : i32
    return %arg0, %arg2 : i32, i32
  }
  func.func @transform_1(%arg0: i32, %arg1: i32, %arg2: i32) -> (i32, i32) {
    %c0_i32 = arith.constant 0 : i32
    return %arg2, %arg1 : i32, i32
  }
  func.func @transform_2(%arg0: i32, %arg1: i32, %arg2: i32) -> (i32, i32) {
    %c0_i32 = arith.constant 0 : i32
    %c0_i32_0 = arith.constant 0 : i32
    return %c0_i32, %arg1 : i32, i32
  }
  func.func @transform_3(%arg0: i32, %arg1: i32, %arg2: i32) -> (i32, i32) {
    %c0_i32 = arith.constant 0 : i32
    %c0_i32_0 = arith.constant 0 : i32
    return %c0_i32, %arg1 : i32, i32
  }
  func.func @transform_4(%arg0: i32, %arg1: i32, %arg2: i32) -> (i32, i32) {
    %c0_i32 = arith.constant 0 : i32
    return %arg0, %arg1 : i32, i32
  }
  func.func @transform_5(%arg0: i32, %arg1: i32, %arg2: i32) -> (i32, i32) {
    %c0_i32 = arith.constant 0 : i32
    return %arg0, %arg1 : i32, i32
  }
}

module attributes {stable_mosaic.version = 11 : i64} {
  func.func @_head_kernel(%arg0: i32, %arg1: memref<2x1x128xbf16, #tpu.memory_space<vmem>>, %arg2: memref<128x128xbf16, #tpu.memory_space<vmem>>, %arg3: memref<1x128xf32, #tpu.memory_space<vmem>>, %arg4: memref<128x128xbf16, #tpu.memory_space<vmem>>, %arg5: memref<1x128xf32, #tpu.memory_space<vmem>>, %arg6: memref<2x128xf32, #tpu.memory_space<vmem>>) attributes {dimension_semantics = [#tpu.dimension_semantics<parallel>], iteration_bounds = array<i64: 1>, scalar_prefetch = 0 : i64, scratch_operands = 0 : i64, tpu.core_type = #tpu.core_type<tc>, window_params = [{transform_indices = @transform_0, window_bounds = array<i64: 2, 1, 128>}, {pipeline_mode = #tpu.pipeline_mode<synchronous>, transform_indices = @transform_1, window_bounds = array<i64: 128, 128>}, {pipeline_mode = #tpu.pipeline_mode<synchronous>, transform_indices = @transform_2, window_bounds = array<i64: 1, 128>}, {pipeline_mode = #tpu.pipeline_mode<synchronous>, transform_indices = @transform_3, window_bounds = array<i64: 128, 128>}, {pipeline_mode = #tpu.pipeline_mode<synchronous>, transform_indices = @transform_4, window_bounds = array<i64: 1, 128>}, {transform_indices = @transform_5, window_bounds = array<i64: 2, 128>}]} {
    %c0 = arith.constant 0 : index
    %c0_0 = arith.constant 0 : index
    %c0_1 = arith.constant 0 : index
    %0 = vector.load %arg1[%c0, %c0_0, %c0_1] : memref<2x1x128xbf16, #tpu.memory_space<vmem>>, vector<2x1x128xbf16>
    %1 = arith.extf %0 : vector<2x1x128xbf16> to vector<2x1x128xf32>
    %cst = arith.constant dense<0.000000e+00> : vector<2x128xf32>
    %2 = vector.multi_reduction <add>, %1, %cst [1] : vector<2x1x128xf32> to vector<2x128xf32>
    %cst_2 = arith.constant 1.000000e+00 : f32
    %3 = vector.broadcast %cst_2 : f32 to vector<2x128xf32>
    %4 = arith.divf %2, %3 : vector<2x128xf32>
    %5 = arith.mulf %4, %4 : vector<2x128xf32>
    %cst_3 = arith.constant dense<0.000000e+00> : vector<2xf32>
    %6 = vector.multi_reduction <add>, %5, %cst_3 [1] : vector<2x128xf32> to vector<2xf32>
    %7 = vector.shape_cast %6 : vector<2xf32> to vector<2x1xf32>
    %cst_4 = arith.constant 1.000000e-24 : f32
    %8 = vector.broadcast %cst_4 : f32 to vector<2x1xf32>
    %9 = arith.maximumf %7, %8 : vector<2x1xf32>
    %10 = math.rsqrt %9 : vector<2x1xf32>
    %11 = vector.broadcast %10 : vector<2x1xf32> to vector<2x128xf32>
    %12 = arith.mulf %4, %11 : vector<2x128xf32>
    %13 = arith.truncf %12 : vector<2x128xf32> to vector<2x128xbf16>
    %c0_5 = arith.constant 0 : index
    %c0_6 = arith.constant 0 : index
    %14 = vector.load %arg2[%c0_5, %c0_6] : memref<128x128xbf16, #tpu.memory_space<vmem>>, vector<128x128xbf16>
    %cst_7 = arith.constant dense<0.000000e+00> : vector<2x128xf32>
    %15 = tpu.matmul %13, %14, %cst_7 {dimension_numbers = #tpu.dot_dimension_numbers<[1], [0], [0], [1], [0, 0, 1, 1], [], []>} : vector<2x128xbf16>, vector<128x128xbf16>, vector<2x128xf32> -> vector<2x128xf32>
    %c0_8 = arith.constant 0 : index
    %c0_9 = arith.constant 0 : index
    %16 = vector.load %arg3[%c0_8, %c0_9] : memref<1x128xf32, #tpu.memory_space<vmem>>, vector<1x128xf32>
    %17 = vector.broadcast %16 : vector<1x128xf32> to vector<2x128xf32>
    %18 = arith.addf %15, %17 : vector<2x128xf32>
    %cst_10 = arith.constant 0.000000e+00 : f32
    %19 = vector.broadcast %cst_10 : f32 to vector<2x128xf32>
    %20 = arith.maximumf %18, %19 : vector<2x128xf32>
    %21 = arith.truncf %20 : vector<2x128xf32> to vector<2x128xbf16>
    %c0_11 = arith.constant 0 : index
    %c0_12 = arith.constant 0 : index
    %22 = vector.load %arg4[%c0_11, %c0_12] : memref<128x128xbf16, #tpu.memory_space<vmem>>, vector<128x128xbf16>
    %cst_13 = arith.constant dense<0.000000e+00> : vector<2x128xf32>
    %23 = tpu.matmul %21, %22, %cst_13 {dimension_numbers = #tpu.dot_dimension_numbers<[1], [0], [0], [1], [0, 0, 1, 1], [], []>} : vector<2x128xbf16>, vector<128x128xbf16>, vector<2x128xf32> -> vector<2x128xf32>
    %c0_14 = arith.constant 0 : index
    %c0_15 = arith.constant 0 : index
    %24 = vector.load %arg5[%c0_14, %c0_15] : memref<1x128xf32, #tpu.memory_space<vmem>>, vector<1x128xf32>
    %25 = vector.broadcast %24 : vector<1x128xf32> to vector<2x128xf32>
    %26 = arith.addf %23, %25 : vector<2x128xf32>
    %c0_16 = arith.constant 0 : index
    %c0_17 = arith.constant 0 : index
    %27 = vector.load %arg6[%c0_16, %c0_17] : memref<2x128xf32, #tpu.memory_space<vmem>>, vector<2x128xf32>
    tpu.vector_store %arg6[%c0_16, %c0_17], %26 {strides = array<i32>} : memref<2x128xf32, #tpu.memory_space<vmem>>, vector<2x128xf32>,
    return
  }
  func.func @transform_0(%arg0: i32) -> (i32, i32, i32) {
    %c0_i32 = arith.constant 0 : i32
    %c0_i32_0 = arith.constant 0 : i32
    %c0_i32_1 = arith.constant 0 : i32
    return %arg0, %c0_i32, %c0_i32_0 : i32, i32, i32
  }
  func.func @transform_1(%arg0: i32) -> (i32, i32) {
    %c0_i32 = arith.constant 0 : i32
    %c0_i32_0 = arith.constant 0 : i32
    %c0_i32_1 = arith.constant 0 : i32
    return %c0_i32, %c0_i32_0 : i32, i32
  }
  func.func @transform_2(%arg0: i32) -> (i32, i32) {
    %c0_i32 = arith.constant 0 : i32
    %c0_i32_0 = arith.constant 0 : i32
    %c0_i32_1 = arith.constant 0 : i32
    return %c0_i32, %c0_i32_0 : i32, i32
  }
  func.func @transform_3(%arg0: i32) -> (i32, i32) {
    %c0_i32 = arith.constant 0 : i32
    %c0_i32_0 = arith.constant 0 : i32
    %c0_i32_1 = arith.constant 0 : i32
    return %c0_i32, %c0_i32_0 : i32, i32
  }
  func.func @transform_4(%arg0: i32) -> (i32, i32) {
    %c0_i32 = arith.constant 0 : i32
    %c0_i32_0 = arith.constant 0 : i32
    %c0_i32_1 = arith.constant 0 : i32
    return %c0_i32, %c0_i32_0 : i32, i32
  }
  func.func @transform_5(%arg0: i32) -> (i32, i32) {
    %c0_i32 = arith.constant 0 : i32
    %c0_i32_0 = arith.constant 0 : i32
    return %arg0, %c0_i32 : i32, i32
  }
}

</mosaic_0001>

<bundles_post_ra>
// kernel: resnet_simclr_forward.23
= control target key start
LH: loop header
LB: loop body
LE: loop exit
PB: predicated region body
PF: predicated region fallthrough
CT: control target
= control target key end

     0   :  { %s969_s6 = smov 0   ;;  %s971_s7 = smov 0   ;;  %s1253_s0 = inlined_call_operand.vmem [shape: bf16[9,128,128], index: 0, kind: input, shape index: {}]   ;;  %s1254_s1 = inlined_call_operand.vmem [shape: bf16[128,128], index: 1, kind: output, shape index: {}]  }
   0x1   :  { %s973_s8 = smov 0  }
   0x2 LB: > { %s870_s9 = sadd.s32 4294967295, %s957_s8   ;;  %s986_s10 = sadd.s32 1, %s957_s8   ;;  %s957_s8 = sphi %s973_s8, %s1257_s8   ;;  %s953_s7 = sphi %s971_s7, %s1256_s7   ;;  %s949_s6 = sphi %s969_s6, %s1255_s6  }
   0x3   : > { %s15_s11 = ssub.s32 %s957_s8, %s986_s10  ;;  %s18_s12 = sadd.s32 1, %s953_s7 }
   0x4   : > { %p16_p0 = scmp.eq.s32.totalorder %s15_s11, 0  ;;  %p25_p1 = scmp.ne.s32.totalorder %s953_s7, %s949_s6 }
   0x5   : > { %p26_p2 = scmp.eq.s32.totalorder %s957_s8, 0  ;;  %p873_p4 = scmp.ge.s32.totalorder %s957_s8, 2 }
   0x6   : > { %s995_s13 = scalar_select %p16_p0, %s953_s7, %s18_s12  }
   0x7   : > { %p27_p3 = por %p26_p2, %p25_p1  ;;  %77 = sbr.rel (%p873_p4) target bundleno = 37 (0x25), region = 16 }
   0xe   : > { %80 = sbr.rel (!%p27_p3) target bundleno = 37 (0x25), region = 20  ;;  %s82_s14 = sand.u32 (%p27_p3), 1, %s953_s7  }
   0xf   : > { %s881_s15 = sshll.u32 (%p27_p3), %s957_s8, 5  ;;  %s909_s16 = smul.u32 (%p27_p3), 288, %s82_s14 }
  0x10   : > { %s1003_s19 = scalar_lea.vmem (%p27_p3), %s1253_s0, %s881_s15 }
  0x11   : > { %v103_v0 = vld [vmem:[%s1003_s19] sm:$0xff] (%p27_p3)   ;;  %v107_v1 = vld [vmem:[%s1003_s19 + $0x8] sm:$0xff] (%p27_p3)   ;;  %v111_v2 = vld [vmem:[%s1003_s19 + $0x10] sm:$0xff] (%p27_p3)   ;;  %s1011_s20 = scalar_lea.vmem (%p27_p3), [#allocation2], %s909_s16 }
  0x12   : > { %v115_v3 = vld [vmem:[%s1003_s19 + $0x18] sm:$0xff] (%p27_p3)   ;;  %v119_v4 = vld [vmem:[%s1003_s19 + $0x40] sm:$0xff] (%p27_p3)   ;;  %v123_v5 = vld [vmem:[%s1003_s19 + $0x48] sm:$0xff] (%p27_p3)   ;;  %104 = vst [vmem:[%s1011_s20] sm:$0xff] (%p27_p3), %v103_v0  }
  0x13   : > { %108 = vst [vmem:[%s1011_s20 + $0x8] sm:$0xff] (%p27_p3), %v107_v1   ;;  %112 = vst [vmem:[%s1011_s20 + $0x10] sm:$0xff] (%p27_p3), %v111_v2   ;;  %v127_v6 = vld [vmem:[%s1003_s19 + $0x50] sm:$0xff] (%p27_p3)   ;;  %v131_v7 = vld [vmem:[%s1003_s19 + $0x58] sm:$0xff] (%p27_p3)  }
  0x14   : > { %116 = vst [vmem:[%s1011_s20 + $0x18] sm:$0xff] (%p27_p3), %v115_v3   ;;  %120 = vst [vmem:[%s1011_s20 + $0x20] sm:$0xff] (%p27_p3), %v119_v4   ;;  %v135_v8 = vld [vmem:[%s1003_s19 + $0x80] sm:$0xff] (%p27_p3)   ;;  %v139_v9 = vld [vmem:[%s1003_s19 + $0x88] sm:$0xff] (%p27_p3)  }
  0x15   : > { %124 = vst [vmem:[%s1011_s20 + $0x28] sm:$0xff] %v123_v5   ;;  %128 = vst [vmem:[%s1011_s20 + $0x30] sm:$0xff] %v127_v6   ;;  %v143_v10 = vld [vmem:[%s1003_s19 + $0x90] sm:$0xff]   ;;  %v147_v11 = vld [vmem:[%s1003_s19 + $0x98] sm:$0xff]  }
  0x16   : > { %132 = vst [vmem:[%s1011_s20 + $0x38] sm:$0xff] %v131_v7   ;;  %136 = vst [vmem:[%s1011_s20 + $0x40] sm:$0xff] %v135_v8   ;;  %v151_v12 = vld [vmem:[%s1003_s19 + $0xc0] sm:$0xff]   ;;  %v155_v13 = vld [vmem:[%s1003_s19 + $0xc8] sm:$0xff]  }
  0x17   : > { %140 = vst [vmem:[%s1011_s20 + $0x48] sm:$0xff] %v139_v9   ;;  %144 = vst [vmem:[%s1011_s20 + $0x50] sm:$0xff] %v143_v10   ;;  %v159_v14 = vld [vmem:[%s1003_s19 + $0xd0] sm:$0xff]   ;;  %v163_v15 = vld [vmem:[%s1003_s19 + $0xd8] sm:$0xff]  }
  0x18   : > { %148 = vst [vmem:[%s1011_s20 + $0x58] sm:$0xff] %v147_v11   ;;  %152 = vst [vmem:[%s1011_s20 + $0x60] sm:$0xff] %v151_v12   ;;  %v167_v16 = vld [vmem:[%s1003_s19 + $0x100] sm:$0xff]   ;;  %v171_v17 = vld [vmem:[%s1003_s19 + $0x108] sm:$0xff]  }
  0x19   : > { %156 = vst [vmem:[%s1011_s20 + $0x68] sm:$0xff] %v155_v13   ;;  %160 = vst [vmem:[%s1011_s20 + $0x70] sm:$0xff] %v159_v14   ;;  %v175_v18 = vld [vmem:[%s1003_s19 + $0x110] sm:$0xff]   ;;  %v179_v19 = vld [vmem:[%s1003_s19 + $0x118] sm:$0xff]  }
  0x1a   : > { %164 = vst [vmem:[%s1011_s20 + $0x78] sm:$0xff] %v163_v15   ;;  %168 = vst [vmem:[%s1011_s20 + $0x80] sm:$0xff] %v167_v16   ;;  %v183_v20 = vld [vmem:[%s1003_s19 + $0x140] sm:$0xff]   ;;  %v187_v21 = vld [vmem:[%s1003_s19 + $0x148] sm:$0xff]  }
  0x1b   : > { %172 = vst [vmem:[%s1011_s20 + $0x88] sm:$0xff] %v171_v17   ;;  %176 = vst [vmem:[%s1011_s20 + $0x90] sm:$0xff] %v175_v18   ;;  %v191_v22 = vld [vmem:[%s1003_s19 + $0x150] sm:$0xff]   ;;  %v195_v23 = vld [vmem:[%s1003_s19 + $0x158] sm:$0xff]  }
  0x1c   : > { %180 = vst [vmem:[%s1011_s20 + $0x98] sm:$0xff] %v179_v19   ;;  %184 = vst [vmem:[%s1011_s20 + $0xa0] sm:$0xff] %v183_v20   ;;  %v199_v24 = vld [vmem:[%s1003_s19 + $0x180] sm:$0xff]   ;;  %v203_v25 = vld [vmem:[%s1003_s19 + $0x188] sm:$0xff]  }
  0x1d   : > { %188 = vst [vmem:[%s1011_s20 + $0xa8] sm:$0xff] %v187_v21   ;;  %192 = vst [vmem:[%s1011_s20 + $0xb0] sm:$0xff] %v191_v22   ;;  %v207_v26 = vld [vmem:[%s1003_s19 + $0x190] sm:$0xff]   ;;  %v211_v27 = vld [vmem:[%s1003_s19 + $0x198] sm:$0xff]  }
  0x1e   : > { %196 = vst [vmem:[%s1011_s20 + $0xb8] sm:$0xff] %v195_v23   ;;  %200 = vst [vmem:[%s1011_s20 + $0xc0] sm:$0xff] %v199_v24   ;;  %v215_v28 = vld [vmem:[%s1003_s19 + $0x1c0] sm:$0xff]   ;;  %v219_v29 = vld [vmem:[%s1003_s19 + $0x1c8] sm:$0xff]  }
  0x1f   : > { %204 = vst [vmem:[%s1011_s20 + $0xc8] sm:$0xff] %v203_v25   ;;  %208 = vst [vmem:[%s1011_s20 + $0xd0] sm:$0xff] %v207_v26   ;;  %v223_v30 = vld [vmem:[%s1003_s19 + $0x1d0] sm:$0xff]   ;;  %v227_v31 = vld [vmem:[%s1003_s19 + $0x1d8] sm:$0xff]  }
  0x20   : > { %212 = vst [vmem:[%s1011_s20 + $0xd8] sm:$0xff] %v211_v27   ;;  %216 = vst [vmem:[%s1011_s20 + $0xe0] sm:$0xff] %v215_v28   ;;  %v231_v32 = vld [vmem:[%s1003_s19 + $0x200] sm:$0xff]   ;;  %v235_v33 = vld [vmem:[%s1003_s19 + $0x208] sm:$0xff]  }
  0x21   : > { %220 = vst [vmem:[%s1011_s20 + $0xe8] sm:$0xff] %v219_v29   ;;  %224 = vst [vmem:[%s1011_s20 + $0xf0] sm:$0xff] %v223_v30   ;;  %v239_v34 = vld [vmem:[%s1003_s19 + $0x210] sm:$0xff]   ;;  %v243_v35 = vld [vmem:[%s1003_s19 + $0x218] sm:$0xff]  }
  0x22   : > { %228 = vst [vmem:[%s1011_s20 + $0xf8] sm:$0xff] %v227_v31   ;;  %232 = vst [vmem:[%s1011_s20 + $0x100] sm:$0xff] %v231_v32  }
  0x23   : > { %236 = vst [vmem:[%s1011_s20 + $0x108] sm:$0xff] %v235_v33   ;;  %240 = vst [vmem:[%s1011_s20 + $0x110] sm:$0xff] %v239_v34  }
  0x24   : > { %244 = vst [vmem:[%s1011_s20 + $0x118] sm:$0xff] %v243_v35  }
  0x25 PF: > { %p876_p5 = scmp.ge.s32.totalorder %s957_s8, 1  ;;  %p412_p6 = scmp.lt.s32.totalorder %s957_s8, 3 }
  0x27   : > { %p413_p7 = pnand %p876_p5, %p412_p6 }
  0x28   : > { %s419_s21 = sand.u32 (!%p413_p7), 1, %s949_s6   ;;  %vm518_vm0 = vcmask (!%p413_p7), 1043456   ;;  %s877_s24 = sshll.u32 (!%p413_p7), %s870_s9, 3 }
  0x29   : > { %416 = sbr.rel (%p413_p7) target bundleno = 107 (0x6b), region = 61  ;;  %p440_p8 = scmp.lt.s32.totalorder (!%p413_p7), %s877_s24, 15 }
  0x2a   : > { %s910_s22 = smul.u32 (!%p413_p7), 288, %s419_s21 }
  0x2c   : > { %s1082_s23 = scalar_lea.vmem (!%p413_p7), [#allocation2], %s910_s22 }
  0x2d   : > { %v446_v36 = vld [vmem:[%s1082_s23] sm:$0xf] (!%p413_p7)  ;;  %v447_v39 = vld [vmem:[%s1082_s23 + $0x4] sm:$0xf] (!%p413_p7)  ;;  %v448_v10 = vld [vmem:[%s1082_s23 + $0x8] sm:$0xf] (!%p413_p7) }
  0x2e   : > { %v454_v37 = vld [vmem:[%s1082_s23 + $0x20] sm:$0xf] (!%p413_p7)  ;;  %v455_v40 = vld [vmem:[%s1082_s23 + $0x24] sm:$0xf] (!%p413_p7)  ;;  %v521_v42 = vsel (!%p413_p7), %vm518_vm0, %v446_v36, 4286644096 }
  0x2f   : > { %v462_v38 = vld [vmem:[%s1082_s23 + $0x40] sm:$0xf] (!%p413_p7)  ;;  %v463_v43 = vld [vmem:[%s1082_s23 + $0x44] sm:$0xf] (!%p413_p7)  ;;  %v524_v44 = vsel (!%p413_p7), %vm518_vm0, %v454_v37, 4286644096 }
  0x30   : > { %v470_v41 = vld [vmem:[%s1082_s23 + $0x60] sm:$0xf]  ;;  %v528_v45 = vsel %vm518_vm0, %v462_v38, 4286644096  ;;  %v526_v47 = vmax.bf16 %v524_v44, %v521_v42  ;;  %v471_v48 = vld [vmem:[%s1082_s23 + $0x64] sm:$0xf] }
  0x31   : > { %v478_v46 = vld [vmem:[%s1082_s23 + $0x80] sm:$0xf]  ;;  %v532_v49 = vsel %vm518_vm0, %v470_v41, 4286644096  ;;  %v556_v50 = vsel %vm518_vm0, %v447_v39, 4286644096 }
  0x32   : > { %v486_v51 = vld [vmem:[%s1082_s23 + $0xa0] sm:$0xf]  ;;  %v530_v52 = vmax.bf16 %v528_v45, %v526_v47  ;;  %v559_v53 = vsel %vm518_vm0, %v455_v40, 4286644096  ;;  %v563_v54 = vsel %vm518_vm0, %v463_v43, 4286644096 }
  0x33   : > { %v479_v55 = vld [vmem:[%s1082_s23 + $0x84] sm:$0xf]  ;;  %v536_v56 = vsel %vm518_vm0, %v478_v46, 4286644096  ;;  %v561_v57 = vmax.bf16 %v559_v53, %v556_v50  ;;  %v494_v58 = vld [vmem:[%s1082_s23 + $0xc0] sm:$0xf] }
  0x34   : > { %v502_v59 = vld [vmem:[%s1082_s23 + $0xe0] sm:$0xf]  ;;  %v534_v60 = vmax.bf16 %v532_v49, %v530_v52  ;;  %v567_v61 = vsel %vm518_vm0, %v471_v48, 4286644096  ;;  %s1259_s24 = smov (!%p440_p8, %s877_s24), 15 }
  0x35   : > { %v487_v62 = vld [vmem:[%s1082_s23 + $0xa4] sm:$0xf]  ;;  %v540_v63 = vsel %vm518_vm0, %v486_v51, 4286644096  ;;  %v565_v0 = vmax.bf16 %v563_v54, %v561_v57  ;;  %v510_v2 = vld [vmem:[%s1082_s23 + $0x100] sm:$0xf] }
  0x36   : > { %v495_v1 = vld [vmem:[%s1082_s23 + $0xc4] sm:$0xf]  ;;  %v538_v3 = vmax.bf16 %v536_v56, %v534_v60  ;;  %v571_v4 = vsel %vm518_vm0, %v479_v55, 4286644096  ;;  %v544_v7 = vsel %vm518_vm0, %v494_v58, 4286644096 }
  0x37   : > { %v503_v5 = vld [vmem:[%s1082_s23 + $0xe4] sm:$0xf]  ;;  %v548_v8 = vsel %vm518_vm0, %v502_v59, 4286644096  ;;  %v569_v9 = vmax.bf16 %v567_v61, %v565_v0  ;;  %v575_v12 = vsel %vm518_vm0, %v487_v62, 4286644096 }
  0x38   : > { %v511_v6 = vld [vmem:[%s1082_s23 + $0x104] sm:$0xf]  ;;  %v542_v11 = vmax.bf16 %v540_v63, %v538_v3  ;;  %v456_v13 = vld [vmem:[%s1082_s23 + $0x28] sm:$0xf]  ;;  %v552_v15 = vsel %vm518_vm0, %v510_v2, 4286644096 }
  0x39   : > { %v464_v14 = vld [vmem:[%s1082_s23 + $0x48] sm:$0xf]  ;;  %v573_v16 = vmax.bf16 %v571_v4, %v569_v9  ;;  %v579_v17 = vsel %vm518_vm0, %v495_v1, 4286644096  ;;  %v449_v18 = vld [vmem:[%s1082_s23 + $0xc] sm:$0xf] }
  0x3a   : > { %v546_v19 = vmax.bf16 %v544_v7, %v542_v11  ;;  %v457_v20 = vld [vmem:[%s1082_s23 + $0x2c] sm:$0xf]  ;;  %v472_v21 = vld [vmem:[%s1082_s23 + $0x68] sm:$0xf]  ;;  %v591_v22 = vsel %vm518_vm0, %v448_v10, 4286644096 }
  0x3b   : > { %v577_v23 = vmax.bf16 %v575_v12, %v573_v16  ;;  %v480_v24 = vld [vmem:[%s1082_s23 + $0x88] sm:$0xf]  ;;  %v594_v25 = vsel %vm518_vm0, %v456_v13, 4286644096  ;;  %v598_v26 = vsel %vm518_vm0, %v464_v14, 4286644096 }
  0x3c   : > { %v550_v27 = vmax.bf16 %v548_v8, %v546_v19  ;;  %v583_v28 = vsel %vm518_vm0, %v503_v5, 4286644096  ;;  %v587_v29 = vsel %vm518_vm0, %v511_v6, 4286644096  ;;  %v465_v30 = vld [vmem:[%s1082_s23 + $0x4c] sm:$0xf]  ;;  %v596_v31 = vmax.bf16 %v594_v25, %v591_v22 }
  0x3d   : > { %v581_v32 = vmax.bf16 %v579_v17, %v577_v23  ;;  %v473_v33 = vld [vmem:[%s1082_s23 + $0x6c] sm:$0xf]  ;;  %v488_v34 = vld [vmem:[%s1082_s23 + $0xa8] sm:$0xf]  ;;  %v602_v35 = vsel %vm518_vm0, %v472_v21, 4286644096 }
  0x3e   : > { %v600_v36 = vmax.bf16 %v598_v26, %v596_v31  ;;  %v606_v37 = vsel %vm518_vm0, %v480_v24, 4286644096  ;;  %v626_v38 = vsel %vm518_vm0, %v449_v18, 4286644096  ;;  %v629_v39 = vsel %vm518_vm0, %v457_v20, 4286644096 }
  0x3f   : > { %s878_s25 = sshll.u32 %s1259_s24, 2  ;;  %v554_v40 = vmax.bf16 %v552_v15, %v550_v27  ;;  %v585_v41 = vmax.bf16 %v583_v28, %v581_v32  ;;  %v481_v42 = vld [vmem:[%s1082_s23 + $0x8c] sm:$0xf]  ;;  %v631_v43 = vmax.bf16 %v629_v39, %v626_v38  ;;  %v633_v44 = vsel %vm518_vm0, %v465_v30, 4286644096 }
  0x40   : > { %v496_v45 = vld [vmem:[%s1082_s23 + $0xc8] sm:$0xf]  ;;  %v604_v47 = vmax.bf16 %v602_v35, %v600_v36  ;;  %v637_v48 = vsel %vm518_vm0, %v473_v33, 4286644096  ;;  %v489_v50 = vld [vmem:[%s1082_s23 + $0xac] sm:$0xf]  ;;  %s1153_s28 = scalar_lea.vmem %s1254_s1, %s878_s25 }
  0x41   : > { %v504_v46 = vld [vmem:[%s1082_s23 + $0xe8] sm:$0xf]  ;;  %v589_v49 = vmax.bf16 %v587_v29, %v585_v41  ;;  %v610_v51 = vsel %vm518_vm0, %v488_v34, 4286644096  ;;  %v635_v52 = vmax.bf16 %v633_v44, %v631_v43  ;;  %v497_v53 = vld [vmem:[%s1082_s23 + $0xcc] sm:$0xf] }
  0x42   : > { %v512_v54 = vld [vmem:[%s1082_s23 + $0x108] sm:$0xf]  ;;  %v608_v55 = vmax.bf16 %v606_v37, %v604_v47  ;;  %v641_v56 = vsel %vm518_vm0, %v481_v42, 4286644096  ;;  %v505_v58 = vld [vmem:[%s1082_s23 + $0xec] sm:$0xf] }
  0x43   : > { %v902_v57 = vcombine.low %v554_v40, %v589_v49  ;;  %v513_v59 = vld [vmem:[%s1082_s23 + $0x10c] sm:$0xf]  ;;  %v614_v60 = vsel %vm518_vm0, %v496_v45, 4286644096  ;;  %v618_v61 = vsel %vm518_vm0, %v504_v46, 4286644096  ;;  %v639_v62 = vmax.bf16 %v637_v48, %v635_v52 }
  0x44   : > { %v450_v63 = vld [vmem:[%s1082_s23 + $0x10] sm:$0xf]  ;;  %v612_v0 = vmax.bf16 %v610_v51, %v608_v55  ;;  %v645_v1 = vsel %vm518_vm0, %v489_v50, 4286644096  ;;  %v622_v4 = vsel %vm518_vm0, %v512_v54, 4286644096 }
  0x45   : > { %v458_v2 = vld [vmem:[%s1082_s23 + $0x30] sm:$0xf]  ;;  %886 = vst [vmem:[%s1153_s28] sm:$0xff] %v902_v57   ;;  %v643_v5 = vmax.bf16 %v641_v56, %v639_v62  ;;  %v649_v6 = vsel %vm518_vm0, %v497_v53, 4286644096  ;;  %v451_v7 = vld [vmem:[%s1082_s23 + $0x14] sm:$0xf] }
  0x46   : > { %v466_v3 = vld [vmem:[%s1082_s23 + $0x50] sm:$0xf]  ;;  %v616_v8 = vmax.bf16 %v614_v60, %v612_v0  ;;  %v459_v9 = vld [vmem:[%s1082_s23 + $0x34] sm:$0xf]  ;;  %v661_v11 = vsel %vm518_vm0, %v450_v63, 4286644096 }
  0x47   : > { %v474_v10 = vld [vmem:[%s1082_s23 + $0x70] sm:$0xf]  ;;  %v647_v12 = vmax.bf16 %v645_v1, %v643_v5  ;;  %v664_v14 = vsel %vm518_vm0, %v458_v2, 4286644096  ;;  %v668_v15 = vsel %vm518_vm0, %v466_v3, 4286644096 }
  0x48   : > { %v482_v13 = vld [vmem:[%s1082_s23 + $0x90] sm:$0xf]  ;;  %v620_v16 = vmax.bf16 %v618_v61, %v616_v8  ;;  %v653_v17 = vsel %vm518_vm0, %v505_v58, 4286644096  ;;  %v657_v18 = vsel %vm518_vm0, %v513_v59, 4286644096  ;;  %v666_v20 = vmax.bf16 %v664_v14, %v661_v11 }
  0x49   : > { %v467_v19 = vld [vmem:[%s1082_s23 + $0x54] sm:$0xf]  ;;  %v651_v21 = vmax.bf16 %v649_v6, %v647_v12  ;;  %v490_v23 = vld [vmem:[%s1082_s23 + $0xb0] sm:$0xf]  ;;  %v672_v24 = vsel %vm518_vm0, %v474_v10, 4286644096 }
  0x4a   : > { %v475_v22 = vld [vmem:[%s1082_s23 + $0x74] sm:$0xf]  ;;  %v670_v25 = vmax.bf16 %v668_v15, %v666_v20  ;;  %v676_v26 = vsel %vm518_vm0, %v482_v13, 4286644096  ;;  %v696_v27 = vsel %vm518_vm0, %v451_v7, 4286644096  ;;  %v624_v29 = vmax.bf16 %v622_v4, %v620_v16 }
  0x4b   : > { %v699_v28 = vsel %vm518_vm0, %v459_v9, 4286644096  ;;  %v655_v30 = vmax.bf16 %v653_v17, %v651_v21  ;;  %v483_v31 = vld [vmem:[%s1082_s23 + $0x94] sm:$0xf]  ;;  %v703_v33 = vsel %vm518_vm0, %v467_v19, 4286644096 }
  0x4c   : > { %v701_v32 = vmax.bf16 %v699_v28, %v696_v27  ;;  %v498_v34 = vld [vmem:[%s1082_s23 + $0xd0] sm:$0xf]  ;;  %v674_v36 = vmax.bf16 %v672_v24, %v670_v25  ;;  %v707_v37 = vsel %vm518_vm0, %v475_v22, 4286644096  ;;  %v491_v39 = vld [vmem:[%s1082_s23 + $0xb4] sm:$0xf] }
  0x4d   : > { %v506_v35 = vld [vmem:[%s1082_s23 + $0xf0] sm:$0xf]  ;;  %v659_v38 = vmax.bf16 %v657_v18, %v655_v30  ;;  %v680_v40 = vsel %vm518_vm0, %v490_v23, 4286644096  ;;  %v499_v42 = vld [vmem:[%s1082_s23 + $0xd4] sm:$0xf] }
  0x4e   : > { %v705_v41 = vmax.bf16 %v703_v33, %v701_v32  ;;  %v514_v43 = vld [vmem:[%s1082_s23 + $0x110] sm:$0xf]  ;;  %v678_v44 = vmax.bf16 %v676_v26, %v674_v36  ;;  %v711_v45 = vsel %vm518_vm0, %v483_v31, 4286644096  ;;  %v507_v47 = vld [vmem:[%s1082_s23 + $0xf4] sm:$0xf] }
  0x4f   : > { %v903_v46 = vcombine.low %v624_v29, %v659_v38  ;;  %v515_v48 = vld [vmem:[%s1082_s23 + $0x114] sm:$0xf]  ;;  %v684_v49 = vsel %vm518_vm0, %v498_v34, 4286644096  ;;  %v688_v50 = vsel %vm518_vm0, %v506_v35, 4286644096 }
  0x50   : > { %v709_v51 = vmax.bf16 %v707_v37, %v705_v41  ;;  %v452_v52 = vld [vmem:[%s1082_s23 + $0x18] sm:$0xf]  ;;  %v682_v53 = vmax.bf16 %v680_v40, %v678_v44  ;;  %v715_v54 = vsel %vm518_vm0, %v491_v39, 4286644096  ;;  %v692_v57 = vsel %vm518_vm0, %v514_v43, 4286644096 }
  0x51   : > { %v460_v55 = vld [vmem:[%s1082_s23 + $0x38] sm:$0xf]  ;;  %904 = vst [vmem:[%s1153_s28 + $0x8] sm:$0xff] %v903_v46   ;;  %v719_v59 = vsel %vm518_vm0, %v499_v42, 4286644096 }
  0x52   : > { %v468_v56 = vld [vmem:[%s1082_s23 + $0x58] sm:$0xf]  ;;  %v713_v58 = vmax.bf16 %v711_v45, %v709_v51  ;;  %v453_v60 = vld [vmem:[%s1082_s23 + $0x1c] sm:$0xf]  ;;  %v686_v61 = vmax.bf16 %v684_v49, %v682_v53  ;;  %v731_v0 = vsel %vm518_vm0, %v452_v52, 4286644096 }
  0x53   : > { %v461_v62 = vld [vmem:[%s1082_s23 + $0x3c] sm:$0xf]  ;;  %v476_v63 = vld [vmem:[%s1082_s23 + $0x78] sm:$0xf]  ;;  %v734_v3 = vsel %vm518_vm0, %v460_v55, 4286644096 }
  0x54   : > { %v717_v1 = vmax.bf16 %v715_v54, %v713_v58  ;;  %v484_v2 = vld [vmem:[%s1082_s23 + $0x98] sm:$0xf]  ;;  %v738_v4 = vsel %vm518_vm0, %v468_v56, 4286644096  ;;  %v690_v5 = vmax.bf16 %v688_v50, %v686_v61  ;;  %v723_v6 = vsel %vm518_vm0, %v507_v47, 4286644096 }
  0x55   : > { %v727_v7 = vsel %vm518_vm0, %v515_v48, 4286644096  ;;  %v469_v8 = vld [vmem:[%s1082_s23 + $0x5c] sm:$0xf]  ;;  %v736_v9 = vmax.bf16 %v734_v3, %v731_v0  ;;  %v492_v12 = vld [vmem:[%s1082_s23 + $0xb8] sm:$0xf] }
  0x56   : > { %v721_v10 = vmax.bf16 %v719_v59, %v717_v1  ;;  %v477_v11 = vld [vmem:[%s1082_s23 + $0x7c] sm:$0xf]  ;;  %v742_v13 = vsel %vm518_vm0, %v476_v63, 4286644096  ;;  %v746_v15 = vsel %vm518_vm0, %v484_v2, 4286644096  ;;  %v694_v18 = vmax.bf16 %v692_v57, %v690_v5 }
  0x57   : > { %v740_v14 = vmax.bf16 %v738_v4, %v736_v9  ;;  %v766_v16 = vsel %vm518_vm0, %v453_v60, 4286644096  ;;  %v769_v17 = vsel %vm518_vm0, %v461_v62, 4286644096  ;;  %v485_v20 = vld [vmem:[%s1082_s23 + $0x9c] sm:$0xf] }
  0x58   : > { %v725_v19 = vmax.bf16 %v723_v6, %v721_v10  ;;  %v771_v21 = vmax.bf16 %v769_v17, %v766_v16  ;;  %v773_v22 = vsel %vm518_vm0, %v469_v8, 4286644096  ;;  %v500_v23 = vld [vmem:[%s1082_s23 + $0xd8] sm:$0xf]  ;;  %v777_v25 = vsel %vm518_vm0, %v477_v11, 4286644096 }
  0x59   : > { %v744_v24 = vmax.bf16 %v742_v13, %v740_v14  ;;  %v493_v27 = vld [vmem:[%s1082_s23 + $0xbc] sm:$0xf]  ;;  %v750_v28 = vsel %vm518_vm0, %v492_v12, 4286644096  ;;  %v508_v30 = vld [vmem:[%s1082_s23 + $0xf8] sm:$0xf] }
  0x5a   : > { %v729_v26 = vmax.bf16 %v727_v7, %v725_v19  ;;  %v775_v29 = vmax.bf16 %v773_v22, %v771_v21  ;;  %v781_v32 = vsel %vm518_vm0, %v485_v20, 4286644096  ;;  %v501_v34 = vld [vmem:[%s1082_s23 + $0xdc] sm:$0xf]  ;;  %v754_v35 = vsel %vm518_vm0, %v500_v23, 4286644096 }
  0x5b   : > { %v748_v31 = vmax.bf16 %v746_v15, %v744_v24  ;;  %v785_v38 = vsel %vm518_vm0, %v493_v27, 4286644096  ;;  %v509_v39 = vld [vmem:[%s1082_s23 + $0xfc] sm:$0xf]  ;;  %v516_v40 = vld [vmem:[%s1082_s23 + $0x118] sm:$0xf] }
  0x5c   : > { %v905_v33 = vcombine.low %v694_v18, %v729_v26  ;;  %v779_v36 = vmax.bf16 %v777_v25, %v775_v29  ;;  %v758_v41 = vsel %vm518_vm0, %v508_v30, 4286644096  ;;  %v789_v44 = vsel %vm518_vm0, %v501_v34, 4286644096  ;;  %v517_v45 = vld [vmem:[%s1082_s23 + $0x11c] sm:$0xf] }
  0x5d   : > { %v752_v37 = vmax.bf16 %v750_v28, %v748_v31  ;;  %v762_v48 = vsel %vm518_vm0, %v516_v40, 4286644096  ;;  %v793_v49 = vsel %vm518_vm0, %v509_v39, 4286644096  ;;  %v797_v51 = vsel %vm518_vm0, %v517_v45, 4286644096 }
  0x5e   : > { %906 = vst [vmem:[%s1153_s28 + $0x10] sm:$0xff] %v905_v33   ;;  %v783_v42 = vmax.bf16 %v781_v32, %v779_v36 }
  0x5f   : > { %v756_v43 = vmax.bf16 %v754_v35, %v752_v37 }
  0x60   : > { %v787_v46 = vmax.bf16 %v785_v38, %v783_v42 }
  0x61   : > { %v760_v47 = vmax.bf16 %v758_v41, %v756_v43 }
  0x62   : > { %v791_v50 = vmax.bf16 %v789_v44, %v787_v46 }
  0x63   : > { %v764_v52 = vmax.bf16 %v762_v48, %v760_v47 }
  0x64   : > { %v795_v53 = vmax.bf16 %v793_v49, %v791_v50 }
  0x66   : > { %v799_v54 = vmax.bf16 %v797_v51, %v795_v53 }
  0x68   : > { %v907_v55 = vcombine.low %v764_v52, %v799_v54 }
  0x6a   : > { %908 = vst [vmem:[%s1153_s28 + $0x18] sm:$0xff] %v907_v55  }
  0x6b PF: > { %p8_p9 = scmp.ge.s32.totalorder %s986_s10, 4   ;;  %s1255_s6 = smov %s953_s7 }
  0x6c   : > { %s1256_s7 = smov %s995_s13  ;;  %s1257_s8 = smov %s986_s10 }
  0x6d   :  { %10 = sbr.rel (!%p8_p9) target bundleno = 2 (0x2), region = 100 }

// kernel: resnet_simclr_forward.22
= control target key start
LH: loop header
LB: loop body
LE: loop exit
PB: predicated region body
PF: predicated region fallthrough
CT: control target
= control target key end

     0   :  { %s1843_s15 = smov 0   ;;  %s1845_s16 = smov 0   ;;  %s2054_s0 = inlined_call_operand.vmem [shape: bf16[512,256], index: 0, kind: input, shape index: {}]   ;;  %s2055_s1 = inlined_call_operand.vmem [shape: bf16[256,128], index: 1, kind: input, shape index: {}]   ;;  %s2056_s2 = inlined_call_operand.vmem [shape: f32[1,128], index: 2, kind: input, shape index: {}]   ;;  %s2057_s3 = inlined_call_operand.vmem [shape: f32[1,128], index: 3, kind: input, shape index: {}]   ;;  %s2058_s4 = inlined_call_operand.vmem [shape: bf16[512,128], index: 4, kind: output, shape index: {}]  }
   0x1   :  { %s1847_s17 = smov 0  }
   0x2 LB: > { %s33_s18 = sadd.s32 1, %s1812_s16  ;;  %p1360_p0 = scmp.ge.s32.totalorder %s1816_s17, 1  ;;  %s1816_s17 = sphi %s1847_s17, %s14_s17   ;;  %s1812_s16 = sphi %s1845_s16, %s2060_s16   ;;  %s1808_s15 = sphi %s1843_s15, %s2059_s15  }
   0x3   : > { %p35_p1 = scmp.ge.s32.totalorder %s33_s18, 2  ;;  %p224_p2 = scmp.lt.s32.totalorder %s1816_s17, 3 }
   0x5   : > { %s2062_s18 = smov (%p35_p1, %s33_s18), 0  ;;  %p225_p3 = pnand %p1360_p0, %p224_p2 }
   0x6   : > { %v1730_v0 = vld [vmem:[%s2055_s1 + $0x40] sm:$0xff] (!%p225_p3)   ;;  %s1361_s21 = sshll.u32 (!%p225_p3), %s1808_s15, 5  ;;  %v1732_v2 = vld [vmem:[%s2055_s1 + $0x48] sm:$0xff] (!%p225_p3)   ;;  %v1734_v4 = vld [vmem:[%s2055_s1 + $0x50] sm:$0xff] (!%p225_p3)  }
   0x7   : > { %228 = sbr.rel (%p225_p3) target bundleno = 322 (0x142), region = 36  ;;  %v1731_v1 = vld [vmem:[%s2055_s1] sm:$0xff] (!%p225_p3)   ;;  %1578 = vmatprep.subr.bf16.mxu0 (!%p225_p3), %v1730_v0  ;;  %1690 = vmatprep.subr.bf16.mxu1 (!%p225_p3), %v1730_v0  ;;  %v1733_v3 = vld [vmem:[%s2055_s1 + $0x8] sm:$0xff] (!%p225_p3)   ;;  %p274_p4 = scmp.lt.s32.totalorder (!%p225_p3), %s1361_s21, 63  ;;  %v1735_v5 = vld [vmem:[%s2055_s1 + $0x10] sm:$0xff] (!%p225_p3)  }
   0x8   : > { %1579 = vmatpush3.bf16.msra.mxu0 (!%p225_p3), %v1731_v1  ;;  %1698 = vmatpush3.bf16.msra.mxu1 (!%p225_p3), %v1731_v1  ;;  %v1736_v6 = vld [vmem:[%s2055_s1 + $0x58] sm:$0xff] (!%p225_p3)   ;;  %v1738_v8 = vld [vmem:[%s2055_s1 + $0x60] sm:$0xff] (!%p225_p3)   ;;  %v1740_v10 = vld [vmem:[%s2055_s1 + $0x68] sm:$0xff] (!%p225_p3)  }
   0x9   : > { %1580 = vmatprep.subr.bf16.mxu0 (!%p225_p3), %v1732_v2  ;;  %1691 = vmatprep.subr.bf16.mxu1 (!%p225_p3), %v1732_v2  ;;  %v1737_v7 = vld [vmem:[%s2055_s1 + $0x18] sm:$0xff] (!%p225_p3)   ;;  %v1739_v9 = vld [vmem:[%s2055_s1 + $0x20] sm:$0xff] (!%p225_p3)   ;;  %v1741_v13 = vld [vmem:[%s2055_s1 + $0x28] sm:$0xff] (!%p225_p3)  }
   0xa   : > { %v1742_v14 = vld [vmem:[%s2055_s1 + $0x70] sm:$0xff] (!%p225_p3)   ;;  %v1744_v16 = vld [vmem:[%s2055_s1 + $0x78] sm:$0xff] (!%p225_p3)   ;;  %v1952_v51 = vld [vmem:[%s2056_s2] ss:$0 sm:$0xff] (!%p225_p3) }
   0xb   : > { %v1743_v15 = vld [vmem:[%s2055_s1 + $0x30] sm:$0xff] (!%p225_p3)   ;;  %v1745_v17 = vld [vmem:[%s2055_s1 + $0x38] sm:$0xff] (!%p225_p3)   ;;  %v1957_v57 = vld [vmem:[%s2057_s3] ss:$0 sm:$0xff] (!%p225_p3) }
   0xc   : > { %1581 = vmatpush3.bf16.msra.mxu0 (!%p225_p3), %v1733_v3  ;;  %1699 = vmatpush3.bf16.msra.mxu1 (!%p225_p3), %v1733_v3 }
   0xd   : > { %1582 = vmatprep.subr.bf16.mxu0 (!%p225_p3), %v1734_v4  ;;  %1692 = vmatprep.subr.bf16.mxu1 (!%p225_p3), %v1734_v4 }
   0xe   : > { %s2064_s21 = smov (!%p274_p4, %s1361_s21), 63 }
   0xf   : > { %s1450_s10 = sshll.u32 %s2064_s21, 3  ;;  %s1365_s12 = sshll.u32 %s2064_s21, 2 }
  0x10   : > { %1583 = vmatpush3.bf16.msra.mxu0 %v1735_v5  ;;  %1700 = vmatpush3.bf16.msra.mxu1 %v1735_v5  ;;  %s1894_s15 = scalar_lea.vmem %s2054_s0, %s1450_s10  ;;  %s1971_s21 = scalar_lea.vmem %s2058_s4, %s1365_s12 }
  0x11   : > { %1584 = vmatprep.subr.bf16.mxu0 %v1736_v6  ;;  %1693 = vmatprep.subr.bf16.mxu1 %v1736_v6  ;;  %v1748_v11 = vld [vmem:[%s1894_s15 + $0x4] ss:$8 sps:$4 sm:$0xff]   ;;  %v1746_v18 = vld [vmem:[%s1894_s15] ss:$8 sps:$4 sm:$0xff]   ;;  %v1752_v20 = vld [vmem:[%s1894_s15 + $0x14] ss:$8 sps:$4 sm:$0xff]  }
  0x12   : > { %v1751_v12 = vld [vmem:[%s1894_s15 + $0x84] ss:$8 sps:$4 sm:$0xff]   ;;  %729 = vmatprep.mubr.bf16.mxu0 %v1748_v11  ;;  %v1749_v19 = vld [vmem:[%s1894_s15 + $0x80] ss:$8 sps:$4 sm:$0xff]   ;;  %v1754_v21 = vld [vmem:[%s1894_s15 + $0x94] ss:$8 sps:$4 sm:$0xff]  }
  0x13   : > { %793 = vmatprep.mubr.bf16.mxu1 %v1751_v12  ;;  %v1756_v22 = vld [vmem:[%s1894_s15 + $0x10] ss:$8 sps:$4 sm:$0xff]   ;;  %v1758_v24 = vld [vmem:[%s1894_s15 + $0x24] ss:$8 sps:$4 sm:$0xff]   ;;  %v1762_v26 = vld [vmem:[%s1894_s15 + $0x20] ss:$8 sps:$4 sm:$0xff]  }
  0x14   : > { %1585 = vmatpush3.bf16.msra.mxu0 %v1737_v7  ;;  %1701 = vmatpush3.bf16.msra.mxu1 %v1737_v7  ;;  %v1757_v23 = vld [vmem:[%s1894_s15 + $0x90] ss:$8 sps:$4 sm:$0xff]   ;;  %v1760_v25 = vld [vmem:[%s1894_s15 + $0xa4] ss:$8 sps:$4 sm:$0xff]   ;;  %v1763_v27 = vld [vmem:[%s1894_s15 + $0xa0] ss:$8 sps:$4 sm:$0xff]  }
  0x15   : > { %1586 = vmatprep.subr.bf16.mxu0 %v1738_v8  ;;  %1694 = vmatprep.subr.bf16.mxu1 %v1738_v8  ;;  %v1764_v28 = vld [vmem:[%s1894_s15 + $0x34] ss:$8 sps:$4 sm:$0xff]   ;;  %v1768_v30 = vld [vmem:[%s1894_s15 + $0x30] ss:$8 sps:$4 sm:$0xff]   ;;  %v1770_v32 = vld [vmem:[%s1894_s15 + $0x44] ss:$8 sps:$4 sm:$0xff]  }
  0x16   : > { %v1766_v29 = vld [vmem:[%s1894_s15 + $0xb4] ss:$8 sps:$4 sm:$0xff]   ;;  %v1769_v31 = vld [vmem:[%s1894_s15 + $0xb0] ss:$8 sps:$4 sm:$0xff]   ;;  %v1772_v33 = vld [vmem:[%s1894_s15 + $0xc4] ss:$8 sps:$4 sm:$0xff]  }
  0x17   : > { %v1774_v34 = vld [vmem:[%s1894_s15 + $0x40] ss:$8 sps:$4 sm:$0xff]   ;;  %v1776_v36 = vld [vmem:[%s1894_s15 + $0x54] ss:$8 sps:$4 sm:$0xff]   ;;  %v1780_v38 = vld [vmem:[%s1894_s15 + $0x50] ss:$8 sps:$4 sm:$0xff]  }
  0x18   : > { %1587 = vmatpush3.bf16.msra.mxu0 %v1739_v9  ;;  %1702 = vmatpush3.bf16.msra.mxu1 %v1739_v9  ;;  %v1775_v35 = vld [vmem:[%s1894_s15 + $0xc0] ss:$8 sps:$4 sm:$0xff]   ;;  %v1778_v37 = vld [vmem:[%s1894_s15 + $0xd4] ss:$8 sps:$4 sm:$0xff]   ;;  %v1781_v39 = vld [vmem:[%s1894_s15 + $0xd0] ss:$8 sps:$4 sm:$0xff]  }
  0x19   : > { %1588 = vmatprep.subr.bf16.mxu0 %v1740_v10  ;;  %1695 = vmatprep.subr.bf16.mxu1 %v1740_v10  ;;  %v1782_v40 = vld [vmem:[%s1894_s15 + $0x64] ss:$8 sps:$4 sm:$0xff]   ;;  %v1786_v42 = vld [vmem:[%s1894_s15 + $0x60] ss:$8 sps:$4 sm:$0xff]   ;;  %v1788_v44 = vld [vmem:[%s1894_s15 + $0x74] ss:$8 sps:$4 sm:$0xff]  }
  0x1a   : > { %v1784_v41 = vld [vmem:[%s1894_s15 + $0xe4] ss:$8 sps:$4 sm:$0xff]   ;;  %v1787_v43 = vld [vmem:[%s1894_s15 + $0xe0] ss:$8 sps:$4 sm:$0xff]   ;;  %v1790_v45 = vld [vmem:[%s1894_s15 + $0xf4] ss:$8 sps:$4 sm:$0xff]  }
  0x1b   : > { %v1792_v46 = vld [vmem:[%s1894_s15 + $0x70] ss:$8 sps:$4 sm:$0xff]  }
  0x1c   : > { %1589 = vmatpush3.bf16.msra.mxu0 %v1741_v13  ;;  %1703 = vmatpush3.bf16.msra.mxu1 %v1741_v13  ;;  %v1793_v47 = vld [vmem:[%s1894_s15 + $0xf0] ss:$8 sps:$4 sm:$0xff]  }
  0x1d   : > { %1590 = vmatprep.subr.bf16.mxu0 %v1742_v14  ;;  %1696 = vmatprep.subr.bf16.mxu1 %v1742_v14 }
  0x20   : > { %1591 = vmatpush3.bf16.msra.mxu0 %v1743_v15  ;;  %1704 = vmatpush3.bf16.msra.mxu1 %v1743_v15 }
  0x21   : > { %1592 = vmatprep.subr.bf16.mxu0 %v1744_v16  ;;  %1697 = vmatprep.subr.bf16.mxu1 %v1744_v16 }
  0x24   : > { %1593 = vmatpush3.bf16.msra.mxu0 %v1745_v17  ;;  %1705 = vmatpush3.bf16.msra.mxu1 %v1745_v17 }
  0x27   : > { %730 = vmatmul.mubr.bf16.vlgmr.msra.gmra.mrb[0].mxu0 %v1746_v18  ;;  %794 = vmatmul.mubr.bf16.vlgmr.msra.gmra.mrb[0].mxu1 %v1749_v19 }
  0x28   : > { %737 = vmatprep.mubr.bf16.mxu0 %v1752_v20  ;;  %801 = vmatprep.mubr.bf16.mxu1 %v1754_v21 }
  0x2f   : > { %738 = vmatmul.mubr.bf16.gmra.mrb[4].mxu0 %v1756_v22  ;;  %802 = vmatmul.mubr.bf16.gmra.mrb[4].mxu1 %v1757_v23 }
  0x30   : > { %745 = vmatprep.mubr.bf16.mxu0 %v1758_v24  ;;  %809 = vmatprep.mubr.bf16.mxu1 %v1760_v25 }
  0x37   : > { %746 = vmatmul.mubr.bf16.gmra.mrb[8].mxu0 %v1762_v26  ;;  %810 = vmatmul.mubr.bf16.gmra.mrb[8].mxu1 %v1763_v27 }
  0x38   : > { %753 = vmatprep.mubr.bf16.mxu0 %v1764_v28  ;;  %817 = vmatprep.mubr.bf16.mxu1 %v1766_v29 }
  0x3f   : > { %754 = vmatmul.mubr.bf16.gmra.mrb[12].mxu0 %v1768_v30  ;;  %818 = vmatmul.mubr.bf16.gmra.mrb[12].mxu1 %v1769_v31 }
  0x40   : > { %761 = vmatprep.mubr.bf16.mxu0 %v1770_v32  ;;  %825 = vmatprep.mubr.bf16.mxu1 %v1772_v33 }
  0x47   : > { %762 = vmatmul.mubr.bf16.gmra.mrb[16].mxu0 %v1774_v34  ;;  %826 = vmatmul.mubr.bf16.gmra.mrb[16].mxu1 %v1775_v35 }
  0x48   : > { %769 = vmatprep.mubr.bf16.mxu0 %v1776_v36  ;;  %833 = vmatprep.mubr.bf16.mxu1 %v1778_v37 }
  0x4f   : > { %770 = vmatmul.mubr.bf16.gmra.mrb[20].mxu0 %v1780_v38  ;;  %834 = vmatmul.mubr.bf16.gmra.mrb[20].mxu1 %v1781_v39 }
  0x50   : > { %777 = vmatprep.mubr.bf16.mxu0 %v1782_v40  ;;  %841 = vmatprep.mubr.bf16.mxu1 %v1784_v41 }
  0x57   : > { %778 = vmatmul.mubr.bf16.gmra.mrb[24].mxu0 %v1786_v42  ;;  %842 = vmatmul.mubr.bf16.gmra.mrb[24].mxu1 %v1787_v43 }
  0x58   : > { %785 = vmatprep.mubr.bf16.mxu0 %v1788_v44  ;;  %849 = vmatprep.mubr.bf16.mxu1 %v1790_v45 }
  0x5f   : > { %786 = vmatmul.mubr.bf16.gmra.mrb[28].mxu0 %v1792_v46  ;;  %850 = vmatmul.mubr.bf16.gmra.mrb[28].mxu1 %v1793_v47 }
  0xfa   : > { %v1594_v48 = vpop.f32.mrb[0].mxu0  ;;  %v1642_v49 = vpop.f32.mrb[0].mxu1 }
  0xfb   : > { %v1595_v50 = vpop.f32.mrb[1].mxu0  ;;  %v1643_v52 = vpop.f32.mrb[1].mxu1 }
  0xfc   : > { %v1596_v53 = vadd.f32 %v1595_v50, %v1594_v48  ;;  %v1644_v54 = vadd.f32 %v1643_v52, %v1642_v49  ;;  %v1597_v55 = vpop.f32.mrb[2].mxu0  ;;  %v1645_v56 = vpop.f32.mrb[2].mxu1 }
  0xfd   : > { %v1598_v58 = vpop.f32.mrb[3].mxu0  ;;  %v1646_v59 = vpop.f32.mrb[3].mxu1 }
  0xfe   : > { %v964_v60 = vmul.f32 %v1596_v53, %v1952_v51  ;;  %v980_v61 = vmul.f32 %v1644_v54, %v1952_v51  ;;  %v1599_v62 = vadd.f32 %v1598_v58, %v1597_v55  ;;  %v1647_v63 = vadd.f32 %v1646_v59, %v1645_v56 }
 0x100   : > { %v1003_v0 = vadd.f32 %v1957_v57, %v964_v60  ;;  %v1019_v1 = vadd.f32 %v1957_v57, %v980_v61  ;;  %v965_v2 = vmul.f32 %v1599_v62, %v1952_v51  ;;  %v981_v3 = vmul.f32 %v1647_v63, %v1952_v51 }
 0x102   : > { %v1004_v4 = vadd.f32 %v1957_v57, %v965_v2  ;;  %v1020_v5 = vadd.f32 %v1957_v57, %v981_v3  ;;  %v1600_v6 = vpop.f32.mrb[4].mxu0  ;;  %v1648_v7 = vpop.f32.mrb[4].mxu1  ;;  %v1035_v8 = vmax.f32 %v1003_v0, 0.0  ;;  %v1051_v9 = vmax.f32 %v1019_v1, 0.0 }
 0x103   : > { %v1601_v10 = vpop.f32.mrb[5].mxu0  ;;  %v1649_v11 = vpop.f32.mrb[5].mxu1 }
 0x104   : > { %v1036_v12 = vmax.f32 %v1004_v4, 0.0  ;;  %v1052_v13 = vmax.f32 %v1020_v5, 0.0  ;;  %v1602_v14 = vadd.f32 %v1601_v10, %v1600_v6  ;;  %v1650_v15 = vadd.f32 %v1649_v11, %v1648_v7  ;;  %v1603_v16 = vpop.f32.mrb[6].mxu0  ;;  %v1651_v17 = vpop.f32.mrb[6].mxu1 }
 0x105   : > { %v1604_v18 = vpop.f32.mrb[7].mxu0  ;;  %v1652_v19 = vpop.f32.mrb[7].mxu1 }
 0x106   : > { %v1486_v20 = vpack.c.bf16 %v1036_v12, %v1035_v8  ;;  %v1526_v21 = vpack.c.bf16 %v1052_v13, %v1051_v9  ;;  %v966_v22 = vmul.f32 %v1602_v14, %v1952_v51  ;;  %v982_v23 = vmul.f32 %v1650_v15, %v1952_v51 }
 0x107   : > { %v1605_v24 = vadd.f32 %v1604_v18, %v1603_v16  ;;  %v1653_v25 = vadd.f32 %v1652_v19, %v1651_v17 }
 0x108   : > { %1487 = vst [vmem:[%s1971_s21] sm:$0xff] %v1486_v20   ;;  %1570 = vst [vmem:[%s1971_s21 + $0x40] sm:$0xff] %v1526_v21   ;;  %v1005_v26 = vadd.f32 %v1957_v57, %v966_v22  ;;  %v1021_v27 = vadd.f32 %v1957_v57, %v982_v23 }
 0x109   : > { %v967_v28 = vmul.f32 %v1605_v24, %v1952_v51  ;;  %v983_v29 = vmul.f32 %v1653_v25, %v1952_v51 }
 0x10a   : > { %v1606_v30 = vpop.f32.mrb[8].mxu0  ;;  %v1654_v31 = vpop.f32.mrb[8].mxu1  ;;  %v1037_v40 = vmax.f32 %v1005_v26, 0.0  ;;  %v1053_v41 = vmax.f32 %v1021_v27, 0.0 }
 0x10b   : > { %v1006_v32 = vadd.f32 %v1957_v57, %v967_v28  ;;  %v1022_v33 = vadd.f32 %v1957_v57, %v983_v29  ;;  %v1607_v34 = vpop.f32.mrb[9].mxu0  ;;  %v1655_v35 = vpop.f32.mrb[9].mxu1 }
 0x10c   : > { %v1608_v36 = vadd.f32 %v1607_v34, %v1606_v30  ;;  %v1656_v37 = vadd.f32 %v1655_v35, %v1654_v31  ;;  %v1609_v38 = vpop.f32.mrb[10].mxu0  ;;  %v1657_v39 = vpop.f32.mrb[10].mxu1 }
 0x10d   : > { %v1038_v42 = vmax.f32 %v1006_v32, 0.0  ;;  %v1054_v43 = vmax.f32 %v1022_v33, 0.0  ;;  %v1610_v44 = vpop.f32.mrb[11].mxu0  ;;  %v1658_v45 = vpop.f32.mrb[11].mxu1 }
 0x10e   : > { %v968_v46 = vmul.f32 %v1608_v36, %v1952_v51  ;;  %v984_v47 = vmul.f32 %v1656_v37, %v1952_v51  ;;  %v1611_v48 = vadd.f32 %v1610_v44, %v1609_v38  ;;  %v1659_v49 = vadd.f32 %v1658_v45, %v1657_v39 }
 0x10f   : > { %v1491_v50 = vpack.c.bf16 %v1038_v42, %v1037_v40  ;;  %v1531_v52 = vpack.c.bf16 %v1054_v43, %v1053_v41 }
 0x110   : > { %v1007_v53 = vadd.f32 %v1957_v57, %v968_v46  ;;  %v1023_v54 = vadd.f32 %v1957_v57, %v984_v47  ;;  %v969_v55 = vmul.f32 %v1611_v48, %v1952_v51  ;;  %v985_v56 = vmul.f32 %v1659_v49, %v1952_v51 }
 0x111   : > { %1563 = vst [vmem:[%s1971_s21 + $0x8] sm:$0xff] %v1491_v50   ;;  %1571 = vst [vmem:[%s1971_s21 + $0x48] sm:$0xff] %v1531_v52  }
 0x112   : > { %v1008_v58 = vadd.f32 %v1957_v57, %v969_v55  ;;  %v1024_v59 = vadd.f32 %v1957_v57, %v985_v56  ;;  %v1612_v60 = vpop.f32.mrb[12].mxu0  ;;  %v1660_v61 = vpop.f32.mrb[12].mxu1  ;;  %v1039_v62 = vmax.f32 %v1007_v53, 0.0  ;;  %v1055_v63 = vmax.f32 %v1023_v54, 0.0 }
 0x113   : > { %v1613_v0 = vpop.f32.mrb[13].mxu0  ;;  %v1661_v1 = vpop.f32.mrb[13].mxu1 }
 0x114   : > { %v1040_v2 = vmax.f32 %v1008_v58, 0.0  ;;  %v1056_v3 = vmax.f32 %v1024_v59, 0.0  ;;  %v1614_v4 = vadd.f32 %v1613_v0, %v1612_v60  ;;  %v1662_v5 = vadd.f32 %v1661_v1, %v1660_v61  ;;  %v1615_v6 = vpop.f32.mrb[14].mxu0  ;;  %v1663_v7 = vpop.f32.mrb[14].mxu1 }
 0x115   : > { %v1616_v8 = vpop.f32.mrb[15].mxu0  ;;  %v1664_v9 = vpop.f32.mrb[15].mxu1 }
 0x116   : > { %v1496_v10 = vpack.c.bf16 %v1040_v2, %v1039_v62  ;;  %v1536_v11 = vpack.c.bf16 %v1056_v3, %v1055_v63  ;;  %v970_v12 = vmul.f32 %v1614_v4, %v1952_v51  ;;  %v986_v13 = vmul.f32 %v1662_v5, %v1952_v51 }
 0x117   : > { %v1617_v14 = vadd.f32 %v1616_v8, %v1615_v6  ;;  %v1665_v15 = vadd.f32 %v1664_v9, %v1663_v7 }
 0x118   : > { %1564 = vst [vmem:[%s1971_s21 + $0x10] sm:$0xff] %v1496_v10   ;;  %1572 = vst [vmem:[%s1971_s21 + $0x50] sm:$0xff] %v1536_v11   ;;  %v1009_v16 = vadd.f32 %v1957_v57, %v970_v12  ;;  %v1025_v17 = vadd.f32 %v1957_v57, %v986_v13 }
 0x119   : > { %v971_v18 = vmul.f32 %v1617_v14, %v1952_v51  ;;  %v987_v19 = vmul.f32 %v1665_v15, %v1952_v51 }
 0x11a   : > { %v1618_v20 = vpop.f32.mrb[16].mxu0  ;;  %v1666_v21 = vpop.f32.mrb[16].mxu1  ;;  %v1041_v30 = vmax.f32 %v1009_v16, 0.0  ;;  %v1057_v31 = vmax.f32 %v1025_v17, 0.0 }
 0x11b   : > { %v1010_v22 = vadd.f32 %v1957_v57, %v971_v18  ;;  %v1026_v23 = vadd.f32 %v1957_v57, %v987_v19  ;;  %v1619_v24 = vpop.f32.mrb[17].mxu0  ;;  %v1667_v25 = vpop.f32.mrb[17].mxu1 }
 0x11c   : > { %v1620_v26 = vadd.f32 %v1619_v24, %v1618_v20  ;;  %v1668_v27 = vadd.f32 %v1667_v25, %v1666_v21  ;;  %v1621_v28 = vpop.f32.mrb[18].mxu0  ;;  %v1669_v29 = vpop.f32.mrb[18].mxu1 }
 0x11d   : > { %v1042_v32 = vmax.f32 %v1010_v22, 0.0  ;;  %v1058_v33 = vmax.f32 %v1026_v23, 0.0  ;;  %v1622_v34 = vpop.f32.mrb[19].mxu0  ;;  %v1670_v35 = vpop.f32.mrb[19].mxu1 }
 0x11e   : > { %v972_v36 = vmul.f32 %v1620_v26, %v1952_v51  ;;  %v988_v37 = vmul.f32 %v1668_v27, %v1952_v51  ;;  %v1623_v38 = vadd.f32 %v1622_v34, %v1621_v28  ;;  %v1671_v39 = vadd.f32 %v1670_v35, %v1669_v29 }
 0x11f   : > { %v1501_v40 = vpack.c.bf16 %v1042_v32, %v1041_v30  ;;  %v1541_v41 = vpack.c.bf16 %v1058_v33, %v1057_v31 }
 0x120   : > { %v1011_v42 = vadd.f32 %v1957_v57, %v972_v36  ;;  %v1027_v43 = vadd.f32 %v1957_v57, %v988_v37  ;;  %v973_v44 = vmul.f32 %v1623_v38, %v1952_v51  ;;  %v989_v45 = vmul.f32 %v1671_v39, %v1952_v51 }
 0x121   : > { %1565 = vst [vmem:[%s1971_s21 + $0x18] sm:$0xff] %v1501_v40   ;;  %1573 = vst [vmem:[%s1971_s21 + $0x58] sm:$0xff] %v1541_v41  }
 0x122   : > { %v1012_v46 = vadd.f32 %v1957_v57, %v973_v44  ;;  %v1028_v47 = vadd.f32 %v1957_v57, %v989_v45  ;;  %v1624_v48 = vpop.f32.mrb[20].mxu0  ;;  %v1672_v49 = vpop.f32.mrb[20].mxu1  ;;  %v1043_v50 = vmax.f32 %v1011_v42, 0.0  ;;  %v1059_v52 = vmax.f32 %v1027_v43, 0.0 }
 0x123   : > { %v1625_v53 = vpop.f32.mrb[21].mxu0  ;;  %v1673_v54 = vpop.f32.mrb[21].mxu1 }
 0x124   : > { %v1044_v55 = vmax.f32 %v1012_v46, 0.0  ;;  %v1060_v56 = vmax.f32 %v1028_v47, 0.0  ;;  %v1626_v58 = vadd.f32 %v1625_v53, %v1624_v48  ;;  %v1674_v59 = vadd.f32 %v1673_v54, %v1672_v49  ;;  %v1627_v60 = vpop.f32.mrb[22].mxu0  ;;  %v1675_v61 = vpop.f32.mrb[22].mxu1 }
 0x125   : > { %v1628_v62 = vpop.f32.mrb[23].mxu0  ;;  %v1676_v63 = vpop.f32.mrb[23].mxu1 }
 0x126   : > { %v1506_v0 = vpack.c.bf16 %v1044_v55, %v1043_v50  ;;  %v1546_v1 = vpack.c.bf16 %v1060_v56, %v1059_v52  ;;  %v974_v2 = vmul.f32 %v1626_v58, %v1952_v51  ;;  %v990_v3 = vmul.f32 %v1674_v59, %v1952_v51 }
 0x127   : > { %v1629_v4 = vadd.f32 %v1628_v62, %v1627_v60  ;;  %v1677_v5 = vadd.f32 %v1676_v63, %v1675_v61 }
 0x128   : > { %1566 = vst [vmem:[%s1971_s21 + $0x20] sm:$0xff] %v1506_v0   ;;  %1574 = vst [vmem:[%s1971_s21 + $0x60] sm:$0xff] %v1546_v1   ;;  %v1013_v6 = vadd.f32 %v1957_v57, %v974_v2  ;;  %v1029_v7 = vadd.f32 %v1957_v57, %v990_v3 }
 0x129   : > { %v975_v8 = vmul.f32 %v1629_v4, %v1952_v51  ;;  %v991_v9 = vmul.f32 %v1677_v5, %v1952_v51 }
 0x12a   : > { %v1630_v10 = vpop.f32.mrb[24].mxu0  ;;  %v1678_v11 = vpop.f32.mrb[24].mxu1  ;;  %v1045_v20 = vmax.f32 %v1013_v6, 0.0  ;;  %v1061_v21 = vmax.f32 %v1029_v7, 0.0 }
 0x12b   : > { %v1014_v12 = vadd.f32 %v1957_v57, %v975_v8  ;;  %v1030_v13 = vadd.f32 %v1957_v57, %v991_v9  ;;  %v1631_v14 = vpop.f32.mrb[25].mxu0  ;;  %v1679_v15 = vpop.f32.mrb[25].mxu1 }
 0x12c   : > { %v1632_v16 = vadd.f32 %v1631_v14, %v1630_v10  ;;  %v1680_v17 = vadd.f32 %v1679_v15, %v1678_v11  ;;  %v1633_v18 = vpop.f32.mrb[26].mxu0  ;;  %v1681_v19 = vpop.f32.mrb[26].mxu1 }
 0x12d   : > { %v1046_v22 = vmax.f32 %v1014_v12, 0.0  ;;  %v1062_v23 = vmax.f32 %v1030_v13, 0.0  ;;  %v1634_v24 = vpop.f32.mrb[27].mxu0  ;;  %v1682_v25 = vpop.f32.mrb[27].mxu1 }
 0x12e   : > { %v976_v26 = vmul.f32 %v1632_v16, %v1952_v51  ;;  %v992_v27 = vmul.f32 %v1680_v17, %v1952_v51  ;;  %v1635_v28 = vadd.f32 %v1634_v24, %v1633_v18  ;;  %v1683_v29 = vadd.f32 %v1682_v25, %v1681_v19 }
 0x12f   : > { %v1511_v30 = vpack.c.bf16 %v1046_v22, %v1045_v20  ;;  %v1551_v31 = vpack.c.bf16 %v1062_v23, %v1061_v21 }
 0x130   : > { %v1015_v32 = vadd.f32 %v1957_v57, %v976_v26  ;;  %v1031_v33 = vadd.f32 %v1957_v57, %v992_v27  ;;  %v977_v34 = vmul.f32 %v1635_v28, %v1952_v51  ;;  %v993_v35 = vmul.f32 %v1683_v29, %v1952_v51 }
 0x131   : > { %1567 = vst [vmem:[%s1971_s21 + $0x28] sm:$0xff] %v1511_v30   ;;  %1575 = vst [vmem:[%s1971_s21 + $0x68] sm:$0xff] %v1551_v31  }
 0x132   : > { %v1016_v36 = vadd.f32 %v1957_v57, %v977_v34  ;;  %v1032_v37 = vadd.f32 %v1957_v57, %v993_v35  ;;  %v1636_v38 = vpop.f32.mrb[28].mxu0  ;;  %v1684_v39 = vpop.f32.mrb[28].mxu1  ;;  %v1047_v40 = vmax.f32 %v1015_v32, 0.0  ;;  %v1063_v41 = vmax.f32 %v1031_v33, 0.0 }
 0x133   : > { %v1637_v42 = vpop.f32.mrb[29].mxu0  ;;  %v1685_v43 = vpop.f32.mrb[29].mxu1 }
 0x134   : > { %v1048_v44 = vmax.f32 %v1016_v36, 0.0  ;;  %v1064_v45 = vmax.f32 %v1032_v37, 0.0  ;;  %v1638_v46 = vadd.f32 %v1637_v42, %v1636_v38  ;;  %v1686_v47 = vadd.f32 %v1685_v43, %v1684_v39  ;;  %v1639_v48 = vpop.f32.mrb[30].mxu0  ;;  %v1687_v49 = vpop.f32.mrb[30].mxu1 }
 0x135   : > { %v1640_v50 = vpop.f32.mrb[31].mxu0  ;;  %v1688_v52 = vpop.f32.mrb[31].mxu1 }
 0x136   : > { %v1516_v53 = vpack.c.bf16 %v1048_v44, %v1047_v40  ;;  %v1556_v54 = vpack.c.bf16 %v1064_v45, %v1063_v41  ;;  %v978_v55 = vmul.f32 %v1638_v46, %v1952_v51  ;;  %v994_v56 = vmul.f32 %v1686_v47, %v1952_v51 }
 0x137   : > { %v1641_v58 = vadd.f32 %v1640_v50, %v1639_v48  ;;  %v1689_v59 = vadd.f32 %v1688_v52, %v1687_v49 }
 0x138   : > { %1568 = vst [vmem:[%s1971_s21 + $0x30] sm:$0xff] %v1516_v53   ;;  %1576 = vst [vmem:[%s1971_s21 + $0x70] sm:$0xff] %v1556_v54   ;;  %v1017_v60 = vadd.f32 %v1957_v57, %v978_v55  ;;  %v1033_v61 = vadd.f32 %v1957_v57, %v994_v56 }
 0x139   : > { %v979_v62 = vmul.f32 %v1641_v58, %v1952_v51  ;;  %v995_v63 = vmul.f32 %v1689_v59, %v1952_v51 }
 0x13a   : > { %v1049_v2 = vmax.f32 %v1017_v60, 0.0  ;;  %v1065_v3 = vmax.f32 %v1033_v61, 0.0 }
 0x13b   : > { %v1018_v0 = vadd.f32 %v1957_v57, %v979_v62  ;;  %v1034_v1 = vadd.f32 %v1957_v57, %v995_v63 }
 0x13d   : > { %v1050_v4 = vmax.f32 %v1018_v0, 0.0  ;;  %v1066_v5 = vmax.f32 %v1034_v1, 0.0 }
 0x13f   : > { %v1521_v6 = vpack.c.bf16 %v1050_v4, %v1049_v2  ;;  %v1561_v7 = vpack.c.bf16 %v1066_v5, %v1065_v3 }
 0x141   : > { %1569 = vst [vmem:[%s1971_s21 + $0x38] sm:$0xff] %v1521_v6   ;;  %1577 = vst [vmem:[%s1971_s21 + $0x78] sm:$0xff] %v1561_v7  }
 0x142 PF: > { %s14_s17 = sadd.s32 1, %s1816_s17   ;;  %s2059_s15 = smov %s1812_s16 }
 0x143   : > { %p11_p5 = scmp.ge.s32.totalorder %s14_s17, 4   ;;  %s2060_s16 = smov %s2062_s18 }
 0x145   :  { %13 = sbr.rel (!%p11_p5) target bundleno = 2 (0x2), region = 83 }

// kernel: resnet_simclr_forward.25
= control target key start
LH: loop header
LB: loop body
LE: loop exit
PB: predicated region body
PF: predicated region fallthrough
CT: control target
= control target key end

     0   :  { %s2383_s18 = smov 0   ;;  %s2385_s19 = smov 0   ;;  %s2699_s0 = inlined_call_operand.vmem [shape: bf16[128,1152], index: 0, kind: input, shape index: {}]   ;;  %s2700_s1 = inlined_call_operand.vmem [shape: bf16[1152,128], index: 1, kind: input, shape index: {}]   ;;  %s2701_s2 = inlined_call_operand.vmem [shape: f32[1,128], index: 2, kind: input, shape index: {}]   ;;  %s2702_s3 = inlined_call_operand.vmem [shape: f32[1,128], index: 3, kind: input, shape index: {}]   ;;  %s2703_s4 = inlined_call_operand.vmem [shape: bf16[128,128], index: 4, kind: input, shape index: {}]   ;;  %s2704_s5 = inlined_call_operand.vmem [shape: bf16[128,128], index: 5, kind: output, shape index: {}]  }
   0x1   :  { %s2387_s20 = smov 0  }
   0x2 LB: > { %s34_s21 = sadd.s32 1, %s2347_s19  ;;  %p1791_p0 = scmp.ge.s32.totalorder %s2351_s20, 1  ;;  %s2351_s20 = sphi %s2387_s20, %s15_s20   ;;  %s2347_s19 = sphi %s2385_s19, %s2706_s19   ;;  %s2343_s18 = sphi %s2383_s18, %s2705_s18  }
   0x3   : > { %p36_p1 = scmp.ge.s32.totalorder %s34_s21, 2  ;;  %p265_p2 = scmp.lt.s32.totalorder %s2351_s20, 3 }
   0x5   : > { %s2708_s21 = smov (%p36_p1, %s34_s21), 0  ;;  %p266_p3 = pnand %p1791_p0, %p265_p2 }
   0x6   : > { %v2205_v0 = vld [vmem:[%s2700_s1 + $0x40] sm:$0xff] (!%p266_p3)   ;;  %v2209_v4 = vld [vmem:[%s2700_s1 + $0x48] sm:$0xff] (!%p266_p3)   ;;  %v2213_v8 = vld [vmem:[%s2700_s1 + $0x50] sm:$0xff] (!%p266_p3)   ;;  %s1792_s6 = sshll.u32 (!%p266_p3), %s2343_s18, 3 }
   0x7   : > { %269 = sbr.rel (%p266_p3) target bundleno = 334 (0x14e), region = 40  ;;  %v2206_v1 = vld [vmem:[%s2700_s1 + $0xc0] sm:$0xff] (!%p266_p3)   ;;  %1968 = vmatprep.subr.bf16.mxu0 (!%p266_p3), %v2205_v0  ;;  %v2210_v5 = vld [vmem:[%s2700_s1 + $0xc8] sm:$0xff] (!%p266_p3)   ;;  %v2214_v9 = vld [vmem:[%s2700_s1 + $0xd0] sm:$0xff] (!%p266_p3)   ;;  %p325_p4 = scmp.lt.s32.totalorder (!%p266_p3), %s1792_s6, 15 }
   0x8   : > { %v2207_v2 = vld [vmem:[%s2700_s1] sm:$0xff] (!%p266_p3)   ;;  %2008 = vmatprep.subr.bf16.mxu1 (!%p266_p3), %v2206_v1  ;;  %v2211_v6 = vld [vmem:[%s2700_s1 + $0x8] sm:$0xff] (!%p266_p3)   ;;  %v2215_v10 = vld [vmem:[%s2700_s1 + $0x10] sm:$0xff] (!%p266_p3)  }
   0x9   : > { %v2208_v3 = vld [vmem:[%s2700_s1 + $0x80] sm:$0xff] (!%p266_p3)   ;;  %1969 = vmatpush3.bf16.msra.mxu0 (!%p266_p3), %v2207_v2  ;;  %v2212_v7 = vld [vmem:[%s2700_s1 + $0x88] sm:$0xff] (!%p266_p3)   ;;  %v2216_v11 = vld [vmem:[%s2700_s1 + $0x90] sm:$0xff] (!%p266_p3)  }
   0xa   : > { %2009 = vmatpush3.bf16.msra.mxu1 (!%p266_p3), %v2208_v3  ;;  %1970 = vmatprep.subr.bf16.mxu0 (!%p266_p3), %v2209_v4  ;;  %v2217_v12 = vld [vmem:[%s2700_s1 + $0x58] sm:$0xff] (!%p266_p3)   ;;  %v2221_v16 = vld [vmem:[%s2700_s1 + $0x60] sm:$0xff] (!%p266_p3)   ;;  %v2225_v20 = vld [vmem:[%s2700_s1 + $0x68] sm:$0xff] (!%p266_p3)  }
   0xb   : > { %2010 = vmatprep.subr.bf16.mxu1 (!%p266_p3), %v2210_v5  ;;  %v2218_v13 = vld [vmem:[%s2700_s1 + $0xd8] sm:$0xff] (!%p266_p3)   ;;  %v2222_v17 = vld [vmem:[%s2700_s1 + $0xe0] sm:$0xff] (!%p266_p3)   ;;  %v2226_v21 = vld [vmem:[%s2700_s1 + $0xe8] sm:$0xff] (!%p266_p3)  }
   0xc   : > { %v2219_v14 = vld [vmem:[%s2700_s1 + $0x18] sm:$0xff] (!%p266_p3)   ;;  %v2223_v18 = vld [vmem:[%s2700_s1 + $0x20] sm:$0xff] (!%p266_p3)   ;;  %v2227_v22 = vld [vmem:[%s2700_s1 + $0x28] sm:$0xff] (!%p266_p3)  }
   0xd   : > { %1971 = vmatpush3.bf16.msra.mxu0 (!%p266_p3), %v2211_v6  ;;  %v2220_v15 = vld [vmem:[%s2700_s1 + $0x98] sm:$0xff] (!%p266_p3)   ;;  %v2224_v19 = vld [vmem:[%s2700_s1 + $0xa0] sm:$0xff] (!%p266_p3)   ;;  %v2228_v23 = vld [vmem:[%s2700_s1 + $0xa8] sm:$0xff] (!%p266_p3)  }
   0xe   : > { %2011 = vmatpush3.bf16.msra.mxu1 %v2212_v7  ;;  %1972 = vmatprep.subr.bf16.mxu0 %v2213_v8  ;;  %s2710_s6 = smov (!%p325_p4, %s1792_s6), 15  ;;  %v2229_v24 = vld [vmem:[%s2700_s1 + $0x70] sm:$0xff]   ;;  %v2233_v28 = vld [vmem:[%s2700_s1 + $0x78] sm:$0xff]   ;;  %v2243_v36 = vld [vmem:[%s2700_s1 + $0x140] sm:$0xff]  }
   0xf   : > { %2012 = vmatprep.subr.bf16.mxu1 %v2214_v9  ;;  %v2230_v25 = vld [vmem:[%s2700_s1 + $0xf0] sm:$0xff]   ;;  %s2180_s8 = smul.u32 36, %s2710_s6  ;;  %v2234_v29 = vld [vmem:[%s2700_s1 + $0xf8] sm:$0xff]   ;;  %v2244_v37 = vld [vmem:[%s2700_s1 + $0x1c0] sm:$0xff]  }
  0x10   : > { %v2231_v26 = vld [vmem:[%s2700_s1 + $0x30] sm:$0xff]   ;;  %v2235_v30 = vld [vmem:[%s2700_s1 + $0x38] sm:$0xff]   ;;  %v2245_v38 = vld [vmem:[%s2700_s1 + $0x100] sm:$0xff]  }
  0x11   : > { %1973 = vmatpush3.bf16.msra.mxu0 %v2215_v10  ;;  %v2232_v27 = vld [vmem:[%s2700_s1 + $0xb0] sm:$0xff]   ;;  %s2500_s22 = scalar_lea.vmem %s2699_s0, %s2180_s8  ;;  %v2236_v31 = vld [vmem:[%s2700_s1 + $0xb8] sm:$0xff]   ;;  %v2246_v39 = vld [vmem:[%s2700_s1 + $0x180] sm:$0xff]  }
  0x12   : > { %2013 = vmatpush3.bf16.msra.mxu1 %v2216_v11  ;;  %1974 = vmatprep.subr.bf16.mxu0 %v2217_v12  ;;  %v2237_v32 = vld [vmem:[%s2500_s22] ss:$36 sps:$4 sm:$0xff]   ;;  %v2240_v34 = vld [vmem:[%s2500_s22 + $0x8] ss:$36 sps:$4 sm:$0xff]   ;;  %v2253_v45 = vld [vmem:[%s2500_s22 + $0x54] ss:$36 sps:$4 sm:$0xff]  }
  0x13   : > { %2014 = vmatprep.subr.bf16.mxu1 %v2218_v13  ;;  %v2239_v33 = vld [vmem:[%s2500_s22 + $0x4] ss:$36 sps:$4 sm:$0xff]   ;;  %v2242_v35 = vld [vmem:[%s2500_s22 + $0xc] ss:$36 sps:$4 sm:$0xff]   ;;  %v2261_v52 = vld [vmem:[%s2700_s1 + $0x158] sm:$0xff]  }
  0x14   : > { %1221 = vmatprep.mubr.bf16.mxu0 %v2239_v33  ;;  %1286 = vmatprep.mubr.bf16.mxu1 %v2242_v35  ;;  %v2247_v40 = vld [vmem:[%s2700_s1 + $0x148] sm:$0xff]   ;;  %v2256_v47 = vld [vmem:[%s2500_s22 + $0x50] ss:$36 sps:$4 sm:$0xff]   ;;  %v2262_v53 = vld [vmem:[%s2700_s1 + $0x1d8] sm:$0xff]  }
  0x15   : > { %1975 = vmatpush3.bf16.msra.mxu0 %v2219_v14  ;;  %v2248_v41 = vld [vmem:[%s2700_s1 + $0x1c8] sm:$0xff]   ;;  %v2257_v48 = vld [vmem:[%s2700_s1 + $0x150] sm:$0xff]   ;;  %v2263_v54 = vld [vmem:[%s2700_s1 + $0x118] sm:$0xff]  }
  0x16   : > { %2015 = vmatpush3.bf16.msra.mxu1 %v2220_v15  ;;  %1976 = vmatprep.subr.bf16.mxu0 %v2221_v16  ;;  %v2249_v42 = vld [vmem:[%s2700_s1 + $0x108] sm:$0xff]   ;;  %v2258_v49 = vld [vmem:[%s2700_s1 + $0x1d0] sm:$0xff]   ;;  %v2264_v55 = vld [vmem:[%s2700_s1 + $0x198] sm:$0xff]  }
  0x17   : > { %2016 = vmatprep.subr.bf16.mxu1 %v2222_v17  ;;  %v2250_v43 = vld [vmem:[%s2700_s1 + $0x188] sm:$0xff]   ;;  %v2259_v50 = vld [vmem:[%s2700_s1 + $0x110] sm:$0xff]   ;;  %v2267_v57 = vld [vmem:[%s2500_s22 + $0x9c] ss:$36 sps:$4 sm:$0xff]  }
  0x18   : > { %v2251_v44 = vld [vmem:[%s2500_s22 + $0x4c] ss:$36 sps:$4 sm:$0xff]   ;;  %v2265_v56 = vld [vmem:[%s2500_s22 + $0x94] ss:$36 sps:$4 sm:$0xff]   ;;  %v2271_v60 = vld [vmem:[%s2700_s1 + $0x160] sm:$0xff]  }
  0x19   : > { %1977 = vmatpush3.bf16.msra.mxu0 %v2223_v18  ;;  %v2255_v46 = vld [vmem:[%s2500_s22 + $0x48] ss:$36 sps:$4 sm:$0xff]   ;;  %v2260_v51 = vld [vmem:[%s2700_s1 + $0x190] sm:$0xff]   ;;  %v2270_v59 = vld [vmem:[%s2500_s22 + $0x98] ss:$36 sps:$4 sm:$0xff]  }
  0x1a   : > { %2017 = vmatpush3.bf16.msra.mxu1 %v2224_v19  ;;  %1978 = vmatprep.subr.bf16.mxu0 %v2225_v20  ;;  %v2269_v58 = vld [vmem:[%s2500_s22 + $0x90] ss:$36 sps:$4 sm:$0xff]   ;;  %v2272_v61 = vld [vmem:[%s2700_s1 + $0x1e0] sm:$0xff]   ;;  %v2275_v0 = vld [vmem:[%s2700_s1 + $0x168] sm:$0xff]  }
  0x1b   : > { %2018 = vmatprep.subr.bf16.mxu1 %v2226_v21  ;;  %v2273_v62 = vld [vmem:[%s2700_s1 + $0x120] sm:$0xff]   ;;  %v2276_v1 = vld [vmem:[%s2700_s1 + $0x1e8] sm:$0xff]   ;;  %v2283_v6 = vld [vmem:[%s2500_s22 + $0xd8] ss:$36 sps:$4 sm:$0xff]  }
  0x1c   : > { %v2274_v63 = vld [vmem:[%s2700_s1 + $0x1a0] sm:$0xff]   ;;  %v2277_v2 = vld [vmem:[%s2700_s1 + $0x128] sm:$0xff]   ;;  %v2285_v8 = vld [vmem:[%s2700_s1 + $0x170] sm:$0xff]  }
  0x1d   : > { %1979 = vmatpush3.bf16.msra.mxu0 %v2227_v22  ;;  %v2278_v3 = vld [vmem:[%s2700_s1 + $0x1a8] sm:$0xff]   ;;  %v2279_v4 = vld [vmem:[%s2500_s22 + $0xdc] ss:$36 sps:$4 sm:$0xff]   ;;  %v2286_v9 = vld [vmem:[%s2700_s1 + $0x1f0] sm:$0xff]  }
  0x1e   : > { %2019 = vmatpush3.bf16.msra.mxu1 %v2228_v23  ;;  %1980 = vmatprep.subr.bf16.mxu0 %v2229_v24  ;;  %v2281_v5 = vld [vmem:[%s2500_s22 + $0xe4] ss:$36 sps:$4 sm:$0xff]   ;;  %v2287_v10 = vld [vmem:[%s2700_s1 + $0x130] sm:$0xff]   ;;  %v2289_v12 = vld [vmem:[%s2700_s1 + $0x178] sm:$0xff]  }
  0x1f   : > { %2020 = vmatprep.subr.bf16.mxu1 %v2230_v25  ;;  %v2284_v7 = vld [vmem:[%s2500_s22 + $0xe0] ss:$36 sps:$4 sm:$0xff]   ;;  %v2288_v11 = vld [vmem:[%s2700_s1 + $0x1b0] sm:$0xff]   ;;  %v2290_v13 = vld [vmem:[%s2700_s1 + $0x1f8] sm:$0xff]  }
  0x20   : > { %v2291_v14 = vld [vmem:[%s2700_s1 + $0x138] sm:$0xff]   ;;  %v2293_v16 = vld [vmem:[%s2500_s22 + $0x10] ss:$36 sps:$4 sm:$0xff]   ;;  %v2299_v20 = vld [vmem:[%s2700_s1 + $0x200] sm:$0xff]  }
  0x21   : > { %1981 = vmatpush3.bf16.msra.mxu0 %v2231_v26  ;;  %v2292_v15 = vld [vmem:[%s2700_s1 + $0x1b8] sm:$0xff]   ;;  %v2300_v21 = vld [vmem:[%s2700_s1 + $0x208] sm:$0xff]   ;;  %v2306_v25 = vld [vmem:[%s2500_s22 + $0x60] ss:$36 sps:$4 sm:$0xff]  }
  0x22   : > { %2021 = vmatpush3.bf16.msra.mxu1 %v2232_v27  ;;  %1982 = vmatprep.subr.bf16.mxu0 %v2233_v28  ;;  %v2295_v17 = vld [vmem:[%s2500_s22 + $0x14] ss:$36 sps:$4 sm:$0xff]   ;;  %v2298_v19 = vld [vmem:[%s2500_s22 + $0x1c] ss:$36 sps:$4 sm:$0xff]   ;;  %v2303_v23 = vld [vmem:[%s2500_s22 + $0x64] ss:$36 sps:$4 sm:$0xff]  }
  0x23   : > { %2022 = vmatprep.subr.bf16.mxu1 %v2234_v29  ;;  %v2296_v18 = vld [vmem:[%s2500_s22 + $0x18] ss:$36 sps:$4 sm:$0xff]   ;;  %v2307_v26 = vld [vmem:[%s2700_s1 + $0x210] sm:$0xff]   ;;  %v2309_v27 = vld [vmem:[%s2500_s22 + $0xa4] ss:$36 sps:$4 sm:$0xff]  }
  0x24   : > { %v2301_v22 = vld [vmem:[%s2500_s22 + $0x5c] ss:$36 sps:$4 sm:$0xff]   ;;  %v2311_v28 = vld [vmem:[%s2500_s22 + $0xac] ss:$36 sps:$4 sm:$0xff]  }
  0x25   : > { %1983 = vmatpush3.bf16.msra.mxu0 %v2235_v30  ;;  %v2305_v24 = vld [vmem:[%s2500_s22 + $0x58] ss:$36 sps:$4 sm:$0xff]   ;;  %v2313_v30 = vld [vmem:[%s2500_s22 + $0xa0] ss:$36 sps:$4 sm:$0xff]   ;;  %v2317_v33 = vld [vmem:[%s2500_s22 + $0xec] ss:$36 sps:$4 sm:$0xff]  }
  0x26   : > { %2023 = vmatpush3.bf16.msra.mxu1 %v2236_v31  ;;  %2048 = vmatprep.subr.bf16.mxu0 %v2243_v36  ;;  %v2308_v29 = vld [vmem:[%s2700_s1 + $0x218] sm:$0xff]   ;;  %v2314_v31 = vld [vmem:[%s2500_s22 + $0xa8] ss:$36 sps:$4 sm:$0xff]  }
  0x27   : > { %2088 = vmatprep.subr.bf16.mxu1 %v2244_v37  ;;  %v2316_v35 = vld [vmem:[%s2700_s1 + $0x228] sm:$0xff]   ;;  %v2323_v37 = vld [vmem:[%s2700_s1 + $0x230] sm:$0xff]  }
  0x28   : > { %1222 = vmatmul.mubr.bf16.vlgmr.msra.gmra.mrb[0].mxu0 %v2237_v32  ;;  %v2315_v32 = vld [vmem:[%s2700_s1 + $0x220] sm:$0xff]   ;;  %v2321_v36 = vld [vmem:[%s2500_s22 + $0xe8] ss:$36 sps:$4 sm:$0xff]  }
  0x29   : > { %1287 = vmatmul.mubr.bf16.vlgmr.msra.gmra.mrb[0].mxu1 %v2240_v34  ;;  %2049 = vmatpush3.bf16.msra.mxu0 %v2245_v38  ;;  %v2319_v34 = vld [vmem:[%s2500_s22 + $0xf4] ss:$36 sps:$4 sm:$0xff]  }
  0x2a   : > { %2089 = vmatpush3.bf16.msra.mxu1 %v2246_v39  ;;  %2050 = vmatprep.subr.bf16.mxu0 %v2247_v40  ;;  %v2322_v38 = vld [vmem:[%s2500_s22 + $0xf0] ss:$36 sps:$4 sm:$0xff]   ;;  %v2325_v39 = vld [vmem:[%s2500_s22 + $0x20] ss:$36 sps:$4 sm:$0xff]  }
  0x2b   : > { %2090 = vmatprep.subr.bf16.mxu1 %v2248_v41  ;;  %1229 = vmatprep.mubr.bf16.mxu0 %v2251_v44  ;;  %v2326_v40 = vld [vmem:[%s2500_s22 + $0xb0] ss:$36 sps:$4 sm:$0xff]   ;;  %v2324_v41 = vld [vmem:[%s2700_s1 + $0x238] sm:$0xff]  }
  0x2c   : > { %1294 = vmatprep.mubr.bf16.mxu1 %v2253_v45 }
  0x2d   : > { %2051 = vmatpush3.bf16.msra.mxu0 %v2249_v42  ;;  %v2327_v42 = vld [vmem:[%s2500_s22 + $0x68] ss:$36 sps:$4 sm:$0xff]  }
  0x2e   : > { %2091 = vmatpush3.bf16.msra.mxu1 %v2250_v43  ;;  %2052 = vmatprep.subr.bf16.mxu0 %v2257_v48  ;;  %v2328_v43 = vld [vmem:[%s2500_s22 + $0xf8] ss:$36 sps:$4 sm:$0xff]   ;;  %s1795_s22 = sshll.u32 %s2710_s6, 2 }
  0x2f   : > { %2092 = vmatprep.subr.bf16.mxu1 %v2258_v49  ;;  %s357_s29 = scalar_lea.vmem %s2703_s4, %s1795_s22  ;;  %s366_s12 = scalar_lea.vmem %s2704_s5, %s1795_s22 }
  0x30   : > { %1230 = vmatmul.mubr.bf16.gmra.mrb[4].mxu0 %v2255_v46 }
  0x31   : > { %1295 = vmatmul.mubr.bf16.gmra.mrb[4].mxu1 %v2256_v47  ;;  %2053 = vmatpush3.bf16.msra.mxu0 %v2259_v50 }
  0x32   : > { %2093 = vmatpush3.bf16.msra.mxu1 %v2260_v51  ;;  %2054 = vmatprep.subr.bf16.mxu0 %v2261_v52 }
  0x33   : > { %2094 = vmatprep.subr.bf16.mxu1 %v2262_v53  ;;  %1237 = vmatprep.mubr.bf16.mxu0 %v2265_v56 }
  0x34   : > { %1302 = vmatprep.mubr.bf16.mxu1 %v2267_v57 }
  0x35   : > { %2055 = vmatpush3.bf16.msra.mxu0 %v2263_v54 }
  0x36   : > { %2095 = vmatpush3.bf16.msra.mxu1 %v2264_v55  ;;  %2056 = vmatprep.subr.bf16.mxu0 %v2271_v60 }
  0x37   : > { %2096 = vmatprep.subr.bf16.mxu1 %v2272_v61 }
  0x38   : > { %1238 = vmatmul.mubr.bf16.gmra.mrb[8].mxu0 %v2269_v58 }
  0x39   : > { %1303 = vmatmul.mubr.bf16.gmra.mrb[8].mxu1 %v2270_v59  ;;  %2057 = vmatpush3.bf16.msra.mxu0 %v2273_v62 }
  0x3a   : > { %2097 = vmatpush3.bf16.msra.mxu1 %v2274_v63  ;;  %2058 = vmatprep.subr.bf16.mxu0 %v2275_v0 }
  0x3b   : > { %2098 = vmatprep.subr.bf16.mxu1 %v2276_v1  ;;  %1245 = vmatprep.mubr.bf16.mxu0 %v2279_v4 }
  0x3c   : > { %1310 = vmatprep.mubr.bf16.mxu1 %v2281_v5 }
  0x3d   : > { %2059 = vmatpush3.bf16.msra.mxu0 %v2277_v2 }
  0x3e   : > { %2099 = vmatpush3.bf16.msra.mxu1 %v2278_v3  ;;  %2060 = vmatprep.subr.bf16.mxu0 %v2285_v8 }
  0x3f   : > { %2100 = vmatprep.subr.bf16.mxu1 %v2286_v9 }
  0x40   : > { %1246 = vmatmul.mubr.bf16.gmra.mrb[12].mxu0 %v2283_v6 }
  0x41   : > { %1311 = vmatmul.mubr.bf16.gmra.mrb[12].mxu1 %v2284_v7  ;;  %2061 = vmatpush3.bf16.msra.mxu0 %v2287_v10 }
  0x42   : > { %2101 = vmatpush3.bf16.msra.mxu1 %v2288_v11  ;;  %2062 = vmatprep.subr.bf16.mxu0 %v2289_v12 }
  0x43   : > { %2102 = vmatprep.subr.bf16.mxu1 %v2290_v13  ;;  %1351 = vmatprep.mubr.bf16.mxu0 %v2295_v17 }
  0x44   : > { %1416 = vmatprep.mubr.bf16.mxu1 %v2298_v19 }
  0x45   : > { %2063 = vmatpush3.bf16.msra.mxu0 %v2291_v14 }
  0x46   : > { %2103 = vmatpush3.bf16.msra.mxu1 %v2292_v15  ;;  %2140 = vmatprep.subr.bf16.mxu0 %v2299_v20 }
  0x47   : > { %2164 = vmatprep.subr.bf16.mxu1 %v2299_v20 }
  0x48   : > { %1352 = vmatmul.mubr.bf16.vlgmr.msra.gmra.mrb[16].mxu0 %v2293_v16 }
  0x49   : > { %1417 = vmatmul.mubr.bf16.vlgmr.msra.gmra.mrb[16].mxu1 %v2296_v18  ;;  %2141 = vmatpush3.bf16.msra.mxu0 %v2299_v20 }
  0x4a   : > { %2172 = vmatpush3.bf16.msra.mxu1 %v2299_v20  ;;  %2142 = vmatprep.subr.bf16.mxu0 %v2300_v21 }
  0x4b   : > { %2165 = vmatprep.subr.bf16.mxu1 %v2300_v21  ;;  %1359 = vmatprep.mubr.bf16.mxu0 %v2301_v22 }
  0x4c   : > { %1424 = vmatprep.mubr.bf16.mxu1 %v2303_v23 }
  0x4d   : > { %2143 = vmatpush3.bf16.msra.mxu0 %v2300_v21 }
  0x4e   : > { %2173 = vmatpush3.bf16.msra.mxu1 %v2300_v21  ;;  %2144 = vmatprep.subr.bf16.mxu0 %v2307_v26 }
  0x4f   : > { %2166 = vmatprep.subr.bf16.mxu1 %v2307_v26 }
  0x50   : > { %1360 = vmatmul.mubr.bf16.gmra.mrb[20].mxu0 %v2305_v24 }
  0x51   : > { %1425 = vmatmul.mubr.bf16.gmra.mrb[20].mxu1 %v2306_v25  ;;  %1367 = vmatprep.mubr.bf16.mxu0 %v2309_v27 }
  0x52   : > { %2145 = vmatpush3.bf16.msra.mxu0 %v2307_v26  ;;  %1432 = vmatprep.mubr.bf16.mxu1 %v2311_v28 }
  0x53   : > { %2174 = vmatpush3.bf16.msra.mxu1 %v2307_v26  ;;  %2146 = vmatprep.subr.bf16.mxu0 %v2308_v29 }
  0x54   : > { %2167 = vmatprep.subr.bf16.mxu1 %v2308_v29 }
  0x56   : > { %2147 = vmatpush3.bf16.msra.mxu0 %v2308_v29 }
  0x57   : > { %2175 = vmatpush3.bf16.msra.mxu1 %v2308_v29  ;;  %2148 = vmatprep.subr.bf16.mxu0 %v2315_v32 }
  0x58   : > { %1368 = vmatmul.mubr.bf16.gmra.mrb[24].mxu0 %v2313_v30  ;;  %2168 = vmatprep.subr.bf16.mxu1 %v2315_v32 }
  0x59   : > { %1433 = vmatmul.mubr.bf16.gmra.mrb[24].mxu1 %v2314_v31  ;;  %1375 = vmatprep.mubr.bf16.mxu0 %v2317_v33 }
  0x5a   : > { %2149 = vmatpush3.bf16.msra.mxu0 %v2315_v32  ;;  %1440 = vmatprep.mubr.bf16.mxu1 %v2319_v34 }
  0x5b   : > { %2176 = vmatpush3.bf16.msra.mxu1 %v2315_v32  ;;  %2150 = vmatprep.subr.bf16.mxu0 %v2316_v35 }
  0x5c   : > { %2169 = vmatprep.subr.bf16.mxu1 %v2316_v35 }
  0x5e   : > { %2151 = vmatpush3.bf16.msra.mxu0 %v2316_v35 }
  0x5f   : > { %2177 = vmatpush3.bf16.msra.mxu1 %v2316_v35  ;;  %2152 = vmatprep.subr.bf16.mxu0 %v2323_v37 }
  0x60   : > { %1376 = vmatmul.mubr.bf16.gmra.mrb[28].mxu0 %v2321_v36  ;;  %2170 = vmatprep.subr.bf16.mxu1 %v2323_v37 }
  0x61   : > { %1441 = vmatmul.mubr.bf16.gmra.mrb[28].mxu1 %v2322_v38  ;;  %2156 = vmatprep.mubr.bf16.mxu0 %v2325_v39 }
  0x62   : > { %2153 = vmatpush3.bf16.msra.mxu0 %v2323_v37  ;;  %2160 = vmatprep.mubr.bf16.mxu1 %v2326_v40 }
  0x63   : > { %2178 = vmatpush3.bf16.msra.mxu1 %v2323_v37  ;;  %2154 = vmatprep.subr.bf16.mxu0 %v2324_v41 }
  0x64   : > { %2171 = vmatprep.subr.bf16.mxu1 %v2324_v41 }
  0x66   : > { %2155 = vmatpush3.bf16.msra.mxu0 %v2324_v41 }
  0x67   : > { %2179 = vmatpush3.bf16.msra.mxu1 %v2324_v41 }
  0x69   : > { %2157 = vmatmul.mubr.bf16.vlgmr.msra.gmra.mrb[32].mxu0 %v2327_v42 }
  0x6a   : > { %2161 = vmatmul.mubr.bf16.vlgmr.msra.gmra.mrb[32].mxu1 %v2328_v43 }
  0xfb   : > { %v1984_v44 = vpop.f32.mrb[0].mxu0 }
  0xfc   : > { %v2024_v45 = vpop.f32.mrb[0].mxu1  ;;  %v1985_v46 = vpop.f32.mrb[1].mxu0 }
  0xfd   : > { %v1986_v47 = vadd.f32 %v1985_v46, %v1984_v44  ;;  %v2025_v48 = vpop.f32.mrb[1].mxu1  ;;  %v1987_v49 = vpop.f32.mrb[2].mxu0 }
  0xfe   : > { %v2026_v50 = vadd.f32 %v2025_v48, %v2024_v45  ;;  %v2027_v51 = vpop.f32.mrb[2].mxu1  ;;  %v1988_v52 = vpop.f32.mrb[3].mxu0 }
  0xff   : > { %v1989_v53 = vadd.f32 %v1988_v52, %v1987_v49  ;;  %v2028_v54 = vpop.f32.mrb[3].mxu1 }
 0x100   : > { %v1289_v55 = vadd.f32 %v2026_v50, %v1986_v47  ;;  %v2029_v56 = vadd.f32 %v2028_v54, %v2027_v51 }
 0x102   : > { %v1292_v57 = vadd.f32 %v2029_v56, %v1989_v53 }
 0x103   : > { %v1990_v58 = vpop.f32.mrb[4].mxu0 }
 0x104   : > { %v2030_v59 = vpop.f32.mrb[4].mxu1  ;;  %v1991_v60 = vpop.f32.mrb[5].mxu0 }
 0x105   : > { %v1992_v61 = vadd.f32 %v1991_v60, %v1990_v58  ;;  %v2031_v62 = vpop.f32.mrb[5].mxu1  ;;  %v1993_v63 = vpop.f32.mrb[6].mxu0 }
 0x106   : > { %v2032_v0 = vadd.f32 %v2031_v62, %v2030_v59  ;;  %v2033_v1 = vpop.f32.mrb[6].mxu1  ;;  %v1994_v2 = vpop.f32.mrb[7].mxu0 }
 0x107   : > { %v1995_v3 = vadd.f32 %v1994_v2, %v1993_v63  ;;  %v2034_v4 = vpop.f32.mrb[7].mxu1 }
 0x108   : > { %v1297_v5 = vadd.f32 %v2032_v0, %v1992_v61  ;;  %v2035_v6 = vadd.f32 %v2034_v4, %v2033_v1 }
 0x10a   : > { %v1300_v7 = vadd.f32 %v2035_v6, %v1995_v3 }
 0x10b   : > { %v1996_v8 = vpop.f32.mrb[8].mxu0 }
 0x10c   : > { %v2036_v9 = vpop.f32.mrb[8].mxu1  ;;  %v1997_v10 = vpop.f32.mrb[9].mxu0 }
 0x10d   : > { %v1998_v11 = vadd.f32 %v1997_v10, %v1996_v8  ;;  %v2037_v12 = vpop.f32.mrb[9].mxu1  ;;  %v1999_v13 = vpop.f32.mrb[10].mxu0 }
 0x10e   : > { %v2038_v14 = vadd.f32 %v2037_v12, %v2036_v9  ;;  %v2039_v15 = vpop.f32.mrb[10].mxu1  ;;  %v2000_v16 = vpop.f32.mrb[11].mxu0 }
 0x10f   : > { %v2001_v17 = vadd.f32 %v2000_v16, %v1999_v13  ;;  %v2040_v18 = vpop.f32.mrb[11].mxu1 }
 0x110   : > { %v1305_v19 = vadd.f32 %v2038_v14, %v1998_v11  ;;  %v2041_v20 = vadd.f32 %v2040_v18, %v2039_v15 }
 0x112   : > { %v1308_v21 = vadd.f32 %v2041_v20, %v2001_v17 }
 0x113   : > { %v2002_v22 = vpop.f32.mrb[12].mxu0 }
 0x114   : > { %v2042_v23 = vpop.f32.mrb[12].mxu1  ;;  %v2003_v24 = vpop.f32.mrb[13].mxu0 }
 0x115   : > { %v2043_v25 = vpop.f32.mrb[13].mxu1  ;;  %v2004_v26 = vadd.f32 %v2003_v24, %v2002_v22  ;;  %v2005_v28 = vpop.f32.mrb[14].mxu0 }
 0x116   : > { %v2044_v27 = vadd.f32 %v2043_v25, %v2042_v23  ;;  %v2045_v29 = vpop.f32.mrb[14].mxu1  ;;  %v2006_v30 = vpop.f32.mrb[15].mxu0 }
 0x117   : > { %v2046_v31 = vpop.f32.mrb[15].mxu1  ;;  %v2007_v33 = vadd.f32 %v2006_v30, %v2005_v28 }
 0x118   : > { %v1313_v32 = vadd.f32 %v2044_v27, %v2004_v26  ;;  %v2047_v34 = vadd.f32 %v2046_v31, %v2045_v29 }
 0x11a   : > { %v2664_v35 = vadd.f32 %v2047_v34, %v2007_v33 }
 0x11b   : > { %v2064_v36 = vpop.f32.mrb[16].mxu0 }
 0x11c   : > { %v2065_v37 = vpop.f32.mrb[17].mxu0  ;;  %v2104_v38 = vpop.f32.mrb[16].mxu1 }
 0x11d   : > { %v2066_v39 = vadd.f32 %v2065_v37, %v2064_v36  ;;  %v2067_v40 = vpop.f32.mrb[18].mxu0  ;;  %v2105_v41 = vpop.f32.mrb[17].mxu1  ;;  %v1962_v37 = vld [vmem:[%s357_s29 + $0x8] sm:$0xff]  }
 0x11e   : > { %v2068_v42 = vpop.f32.mrb[19].mxu0  ;;  %v2106_v44 = vadd.f32 %v2105_v41, %v2104_v38  ;;  %v2107_v45 = vpop.f32.mrb[18].mxu1  ;;  %v1964_v38 = vld [vmem:[%s357_s29 + $0x18] sm:$0xff]  }
 0x11f   : > { %v1354_v43 = vadd.f32 %v2066_v39, %v1289_v55  ;;  %v2069_v46 = vadd.f32 %v2068_v42, %v2067_v40  ;;  %v2108_v47 = vpop.f32.mrb[19].mxu1  ;;  %v1927_v39 = vld [vmem:[%s357_s29] sm:$0xff]   ;;  %v1963_v40 = vld [vmem:[%s357_s29 + $0x10] sm:$0xff]  }
 0x120   : > { %v2109_v49 = vadd.f32 %v2108_v47, %v2107_v45 }
 0x121   : > { %v1357_v48 = vadd.f32 %v2069_v46, %v1292_v57  ;;  %v2666_v50 = vadd.f32 %v2106_v44, %v1354_v43  ;;  %v1932_v43 = vunpack.c.l.bf16 %v1962_v37  ;;  %v1940_v44 = vunpack.c.l.bf16 %v1964_v38 }
 0x123   : > { %v2070_v51 = vpop.f32.mrb[20].mxu0  ;;  %v2668_v52 = vadd.f32 %v2109_v49, %v1357_v48  ;;  %v1928_v48 = vunpack.c.l.bf16 %v1927_v39  ;;  %v1936_v49 = vunpack.c.l.bf16 %v1963_v40 }
 0x124   : > { %v2071_v53 = vpop.f32.mrb[21].mxu0  ;;  %v2110_v54 = vpop.f32.mrb[20].mxu1 }
 0x125   : > { %v2072_v56 = vadd.f32 %v2071_v53, %v2070_v51  ;;  %v2073_v58 = vpop.f32.mrb[22].mxu0  ;;  %v2111_v59 = vpop.f32.mrb[21].mxu1  ;;  %v1907_v51 = vld [vmem:[%s2702_s3] ss:$0 sm:$0xff] }
 0x126   : > { %v2074_v60 = vpop.f32.mrb[23].mxu0  ;;  %v2112_v62 = vadd.f32 %v2111_v59, %v2110_v54  ;;  %v2113_v55 = vpop.f32.mrb[22].mxu1  ;;  %v1941_v59 = vunpack.c.h.bf16 %v1964_v38 }
 0x127   : > { %v1362_v61 = vadd.f32 %v2072_v56, %v1297_v5  ;;  %v2075_v63 = vadd.f32 %v2074_v60, %v2073_v58  ;;  %v2114_v0 = vpop.f32.mrb[23].mxu1  ;;  %v1929_v60 = vunpack.c.h.bf16 %v1927_v39 }
 0x128   : > { %v2115_v2 = vadd.f32 %v2114_v0, %v2113_v55 }
 0x129   : > { %v1365_v1 = vadd.f32 %v2075_v63, %v1300_v7  ;;  %v1427_v57 = vadd.f32 %v2112_v62, %v1362_v61 }
 0x12b   : > { %v2076_v3 = vpop.f32.mrb[24].mxu0  ;;  %v1430_v4 = vadd.f32 %v2115_v2, %v1365_v1  ;;  %v1937_v1 = vunpack.c.h.bf16 %v1963_v40 }
 0x12c   : > { %v2077_v6 = vpop.f32.mrb[25].mxu0  ;;  %v2116_v8 = vpop.f32.mrb[24].mxu1 }
 0x12d   : > { %v2078_v9 = vadd.f32 %v2077_v6, %v2076_v3  ;;  %v2079_v10 = vpop.f32.mrb[26].mxu0  ;;  %v2117_v11 = vpop.f32.mrb[25].mxu1 }
 0x12e   : > { %v2080_v12 = vpop.f32.mrb[27].mxu0  ;;  %v2118_v14 = vadd.f32 %v2117_v11, %v2116_v8  ;;  %v2119_v15 = vpop.f32.mrb[26].mxu1 }
 0x12f   : > { %v1370_v13 = vadd.f32 %v2078_v9, %v1305_v19  ;;  %v2081_v5 = vadd.f32 %v2080_v12, %v2079_v10  ;;  %v2120_v16 = vpop.f32.mrb[27].mxu1 }
 0x130   : > { %v2121_v18 = vadd.f32 %v2120_v16, %v2119_v15 }
 0x131   : > { %v1373_v17 = vadd.f32 %v2081_v5, %v1308_v21  ;;  %v1435_v7 = vadd.f32 %v2118_v14, %v1370_v13 }
 0x133   : > { %v2082_v20 = vpop.f32.mrb[28].mxu0  ;;  %v1438_v22 = vadd.f32 %v2121_v18, %v1373_v17 }
 0x134   : > { %v2083_v23 = vpop.f32.mrb[29].mxu0  ;;  %v2122_v24 = vpop.f32.mrb[28].mxu1 }
 0x135   : > { %v2084_v25 = vadd.f32 %v2083_v23, %v2082_v20  ;;  %v2085_v26 = vpop.f32.mrb[30].mxu0  ;;  %v2123_v27 = vpop.f32.mrb[29].mxu1 }
 0x136   : > { %v2086_v28 = vpop.f32.mrb[31].mxu0  ;;  %v2124_v30 = vadd.f32 %v2123_v27, %v2122_v24  ;;  %v2125_v19 = vpop.f32.mrb[30].mxu1 }
 0x137   : > { %v1378_v29 = vadd.f32 %v2084_v25, %v1313_v32  ;;  %v2087_v31 = vadd.f32 %v2086_v28, %v2085_v26  ;;  %v2126_v21 = vpop.f32.mrb[31].mxu1  ;;  %v1906_v32 = vld [vmem:[%s2701_s2] ss:$0 sm:$0xff] }
 0x138   : > { %v2127_v34 = vadd.f32 %v2126_v21, %v2125_v19 }
 0x139   : > { %v1381_v33 = vadd.f32 %v2087_v31, %v2664_v35  ;;  %v1443_v36 = vadd.f32 %v2124_v30, %v1378_v29  ;;  %v1933_v35 = vunpack.c.h.bf16 %v1962_v37 }
 0x13b   : > { %v1446_v41 = vadd.f32 %v2127_v34, %v1381_v33 }
 0x13c   : > { %v2158_v42 = vpop.f32.mrb[32].mxu0 }
 0x13d   : > { %v1492_v45 = vadd.f32 %v2158_v42, %v1427_v57  ;;  %v2162_v46 = vpop.f32.mrb[32].mxu1  ;;  %v1483_v47 = vpop.f32.mrb[33].mxu0 }
 0x13e   : > { %v1508_v53 = vadd.f32 %v2162_v46, %v1443_v36  ;;  %v1484_v54 = vadd.f32 %v1483_v47, %v2666_v50  ;;  %v1499_v56 = vpop.f32.mrb[33].mxu1  ;;  %v2159_v58 = vpop.f32.mrb[34].mxu0 }
 0x13f   : > { %v1550_v61 = vmul.f32 %v1906_v32, %v1492_v45  ;;  %v1500_v62 = vadd.f32 %v1499_v56, %v1435_v7  ;;  %v1495_v55 = vadd.f32 %v2159_v58, %v1430_v4  ;;  %v2163_v63 = vpop.f32.mrb[34].mxu1  ;;  %v1486_v0 = vpop.f32.mrb[35].mxu0 }
 0x140   : > { %v1554_v2 = vmul.f32 %v1906_v32, %v1508_v53  ;;  %v1548_v57 = vmul.f32 %v1906_v32, %v1484_v54  ;;  %v1511_v3 = vadd.f32 %v2163_v63, %v1446_v41  ;;  %v1487_v6 = vadd.f32 %v1486_v0, %v2668_v52  ;;  %v1502_v8 = vpop.f32.mrb[35].mxu1 }
 0x141   : > { %v1565_v9 = vadd.f32 %v1907_v51, %v1550_v61  ;;  %v1552_v10 = vmul.f32 %v1906_v32, %v1500_v62  ;;  %v1551_v11 = vmul.f32 %v1906_v32, %v1495_v55  ;;  %v1503_v50 = vadd.f32 %v1502_v8, %v1438_v22 }
 0x142   : > { %v1569_v12 = vadd.f32 %v1907_v51, %v1554_v2  ;;  %v1563_v13 = vadd.f32 %v1907_v51, %v1548_v57  ;;  %v1555_v14 = vmul.f32 %v1906_v32, %v1511_v3  ;;  %v1549_v15 = vmul.f32 %v1906_v32, %v1487_v6 }
 0x143   : > { %v1589_v5 = vadd.f32 %v1932_v43, %v1565_v9  ;;  %v1567_v16 = vadd.f32 %v1907_v51, %v1552_v10  ;;  %v1566_v4 = vadd.f32 %v1907_v51, %v1551_v11  ;;  %v1553_v17 = vmul.f32 %v1906_v32, %v1503_v50 }
 0x144   : > { %v1593_v18 = vadd.f32 %v1940_v44, %v1569_v12  ;;  %v1587_v7 = vadd.f32 %v1928_v48, %v1563_v13  ;;  %v1570_v20 = vadd.f32 %v1907_v51, %v1555_v14  ;;  %v1564_v23 = vadd.f32 %v1907_v51, %v1549_v15 }
 0x145   : > { %v1591_v24 = vadd.f32 %v1936_v49, %v1567_v16  ;;  %v1590_v52 = vadd.f32 %v1933_v35, %v1566_v4  ;;  %v1568_v25 = vadd.f32 %v1907_v51, %v1553_v17  ;;  %v1597_v28 = vmax.f32 %v1589_v5, 0.0 }
 0x146   : > { %v1594_v26 = vadd.f32 %v1941_v59, %v1570_v20  ;;  %v1588_v27 = vadd.f32 %v1929_v60, %v1564_v23  ;;  %v1601_v30 = vmax.f32 %v1593_v18, 0.0  ;;  %v1595_v19 = vmax.f32 %v1587_v7, 0.0 }
 0x147   : > { %v1598_v22 = vmax.f32 %v1590_v52, 0.0  ;;  %v1592_v29 = vadd.f32 %v1937_v1, %v1568_v25  ;;  %v1599_v33 = vmax.f32 %v1591_v24, 0.0 }
 0x148   : > { %v1602_v31 = vmax.f32 %v1594_v26, 0.0  ;;  %v1596_v21 = vmax.f32 %v1588_v27, 0.0 }
 0x149   : > { %v1950_v34 = vpack.c.bf16 %v1598_v22, %v1597_v28  ;;  %v1600_v36 = vmax.f32 %v1592_v29, 0.0 }
 0x14a   : > { %v1960_v37 = vpack.c.bf16 %v1602_v31, %v1601_v30  ;;  %v1945_v38 = vpack.c.bf16 %v1596_v21, %v1595_v19 }
 0x14b   : > { %1965 = vst [vmem:[%s366_s12 + $0x8] sm:$0xff] %v1950_v34   ;;  %v1955_v39 = vpack.c.bf16 %v1600_v36, %v1599_v33 }
 0x14c   : > { %1967 = vst [vmem:[%s366_s12 + $0x18] sm:$0xff] %v1960_v37   ;;  %1946 = vst [vmem:[%s366_s12] sm:$0xff] %v1945_v38  }
 0x14d   : > { %1966 = vst [vmem:[%s366_s12 + $0x10] sm:$0xff] %v1955_v39  }
 0x14e PF: > { %s15_s20 = sadd.s32 1, %s2351_s20   ;;  %s2705_s18 = smov %s2347_s19 }
 0x14f   : > { %p12_p5 = scmp.ge.s32.totalorder %s15_s20, 4   ;;  %s2706_s19 = smov %s2708_s21 }
 0x151   :  { %14 = sbr.rel (!%p12_p5) target bundleno = 2 (0x2), region = 90 }

// kernel: resnet_simclr_forward.24
= control target key start
LH: loop header
LB: loop body
LE: loop exit
PB: predicated region body
PF: predicated region fallthrough
CT: control target
= control target key end

     0   :  { %s2258_s15 = smov 0   ;;  %s2260_s16 = smov 0   ;;  %s2561_s0 = inlined_call_operand.vmem [shape: bf16[128,1152], index: 0, kind: input, shape index: {}]   ;;  %s2562_s1 = inlined_call_operand.vmem [shape: bf16[1152,128], index: 1, kind: input, shape index: {}]   ;;  %s2563_s2 = inlined_call_operand.vmem [shape: f32[1,128], index: 2, kind: input, shape index: {}]   ;;  %s2564_s3 = inlined_call_operand.vmem [shape: f32[1,128], index: 3, kind: input, shape index: {}]   ;;  %s2565_s4 = inlined_call_operand.vmem [shape: bf16[128,128], index: 4, kind: output, shape index: {}]  }
   0x1   :  { %s2262_s17 = smov 0  }
   0x2 LB: > { %s33_s18 = sadd.s32 1, %s2227_s16  ;;  %p1692_p0 = scmp.ge.s32.totalorder %s2231_s17, 1  ;;  %s2231_s17 = sphi %s2262_s17, %s14_s17   ;;  %s2227_s16 = sphi %s2260_s16, %s2567_s16   ;;  %s2223_s15 = sphi %s2258_s15, %s2566_s15  }
   0x3   : > { %p35_p1 = scmp.ge.s32.totalorder %s33_s18, 2  ;;  %p224_p2 = scmp.lt.s32.totalorder %s2231_s17, 3 }
   0x5   : > { %s2569_s18 = smov (%p35_p1, %s33_s18), 0  ;;  %p225_p3 = pnand %p1692_p0, %p224_p2 }
   0x6   : > { %v2085_v0 = vld [vmem:[%s2562_s1 + $0x40] sm:$0xff] (!%p225_p3)   ;;  %v2089_v4 = vld [vmem:[%s2562_s1 + $0x48] sm:$0xff] (!%p225_p3)   ;;  %v2093_v8 = vld [vmem:[%s2562_s1 + $0x50] sm:$0xff] (!%p225_p3)   ;;  %s1693_s27 = sshll.u32 (!%p225_p3), %s2223_s15, 3 }
   0x7   : > { %228 = sbr.rel (%p225_p3) target bundleno = 332 (0x14c), region = 36  ;;  %v2086_v1 = vld [vmem:[%s2562_s1 + $0xc0] sm:$0xff] (!%p225_p3)   ;;  %1848 = vmatprep.subr.bf16.mxu0 (!%p225_p3), %v2085_v0  ;;  %v2090_v5 = vld [vmem:[%s2562_s1 + $0xc8] sm:$0xff] (!%p225_p3)   ;;  %v2094_v9 = vld [vmem:[%s2562_s1 + $0xd0] sm:$0xff] (!%p225_p3)   ;;  %p274_p4 = scmp.lt.s32.totalorder (!%p225_p3), %s1693_s27, 15 }
   0x8   : > { %v2087_v2 = vld [vmem:[%s2562_s1] sm:$0xff] (!%p225_p3)   ;;  %1888 = vmatprep.subr.bf16.mxu1 (!%p225_p3), %v2086_v1  ;;  %v2091_v6 = vld [vmem:[%s2562_s1 + $0x8] sm:$0xff] (!%p225_p3)   ;;  %v2095_v10 = vld [vmem:[%s2562_s1 + $0x10] sm:$0xff] (!%p225_p3)  }
   0x9   : > { %v2088_v3 = vld [vmem:[%s2562_s1 + $0x80] sm:$0xff] (!%p225_p3)   ;;  %1849 = vmatpush3.bf16.msra.mxu0 (!%p225_p3), %v2087_v2  ;;  %v2092_v7 = vld [vmem:[%s2562_s1 + $0x88] sm:$0xff] (!%p225_p3)   ;;  %v2096_v11 = vld [vmem:[%s2562_s1 + $0x90] sm:$0xff] (!%p225_p3)  }
   0xa   : > { %1889 = vmatpush3.bf16.msra.mxu1 (!%p225_p3), %v2088_v3  ;;  %1850 = vmatprep.subr.bf16.mxu0 (!%p225_p3), %v2089_v4  ;;  %v2097_v12 = vld [vmem:[%s2562_s1 + $0x58] sm:$0xff] (!%p225_p3)   ;;  %v2101_v16 = vld [vmem:[%s2562_s1 + $0x60] sm:$0xff] (!%p225_p3)   ;;  %v2105_v20 = vld [vmem:[%s2562_s1 + $0x68] sm:$0xff] (!%p225_p3)  }
   0xb   : > { %1890 = vmatprep.subr.bf16.mxu1 (!%p225_p3), %v2090_v5  ;;  %v2098_v13 = vld [vmem:[%s2562_s1 + $0xd8] sm:$0xff] (!%p225_p3)   ;;  %v2102_v17 = vld [vmem:[%s2562_s1 + $0xe0] sm:$0xff] (!%p225_p3)   ;;  %v2106_v21 = vld [vmem:[%s2562_s1 + $0xe8] sm:$0xff] (!%p225_p3)  }
   0xc   : > { %v2099_v14 = vld [vmem:[%s2562_s1 + $0x18] sm:$0xff] (!%p225_p3)   ;;  %v2103_v18 = vld [vmem:[%s2562_s1 + $0x20] sm:$0xff] (!%p225_p3)   ;;  %v2107_v22 = vld [vmem:[%s2562_s1 + $0x28] sm:$0xff] (!%p225_p3)  }
   0xd   : > { %1851 = vmatpush3.bf16.msra.mxu0 (!%p225_p3), %v2091_v6  ;;  %v2100_v15 = vld [vmem:[%s2562_s1 + $0x98] sm:$0xff] (!%p225_p3)   ;;  %v2104_v19 = vld [vmem:[%s2562_s1 + $0xa0] sm:$0xff] (!%p225_p3)   ;;  %v2108_v23 = vld [vmem:[%s2562_s1 + $0xa8] sm:$0xff] (!%p225_p3)  }
   0xe   : > { %1891 = vmatpush3.bf16.msra.mxu1 %v2092_v7  ;;  %1852 = vmatprep.subr.bf16.mxu0 %v2093_v8  ;;  %s2571_s27 = smov (!%p274_p4, %s1693_s27), 15  ;;  %v2109_v24 = vld [vmem:[%s2562_s1 + $0x70] sm:$0xff]   ;;  %v2113_v28 = vld [vmem:[%s2562_s1 + $0x78] sm:$0xff]   ;;  %v2123_v36 = vld [vmem:[%s2562_s1 + $0x140] sm:$0xff]  }
   0xf   : > { %1892 = vmatprep.subr.bf16.mxu1 %v2094_v9  ;;  %v2110_v25 = vld [vmem:[%s2562_s1 + $0xf0] sm:$0xff]   ;;  %s2060_s28 = smul.u32 36, %s2571_s27  ;;  %v2114_v29 = vld [vmem:[%s2562_s1 + $0xf8] sm:$0xff]   ;;  %v2124_v37 = vld [vmem:[%s2562_s1 + $0x1c0] sm:$0xff]   ;;  %s1696_s20 = sshll.u32 %s2571_s27, 2 }
  0x10   : > { %v2111_v26 = vld [vmem:[%s2562_s1 + $0x30] sm:$0xff]   ;;  %v2115_v30 = vld [vmem:[%s2562_s1 + $0x38] sm:$0xff]   ;;  %v2125_v38 = vld [vmem:[%s2562_s1 + $0x100] sm:$0xff]   ;;  %s306_s23 = scalar_lea.vmem %s2565_s4, %s1696_s20 }
  0x11   : > { %1853 = vmatpush3.bf16.msra.mxu0 %v2095_v10  ;;  %v2112_v27 = vld [vmem:[%s2562_s1 + $0xb0] sm:$0xff]   ;;  %s2375_s12 = scalar_lea.vmem %s2561_s0, %s2060_s28  ;;  %v2116_v31 = vld [vmem:[%s2562_s1 + $0xb8] sm:$0xff]   ;;  %v2126_v39 = vld [vmem:[%s2562_s1 + $0x180] sm:$0xff]  }
  0x12   : > { %1893 = vmatpush3.bf16.msra.mxu1 %v2096_v11  ;;  %1854 = vmatprep.subr.bf16.mxu0 %v2097_v12  ;;  %v2117_v32 = vld [vmem:[%s2375_s12] ss:$36 sps:$4 sm:$0xff]   ;;  %v2120_v34 = vld [vmem:[%s2375_s12 + $0x8] ss:$36 sps:$4 sm:$0xff]   ;;  %v2133_v45 = vld [vmem:[%s2375_s12 + $0x54] ss:$36 sps:$4 sm:$0xff]  }
  0x13   : > { %1894 = vmatprep.subr.bf16.mxu1 %v2098_v13  ;;  %v2119_v33 = vld [vmem:[%s2375_s12 + $0x4] ss:$36 sps:$4 sm:$0xff]   ;;  %v2122_v35 = vld [vmem:[%s2375_s12 + $0xc] ss:$36 sps:$4 sm:$0xff]   ;;  %v2141_v52 = vld [vmem:[%s2562_s1 + $0x158] sm:$0xff]  }
  0x14   : > { %1161 = vmatprep.mubr.bf16.mxu0 %v2119_v33  ;;  %1226 = vmatprep.mubr.bf16.mxu1 %v2122_v35  ;;  %v2127_v40 = vld [vmem:[%s2562_s1 + $0x148] sm:$0xff]   ;;  %v2136_v47 = vld [vmem:[%s2375_s12 + $0x50] ss:$36 sps:$4 sm:$0xff]   ;;  %v2142_v53 = vld [vmem:[%s2562_s1 + $0x1d8] sm:$0xff]  }
  0x15   : > { %1855 = vmatpush3.bf16.msra.mxu0 %v2099_v14  ;;  %v2128_v41 = vld [vmem:[%s2562_s1 + $0x1c8] sm:$0xff]   ;;  %v2137_v48 = vld [vmem:[%s2562_s1 + $0x150] sm:$0xff]   ;;  %v2143_v54 = vld [vmem:[%s2562_s1 + $0x118] sm:$0xff]  }
  0x16   : > { %1895 = vmatpush3.bf16.msra.mxu1 %v2100_v15  ;;  %1856 = vmatprep.subr.bf16.mxu0 %v2101_v16  ;;  %v2129_v42 = vld [vmem:[%s2562_s1 + $0x108] sm:$0xff]   ;;  %v2138_v49 = vld [vmem:[%s2562_s1 + $0x1d0] sm:$0xff]   ;;  %v2144_v55 = vld [vmem:[%s2562_s1 + $0x198] sm:$0xff]  }
  0x17   : > { %1896 = vmatprep.subr.bf16.mxu1 %v2102_v17  ;;  %v2130_v43 = vld [vmem:[%s2562_s1 + $0x188] sm:$0xff]   ;;  %v2139_v50 = vld [vmem:[%s2562_s1 + $0x110] sm:$0xff]   ;;  %v2147_v57 = vld [vmem:[%s2375_s12 + $0x9c] ss:$36 sps:$4 sm:$0xff]  }
  0x18   : > { %v2131_v44 = vld [vmem:[%s2375_s12 + $0x4c] ss:$36 sps:$4 sm:$0xff]   ;;  %v2145_v56 = vld [vmem:[%s2375_s12 + $0x94] ss:$36 sps:$4 sm:$0xff]   ;;  %v2151_v60 = vld [vmem:[%s2562_s1 + $0x160] sm:$0xff]  }
  0x19   : > { %1857 = vmatpush3.bf16.msra.mxu0 %v2103_v18  ;;  %v2135_v46 = vld [vmem:[%s2375_s12 + $0x48] ss:$36 sps:$4 sm:$0xff]   ;;  %v2140_v51 = vld [vmem:[%s2562_s1 + $0x190] sm:$0xff]   ;;  %v2150_v59 = vld [vmem:[%s2375_s12 + $0x98] ss:$36 sps:$4 sm:$0xff]  }
  0x1a   : > { %1897 = vmatpush3.bf16.msra.mxu1 %v2104_v19  ;;  %1858 = vmatprep.subr.bf16.mxu0 %v2105_v20  ;;  %v2149_v58 = vld [vmem:[%s2375_s12 + $0x90] ss:$36 sps:$4 sm:$0xff]   ;;  %v2152_v61 = vld [vmem:[%s2562_s1 + $0x1e0] sm:$0xff]   ;;  %v2155_v0 = vld [vmem:[%s2562_s1 + $0x168] sm:$0xff]  }
  0x1b   : > { %1898 = vmatprep.subr.bf16.mxu1 %v2106_v21  ;;  %v2153_v62 = vld [vmem:[%s2562_s1 + $0x120] sm:$0xff]   ;;  %v2156_v1 = vld [vmem:[%s2562_s1 + $0x1e8] sm:$0xff]   ;;  %v2163_v6 = vld [vmem:[%s2375_s12 + $0xd8] ss:$36 sps:$4 sm:$0xff]  }
  0x1c   : > { %v2154_v63 = vld [vmem:[%s2562_s1 + $0x1a0] sm:$0xff]   ;;  %v2157_v2 = vld [vmem:[%s2562_s1 + $0x128] sm:$0xff]   ;;  %v2165_v8 = vld [vmem:[%s2562_s1 + $0x170] sm:$0xff]  }
  0x1d   : > { %1859 = vmatpush3.bf16.msra.mxu0 %v2107_v22  ;;  %v2158_v3 = vld [vmem:[%s2562_s1 + $0x1a8] sm:$0xff]   ;;  %v2159_v4 = vld [vmem:[%s2375_s12 + $0xdc] ss:$36 sps:$4 sm:$0xff]   ;;  %v2166_v9 = vld [vmem:[%s2562_s1 + $0x1f0] sm:$0xff]  }
  0x1e   : > { %1899 = vmatpush3.bf16.msra.mxu1 %v2108_v23  ;;  %1860 = vmatprep.subr.bf16.mxu0 %v2109_v24  ;;  %v2161_v5 = vld [vmem:[%s2375_s12 + $0xe4] ss:$36 sps:$4 sm:$0xff]   ;;  %v2167_v10 = vld [vmem:[%s2562_s1 + $0x130] sm:$0xff]   ;;  %v2169_v12 = vld [vmem:[%s2562_s1 + $0x178] sm:$0xff]  }
  0x1f   : > { %1900 = vmatprep.subr.bf16.mxu1 %v2110_v25  ;;  %v2164_v7 = vld [vmem:[%s2375_s12 + $0xe0] ss:$36 sps:$4 sm:$0xff]   ;;  %v2168_v11 = vld [vmem:[%s2562_s1 + $0x1b0] sm:$0xff]   ;;  %v2170_v13 = vld [vmem:[%s2562_s1 + $0x1f8] sm:$0xff]  }
  0x20   : > { %v2171_v14 = vld [vmem:[%s2562_s1 + $0x138] sm:$0xff]   ;;  %v2173_v16 = vld [vmem:[%s2375_s12 + $0x10] ss:$36 sps:$4 sm:$0xff]   ;;  %v2179_v20 = vld [vmem:[%s2562_s1 + $0x200] sm:$0xff]  }
  0x21   : > { %1861 = vmatpush3.bf16.msra.mxu0 %v2111_v26  ;;  %v2172_v15 = vld [vmem:[%s2562_s1 + $0x1b8] sm:$0xff]   ;;  %v2180_v21 = vld [vmem:[%s2562_s1 + $0x208] sm:$0xff]   ;;  %v2186_v25 = vld [vmem:[%s2375_s12 + $0x60] ss:$36 sps:$4 sm:$0xff]  }
  0x22   : > { %1901 = vmatpush3.bf16.msra.mxu1 %v2112_v27  ;;  %1862 = vmatprep.subr.bf16.mxu0 %v2113_v28  ;;  %v2175_v17 = vld [vmem:[%s2375_s12 + $0x14] ss:$36 sps:$4 sm:$0xff]   ;;  %v2178_v19 = vld [vmem:[%s2375_s12 + $0x1c] ss:$36 sps:$4 sm:$0xff]   ;;  %v2183_v23 = vld [vmem:[%s2375_s12 + $0x64] ss:$36 sps:$4 sm:$0xff]  }
  0x23   : > { %1902 = vmatprep.subr.bf16.mxu1 %v2114_v29  ;;  %v2176_v18 = vld [vmem:[%s2375_s12 + $0x18] ss:$36 sps:$4 sm:$0xff]   ;;  %v2187_v26 = vld [vmem:[%s2562_s1 + $0x210] sm:$0xff]   ;;  %v2189_v27 = vld [vmem:[%s2375_s12 + $0xa4] ss:$36 sps:$4 sm:$0xff]  }
  0x24   : > { %v2181_v22 = vld [vmem:[%s2375_s12 + $0x5c] ss:$36 sps:$4 sm:$0xff]   ;;  %v2191_v28 = vld [vmem:[%s2375_s12 + $0xac] ss:$36 sps:$4 sm:$0xff]  }
  0x25   : > { %1863 = vmatpush3.bf16.msra.mxu0 %v2115_v30  ;;  %v2185_v24 = vld [vmem:[%s2375_s12 + $0x58] ss:$36 sps:$4 sm:$0xff]   ;;  %v2193_v30 = vld [vmem:[%s2375_s12 + $0xa0] ss:$36 sps:$4 sm:$0xff]   ;;  %v2197_v33 = vld [vmem:[%s2375_s12 + $0xec] ss:$36 sps:$4 sm:$0xff]  }
  0x26   : > { %1903 = vmatpush3.bf16.msra.mxu1 %v2116_v31  ;;  %1928 = vmatprep.subr.bf16.mxu0 %v2123_v36  ;;  %v2188_v29 = vld [vmem:[%s2562_s1 + $0x218] sm:$0xff]   ;;  %v2194_v31 = vld [vmem:[%s2375_s12 + $0xa8] ss:$36 sps:$4 sm:$0xff]  }
  0x27   : > { %1968 = vmatprep.subr.bf16.mxu1 %v2124_v37  ;;  %v2196_v35 = vld [vmem:[%s2562_s1 + $0x228] sm:$0xff]   ;;  %v2203_v37 = vld [vmem:[%s2562_s1 + $0x230] sm:$0xff]  }
  0x28   : > { %1162 = vmatmul.mubr.bf16.vlgmr.msra.gmra.mrb[0].mxu0 %v2117_v32  ;;  %v2195_v32 = vld [vmem:[%s2562_s1 + $0x220] sm:$0xff]   ;;  %v2201_v36 = vld [vmem:[%s2375_s12 + $0xe8] ss:$36 sps:$4 sm:$0xff]  }
  0x29   : > { %1227 = vmatmul.mubr.bf16.vlgmr.msra.gmra.mrb[0].mxu1 %v2120_v34  ;;  %1929 = vmatpush3.bf16.msra.mxu0 %v2125_v38  ;;  %v2199_v34 = vld [vmem:[%s2375_s12 + $0xf4] ss:$36 sps:$4 sm:$0xff]  }
  0x2a   : > { %1969 = vmatpush3.bf16.msra.mxu1 %v2126_v39  ;;  %1930 = vmatprep.subr.bf16.mxu0 %v2127_v40  ;;  %v2202_v38 = vld [vmem:[%s2375_s12 + $0xf0] ss:$36 sps:$4 sm:$0xff]   ;;  %v2205_v39 = vld [vmem:[%s2375_s12 + $0x20] ss:$36 sps:$4 sm:$0xff]  }
  0x2b   : > { %1970 = vmatprep.subr.bf16.mxu1 %v2128_v41  ;;  %1169 = vmatprep.mubr.bf16.mxu0 %v2131_v44  ;;  %v2206_v40 = vld [vmem:[%s2375_s12 + $0xb0] ss:$36 sps:$4 sm:$0xff]   ;;  %v2204_v41 = vld [vmem:[%s2562_s1 + $0x238] sm:$0xff]  }
  0x2c   : > { %1234 = vmatprep.mubr.bf16.mxu1 %v2133_v45 }
  0x2d   : > { %1931 = vmatpush3.bf16.msra.mxu0 %v2129_v42  ;;  %v2207_v42 = vld [vmem:[%s2375_s12 + $0x68] ss:$36 sps:$4 sm:$0xff]  }
  0x2e   : > { %1971 = vmatpush3.bf16.msra.mxu1 %v2130_v43  ;;  %1932 = vmatprep.subr.bf16.mxu0 %v2137_v48  ;;  %v2208_v43 = vld [vmem:[%s2375_s12 + $0xf8] ss:$36 sps:$4 sm:$0xff]  }
  0x2f   : > { %1972 = vmatprep.subr.bf16.mxu1 %v2138_v49 }
  0x30   : > { %1170 = vmatmul.mubr.bf16.gmra.mrb[4].mxu0 %v2135_v46 }
  0x31   : > { %1235 = vmatmul.mubr.bf16.gmra.mrb[4].mxu1 %v2136_v47  ;;  %1933 = vmatpush3.bf16.msra.mxu0 %v2139_v50 }
  0x32   : > { %1973 = vmatpush3.bf16.msra.mxu1 %v2140_v51  ;;  %1934 = vmatprep.subr.bf16.mxu0 %v2141_v52 }
  0x33   : > { %1974 = vmatprep.subr.bf16.mxu1 %v2142_v53  ;;  %1177 = vmatprep.mubr.bf16.mxu0 %v2145_v56 }
  0x34   : > { %1242 = vmatprep.mubr.bf16.mxu1 %v2147_v57 }
  0x35   : > { %1935 = vmatpush3.bf16.msra.mxu0 %v2143_v54 }
  0x36   : > { %1975 = vmatpush3.bf16.msra.mxu1 %v2144_v55  ;;  %1936 = vmatprep.subr.bf16.mxu0 %v2151_v60 }
  0x37   : > { %1976 = vmatprep.subr.bf16.mxu1 %v2152_v61 }
  0x38   : > { %1178 = vmatmul.mubr.bf16.gmra.mrb[8].mxu0 %v2149_v58 }
  0x39   : > { %1243 = vmatmul.mubr.bf16.gmra.mrb[8].mxu1 %v2150_v59  ;;  %1937 = vmatpush3.bf16.msra.mxu0 %v2153_v62 }
  0x3a   : > { %1977 = vmatpush3.bf16.msra.mxu1 %v2154_v63  ;;  %1938 = vmatprep.subr.bf16.mxu0 %v2155_v0 }
  0x3b   : > { %1978 = vmatprep.subr.bf16.mxu1 %v2156_v1  ;;  %1185 = vmatprep.mubr.bf16.mxu0 %v2159_v4 }
  0x3c   : > { %1250 = vmatprep.mubr.bf16.mxu1 %v2161_v5 }
  0x3d   : > { %1939 = vmatpush3.bf16.msra.mxu0 %v2157_v2 }
  0x3e   : > { %1979 = vmatpush3.bf16.msra.mxu1 %v2158_v3  ;;  %1940 = vmatprep.subr.bf16.mxu0 %v2165_v8 }
  0x3f   : > { %1980 = vmatprep.subr.bf16.mxu1 %v2166_v9 }
  0x40   : > { %1186 = vmatmul.mubr.bf16.gmra.mrb[12].mxu0 %v2163_v6 }
  0x41   : > { %1251 = vmatmul.mubr.bf16.gmra.mrb[12].mxu1 %v2164_v7  ;;  %1941 = vmatpush3.bf16.msra.mxu0 %v2167_v10 }
  0x42   : > { %1981 = vmatpush3.bf16.msra.mxu1 %v2168_v11  ;;  %1942 = vmatprep.subr.bf16.mxu0 %v2169_v12 }
  0x43   : > { %1982 = vmatprep.subr.bf16.mxu1 %v2170_v13  ;;  %1291 = vmatprep.mubr.bf16.mxu0 %v2175_v17 }
  0x44   : > { %1356 = vmatprep.mubr.bf16.mxu1 %v2178_v19 }
  0x45   : > { %1943 = vmatpush3.bf16.msra.mxu0 %v2171_v14 }
  0x46   : > { %1983 = vmatpush3.bf16.msra.mxu1 %v2172_v15  ;;  %2020 = vmatprep.subr.bf16.mxu0 %v2179_v20 }
  0x47   : > { %2044 = vmatprep.subr.bf16.mxu1 %v2179_v20 }
  0x48   : > { %1292 = vmatmul.mubr.bf16.vlgmr.msra.gmra.mrb[16].mxu0 %v2173_v16 }
  0x49   : > { %1357 = vmatmul.mubr.bf16.vlgmr.msra.gmra.mrb[16].mxu1 %v2176_v18  ;;  %2021 = vmatpush3.bf16.msra.mxu0 %v2179_v20 }
  0x4a   : > { %2052 = vmatpush3.bf16.msra.mxu1 %v2179_v20  ;;  %2022 = vmatprep.subr.bf16.mxu0 %v2180_v21 }
  0x4b   : > { %2045 = vmatprep.subr.bf16.mxu1 %v2180_v21  ;;  %1299 = vmatprep.mubr.bf16.mxu0 %v2181_v22 }
  0x4c   : > { %1364 = vmatprep.mubr.bf16.mxu1 %v2183_v23 }
  0x4d   : > { %2023 = vmatpush3.bf16.msra.mxu0 %v2180_v21 }
  0x4e   : > { %2053 = vmatpush3.bf16.msra.mxu1 %v2180_v21  ;;  %2024 = vmatprep.subr.bf16.mxu0 %v2187_v26 }
  0x4f   : > { %2046 = vmatprep.subr.bf16.mxu1 %v2187_v26 }
  0x50   : > { %1300 = vmatmul.mubr.bf16.gmra.mrb[20].mxu0 %v2185_v24 }
  0x51   : > { %1365 = vmatmul.mubr.bf16.gmra.mrb[20].mxu1 %v2186_v25  ;;  %1307 = vmatprep.mubr.bf16.mxu0 %v2189_v27 }
  0x52   : > { %2025 = vmatpush3.bf16.msra.mxu0 %v2187_v26  ;;  %1372 = vmatprep.mubr.bf16.mxu1 %v2191_v28 }
  0x53   : > { %2054 = vmatpush3.bf16.msra.mxu1 %v2187_v26  ;;  %2026 = vmatprep.subr.bf16.mxu0 %v2188_v29 }
  0x54   : > { %2047 = vmatprep.subr.bf16.mxu1 %v2188_v29 }
  0x56   : > { %2027 = vmatpush3.bf16.msra.mxu0 %v2188_v29 }
  0x57   : > { %2055 = vmatpush3.bf16.msra.mxu1 %v2188_v29  ;;  %2028 = vmatprep.subr.bf16.mxu0 %v2195_v32 }
  0x58   : > { %1308 = vmatmul.mubr.bf16.gmra.mrb[24].mxu0 %v2193_v30  ;;  %2048 = vmatprep.subr.bf16.mxu1 %v2195_v32 }
  0x59   : > { %1373 = vmatmul.mubr.bf16.gmra.mrb[24].mxu1 %v2194_v31  ;;  %1315 = vmatprep.mubr.bf16.mxu0 %v2197_v33 }
  0x5a   : > { %2029 = vmatpush3.bf16.msra.mxu0 %v2195_v32  ;;  %1380 = vmatprep.mubr.bf16.mxu1 %v2199_v34 }
  0x5b   : > { %2056 = vmatpush3.bf16.msra.mxu1 %v2195_v32  ;;  %2030 = vmatprep.subr.bf16.mxu0 %v2196_v35 }
  0x5c   : > { %2049 = vmatprep.subr.bf16.mxu1 %v2196_v35 }
  0x5e   : > { %2031 = vmatpush3.bf16.msra.mxu0 %v2196_v35 }
  0x5f   : > { %2057 = vmatpush3.bf16.msra.mxu1 %v2196_v35  ;;  %2032 = vmatprep.subr.bf16.mxu0 %v2203_v37 }
  0x60   : > { %1316 = vmatmul.mubr.bf16.gmra.mrb[28].mxu0 %v2201_v36  ;;  %2050 = vmatprep.subr.bf16.mxu1 %v2203_v37 }
  0x61   : > { %1381 = vmatmul.mubr.bf16.gmra.mrb[28].mxu1 %v2202_v38  ;;  %2036 = vmatprep.mubr.bf16.mxu0 %v2205_v39 }
  0x62   : > { %2033 = vmatpush3.bf16.msra.mxu0 %v2203_v37  ;;  %2040 = vmatprep.mubr.bf16.mxu1 %v2206_v40 }
  0x63   : > { %2058 = vmatpush3.bf16.msra.mxu1 %v2203_v37  ;;  %2034 = vmatprep.subr.bf16.mxu0 %v2204_v41 }
  0x64   : > { %2051 = vmatprep.subr.bf16.mxu1 %v2204_v41 }
  0x66   : > { %2035 = vmatpush3.bf16.msra.mxu0 %v2204_v41 }
  0x67   : > { %2059 = vmatpush3.bf16.msra.mxu1 %v2204_v41 }
  0x69   : > { %2037 = vmatmul.mubr.bf16.vlgmr.msra.gmra.mrb[32].mxu0 %v2207_v42 }
  0x6a   : > { %2041 = vmatmul.mubr.bf16.vlgmr.msra.gmra.mrb[32].mxu1 %v2208_v43 }
  0xfb   : > { %v1864_v44 = vpop.f32.mrb[0].mxu0 }
  0xfc   : > { %v1904_v45 = vpop.f32.mrb[0].mxu1  ;;  %v1865_v46 = vpop.f32.mrb[1].mxu0 }
  0xfd   : > { %v1866_v47 = vadd.f32 %v1865_v46, %v1864_v44  ;;  %v1905_v48 = vpop.f32.mrb[1].mxu1  ;;  %v1867_v49 = vpop.f32.mrb[2].mxu0 }
  0xfe   : > { %v1906_v50 = vadd.f32 %v1905_v48, %v1904_v45  ;;  %v1907_v51 = vpop.f32.mrb[2].mxu1  ;;  %v1868_v52 = vpop.f32.mrb[3].mxu0 }
  0xff   : > { %v1869_v53 = vadd.f32 %v1868_v52, %v1867_v49  ;;  %v1908_v54 = vpop.f32.mrb[3].mxu1 }
 0x100   : > { %v1229_v55 = vadd.f32 %v1906_v50, %v1866_v47  ;;  %v1909_v56 = vadd.f32 %v1908_v54, %v1907_v51 }
 0x102   : > { %v1232_v57 = vadd.f32 %v1909_v56, %v1869_v53 }
 0x103   : > { %v1870_v58 = vpop.f32.mrb[4].mxu0 }
 0x104   : > { %v1910_v59 = vpop.f32.mrb[4].mxu1  ;;  %v1871_v60 = vpop.f32.mrb[5].mxu0 }
 0x105   : > { %v1872_v61 = vadd.f32 %v1871_v60, %v1870_v58  ;;  %v1911_v62 = vpop.f32.mrb[5].mxu1  ;;  %v1873_v63 = vpop.f32.mrb[6].mxu0 }
 0x106   : > { %v1912_v0 = vadd.f32 %v1911_v62, %v1910_v59  ;;  %v1913_v1 = vpop.f32.mrb[6].mxu1  ;;  %v1874_v2 = vpop.f32.mrb[7].mxu0 }
 0x107   : > { %v1875_v3 = vadd.f32 %v1874_v2, %v1873_v63  ;;  %v1914_v4 = vpop.f32.mrb[7].mxu1 }
 0x108   : > { %v1237_v5 = vadd.f32 %v1912_v0, %v1872_v61  ;;  %v1915_v6 = vadd.f32 %v1914_v4, %v1913_v1 }
 0x10a   : > { %v1240_v7 = vadd.f32 %v1915_v6, %v1875_v3 }
 0x10b   : > { %v1876_v8 = vpop.f32.mrb[8].mxu0 }
 0x10c   : > { %v1916_v9 = vpop.f32.mrb[8].mxu1  ;;  %v1877_v10 = vpop.f32.mrb[9].mxu0 }
 0x10d   : > { %v1878_v11 = vadd.f32 %v1877_v10, %v1876_v8  ;;  %v1917_v12 = vpop.f32.mrb[9].mxu1  ;;  %v1879_v13 = vpop.f32.mrb[10].mxu0 }
 0x10e   : > { %v1918_v14 = vadd.f32 %v1917_v12, %v1916_v9  ;;  %v1919_v15 = vpop.f32.mrb[10].mxu1  ;;  %v1880_v16 = vpop.f32.mrb[11].mxu0 }
 0x10f   : > { %v1881_v17 = vadd.f32 %v1880_v16, %v1879_v13  ;;  %v1920_v18 = vpop.f32.mrb[11].mxu1 }
 0x110   : > { %v1245_v19 = vadd.f32 %v1918_v14, %v1878_v11  ;;  %v1921_v20 = vadd.f32 %v1920_v18, %v1919_v15 }
 0x112   : > { %v1248_v21 = vadd.f32 %v1921_v20, %v1881_v17 }
 0x113   : > { %v1882_v22 = vpop.f32.mrb[12].mxu0 }
 0x114   : > { %v1922_v23 = vpop.f32.mrb[12].mxu1  ;;  %v1883_v24 = vpop.f32.mrb[13].mxu0 }
 0x115   : > { %v1923_v25 = vpop.f32.mrb[13].mxu1  ;;  %v1884_v26 = vadd.f32 %v1883_v24, %v1882_v22  ;;  %v1885_v28 = vpop.f32.mrb[14].mxu0 }
 0x116   : > { %v1924_v27 = vadd.f32 %v1923_v25, %v1922_v23  ;;  %v1925_v29 = vpop.f32.mrb[14].mxu1  ;;  %v1886_v30 = vpop.f32.mrb[15].mxu0 }
 0x117   : > { %v1926_v31 = vpop.f32.mrb[15].mxu1  ;;  %v1887_v33 = vadd.f32 %v1886_v30, %v1885_v28 }
 0x118   : > { %v1253_v32 = vadd.f32 %v1924_v27, %v1884_v26  ;;  %v1927_v34 = vadd.f32 %v1926_v31, %v1925_v29 }
 0x11a   : > { %v1256_v35 = vadd.f32 %v1927_v34, %v1887_v33 }
 0x11b   : > { %v1944_v36 = vpop.f32.mrb[16].mxu0 }
 0x11c   : > { %v1945_v37 = vpop.f32.mrb[17].mxu0  ;;  %v1984_v38 = vpop.f32.mrb[16].mxu1 }
 0x11d   : > { %v1946_v39 = vadd.f32 %v1945_v37, %v1944_v36  ;;  %v1947_v40 = vpop.f32.mrb[18].mxu0  ;;  %v1985_v41 = vpop.f32.mrb[17].mxu1 }
 0x11e   : > { %v1948_v42 = vpop.f32.mrb[19].mxu0  ;;  %v1986_v44 = vadd.f32 %v1985_v41, %v1984_v38  ;;  %v1987_v45 = vpop.f32.mrb[18].mxu1 }
 0x11f   : > { %v1294_v43 = vadd.f32 %v1946_v39, %v1229_v55  ;;  %v1949_v46 = vadd.f32 %v1948_v42, %v1947_v40  ;;  %v1988_v47 = vpop.f32.mrb[19].mxu1  ;;  %v1805_v39 = vld [vmem:[%s2563_s2] ss:$0 sm:$0xff] }
 0x120   : > { %v1989_v49 = vadd.f32 %v1988_v47, %v1987_v45 }
 0x121   : > { %v1297_v48 = vadd.f32 %v1949_v46, %v1232_v57  ;;  %v1359_v50 = vadd.f32 %v1986_v44, %v1294_v43 }
 0x123   : > { %v1950_v51 = vpop.f32.mrb[20].mxu0  ;;  %v2539_v52 = vadd.f32 %v1989_v49, %v1297_v48 }
 0x124   : > { %v1951_v53 = vpop.f32.mrb[21].mxu0  ;;  %v1990_v54 = vpop.f32.mrb[20].mxu1 }
 0x125   : > { %v1952_v56 = vadd.f32 %v1951_v53, %v1950_v51  ;;  %v1953_v58 = vpop.f32.mrb[22].mxu0  ;;  %v1991_v59 = vpop.f32.mrb[21].mxu1 }
 0x126   : > { %v1954_v60 = vpop.f32.mrb[23].mxu0  ;;  %v1992_v62 = vadd.f32 %v1991_v59, %v1990_v54  ;;  %v1993_v63 = vpop.f32.mrb[22].mxu1 }
 0x127   : > { %v1302_v61 = vadd.f32 %v1952_v56, %v1237_v5  ;;  %v1955_v55 = vadd.f32 %v1954_v60, %v1953_v58  ;;  %v1994_v0 = vpop.f32.mrb[23].mxu1 }
 0x128   : > { %v1995_v2 = vadd.f32 %v1994_v0, %v1993_v63 }
 0x129   : > { %v1305_v1 = vadd.f32 %v1955_v55, %v1240_v7  ;;  %v1367_v3 = vadd.f32 %v1992_v62, %v1302_v61 }
 0x12b   : > { %v1956_v57 = vpop.f32.mrb[24].mxu0  ;;  %v1370_v4 = vadd.f32 %v1995_v2, %v1305_v1 }
 0x12c   : > { %v1957_v6 = vpop.f32.mrb[25].mxu0  ;;  %v1996_v8 = vpop.f32.mrb[24].mxu1 }
 0x12d   : > { %v1958_v9 = vadd.f32 %v1957_v6, %v1956_v57  ;;  %v1959_v10 = vpop.f32.mrb[26].mxu0  ;;  %v1997_v11 = vpop.f32.mrb[25].mxu1 }
 0x12e   : > { %v1960_v12 = vpop.f32.mrb[27].mxu0  ;;  %v1998_v14 = vadd.f32 %v1997_v11, %v1996_v8  ;;  %v1999_v15 = vpop.f32.mrb[26].mxu1 }
 0x12f   : > { %v1310_v13 = vadd.f32 %v1958_v9, %v1245_v19  ;;  %v1961_v16 = vadd.f32 %v1960_v12, %v1959_v10  ;;  %v2000_v5 = vpop.f32.mrb[27].mxu1 }
 0x130   : > { %v2001_v18 = vadd.f32 %v2000_v5, %v1999_v15 }
 0x131   : > { %v1313_v17 = vadd.f32 %v1961_v16, %v1248_v21  ;;  %v1375_v20 = vadd.f32 %v1998_v14, %v1310_v13 }
 0x133   : > { %v1962_v22 = vpop.f32.mrb[28].mxu0  ;;  %v1378_v7 = vadd.f32 %v2001_v18, %v1313_v17 }
 0x134   : > { %v1963_v23 = vpop.f32.mrb[29].mxu0  ;;  %v2002_v24 = vpop.f32.mrb[28].mxu1 }
 0x135   : > { %v1964_v25 = vadd.f32 %v1963_v23, %v1962_v22  ;;  %v1965_v26 = vpop.f32.mrb[30].mxu0  ;;  %v2003_v27 = vpop.f32.mrb[29].mxu1 }
 0x136   : > { %v1966_v28 = vpop.f32.mrb[31].mxu0  ;;  %v2004_v30 = vadd.f32 %v2003_v27, %v2002_v24  ;;  %v2005_v31 = vpop.f32.mrb[30].mxu1 }
 0x137   : > { %v1318_v29 = vadd.f32 %v1964_v25, %v1253_v32  ;;  %v1967_v33 = vadd.f32 %v1966_v28, %v1965_v26  ;;  %v2006_v19 = vpop.f32.mrb[31].mxu1  ;;  %v1806_v32 = vld [vmem:[%s2564_s3] ss:$0 sm:$0xff] }
 0x138   : > { %v2007_v36 = vadd.f32 %v2006_v19, %v2005_v31 }
 0x139   : > { %v1321_v34 = vadd.f32 %v1967_v33, %v1256_v35  ;;  %v1383_v37 = vadd.f32 %v2004_v30, %v1318_v29 }
 0x13b   : > { %v1386_v38 = vadd.f32 %v2007_v36, %v1321_v34 }
 0x13c   : > { %v2038_v21 = vpop.f32.mrb[32].mxu0 }
 0x13d   : > { %v1432_v40 = vadd.f32 %v2038_v21, %v1367_v3  ;;  %v2042_v41 = vpop.f32.mrb[32].mxu1  ;;  %v1423_v42 = vpop.f32.mrb[33].mxu0 }
 0x13e   : > { %v1448_v43 = vadd.f32 %v2042_v41, %v1383_v37  ;;  %v1424_v44 = vadd.f32 %v1423_v42, %v1359_v50  ;;  %v1439_v45 = vpop.f32.mrb[33].mxu1  ;;  %v2039_v46 = vpop.f32.mrb[34].mxu0 }
 0x13f   : > { %v1490_v35 = vmul.f32 %v1805_v39, %v1432_v40  ;;  %v1440_v47 = vadd.f32 %v1439_v45, %v1375_v20  ;;  %v1435_v48 = vadd.f32 %v2039_v46, %v1370_v4  ;;  %v2043_v49 = vpop.f32.mrb[34].mxu1  ;;  %v1426_v51 = vpop.f32.mrb[35].mxu0 }
 0x140   : > { %v1494_v53 = vmul.f32 %v1805_v39, %v1448_v43  ;;  %v1488_v54 = vmul.f32 %v1805_v39, %v1424_v44  ;;  %v1451_v56 = vadd.f32 %v2043_v49, %v1386_v38  ;;  %v1427_v58 = vadd.f32 %v1426_v51, %v2539_v52  ;;  %v1442_v59 = vpop.f32.mrb[35].mxu1 }
 0x141   : > { %v1505_v60 = vadd.f32 %v1806_v32, %v1490_v35  ;;  %v1492_v61 = vmul.f32 %v1805_v39, %v1440_v47  ;;  %v1491_v62 = vmul.f32 %v1805_v39, %v1435_v48  ;;  %v1443_v63 = vadd.f32 %v1442_v59, %v1378_v7 }
 0x142   : > { %v1509_v55 = vadd.f32 %v1806_v32, %v1494_v53  ;;  %v1503_v50 = vadd.f32 %v1806_v32, %v1488_v54  ;;  %v1495_v0 = vmul.f32 %v1805_v39, %v1451_v56  ;;  %v1489_v1 = vmul.f32 %v1805_v39, %v1427_v58 }
 0x143   : > { %v1507_v2 = vadd.f32 %v1806_v32, %v1492_v61  ;;  %v1506_v3 = vadd.f32 %v1806_v32, %v1491_v62  ;;  %v1493_v57 = vmul.f32 %v1805_v39, %v1443_v63  ;;  %v1513_v8 = vmax.f32 %v1505_v60, 0.0 }
 0x144   : > { %v1510_v4 = vadd.f32 %v1806_v32, %v1495_v0  ;;  %v1504_v6 = vadd.f32 %v1806_v32, %v1489_v1  ;;  %v1517_v11 = vmax.f32 %v1509_v55, 0.0  ;;  %v1511_v52 = vmax.f32 %v1503_v50, 0.0 }
 0x145   : > { %v1514_v9 = vmax.f32 %v1506_v3, 0.0  ;;  %v1508_v10 = vadd.f32 %v1806_v32, %v1493_v57  ;;  %v1515_v14 = vmax.f32 %v1507_v2, 0.0 }
 0x146   : > { %v1518_v12 = vmax.f32 %v1510_v4, 0.0  ;;  %v1512_v13 = vmax.f32 %v1504_v6, 0.0 }
 0x147   : > { %v1833_v15 = vpack.c.bf16 %v1514_v9, %v1513_v8  ;;  %v1516_v16 = vmax.f32 %v1508_v10, 0.0 }
 0x148   : > { %v1843_v5 = vpack.c.bf16 %v1518_v12, %v1517_v11  ;;  %v1828_v17 = vpack.c.bf16 %v1512_v13, %v1511_v52 }
 0x149   : > { %1845 = vst [vmem:[%s306_s23 + $0x8] sm:$0xff] %v1833_v15   ;;  %v1838_v18 = vpack.c.bf16 %v1516_v16, %v1515_v14 }
 0x14a   : > { %1847 = vst [vmem:[%s306_s23 + $0x18] sm:$0xff] %v1843_v5   ;;  %1829 = vst [vmem:[%s306_s23] sm:$0xff] %v1828_v17  }
 0x14b   : > { %1846 = vst [vmem:[%s306_s23 + $0x10] sm:$0xff] %v1838_v18  }
 0x14c PF: > { %s14_s17 = sadd.s32 1, %s2231_s17   ;;  %s2566_s15 = smov %s2227_s16 }
 0x14d   : > { %p11_p5 = scmp.ge.s32.totalorder %s14_s17, 4   ;;  %s2567_s16 = smov %s2569_s18 }
 0x14f   :  { %13 = sbr.rel (!%p11_p5) target bundleno = 2 (0x2), region = 83 }

// kernel: resnet_simclr_forward.28
= control target key start
LH: loop header
LB: loop body
LE: loop exit
PB: predicated region body
PF: predicated region fallthrough
CT: control target
= control target key end

     0   :  { %s731_s15 = smov 0   ;;  %s733_s16 = smov 0   ;;  %s801_s0 = inlined_call_operand.vmem [shape: bf16[32,128], index: 0, kind: input, shape index: {}]   ;;  %s802_s1 = inlined_call_operand.vmem [shape: bf16[128,128], index: 1, kind: input, shape index: {}]   ;;  %s803_s2 = inlined_call_operand.vmem [shape: f32[1,128], index: 2, kind: input, shape index: {}]   ;;  %s804_s3 = inlined_call_operand.vmem [shape: f32[1,128], index: 3, kind: input, shape index: {}]   ;;  %s805_s4 = inlined_call_operand.vmem [shape: bf16[32,128], index: 4, kind: output, shape index: {}]  }
   0x1   :  { %s735_s17 = smov 0  }
   0x2 LB: > { %s33_s18 = sadd.s32 1, %s698_s16  ;;  %p589_p0 = scmp.ge.s32.totalorder %s702_s17, 1  ;;  %s702_s17 = sphi %s735_s17, %s14_s17   ;;  %s698_s16 = sphi %s733_s16, %s807_s16   ;;  %s694_s15 = sphi %s731_s15, %s806_s15  }
   0x3   : > { %p35_p1 = scmp.ge.s32.totalorder %s33_s18, 2  ;;  %p221_p2 = scmp.lt.s32.totalorder %s702_s17, 3 }
   0x5   : > { %s809_s18 = smov (%p35_p1, %s33_s18), 0  ;;  %p222_p3 = pnand %p589_p0, %p221_p2 }
   0x6   : > { %v671_v0 = vld [vmem:[%s802_s1] sm:$0xff] (!%p222_p3)   ;;  %v704_v1 = vmov (!%p222_p3), 0.0   ;;  %v672_v2 = vld [vmem:[%s802_s1 + $0x8] sm:$0xff] (!%p222_p3)   ;;  %vm705_vm0 = vmmov (!%p222_p3), 0   ;;  %s590_s23 = sshll.u32 (!%p222_p3), %s694_s15, 1  ;;  %v673_v3 = vld [vmem:[%s802_s1 + $0x10] sm:$0xff] (!%p222_p3)  }
   0x7   : > { %225 = sbr.rel (%p222_p3) target bundleno = 260 (0x104), region = 36  ;;  %625 = vmatprep.subr.bf16.mxu0 (!%p222_p3), %v704_v1  ;;  %641 = vmatprep.mubr.msk.bf16.mxu0 (!%p222_p3), %vm705_vm0, %v704_v1  ;;  %p268_p4 = scmp.lt.s32.totalorder (!%p222_p3), %s590_s23, 3  ;;  %v674_v4 = vld [vmem:[%s802_s1 + $0x18] sm:$0xff] (!%p222_p3)   ;;  %v675_v5 = vld [vmem:[%s802_s1 + $0x20] sm:$0xff] (!%p222_p3)   ;;  %v676_v6 = vld [vmem:[%s802_s1 + $0x28] sm:$0xff] (!%p222_p3)  }
   0x8   : > { %626 = vmatpush3.bf16.msra.mxu0 (!%p222_p3), %v671_v0  ;;  %v677_v7 = vld [vmem:[%s802_s1 + $0x30] sm:$0xff] (!%p222_p3)   ;;  %v678_v8 = vld [vmem:[%s802_s1 + $0x38] sm:$0xff] (!%p222_p3)   ;;  %v603_v10 = vld [vmem:[%s803_s2] ss:$0 sm:$0xff] (!%p222_p3) }
   0x9   : > { %627 = vmatprep.subr.bf16.mxu0 (!%p222_p3), %v704_v1  ;;  %v604_v14 = vld [vmem:[%s804_s3] ss:$0 sm:$0xff] (!%p222_p3) }
   0xc   : > { %628 = vmatpush3.bf16.msra.mxu0 (!%p222_p3), %v672_v2 }
   0xd   : > { %629 = vmatprep.subr.bf16.mxu0 (!%p222_p3), %v704_v1 }
   0xe   : > { %s811_s23 = smov (!%p268_p4, %s590_s23), 3 }
   0xf   : > { %s591_s26 = sshll.u32 %s811_s23, 2 }
  0x10   : > { %s274_s29 = scalar_lea.vmem %s801_s0, %s591_s26  ;;  %630 = vmatpush3.bf16.msra.mxu0 %v673_v3  ;;  %s298_s24 = scalar_lea.vmem %s805_s4, %s591_s26 }
  0x11   : > { %631 = vmatprep.subr.bf16.mxu0 %v704_v1  ;;  %v679_v9 = vld [vmem:[%s274_s29] sm:$0xff]  }
  0x14   : > { %632 = vmatpush3.bf16.msra.mxu0 %v674_v4 }
  0x15   : > { %633 = vmatprep.subr.bf16.mxu0 %v704_v1 }
  0x18   : > { %634 = vmatpush3.bf16.msra.mxu0 %v675_v5 }
  0x19   : > { %635 = vmatprep.subr.bf16.mxu0 %v704_v1 }
  0x1c   : > { %636 = vmatpush3.bf16.msra.mxu0 %v676_v6 }
  0x1d   : > { %637 = vmatprep.subr.bf16.mxu0 %v704_v1 }
  0x20   : > { %638 = vmatpush3.bf16.msra.mxu0 %v677_v7 }
  0x21   : > { %639 = vmatprep.subr.bf16.mxu0 %v704_v1 }
  0x24   : > { %640 = vmatpush3.bf16.msra.mxu0 %v678_v8 }
  0x27   : > { %642 = vmatmul.mubr.bf16.vlgmr.msra.gmra.mrb[0].mxu0 %v679_v9 }
  0xfa   : > { %v415_v11 = vpop.f32.mrb[0].mxu0 }
  0xfb   : > { %v438_v12 = vmul.f32 %v603_v10, %v415_v11  ;;  %v643_v13 = vpop.f32.mrb[1].mxu0 }
  0xfc   : > { %v418_v15 = vpop.f32.mrb[2].mxu0 }
  0xfd   : > { %v439_v16 = vmul.f32 %v603_v10, %v418_v15  ;;  %v644_v17 = vpop.f32.mrb[3].mxu0  ;;  %v447_v18 = vadd.f32 %v604_v14, %v438_v12 }
  0xff   : > { %v448_v19 = vadd.f32 %v604_v14, %v439_v16 }
 0x101   : > { %v614_v20 = vpack.c.bf16 %v448_v19, %v447_v18 }
 0x103   : > { %615 = vst [vmem:[%s298_s24] sm:$0xff] %v614_v20  }
 0x104 PF: > { %s14_s17 = sadd.s32 1, %s702_s17   ;;  %s806_s15 = smov %s698_s16 }
 0x105   : > { %p11_p5 = scmp.ge.s32.totalorder %s14_s17, 4   ;;  %s807_s16 = smov %s809_s18 }
 0x107   :  { %13 = sbr.rel (!%p11_p5) target bundleno = 2 (0x2), region = 83 }

// kernel: resnet_simclr_forward.29
= control target key start
LH: loop header
LB: loop body
LE: loop exit
PB: predicated region body
PF: predicated region fallthrough
CT: control target
= control target key end

     0   :  { %s1705_s15 = smov 0   ;;  %s1707_s16 = smov 0   ;;  %s1978_s0 = inlined_call_operand.vmem [shape: bf16[32,1152], index: 0, kind: input, shape index: {}]   ;;  %s1979_s1 = inlined_call_operand.vmem [shape: bf16[1152,128], index: 1, kind: input, shape index: {}]   ;;  %s1980_s2 = inlined_call_operand.vmem [shape: f32[1,128], index: 2, kind: input, shape index: {}]   ;;  %s1981_s3 = inlined_call_operand.vmem [shape: f32[1,128], index: 3, kind: input, shape index: {}]   ;;  %s1982_s4 = inlined_call_operand.vmem [shape: bf16[32,128], index: 4, kind: output, shape index: {}]  }
   0x1   :  { %s1709_s17 = smov 0  }
   0x2 LB: > { %s33_s18 = sadd.s32 1, %s1672_s16  ;;  %p1326_p0 = scmp.ge.s32.totalorder %s1676_s17, 1  ;;  %s1676_s17 = sphi %s1709_s17, %s14_s17   ;;  %s1672_s16 = sphi %s1707_s16, %s1984_s16   ;;  %s1668_s15 = sphi %s1705_s15, %s1983_s15  }
   0x3   : > { %p35_p1 = scmp.ge.s32.totalorder %s33_s18, 2  ;;  %p224_p2 = scmp.lt.s32.totalorder %s1676_s17, 3 }
   0x5   : > { %s1986_s18 = smov (%p35_p1, %s33_s18), 0  ;;  %p225_p3 = pnand %p1326_p0, %p224_p2 }
   0x6   : > { %v1569_v0 = vld [vmem:[%s1979_s1 + $0x40] sm:$0xff] (!%p225_p3)   ;;  %v1573_v4 = vld [vmem:[%s1979_s1 + $0x48] sm:$0xff] (!%p225_p3)   ;;  %v1577_v8 = vld [vmem:[%s1979_s1 + $0x50] sm:$0xff] (!%p225_p3)   ;;  %s1327_s27 = sshll.u32 (!%p225_p3), %s1668_s15, 1  ;;  %vm1679_vm0 = vmmov (!%p225_p3), 0  }
   0x7   : > { %228 = sbr.rel (%p225_p3) target bundleno = 329 (0x149), region = 36  ;;  %v1570_v1 = vld [vmem:[%s1979_s1 + $0xc0] sm:$0xff] (!%p225_p3)   ;;  %1425 = vmatprep.subr.bf16.mxu0 (!%p225_p3), %v1569_v0  ;;  %v1574_v5 = vld [vmem:[%s1979_s1 + $0xc8] sm:$0xff] (!%p225_p3)   ;;  %v1578_v9 = vld [vmem:[%s1979_s1 + $0xd0] sm:$0xff] (!%p225_p3)   ;;  %p274_p4 = scmp.lt.s32.totalorder (!%p225_p3), %s1327_s27, 3 }
   0x8   : > { %v1571_v2 = vld [vmem:[%s1979_s1] sm:$0xff] (!%p225_p3)   ;;  %1447 = vmatprep.subr.bf16.mxu1 (!%p225_p3), %v1570_v1  ;;  %v1575_v6 = vld [vmem:[%s1979_s1 + $0x8] sm:$0xff] (!%p225_p3)   ;;  %v1579_v10 = vld [vmem:[%s1979_s1 + $0x10] sm:$0xff] (!%p225_p3)  }
   0x9   : > { %v1572_v3 = vld [vmem:[%s1979_s1 + $0x80] sm:$0xff] (!%p225_p3)   ;;  %1426 = vmatpush3.bf16.msra.mxu0 (!%p225_p3), %v1571_v2  ;;  %v1576_v7 = vld [vmem:[%s1979_s1 + $0x88] sm:$0xff] (!%p225_p3)   ;;  %v1580_v11 = vld [vmem:[%s1979_s1 + $0x90] sm:$0xff] (!%p225_p3)  }
   0xa   : > { %1448 = vmatpush3.bf16.msra.mxu1 (!%p225_p3), %v1572_v3  ;;  %1427 = vmatprep.subr.bf16.mxu0 (!%p225_p3), %v1573_v4  ;;  %v1581_v12 = vld [vmem:[%s1979_s1 + $0x58] sm:$0xff] (!%p225_p3)   ;;  %v1585_v16 = vld [vmem:[%s1979_s1 + $0x60] sm:$0xff] (!%p225_p3)   ;;  %v1589_v20 = vld [vmem:[%s1979_s1 + $0x68] sm:$0xff] (!%p225_p3)  }
   0xb   : > { %1449 = vmatprep.subr.bf16.mxu1 (!%p225_p3), %v1574_v5  ;;  %v1582_v13 = vld [vmem:[%s1979_s1 + $0xd8] sm:$0xff] (!%p225_p3)   ;;  %v1586_v17 = vld [vmem:[%s1979_s1 + $0xe0] sm:$0xff] (!%p225_p3)   ;;  %v1590_v21 = vld [vmem:[%s1979_s1 + $0xe8] sm:$0xff] (!%p225_p3)  }
   0xc   : > { %v1583_v14 = vld [vmem:[%s1979_s1 + $0x18] sm:$0xff] (!%p225_p3)   ;;  %v1587_v18 = vld [vmem:[%s1979_s1 + $0x20] sm:$0xff] (!%p225_p3)   ;;  %v1591_v22 = vld [vmem:[%s1979_s1 + $0x28] sm:$0xff] (!%p225_p3)  }
   0xd   : > { %1428 = vmatpush3.bf16.msra.mxu0 (!%p225_p3), %v1575_v6  ;;  %v1584_v15 = vld [vmem:[%s1979_s1 + $0x98] sm:$0xff] (!%p225_p3)   ;;  %v1588_v19 = vld [vmem:[%s1979_s1 + $0xa0] sm:$0xff] (!%p225_p3)   ;;  %v1592_v23 = vld [vmem:[%s1979_s1 + $0xa8] sm:$0xff] (!%p225_p3)   ;;  %v1678_v6 = vmov (!%p225_p3), 0.0  }
   0xe   : > { %1450 = vmatpush3.bf16.msra.mxu1 %v1576_v7  ;;  %1429 = vmatprep.subr.bf16.mxu0 %v1577_v8  ;;  %s1988_s27 = smov (!%p274_p4, %s1327_s27), 3  ;;  %v1593_v24 = vld [vmem:[%s1979_s1 + $0x70] sm:$0xff]   ;;  %v1597_v28 = vld [vmem:[%s1979_s1 + $0x78] sm:$0xff]   ;;  %v1607_v36 = vld [vmem:[%s1979_s1 + $0x140] sm:$0xff]  }
   0xf   : > { %1451 = vmatprep.subr.bf16.mxu1 %v1578_v9  ;;  %v1594_v25 = vld [vmem:[%s1979_s1 + $0xf0] sm:$0xff]   ;;  %s1542_s28 = smul.u32 36, %s1988_s27  ;;  %v1598_v29 = vld [vmem:[%s1979_s1 + $0xf8] sm:$0xff]   ;;  %v1608_v37 = vld [vmem:[%s1979_s1 + $0x100] sm:$0xff]   ;;  %s1330_s20 = sshll.u32 %s1988_s27, 2 }
  0x10   : > { %v1595_v26 = vld [vmem:[%s1979_s1 + $0x30] sm:$0xff]   ;;  %v1599_v30 = vld [vmem:[%s1979_s1 + $0x38] sm:$0xff]   ;;  %v1609_v38 = vld [vmem:[%s1979_s1 + $0x1c0] sm:$0xff]   ;;  %s306_s23 = scalar_lea.vmem %s1982_s4, %s1330_s20 }
  0x11   : > { %1430 = vmatpush3.bf16.msra.mxu0 %v1579_v10  ;;  %v1596_v27 = vld [vmem:[%s1979_s1 + $0xb0] sm:$0xff]   ;;  %s1822_s12 = scalar_lea.vmem %s1978_s0, %s1542_s28  ;;  %v1600_v31 = vld [vmem:[%s1979_s1 + $0xb8] sm:$0xff]   ;;  %v1610_v39 = vld [vmem:[%s1979_s1 + $0x180] sm:$0xff]  }
  0x12   : > { %1452 = vmatpush3.bf16.msra.mxu1 %v1580_v11  ;;  %1431 = vmatprep.subr.bf16.mxu0 %v1581_v12  ;;  %v1601_v32 = vld [vmem:[%s1822_s12] ss:$36 sps:$4 sm:$0xff]   ;;  %v1604_v34 = vld [vmem:[%s1822_s12 + $0x8] ss:$36 sps:$4 sm:$0xff]   ;;  %v1615_v44 = vld [vmem:[%s1979_s1 + $0x150] sm:$0xff]  }
  0x13   : > { %1453 = vmatprep.subr.bf16.mxu1 %v1582_v13  ;;  %v1603_v33 = vld [vmem:[%s1822_s12 + $0x4] ss:$36 sps:$4 sm:$0xff]   ;;  %v1606_v35 = vld [vmem:[%s1822_s12 + $0xc] ss:$36 sps:$4 sm:$0xff]   ;;  %v1619_v48 = vld [vmem:[%s1979_s1 + $0x158] sm:$0xff]  }
  0x14   : > { %981 = vmatprep.mubr.bf16.mxu0 %v1603_v33  ;;  %1022 = vmatprep.mubr.bf16.mxu1 %v1606_v35  ;;  %v1611_v40 = vld [vmem:[%s1979_s1 + $0x148] sm:$0xff]   ;;  %v1616_v45 = vld [vmem:[%s1979_s1 + $0x110] sm:$0xff]   ;;  %v1620_v49 = vld [vmem:[%s1979_s1 + $0x118] sm:$0xff]  }
  0x15   : > { %1432 = vmatpush3.bf16.msra.mxu0 %v1583_v14  ;;  %v1612_v41 = vld [vmem:[%s1979_s1 + $0x108] sm:$0xff]   ;;  %v1617_v46 = vld [vmem:[%s1979_s1 + $0x1d0] sm:$0xff]   ;;  %v1621_v50 = vld [vmem:[%s1979_s1 + $0x1d8] sm:$0xff]  }
  0x16   : > { %1454 = vmatpush3.bf16.msra.mxu1 %v1584_v15  ;;  %1433 = vmatprep.subr.bf16.mxu0 %v1585_v16  ;;  %v1613_v42 = vld [vmem:[%s1979_s1 + $0x1c8] sm:$0xff]   ;;  %v1618_v47 = vld [vmem:[%s1979_s1 + $0x190] sm:$0xff]   ;;  %v1622_v51 = vld [vmem:[%s1979_s1 + $0x198] sm:$0xff]  }
  0x17   : > { %1455 = vmatprep.subr.bf16.mxu1 %v1586_v17  ;;  %v1614_v43 = vld [vmem:[%s1979_s1 + $0x188] sm:$0xff]   ;;  %v1623_v52 = vld [vmem:[%s1979_s1 + $0x160] sm:$0xff]   ;;  %v1631_v60 = vld [vmem:[%s1979_s1 + $0x170] sm:$0xff]  }
  0x18   : > { %v1624_v53 = vld [vmem:[%s1979_s1 + $0x120] sm:$0xff]   ;;  %v1627_v56 = vld [vmem:[%s1979_s1 + $0x168] sm:$0xff]   ;;  %v1632_v61 = vld [vmem:[%s1979_s1 + $0x130] sm:$0xff]  }
  0x19   : > { %1434 = vmatpush3.bf16.msra.mxu0 %v1587_v18  ;;  %v1625_v54 = vld [vmem:[%s1979_s1 + $0x1e0] sm:$0xff]   ;;  %v1628_v57 = vld [vmem:[%s1979_s1 + $0x128] sm:$0xff]   ;;  %v1633_v62 = vld [vmem:[%s1979_s1 + $0x1f0] sm:$0xff]  }
  0x1a   : > { %1456 = vmatpush3.bf16.msra.mxu1 %v1588_v19  ;;  %1435 = vmatprep.subr.bf16.mxu0 %v1589_v20  ;;  %v1626_v55 = vld [vmem:[%s1979_s1 + $0x1a0] sm:$0xff]   ;;  %v1629_v58 = vld [vmem:[%s1979_s1 + $0x1e8] sm:$0xff]   ;;  %v1634_v63 = vld [vmem:[%s1979_s1 + $0x1b0] sm:$0xff]  }
  0x1b   : > { %1457 = vmatprep.subr.bf16.mxu1 %v1590_v21  ;;  %v1630_v59 = vld [vmem:[%s1979_s1 + $0x1a8] sm:$0xff]   ;;  %v1635_v0 = vld [vmem:[%s1979_s1 + $0x178] sm:$0xff]   ;;  %v1638_v3 = vld [vmem:[%s1822_s12 + $0x10] ss:$36 sps:$4 sm:$0xff]  }
  0x1c   : > { %v1636_v1 = vld [vmem:[%s1979_s1 + $0x138] sm:$0xff]   ;;  %v1645_v9 = vld [vmem:[%s1979_s1 + $0x200] sm:$0xff]   ;;  %v1646_v10 = vld [vmem:[%s1979_s1 + $0x208] sm:$0xff]  }
  0x1d   : > { %1436 = vmatpush3.bf16.msra.mxu0 %v1591_v22  ;;  %v1637_v2 = vld [vmem:[%s1979_s1 + $0x1f8] sm:$0xff]   ;;  %v1647_v11 = vld [vmem:[%s1979_s1 + $0x210] sm:$0xff]   ;;  %v1649_v13 = vld [vmem:[%s1979_s1 + $0x220] sm:$0xff]  }
  0x1e   : > { %1458 = vmatpush3.bf16.msra.mxu1 %v1592_v23  ;;  %1437 = vmatprep.subr.bf16.mxu0 %v1593_v24  ;;  %v1640_v4 = vld [vmem:[%s1822_s12 + $0x14] ss:$36 sps:$4 sm:$0xff]   ;;  %v1644_v8 = vld [vmem:[%s1822_s12 + $0x1c] ss:$36 sps:$4 sm:$0xff]   ;;  %v1650_v14 = vld [vmem:[%s1979_s1 + $0x228] sm:$0xff]  }
  0x1f   : > { %1459 = vmatprep.subr.bf16.mxu1 %v1594_v25  ;;  %v1641_v5 = vld [vmem:[%s1979_s1 + $0x1b8] sm:$0xff]   ;;  %v1651_v15 = vld [vmem:[%s1979_s1 + $0x230] sm:$0xff]   ;;  %v1653_v17 = vld [vmem:[%s1822_s12 + $0x20] ss:$36 sps:$4 sm:$0xff]  }
  0x20   : > { %v1642_v7 = vld [vmem:[%s1822_s12 + $0x18] ss:$36 sps:$4 sm:$0xff]  }
  0x21   : > { %1438 = vmatpush3.bf16.msra.mxu0 %v1595_v26  ;;  %v1648_v12 = vld [vmem:[%s1979_s1 + $0x218] sm:$0xff]  }
  0x22   : > { %1460 = vmatpush3.bf16.msra.mxu1 %v1596_v27  ;;  %1439 = vmatprep.subr.bf16.mxu0 %v1597_v28  ;;  %v1652_v16 = vld [vmem:[%s1979_s1 + $0x238] sm:$0xff]  }
  0x23   : > { %1461 = vmatprep.subr.bf16.mxu1 %v1598_v29 }
  0x25   : > { %1440 = vmatpush3.bf16.msra.mxu0 %v1599_v30 }
  0x26   : > { %1462 = vmatpush3.bf16.msra.mxu1 %v1600_v31  ;;  %1469 = vmatprep.subr.bf16.mxu0 %v1607_v36 }
  0x27   : > { %1491 = vmatprep.subr.bf16.mxu1 %v1609_v38 }
  0x28   : > { %982 = vmatmul.mubr.bf16.vlgmr.msra.gmra.mrb[0].mxu0 %v1601_v32 }
  0x29   : > { %1023 = vmatmul.mubr.bf16.vlgmr.msra.gmra.mrb[0].mxu1 %v1604_v34  ;;  %1470 = vmatpush3.bf16.msra.mxu0 %v1608_v37 }
  0x2a   : > { %1492 = vmatpush3.bf16.msra.mxu1 %v1610_v39  ;;  %1471 = vmatprep.subr.bf16.mxu0 %v1611_v40 }
  0x2b   : > { %1493 = vmatprep.subr.bf16.mxu1 %v1613_v42  ;;  %1063 = vmatprep.mubr.bf16.mxu0 %v1640_v4 }
  0x2c   : > { %1104 = vmatprep.mubr.bf16.mxu1 %v1644_v8 }
  0x2d   : > { %1472 = vmatpush3.bf16.msra.mxu0 %v1612_v41 }
  0x2e   : > { %1494 = vmatpush3.bf16.msra.mxu1 %v1614_v43  ;;  %1473 = vmatprep.subr.bf16.mxu0 %v1615_v44 }
  0x2f   : > { %1495 = vmatprep.subr.bf16.mxu1 %v1617_v46 }
  0x31   : > { %1474 = vmatpush3.bf16.msra.mxu0 %v1616_v45 }
  0x32   : > { %1496 = vmatpush3.bf16.msra.mxu1 %v1618_v47  ;;  %1475 = vmatprep.subr.bf16.mxu0 %v1619_v48 }
  0x33   : > { %1497 = vmatprep.subr.bf16.mxu1 %v1621_v50 }
  0x35   : > { %1476 = vmatpush3.bf16.msra.mxu0 %v1620_v49  ;;  %v1412_v49 = vld [vmem:[%s1980_s2] ss:$0 sm:$0xff] }
  0x36   : > { %1498 = vmatpush3.bf16.msra.mxu1 %v1622_v51  ;;  %1477 = vmatprep.subr.bf16.mxu0 %v1623_v52  ;;  %v1413_v52 = vld [vmem:[%s1981_s3] ss:$0 sm:$0xff] }
  0x37   : > { %1499 = vmatprep.subr.bf16.mxu1 %v1625_v54 }
  0x39   : > { %1478 = vmatpush3.bf16.msra.mxu0 %v1624_v53 }
  0x3a   : > { %1500 = vmatpush3.bf16.msra.mxu1 %v1626_v55  ;;  %1479 = vmatprep.subr.bf16.mxu0 %v1627_v56 }
  0x3b   : > { %1501 = vmatprep.subr.bf16.mxu1 %v1629_v58 }
  0x3d   : > { %1480 = vmatpush3.bf16.msra.mxu0 %v1628_v57 }
  0x3e   : > { %1502 = vmatpush3.bf16.msra.mxu1 %v1630_v59  ;;  %1481 = vmatprep.subr.bf16.mxu0 %v1631_v60 }
  0x3f   : > { %1503 = vmatprep.subr.bf16.mxu1 %v1633_v62 }
  0x41   : > { %1482 = vmatpush3.bf16.msra.mxu0 %v1632_v61 }
  0x42   : > { %1504 = vmatpush3.bf16.msra.mxu1 %v1634_v63  ;;  %1483 = vmatprep.subr.bf16.mxu0 %v1635_v0 }
  0x43   : > { %1505 = vmatprep.subr.bf16.mxu1 %v1637_v2 }
  0x45   : > { %1484 = vmatpush3.bf16.msra.mxu0 %v1636_v1 }
  0x46   : > { %1522 = vmatprep.subr.bf16.mxu0 %v1678_v6  ;;  %1506 = vmatpush3.bf16.msra.mxu1 %v1641_v5 }
  0x48   : > { %1064 = vmatmul.mubr.bf16.vlgmr.msra.gmra.mrb[4].mxu0 %v1638_v3 }
  0x49   : > { %1538 = vmatprep.mubr.msk.bf16.mxu0 %vm1679_vm0, %v1678_v6  ;;  %1523 = vmatpush3.bf16.msra.mxu0 %v1645_v9 }
  0x4a   : > { %1105 = vmatmul.mubr.bf16.vlgmr.msra.gmra.mrb[4].mxu1 %v1642_v7  ;;  %1524 = vmatprep.subr.bf16.mxu0 %v1678_v6 }
  0x4d   : > { %1525 = vmatpush3.bf16.msra.mxu0 %v1646_v10 }
  0x4e   : > { %1526 = vmatprep.subr.bf16.mxu0 %v1678_v6 }
  0x51   : > { %1527 = vmatpush3.bf16.msra.mxu0 %v1647_v11 }
  0x52   : > { %1528 = vmatprep.subr.bf16.mxu0 %v1678_v6 }
  0x55   : > { %1529 = vmatpush3.bf16.msra.mxu0 %v1648_v12 }
  0x56   : > { %1530 = vmatprep.subr.bf16.mxu0 %v1678_v6 }
  0x59   : > { %1531 = vmatpush3.bf16.msra.mxu0 %v1649_v13 }
  0x5a   : > { %1532 = vmatprep.subr.bf16.mxu0 %v1678_v6 }
  0x5d   : > { %1533 = vmatpush3.bf16.msra.mxu0 %v1650_v14 }
  0x5e   : > { %1534 = vmatprep.subr.bf16.mxu0 %v1678_v6 }
  0x61   : > { %1535 = vmatpush3.bf16.msra.mxu0 %v1651_v15 }
  0x62   : > { %1536 = vmatprep.subr.bf16.mxu0 %v1678_v6 }
  0x65   : > { %1537 = vmatpush3.bf16.msra.mxu0 %v1652_v16 }
  0x68   : > { %1539 = vmatmul.mubr.bf16.vlgmr.msra.gmra.mrb[8].mxu0 %v1653_v17 }
  0xfb   : > { %v1441_v18 = vpop.f32.mrb[0].mxu0 }
  0xfc   : > { %v1463_v19 = vpop.f32.mrb[0].mxu1  ;;  %v1442_v20 = vpop.f32.mrb[1].mxu0 }
  0xfd   : > { %v1443_v21 = vadd.f32 %v1442_v20, %v1441_v18  ;;  %v1464_v22 = vpop.f32.mrb[1].mxu1  ;;  %v1444_v23 = vpop.f32.mrb[2].mxu0 }
  0xfe   : > { %v1465_v24 = vadd.f32 %v1464_v22, %v1463_v19  ;;  %v1466_v25 = vpop.f32.mrb[2].mxu1  ;;  %v1445_v26 = vpop.f32.mrb[3].mxu0 }
  0xff   : > { %v1446_v27 = vadd.f32 %v1445_v26, %v1444_v23  ;;  %v1467_v28 = vpop.f32.mrb[3].mxu1 }
 0x100   : > { %v1025_v29 = vadd.f32 %v1465_v24, %v1443_v21  ;;  %v1468_v30 = vadd.f32 %v1467_v28, %v1466_v25 }
 0x102   : > { %v1028_v31 = vadd.f32 %v1468_v30, %v1446_v27 }
 0x11b   : > { %v1485_v32 = vpop.f32.mrb[4].mxu0 }
 0x11c   : > { %v1486_v33 = vpop.f32.mrb[5].mxu0 }
 0x11d   : > { %v1487_v34 = vadd.f32 %v1486_v33, %v1485_v32  ;;  %v1488_v35 = vpop.f32.mrb[6].mxu0  ;;  %v1507_v36 = vpop.f32.mrb[4].mxu1 }
 0x11e   : > { %v1489_v37 = vpop.f32.mrb[7].mxu0  ;;  %v1508_v40 = vpop.f32.mrb[5].mxu1 }
 0x11f   : > { %v1066_v38 = vadd.f32 %v1487_v34, %v1025_v29  ;;  %v1490_v39 = vadd.f32 %v1489_v37, %v1488_v35  ;;  %v1509_v41 = vadd.f32 %v1508_v40, %v1507_v36  ;;  %v1510_v42 = vpop.f32.mrb[6].mxu1 }
 0x120   : > { %v1511_v44 = vpop.f32.mrb[7].mxu1 }
 0x121   : > { %v1069_v43 = vadd.f32 %v1490_v39, %v1028_v31  ;;  %v1512_v45 = vadd.f32 %v1511_v44, %v1510_v42  ;;  %v1107_v46 = vadd.f32 %v1509_v41, %v1066_v38 }
 0x123   : > { %v1110_v47 = vadd.f32 %v1512_v45, %v1069_v43 }
 0x13b   : > { %v1147_v48 = vpop.f32.mrb[8].mxu0 }
 0x13c   : > { %v1148_v50 = vadd.f32 %v1147_v48, %v1107_v46  ;;  %v1540_v51 = vpop.f32.mrb[9].mxu0 }
 0x13d   : > { %v1150_v53 = vpop.f32.mrb[10].mxu0 }
 0x13e   : > { %v1170_v54 = vmul.f32 %v1412_v49, %v1148_v50  ;;  %v1151_v55 = vadd.f32 %v1150_v53, %v1110_v47  ;;  %v1541_v56 = vpop.f32.mrb[11].mxu0 }
 0x140   : > { %v1179_v57 = vadd.f32 %v1413_v52, %v1170_v54  ;;  %v1171_v58 = vmul.f32 %v1412_v49, %v1151_v55 }
 0x142   : > { %v1180_v59 = vadd.f32 %v1413_v52, %v1171_v58  ;;  %v1181_v60 = vmax.f32 %v1179_v57, 0.0 }
 0x144   : > { %v1182_v61 = vmax.f32 %v1180_v59, 0.0 }
 0x146   : > { %v1423_v62 = vpack.c.bf16 %v1182_v61, %v1181_v60 }
 0x148   : > { %1424 = vst [vmem:[%s306_s23] sm:$0xff] %v1423_v62  }
 0x149 PF: > { %s14_s17 = sadd.s32 1, %s1676_s17   ;;  %s1983_s15 = smov %s1672_s16 }
 0x14a   : > { %p11_p5 = scmp.ge.s32.totalorder %s14_s17, 4   ;;  %s1984_s16 = smov %s1986_s18 }
 0x14c   :  { %13 = sbr.rel (!%p11_p5) target bundleno = 2 (0x2), region = 83 }

// kernel: resnet_simclr_forward.30
= control target key start
LH: loop header
LB: loop body
LE: loop exit
PB: predicated region body
PF: predicated region fallthrough
CT: control target
= control target key end

     0   :  { %s1797_s18 = smov 0   ;;  %s1799_s19 = smov 0   ;;  %s2073_s0 = inlined_call_operand.vmem [shape: bf16[32,1152], index: 0, kind: input, shape index: {}]   ;;  %s2074_s1 = inlined_call_operand.vmem [shape: bf16[1152,128], index: 1, kind: input, shape index: {}]   ;;  %s2075_s2 = inlined_call_operand.vmem [shape: f32[1,128], index: 2, kind: input, shape index: {}]   ;;  %s2076_s3 = inlined_call_operand.vmem [shape: f32[1,128], index: 3, kind: input, shape index: {}]   ;;  %s2077_s4 = inlined_call_operand.vmem [shape: bf16[32,128], index: 4, kind: input, shape index: {}]   ;;  %s2078_s5 = inlined_call_operand.vmem [shape: bf16[32,128], index: 5, kind: output, shape index: {}]  }
   0x1   :  { %s1801_s20 = smov 0  }
   0x2 LB: > { %s34_s21 = sadd.s32 1, %s1759_s19  ;;  %p1407_p0 = scmp.ge.s32.totalorder %s1763_s20, 1  ;;  %s1763_s20 = sphi %s1801_s20, %s15_s20   ;;  %s1759_s19 = sphi %s1799_s19, %s2080_s19   ;;  %s1755_s18 = sphi %s1797_s18, %s2079_s18  }
   0x3   : > { %p36_p1 = scmp.ge.s32.totalorder %s34_s21, 2  ;;  %p265_p2 = scmp.lt.s32.totalorder %s1763_s20, 3 }
   0x5   : > { %s2082_s21 = smov (%p36_p1, %s34_s21), 0  ;;  %p266_p3 = pnand %p1407_p0, %p265_p2 }
   0x6   : > { %v1656_v0 = vld [vmem:[%s2074_s1 + $0x40] sm:$0xff] (!%p266_p3)   ;;  %v1660_v4 = vld [vmem:[%s2074_s1 + $0x48] sm:$0xff] (!%p266_p3)   ;;  %v1664_v8 = vld [vmem:[%s2074_s1 + $0x50] sm:$0xff] (!%p266_p3)   ;;  %s1408_s6 = sshll.u32 (!%p266_p3), %s1755_s18, 1  ;;  %vm1766_vm0 = vmmov (!%p266_p3), 0  }
   0x7   : > { %269 = sbr.rel (%p266_p3) target bundleno = 331 (0x14b), region = 40  ;;  %v1657_v1 = vld [vmem:[%s2074_s1 + $0xc0] sm:$0xff] (!%p266_p3)   ;;  %1512 = vmatprep.subr.bf16.mxu0 (!%p266_p3), %v1656_v0  ;;  %v1661_v5 = vld [vmem:[%s2074_s1 + $0xc8] sm:$0xff] (!%p266_p3)   ;;  %v1665_v9 = vld [vmem:[%s2074_s1 + $0xd0] sm:$0xff] (!%p266_p3)   ;;  %p325_p4 = scmp.lt.s32.totalorder (!%p266_p3), %s1408_s6, 3 }
   0x8   : > { %v1658_v2 = vld [vmem:[%s2074_s1] sm:$0xff] (!%p266_p3)   ;;  %1534 = vmatprep.subr.bf16.mxu1 (!%p266_p3), %v1657_v1  ;;  %v1662_v6 = vld [vmem:[%s2074_s1 + $0x8] sm:$0xff] (!%p266_p3)   ;;  %v1666_v10 = vld [vmem:[%s2074_s1 + $0x10] sm:$0xff] (!%p266_p3)  }
   0x9   : > { %v1659_v3 = vld [vmem:[%s2074_s1 + $0x80] sm:$0xff] (!%p266_p3)   ;;  %1513 = vmatpush3.bf16.msra.mxu0 (!%p266_p3), %v1658_v2  ;;  %v1663_v7 = vld [vmem:[%s2074_s1 + $0x88] sm:$0xff] (!%p266_p3)   ;;  %v1667_v11 = vld [vmem:[%s2074_s1 + $0x90] sm:$0xff] (!%p266_p3)  }
   0xa   : > { %1535 = vmatpush3.bf16.msra.mxu1 (!%p266_p3), %v1659_v3  ;;  %1514 = vmatprep.subr.bf16.mxu0 (!%p266_p3), %v1660_v4  ;;  %v1668_v12 = vld [vmem:[%s2074_s1 + $0x58] sm:$0xff] (!%p266_p3)   ;;  %v1672_v16 = vld [vmem:[%s2074_s1 + $0x60] sm:$0xff] (!%p266_p3)   ;;  %v1676_v20 = vld [vmem:[%s2074_s1 + $0x68] sm:$0xff] (!%p266_p3)  }
   0xb   : > { %1536 = vmatprep.subr.bf16.mxu1 (!%p266_p3), %v1661_v5  ;;  %v1669_v13 = vld [vmem:[%s2074_s1 + $0xd8] sm:$0xff] (!%p266_p3)   ;;  %v1673_v17 = vld [vmem:[%s2074_s1 + $0xe0] sm:$0xff] (!%p266_p3)   ;;  %v1677_v21 = vld [vmem:[%s2074_s1 + $0xe8] sm:$0xff] (!%p266_p3)  }
   0xc   : > { %v1670_v14 = vld [vmem:[%s2074_s1 + $0x18] sm:$0xff] (!%p266_p3)   ;;  %v1674_v18 = vld [vmem:[%s2074_s1 + $0x20] sm:$0xff] (!%p266_p3)   ;;  %v1678_v22 = vld [vmem:[%s2074_s1 + $0x28] sm:$0xff] (!%p266_p3)  }
   0xd   : > { %1515 = vmatpush3.bf16.msra.mxu0 (!%p266_p3), %v1662_v6  ;;  %v1671_v15 = vld [vmem:[%s2074_s1 + $0x98] sm:$0xff] (!%p266_p3)   ;;  %v1675_v19 = vld [vmem:[%s2074_s1 + $0xa0] sm:$0xff] (!%p266_p3)   ;;  %v1679_v23 = vld [vmem:[%s2074_s1 + $0xa8] sm:$0xff] (!%p266_p3)   ;;  %v1765_v6 = vmov (!%p266_p3), 0.0  }
   0xe   : > { %1537 = vmatpush3.bf16.msra.mxu1 %v1663_v7  ;;  %1516 = vmatprep.subr.bf16.mxu0 %v1664_v8  ;;  %s2084_s6 = smov (!%p325_p4, %s1408_s6), 3  ;;  %v1680_v24 = vld [vmem:[%s2074_s1 + $0x70] sm:$0xff]   ;;  %v1684_v28 = vld [vmem:[%s2074_s1 + $0x78] sm:$0xff]   ;;  %v1694_v36 = vld [vmem:[%s2074_s1 + $0x140] sm:$0xff]  }
   0xf   : > { %1538 = vmatprep.subr.bf16.mxu1 %v1665_v9  ;;  %v1681_v25 = vld [vmem:[%s2074_s1 + $0xf0] sm:$0xff]   ;;  %s1629_s8 = smul.u32 36, %s2084_s6  ;;  %v1685_v29 = vld [vmem:[%s2074_s1 + $0xf8] sm:$0xff]   ;;  %v1695_v37 = vld [vmem:[%s2074_s1 + $0x100] sm:$0xff]  }
  0x10   : > { %v1682_v26 = vld [vmem:[%s2074_s1 + $0x30] sm:$0xff]   ;;  %v1686_v30 = vld [vmem:[%s2074_s1 + $0x38] sm:$0xff]   ;;  %v1696_v38 = vld [vmem:[%s2074_s1 + $0x1c0] sm:$0xff]  }
  0x11   : > { %1517 = vmatpush3.bf16.msra.mxu0 %v1666_v10  ;;  %v1683_v27 = vld [vmem:[%s2074_s1 + $0xb0] sm:$0xff]   ;;  %s1914_s22 = scalar_lea.vmem %s2073_s0, %s1629_s8  ;;  %v1687_v31 = vld [vmem:[%s2074_s1 + $0xb8] sm:$0xff]   ;;  %v1697_v39 = vld [vmem:[%s2074_s1 + $0x180] sm:$0xff]  }
  0x12   : > { %1539 = vmatpush3.bf16.msra.mxu1 %v1667_v11  ;;  %1518 = vmatprep.subr.bf16.mxu0 %v1668_v12  ;;  %v1688_v32 = vld [vmem:[%s1914_s22] ss:$36 sps:$4 sm:$0xff]   ;;  %v1691_v34 = vld [vmem:[%s1914_s22 + $0x8] ss:$36 sps:$4 sm:$0xff]   ;;  %v1702_v44 = vld [vmem:[%s2074_s1 + $0x150] sm:$0xff]  }
  0x13   : > { %1540 = vmatprep.subr.bf16.mxu1 %v1669_v13  ;;  %v1690_v33 = vld [vmem:[%s1914_s22 + $0x4] ss:$36 sps:$4 sm:$0xff]   ;;  %v1693_v35 = vld [vmem:[%s1914_s22 + $0xc] ss:$36 sps:$4 sm:$0xff]   ;;  %v1706_v48 = vld [vmem:[%s2074_s1 + $0x158] sm:$0xff]  }
  0x14   : > { %1041 = vmatprep.mubr.bf16.mxu0 %v1690_v33  ;;  %1082 = vmatprep.mubr.bf16.mxu1 %v1693_v35  ;;  %v1698_v40 = vld [vmem:[%s2074_s1 + $0x148] sm:$0xff]   ;;  %v1703_v45 = vld [vmem:[%s2074_s1 + $0x110] sm:$0xff]   ;;  %v1707_v49 = vld [vmem:[%s2074_s1 + $0x118] sm:$0xff]  }
  0x15   : > { %1519 = vmatpush3.bf16.msra.mxu0 %v1670_v14  ;;  %v1699_v41 = vld [vmem:[%s2074_s1 + $0x108] sm:$0xff]   ;;  %v1704_v46 = vld [vmem:[%s2074_s1 + $0x1d0] sm:$0xff]   ;;  %v1708_v50 = vld [vmem:[%s2074_s1 + $0x1d8] sm:$0xff]  }
  0x16   : > { %1541 = vmatpush3.bf16.msra.mxu1 %v1671_v15  ;;  %1520 = vmatprep.subr.bf16.mxu0 %v1672_v16  ;;  %v1700_v42 = vld [vmem:[%s2074_s1 + $0x1c8] sm:$0xff]   ;;  %v1705_v47 = vld [vmem:[%s2074_s1 + $0x190] sm:$0xff]   ;;  %v1709_v51 = vld [vmem:[%s2074_s1 + $0x198] sm:$0xff]  }
  0x17   : > { %1542 = vmatprep.subr.bf16.mxu1 %v1673_v17  ;;  %v1701_v43 = vld [vmem:[%s2074_s1 + $0x188] sm:$0xff]   ;;  %v1710_v52 = vld [vmem:[%s2074_s1 + $0x160] sm:$0xff]   ;;  %v1718_v60 = vld [vmem:[%s2074_s1 + $0x170] sm:$0xff]  }
  0x18   : > { %v1711_v53 = vld [vmem:[%s2074_s1 + $0x120] sm:$0xff]   ;;  %v1714_v56 = vld [vmem:[%s2074_s1 + $0x168] sm:$0xff]   ;;  %v1719_v61 = vld [vmem:[%s2074_s1 + $0x130] sm:$0xff]  }
  0x19   : > { %1521 = vmatpush3.bf16.msra.mxu0 %v1674_v18  ;;  %v1712_v54 = vld [vmem:[%s2074_s1 + $0x1e0] sm:$0xff]   ;;  %v1715_v57 = vld [vmem:[%s2074_s1 + $0x128] sm:$0xff]   ;;  %v1720_v62 = vld [vmem:[%s2074_s1 + $0x1f0] sm:$0xff]  }
  0x1a   : > { %1543 = vmatpush3.bf16.msra.mxu1 %v1675_v19  ;;  %1522 = vmatprep.subr.bf16.mxu0 %v1676_v20  ;;  %v1713_v55 = vld [vmem:[%s2074_s1 + $0x1a0] sm:$0xff]   ;;  %v1716_v58 = vld [vmem:[%s2074_s1 + $0x1e8] sm:$0xff]   ;;  %v1721_v63 = vld [vmem:[%s2074_s1 + $0x1b0] sm:$0xff]  }
  0x1b   : > { %1544 = vmatprep.subr.bf16.mxu1 %v1677_v21  ;;  %v1717_v59 = vld [vmem:[%s2074_s1 + $0x1a8] sm:$0xff]   ;;  %v1722_v0 = vld [vmem:[%s2074_s1 + $0x178] sm:$0xff]   ;;  %v1725_v3 = vld [vmem:[%s1914_s22 + $0x10] ss:$36 sps:$4 sm:$0xff]  }
  0x1c   : > { %v1723_v1 = vld [vmem:[%s2074_s1 + $0x138] sm:$0xff]   ;;  %v1732_v9 = vld [vmem:[%s2074_s1 + $0x200] sm:$0xff]   ;;  %v1733_v10 = vld [vmem:[%s2074_s1 + $0x208] sm:$0xff]  }
  0x1d   : > { %1523 = vmatpush3.bf16.msra.mxu0 %v1678_v22  ;;  %v1724_v2 = vld [vmem:[%s2074_s1 + $0x1f8] sm:$0xff]   ;;  %v1734_v11 = vld [vmem:[%s2074_s1 + $0x210] sm:$0xff]   ;;  %v1736_v13 = vld [vmem:[%s2074_s1 + $0x220] sm:$0xff]  }
  0x1e   : > { %1545 = vmatpush3.bf16.msra.mxu1 %v1679_v23  ;;  %1524 = vmatprep.subr.bf16.mxu0 %v1680_v24  ;;  %v1727_v4 = vld [vmem:[%s1914_s22 + $0x14] ss:$36 sps:$4 sm:$0xff]   ;;  %v1731_v8 = vld [vmem:[%s1914_s22 + $0x1c] ss:$36 sps:$4 sm:$0xff]   ;;  %v1737_v14 = vld [vmem:[%s2074_s1 + $0x228] sm:$0xff]  }
  0x1f   : > { %1546 = vmatprep.subr.bf16.mxu1 %v1681_v25  ;;  %v1728_v5 = vld [vmem:[%s2074_s1 + $0x1b8] sm:$0xff]   ;;  %v1738_v15 = vld [vmem:[%s2074_s1 + $0x230] sm:$0xff]   ;;  %v1740_v17 = vld [vmem:[%s1914_s22 + $0x20] ss:$36 sps:$4 sm:$0xff]  }
  0x20   : > { %v1729_v7 = vld [vmem:[%s1914_s22 + $0x18] ss:$36 sps:$4 sm:$0xff]   ;;  %s1411_s22 = sshll.u32 %s2084_s6, 2 }
  0x21   : > { %1525 = vmatpush3.bf16.msra.mxu0 %v1682_v26  ;;  %v1735_v12 = vld [vmem:[%s2074_s1 + $0x218] sm:$0xff]   ;;  %s357_s29 = scalar_lea.vmem %s2077_s4, %s1411_s22  ;;  %s366_s11 = scalar_lea.vmem %s2078_s5, %s1411_s22 }
  0x22   : > { %1547 = vmatpush3.bf16.msra.mxu1 %v1683_v27  ;;  %1526 = vmatprep.subr.bf16.mxu0 %v1684_v28  ;;  %v1739_v16 = vld [vmem:[%s2074_s1 + $0x238] sm:$0xff]  }
  0x23   : > { %1548 = vmatprep.subr.bf16.mxu1 %v1685_v29 }
  0x25   : > { %1527 = vmatpush3.bf16.msra.mxu0 %v1686_v30 }
  0x26   : > { %1549 = vmatpush3.bf16.msra.mxu1 %v1687_v31  ;;  %1556 = vmatprep.subr.bf16.mxu0 %v1694_v36 }
  0x27   : > { %1578 = vmatprep.subr.bf16.mxu1 %v1696_v38 }
  0x28   : > { %1042 = vmatmul.mubr.bf16.vlgmr.msra.gmra.mrb[0].mxu0 %v1688_v32 }
  0x29   : > { %1083 = vmatmul.mubr.bf16.vlgmr.msra.gmra.mrb[0].mxu1 %v1691_v34  ;;  %1557 = vmatpush3.bf16.msra.mxu0 %v1695_v37 }
  0x2a   : > { %1579 = vmatpush3.bf16.msra.mxu1 %v1697_v39  ;;  %1558 = vmatprep.subr.bf16.mxu0 %v1698_v40 }
  0x2b   : > { %1580 = vmatprep.subr.bf16.mxu1 %v1700_v42  ;;  %1123 = vmatprep.mubr.bf16.mxu0 %v1727_v4 }
  0x2c   : > { %1164 = vmatprep.mubr.bf16.mxu1 %v1731_v8 }
  0x2d   : > { %1559 = vmatpush3.bf16.msra.mxu0 %v1699_v41 }
  0x2e   : > { %1581 = vmatpush3.bf16.msra.mxu1 %v1701_v43  ;;  %1560 = vmatprep.subr.bf16.mxu0 %v1702_v44 }
  0x2f   : > { %1582 = vmatprep.subr.bf16.mxu1 %v1704_v46 }
  0x31   : > { %1561 = vmatpush3.bf16.msra.mxu0 %v1703_v45 }
  0x32   : > { %1583 = vmatpush3.bf16.msra.mxu1 %v1705_v47  ;;  %1562 = vmatprep.subr.bf16.mxu0 %v1706_v48 }
  0x33   : > { %1584 = vmatprep.subr.bf16.mxu1 %v1708_v50  ;;  %v1504_v50 = vld [vmem:[%s357_s29] sm:$0xff]  }
  0x35   : > { %1563 = vmatpush3.bf16.msra.mxu0 %v1707_v49  ;;  %v1495_v49 = vld [vmem:[%s2075_s2] ss:$0 sm:$0xff] }
  0x36   : > { %1585 = vmatpush3.bf16.msra.mxu1 %v1709_v51  ;;  %1564 = vmatprep.subr.bf16.mxu0 %v1710_v52 }
  0x37   : > { %1586 = vmatprep.subr.bf16.mxu1 %v1712_v54 }
  0x39   : > { %1565 = vmatpush3.bf16.msra.mxu0 %v1711_v53  ;;  %v1496_v53 = vld [vmem:[%s2076_s3] ss:$0 sm:$0xff] }
  0x3a   : > { %1587 = vmatpush3.bf16.msra.mxu1 %v1713_v55  ;;  %1566 = vmatprep.subr.bf16.mxu0 %v1714_v56  ;;  %v1505_v56 = vunpack.c.l.bf16 %v1504_v50 }
  0x3b   : > { %1588 = vmatprep.subr.bf16.mxu1 %v1716_v58 }
  0x3d   : > { %1567 = vmatpush3.bf16.msra.mxu0 %v1715_v57 }
  0x3e   : > { %1589 = vmatpush3.bf16.msra.mxu1 %v1717_v59  ;;  %1568 = vmatprep.subr.bf16.mxu0 %v1718_v60 }
  0x3f   : > { %1590 = vmatprep.subr.bf16.mxu1 %v1720_v62 }
  0x41   : > { %1569 = vmatpush3.bf16.msra.mxu0 %v1719_v61  ;;  %v1506_v61 = vunpack.c.h.bf16 %v1504_v50 }
  0x42   : > { %1591 = vmatpush3.bf16.msra.mxu1 %v1721_v63  ;;  %1570 = vmatprep.subr.bf16.mxu0 %v1722_v0 }
  0x43   : > { %1592 = vmatprep.subr.bf16.mxu1 %v1724_v2 }
  0x45   : > { %1571 = vmatpush3.bf16.msra.mxu0 %v1723_v1 }
  0x46   : > { %1609 = vmatprep.subr.bf16.mxu0 %v1765_v6  ;;  %1593 = vmatpush3.bf16.msra.mxu1 %v1728_v5 }
  0x48   : > { %1124 = vmatmul.mubr.bf16.vlgmr.msra.gmra.mrb[4].mxu0 %v1725_v3 }
  0x49   : > { %1625 = vmatprep.mubr.msk.bf16.mxu0 %vm1766_vm0, %v1765_v6  ;;  %1610 = vmatpush3.bf16.msra.mxu0 %v1732_v9 }
  0x4a   : > { %1165 = vmatmul.mubr.bf16.vlgmr.msra.gmra.mrb[4].mxu1 %v1729_v7  ;;  %1611 = vmatprep.subr.bf16.mxu0 %v1765_v6 }
  0x4d   : > { %1612 = vmatpush3.bf16.msra.mxu0 %v1733_v10 }
  0x4e   : > { %1613 = vmatprep.subr.bf16.mxu0 %v1765_v6 }
  0x51   : > { %1614 = vmatpush3.bf16.msra.mxu0 %v1734_v11 }
  0x52   : > { %1615 = vmatprep.subr.bf16.mxu0 %v1765_v6 }
  0x55   : > { %1616 = vmatpush3.bf16.msra.mxu0 %v1735_v12 }
  0x56   : > { %1617 = vmatprep.subr.bf16.mxu0 %v1765_v6 }
  0x59   : > { %1618 = vmatpush3.bf16.msra.mxu0 %v1736_v13 }
  0x5a   : > { %1619 = vmatprep.subr.bf16.mxu0 %v1765_v6 }
  0x5d   : > { %1620 = vmatpush3.bf16.msra.mxu0 %v1737_v14 }
  0x5e   : > { %1621 = vmatprep.subr.bf16.mxu0 %v1765_v6 }
  0x61   : > { %1622 = vmatpush3.bf16.msra.mxu0 %v1738_v15 }
  0x62   : > { %1623 = vmatprep.subr.bf16.mxu0 %v1765_v6 }
  0x65   : > { %1624 = vmatpush3.bf16.msra.mxu0 %v1739_v16 }
  0x68   : > { %1626 = vmatmul.mubr.bf16.vlgmr.msra.gmra.mrb[8].mxu0 %v1740_v17 }
  0xfb   : > { %v1528_v18 = vpop.f32.mrb[0].mxu0 }
  0xfc   : > { %v1550_v19 = vpop.f32.mrb[0].mxu1  ;;  %v1529_v20 = vpop.f32.mrb[1].mxu0 }
  0xfd   : > { %v1530_v21 = vadd.f32 %v1529_v20, %v1528_v18  ;;  %v1551_v22 = vpop.f32.mrb[1].mxu1  ;;  %v1531_v23 = vpop.f32.mrb[2].mxu0 }
  0xfe   : > { %v1552_v24 = vadd.f32 %v1551_v22, %v1550_v19  ;;  %v1553_v25 = vpop.f32.mrb[2].mxu1  ;;  %v1532_v26 = vpop.f32.mrb[3].mxu0 }
  0xff   : > { %v1533_v27 = vadd.f32 %v1532_v26, %v1531_v23  ;;  %v1554_v28 = vpop.f32.mrb[3].mxu1 }
 0x100   : > { %v1085_v29 = vadd.f32 %v1552_v24, %v1530_v21  ;;  %v1555_v30 = vadd.f32 %v1554_v28, %v1553_v25 }
 0x102   : > { %v1088_v31 = vadd.f32 %v1555_v30, %v1533_v27 }
 0x11b   : > { %v1572_v32 = vpop.f32.mrb[4].mxu0 }
 0x11c   : > { %v1573_v33 = vpop.f32.mrb[5].mxu0 }
 0x11d   : > { %v1574_v34 = vadd.f32 %v1573_v33, %v1572_v32  ;;  %v1575_v35 = vpop.f32.mrb[6].mxu0  ;;  %v1594_v36 = vpop.f32.mrb[4].mxu1 }
 0x11e   : > { %v1576_v37 = vpop.f32.mrb[7].mxu0  ;;  %v1595_v40 = vpop.f32.mrb[5].mxu1 }
 0x11f   : > { %v1126_v38 = vadd.f32 %v1574_v34, %v1085_v29  ;;  %v1577_v39 = vadd.f32 %v1576_v37, %v1575_v35  ;;  %v1596_v41 = vadd.f32 %v1595_v40, %v1594_v36  ;;  %v1597_v42 = vpop.f32.mrb[6].mxu1 }
 0x120   : > { %v1598_v44 = vpop.f32.mrb[7].mxu1 }
 0x121   : > { %v1129_v43 = vadd.f32 %v1577_v39, %v1088_v31  ;;  %v1599_v45 = vadd.f32 %v1598_v44, %v1597_v42  ;;  %v1167_v46 = vadd.f32 %v1596_v41, %v1126_v38 }
 0x123   : > { %v1170_v47 = vadd.f32 %v1599_v45, %v1129_v43 }
 0x13b   : > { %v1207_v48 = vpop.f32.mrb[8].mxu0 }
 0x13c   : > { %v1208_v51 = vadd.f32 %v1207_v48, %v1167_v46  ;;  %v1627_v52 = vpop.f32.mrb[9].mxu0 }
 0x13d   : > { %v1210_v54 = vpop.f32.mrb[10].mxu0 }
 0x13e   : > { %v1230_v55 = vmul.f32 %v1495_v49, %v1208_v51  ;;  %v1211_v57 = vadd.f32 %v1210_v54, %v1170_v47  ;;  %v1628_v58 = vpop.f32.mrb[11].mxu0 }
 0x140   : > { %v1239_v59 = vadd.f32 %v1496_v53, %v1230_v55  ;;  %v1231_v60 = vmul.f32 %v1495_v49, %v1211_v57 }
 0x142   : > { %v1245_v62 = vadd.f32 %v1505_v56, %v1239_v59  ;;  %v1240_v63 = vadd.f32 %v1496_v53, %v1231_v60 }
 0x144   : > { %v1246_v0 = vadd.f32 %v1506_v61, %v1240_v63  ;;  %v1247_v1 = vmax.f32 %v1245_v62, 0.0 }
 0x146   : > { %v1248_v2 = vmax.f32 %v1246_v0, 0.0 }
 0x148   : > { %v1510_v3 = vpack.c.bf16 %v1248_v2, %v1247_v1 }
 0x14a   : > { %1511 = vst [vmem:[%s366_s11] sm:$0xff] %v1510_v3  }
 0x14b PF: > { %s15_s20 = sadd.s32 1, %s1763_s20   ;;  %s2079_s18 = smov %s1759_s19 }
 0x14c   : > { %p12_p5 = scmp.ge.s32.totalorder %s15_s20, 4   ;;  %s2080_s19 = smov %s2082_s21 }
 0x14e   :  { %14 = sbr.rel (!%p12_p5) target bundleno = 2 (0x2), region = 90 }

// kernel: resnet_simclr_forward.34
= control target key start
LH: loop header
LB: loop body
LE: loop exit
PB: predicated region body
PF: predicated region fallthrough
CT: control target
= control target key end

     0   :  { %vm1150_vm0 = vmmov 0   ;;  %s1416_s1 = inlined_call_operand.vmem [shape: bf16[1152,128], index: 1, kind: input, shape index: {}]   ;;  %s1417_s0 = inlined_call_operand.vmem [shape: bf16[8,1152], index: 0, kind: input, shape index: {}]   ;;  %s1418_s2 = inlined_call_operand.vmem [shape: f32[1,128], index: 2, kind: input, shape index: {}]   ;;  %s1419_s3 = inlined_call_operand.vmem [shape: f32[1,128], index: 3, kind: input, shape index: {}]   ;;  %s1420_s4 = inlined_call_operand.vmem [shape: bf16[8,128], index: 4, kind: output, shape index: {}]  }
   0x1   :  { %v1068_v0 = vld [vmem:[%s1416_s1 + $0x40] sm:$0xff]   ;;  %v1072_v4 = vld [vmem:[%s1416_s1 + $0x48] sm:$0xff]   ;;  %v1076_v8 = vld [vmem:[%s1416_s1 + $0x50] sm:$0xff]  }
   0x2   :  { %v1069_v1 = vld [vmem:[%s1416_s1 + $0xc0] sm:$0xff]   ;;  %949 = vmatprep.subr.bf16.mxu0 %v1068_v0  ;;  %v1073_v5 = vld [vmem:[%s1416_s1 + $0xc8] sm:$0xff]   ;;  %v1077_v9 = vld [vmem:[%s1416_s1 + $0xd0] sm:$0xff]  }
   0x3   :  { %v1070_v2 = vld [vmem:[%s1416_s1] sm:$0xff]   ;;  %971 = vmatprep.subr.bf16.mxu1 %v1069_v1  ;;  %v1074_v6 = vld [vmem:[%s1416_s1 + $0x8] sm:$0xff]   ;;  %v1078_v10 = vld [vmem:[%s1416_s1 + $0x10] sm:$0xff]  }
   0x4   :  { %v1071_v3 = vld [vmem:[%s1416_s1 + $0x80] sm:$0xff]   ;;  %950 = vmatpush3.bf16.msra.mxu0 %v1070_v2  ;;  %v1075_v7 = vld [vmem:[%s1416_s1 + $0x88] sm:$0xff]   ;;  %v1079_v11 = vld [vmem:[%s1416_s1 + $0x90] sm:$0xff]  }
   0x5   :  { %972 = vmatpush3.bf16.msra.mxu1 %v1071_v3  ;;  %951 = vmatprep.subr.bf16.mxu0 %v1072_v4  ;;  %v1080_v12 = vld [vmem:[%s1416_s1 + $0x58] sm:$0xff]   ;;  %v1084_v16 = vld [vmem:[%s1416_s1 + $0x60] sm:$0xff]   ;;  %v1088_v20 = vld [vmem:[%s1416_s1 + $0x68] sm:$0xff]  }
   0x6   :  { %973 = vmatprep.subr.bf16.mxu1 %v1073_v5  ;;  %v1081_v13 = vld [vmem:[%s1416_s1 + $0xd8] sm:$0xff]   ;;  %v1085_v17 = vld [vmem:[%s1416_s1 + $0xe0] sm:$0xff]   ;;  %v1089_v21 = vld [vmem:[%s1416_s1 + $0xe8] sm:$0xff]  }
   0x7   :  { %v1082_v14 = vld [vmem:[%s1416_s1 + $0x18] sm:$0xff]   ;;  %v1086_v18 = vld [vmem:[%s1416_s1 + $0x20] sm:$0xff]   ;;  %v1090_v22 = vld [vmem:[%s1416_s1 + $0x28] sm:$0xff]  }
   0x8   :  { %952 = vmatpush3.bf16.msra.mxu0 %v1074_v6  ;;  %v1083_v15 = vld [vmem:[%s1416_s1 + $0x98] sm:$0xff]   ;;  %v1087_v19 = vld [vmem:[%s1416_s1 + $0xa0] sm:$0xff]   ;;  %v1091_v23 = vld [vmem:[%s1416_s1 + $0xa8] sm:$0xff]  }
   0x9   :  { %974 = vmatpush3.bf16.msra.mxu1 %v1075_v7  ;;  %953 = vmatprep.subr.bf16.mxu0 %v1076_v8  ;;  %v1092_v24 = vld [vmem:[%s1416_s1 + $0x70] sm:$0xff]   ;;  %v1096_v28 = vld [vmem:[%s1416_s1 + $0x78] sm:$0xff]   ;;  %v24_v32 = vld [vmem:[%s1417_s0] sm:$0xff] }
   0xa   :  { %975 = vmatprep.subr.bf16.mxu1 %v1077_v9  ;;  %v1093_v25 = vld [vmem:[%s1416_s1 + $0xf0] sm:$0xff]   ;;  %v1097_v29 = vld [vmem:[%s1416_s1 + $0xf8] sm:$0xff]   ;;  %v25_v33 = vld [vmem:[%s1417_s0 + $0x8] sm:$0xff]  ;;  %v866_v34 = vcombine.low %v24_v32, %v24_v32  ;;  %v867_v35 = vcombine.high %v24_v32, %v24_v32 }
   0xb   :  { %v1094_v26 = vld [vmem:[%s1416_s1 + $0x30] sm:$0xff]   ;;  %v1098_v30 = vld [vmem:[%s1416_s1 + $0x38] sm:$0xff]   ;;  %v868_v36 = vcombine.low %v25_v33, %v25_v33  ;;  %v869_v37 = vcombine.high %v25_v33, %v25_v33  ;;  %v1104_v38 = vld [vmem:[%s1416_s1 + $0x140] sm:$0xff]  }
   0xc   :  { %954 = vmatpush3.bf16.msra.mxu0 %v1078_v10  ;;  %v1095_v27 = vld [vmem:[%s1416_s1 + $0xb0] sm:$0xff]   ;;  %v1099_v31 = vld [vmem:[%s1416_s1 + $0xb8] sm:$0xff]   ;;  %v1105_v39 = vld [vmem:[%s1416_s1 + $0x100] sm:$0xff]   ;;  %669 = vmatprep.mubr.bf16.mxu0 %v867_v35 }
   0xd   :  { %976 = vmatpush3.bf16.msra.mxu1 %v1079_v11  ;;  %955 = vmatprep.subr.bf16.mxu0 %v1080_v12  ;;  %v1106_v40 = vld [vmem:[%s1416_s1 + $0x1c0] sm:$0xff]   ;;  %v1108_v42 = vld [vmem:[%s1416_s1 + $0x148] sm:$0xff]   ;;  %v1112_v46 = vld [vmem:[%s1416_s1 + $0x150] sm:$0xff]  }
   0xe   :  { %977 = vmatprep.subr.bf16.mxu1 %v1081_v13  ;;  %709 = vmatprep.mubr.bf16.mxu1 %v869_v37  ;;  %v1107_v41 = vld [vmem:[%s1416_s1 + $0x180] sm:$0xff]   ;;  %v1109_v43 = vld [vmem:[%s1416_s1 + $0x108] sm:$0xff]   ;;  %v1113_v47 = vld [vmem:[%s1416_s1 + $0x110] sm:$0xff]   ;;  %v1149_v13 = vmov 0.0  }
   0xf   :  { %v1110_v44 = vld [vmem:[%s1416_s1 + $0x1c8] sm:$0xff]   ;;  %v1114_v48 = vld [vmem:[%s1416_s1 + $0x1d0] sm:$0xff]   ;;  %v1116_v50 = vld [vmem:[%s1416_s1 + $0x158] sm:$0xff]  }
  0x10   :  { %956 = vmatpush3.bf16.msra.mxu0 %v1082_v14  ;;  %v1111_v45 = vld [vmem:[%s1416_s1 + $0x188] sm:$0xff]   ;;  %v1115_v49 = vld [vmem:[%s1416_s1 + $0x190] sm:$0xff]   ;;  %v1117_v51 = vld [vmem:[%s1416_s1 + $0x118] sm:$0xff]  }
  0x11   :  { %978 = vmatpush3.bf16.msra.mxu1 %v1083_v15  ;;  %957 = vmatprep.subr.bf16.mxu0 %v1084_v16  ;;  %v1118_v52 = vld [vmem:[%s1416_s1 + $0x1d8] sm:$0xff]   ;;  %v1120_v54 = vld [vmem:[%s1416_s1 + $0x160] sm:$0xff]   ;;  %v1124_v58 = vld [vmem:[%s1416_s1 + $0x168] sm:$0xff]  }
  0x12   :  { %979 = vmatprep.subr.bf16.mxu1 %v1085_v17  ;;  %v1119_v53 = vld [vmem:[%s1416_s1 + $0x198] sm:$0xff]   ;;  %v1121_v55 = vld [vmem:[%s1416_s1 + $0x120] sm:$0xff]   ;;  %v1125_v59 = vld [vmem:[%s1416_s1 + $0x128] sm:$0xff]  }
  0x13   :  { %v1122_v56 = vld [vmem:[%s1416_s1 + $0x1e0] sm:$0xff]   ;;  %v1126_v60 = vld [vmem:[%s1416_s1 + $0x1e8] sm:$0xff]   ;;  %v1128_v62 = vld [vmem:[%s1416_s1 + $0x170] sm:$0xff]  }
  0x14   :  { %958 = vmatpush3.bf16.msra.mxu0 %v1086_v18  ;;  %v1123_v57 = vld [vmem:[%s1416_s1 + $0x1a0] sm:$0xff]   ;;  %v1127_v61 = vld [vmem:[%s1416_s1 + $0x1a8] sm:$0xff]   ;;  %v1129_v63 = vld [vmem:[%s1416_s1 + $0x130] sm:$0xff]  }
  0x15   :  { %980 = vmatpush3.bf16.msra.mxu1 %v1087_v19  ;;  %959 = vmatprep.subr.bf16.mxu0 %v1088_v20  ;;  %v1130_v0 = vld [vmem:[%s1416_s1 + $0x1f0] sm:$0xff]   ;;  %v1132_v2 = vld [vmem:[%s1416_s1 + $0x178] sm:$0xff]   ;;  %v1140_v12 = vld [vmem:[%s1416_s1 + $0x200] sm:$0xff]  }
  0x16   :  { %981 = vmatprep.subr.bf16.mxu1 %v1089_v21  ;;  %v1131_v1 = vld [vmem:[%s1416_s1 + $0x1b0] sm:$0xff]   ;;  %v1133_v3 = vld [vmem:[%s1416_s1 + $0x138] sm:$0xff]   ;;  %v1141_v14 = vld [vmem:[%s1416_s1 + $0x208] sm:$0xff]  }
  0x17   :  { %v1134_v4 = vld [vmem:[%s1416_s1 + $0x1f8] sm:$0xff]   ;;  %v26_v5 = vld [vmem:[%s1417_s0 + $0x10] sm:$0xff]  ;;  %v1144_v17 = vld [vmem:[%s1416_s1 + $0x220] sm:$0xff]  }
  0x18   :  { %960 = vmatpush3.bf16.msra.mxu0 %v1090_v22  ;;  %v871_v6 = vcombine.high %v26_v5, %v26_v5  ;;  %v1137_v7 = vld [vmem:[%s1416_s1 + $0x1b8] sm:$0xff]   ;;  %v870_v8 = vcombine.low %v26_v5, %v26_v5  ;;  %v1142_v15 = vld [vmem:[%s1416_s1 + $0x210] sm:$0xff]   ;;  %v1145_v18 = vld [vmem:[%s1416_s1 + $0x228] sm:$0xff]  }
  0x19   :  { %982 = vmatpush3.bf16.msra.mxu1 %v1091_v23  ;;  %961 = vmatprep.subr.bf16.mxu0 %v1092_v24  ;;  %v27_v9 = vld [vmem:[%s1417_s0 + $0x18] sm:$0xff]  ;;  %v1146_v19 = vld [vmem:[%s1416_s1 + $0x230] sm:$0xff]   ;;  %v1148_v21 = vld [vmem:[%s1417_s0 + $0x20] ss:$0 sps:$4 sm:$0xff]  }
  0x1a   :  { %983 = vmatprep.subr.bf16.mxu1 %v1093_v25  ;;  %v872_v10 = vcombine.low %v27_v9, %v27_v9  ;;  %v873_v11 = vcombine.high %v27_v9, %v27_v9  ;;  %v1143_v16 = vld [vmem:[%s1416_s1 + $0x218] sm:$0xff]  }
  0x1b   :  { %v1147_v20 = vld [vmem:[%s1416_s1 + $0x238] sm:$0xff]  }
  0x1c   :  { %962 = vmatpush3.bf16.msra.mxu0 %v1094_v26 }
  0x1d   :  { %984 = vmatpush3.bf16.msra.mxu1 %v1095_v27  ;;  %963 = vmatprep.subr.bf16.mxu0 %v1096_v28 }
  0x1e   :  { %985 = vmatprep.subr.bf16.mxu1 %v1097_v29 }
  0x20   :  { %964 = vmatpush3.bf16.msra.mxu0 %v1098_v30 }
  0x21   :  { %986 = vmatpush3.bf16.msra.mxu1 %v1099_v31  ;;  %993 = vmatprep.subr.bf16.mxu0 %v1104_v38 }
  0x22   :  { %1015 = vmatprep.subr.bf16.mxu1 %v1106_v40 }
  0x23   :  { %670 = vmatmul.mubr.bf16.vlgmr.msra.gmra.mrb[0].mxu0 %v866_v34 }
  0x24   :  { %710 = vmatmul.mubr.bf16.vlgmr.msra.gmra.mrb[0].mxu1 %v868_v36  ;;  %994 = vmatpush3.bf16.msra.mxu0 %v1105_v39 }
  0x25   :  { %1016 = vmatpush3.bf16.msra.mxu1 %v1107_v41  ;;  %995 = vmatprep.subr.bf16.mxu0 %v1108_v42 }
  0x26   :  { %1017 = vmatprep.subr.bf16.mxu1 %v1110_v44  ;;  %749 = vmatprep.mubr.bf16.mxu0 %v871_v6 }
  0x27   :  { %789 = vmatprep.mubr.bf16.mxu1 %v873_v11 }
  0x28   :  { %996 = vmatpush3.bf16.msra.mxu0 %v1109_v43 }
  0x29   :  { %1018 = vmatpush3.bf16.msra.mxu1 %v1111_v45  ;;  %997 = vmatprep.subr.bf16.mxu0 %v1112_v46  ;;  %v947_v46 = vld [vmem:[%s1418_s2] ss:$0 sm:$0xff] }
  0x2a   :  { %1019 = vmatprep.subr.bf16.mxu1 %v1114_v48 }
  0x2c   :  { %998 = vmatpush3.bf16.msra.mxu0 %v1113_v47 }
  0x2d   :  { %1020 = vmatpush3.bf16.msra.mxu1 %v1115_v49  ;;  %999 = vmatprep.subr.bf16.mxu0 %v1116_v50  ;;  %v948_v49 = vld [vmem:[%s1419_s3] ss:$0 sm:$0xff] }
  0x2e   :  { %1021 = vmatprep.subr.bf16.mxu1 %v1118_v52 }
  0x30   :  { %1000 = vmatpush3.bf16.msra.mxu0 %v1117_v51 }
  0x31   :  { %1022 = vmatpush3.bf16.msra.mxu1 %v1119_v53  ;;  %1001 = vmatprep.subr.bf16.mxu0 %v1120_v54 }
  0x32   :  { %1023 = vmatprep.subr.bf16.mxu1 %v1122_v56 }
  0x34   :  { %1002 = vmatpush3.bf16.msra.mxu0 %v1121_v55 }
  0x35   :  { %1024 = vmatpush3.bf16.msra.mxu1 %v1123_v57  ;;  %1003 = vmatprep.subr.bf16.mxu0 %v1124_v58 }
  0x36   :  { %1025 = vmatprep.subr.bf16.mxu1 %v1126_v60 }
  0x38   :  { %1004 = vmatpush3.bf16.msra.mxu0 %v1125_v59 }
  0x39   :  { %1026 = vmatpush3.bf16.msra.mxu1 %v1127_v61  ;;  %1005 = vmatprep.subr.bf16.mxu0 %v1128_v62 }
  0x3a   :  { %1027 = vmatprep.subr.bf16.mxu1 %v1130_v0 }
  0x3c   :  { %1006 = vmatpush3.bf16.msra.mxu0 %v1129_v63 }
  0x3d   :  { %1028 = vmatpush3.bf16.msra.mxu1 %v1131_v1  ;;  %1007 = vmatprep.subr.bf16.mxu0 %v1132_v2 }
  0x3e   :  { %1029 = vmatprep.subr.bf16.mxu1 %v1134_v4 }
  0x40   :  { %1008 = vmatpush3.bf16.msra.mxu0 %v1133_v3 }
  0x41   :  { %1030 = vmatpush3.bf16.msra.mxu1 %v1137_v7  ;;  %1046 = vmatprep.subr.bf16.mxu0 %v1149_v13 }
  0x43   :  { %750 = vmatmul.mubr.bf16.vlgmr.msra.gmra.mrb[4].mxu0 %v870_v8 }
  0x44   :  { %1047 = vmatpush3.bf16.msra.mxu0 %v1140_v12  ;;  %790 = vmatmul.mubr.bf16.vlgmr.msra.gmra.mrb[4].mxu1 %v872_v10 }
  0x45   :  { %1048 = vmatprep.subr.bf16.mxu0 %v1149_v13  ;;  %1062 = vmatprep.mubr.msk.bf16.mxu0 %vm1150_vm0, %v1149_v13 }
  0x48   :  { %1049 = vmatpush3.bf16.msra.mxu0 %v1141_v14 }
  0x49   :  { %1050 = vmatprep.subr.bf16.mxu0 %v1149_v13 }
  0x4c   :  { %1051 = vmatpush3.bf16.msra.mxu0 %v1142_v15 }
  0x4d   :  { %1052 = vmatprep.subr.bf16.mxu0 %v1149_v13 }
  0x50   :  { %1053 = vmatpush3.bf16.msra.mxu0 %v1143_v16 }
  0x51   :  { %1054 = vmatprep.subr.bf16.mxu0 %v1149_v13 }
  0x54   :  { %1055 = vmatpush3.bf16.msra.mxu0 %v1144_v17 }
  0x55   :  { %1056 = vmatprep.subr.bf16.mxu0 %v1149_v13 }
  0x58   :  { %1057 = vmatpush3.bf16.msra.mxu0 %v1145_v18 }
  0x59   :  { %1058 = vmatprep.subr.bf16.mxu0 %v1149_v13 }
  0x5c   :  { %1059 = vmatpush3.bf16.msra.mxu0 %v1146_v19 }
  0x5d   :  { %1060 = vmatprep.subr.bf16.mxu0 %v1149_v13 }
  0x60   :  { %1061 = vmatpush3.bf16.msra.mxu0 %v1147_v20 }
  0x63   :  { %1063 = vmatmul.mubr.bf16.vlgmr.msra.gmra.mrb[8].mxu0 %v1148_v21 }
  0xf6   :  { %v965_v22 = vpop.f32.mrb[0].mxu0 }
  0xf7   :  { %v987_v23 = vpop.f32.mrb[0].mxu1  ;;  %v966_v24 = vpop.f32.mrb[1].mxu0 }
  0xf8   :  { %v988_v25 = vpop.f32.mrb[1].mxu1  ;;  %v967_v26 = vadd.f32 %v966_v24, %v965_v22  ;;  %v968_v28 = vpop.f32.mrb[2].mxu0 }
  0xf9   :  { %v989_v27 = vadd.f32 %v988_v25, %v987_v23  ;;  %v990_v29 = vpop.f32.mrb[2].mxu1  ;;  %v969_v30 = vpop.f32.mrb[3].mxu0 }
  0xfa   :  { %v991_v31 = vpop.f32.mrb[3].mxu1 }
  0xfb   :  { %v712_v32 = vadd.f32 %v989_v27, %v967_v26 }
 0x116   :  { %v1009_v33 = vpop.f32.mrb[4].mxu0 }
 0x117   :  { %v1010_v34 = vpop.f32.mrb[5].mxu0  ;;  %v1031_v35 = vpop.f32.mrb[4].mxu1 }
 0x118   :  { %v1011_v36 = vadd.f32 %v1010_v34, %v1009_v33  ;;  %v1012_v37 = vpop.f32.mrb[6].mxu0  ;;  %v1032_v38 = vpop.f32.mrb[5].mxu1 }
 0x119   :  { %v1013_v39 = vpop.f32.mrb[7].mxu0  ;;  %v1033_v40 = vadd.f32 %v1032_v38, %v1031_v35  ;;  %v1034_v41 = vpop.f32.mrb[6].mxu1 }
 0x11a   :  { %v752_v42 = vadd.f32 %v1011_v36, %v712_v32  ;;  %v1035_v43 = vpop.f32.mrb[7].mxu1 }
 0x11c   :  { %v792_v44 = vadd.f32 %v1033_v40, %v752_v42 }
 0x136   :  { %v831_v45 = vpop.f32.mrb[8].mxu0 }
 0x137   :  { %v832_v47 = vadd.f32 %v831_v45, %v792_v44  ;;  %v1064_v48 = vpop.f32.mrb[9].mxu0 }
 0x138   :  { %v834_v50 = vpop.f32.mrb[10].mxu0 }
 0x139   :  { %v850_v51 = vmul.f32 %v947_v46, %v832_v47  ;;  %v1065_v52 = vpop.f32.mrb[11].mxu0 }
 0x13b   :  { %v858_v53 = vadd.f32 %v948_v49, %v850_v51 }
 0x13d   :  { %v859_v54 = vmax.f32 %v858_v53, 0.0 }
 0x13f   :  { %v860_v55 = vpack.c.bf16 %v859_v54, %v859_v54 }
 0x141   :  { %861 = vst [vmem:[%s1420_s4] sm:$0xf] %v860_v55 }

// kernel: resnet_simclr_forward.33
= control target key start
LH: loop header
LB: loop body
LE: loop exit
PB: predicated region body
PF: predicated region fallthrough
CT: control target
= control target key end

     0   :  { %v206_v0 = vmov 0.0   ;;  %vm207_vm0 = vmmov 0   ;;  %s269_s1 = inlined_call_operand.vmem [shape: bf16[128,128], index: 1, kind: input, shape index: {}]   ;;  %s270_s0 = inlined_call_operand.vmem [shape: bf16[8,128], index: 0, kind: input, shape index: {}]   ;;  %s271_s2 = inlined_call_operand.vmem [shape: f32[1,128], index: 2, kind: input, shape index: {}]   ;;  %s272_s3 = inlined_call_operand.vmem [shape: f32[1,128], index: 3, kind: input, shape index: {}]   ;;  %s273_s4 = inlined_call_operand.vmem [shape: bf16[8,128], index: 4, kind: output, shape index: {}]  }
   0x1   :  { %176 = vmatprep.subr.bf16.mxu0 %v206_v0  ;;  %v198_v1 = vld [vmem:[%s269_s1] sm:$0xff]   ;;  %192 = vmatprep.mubr.msk.bf16.mxu0 %vm207_vm0, %v206_v0  ;;  %v199_v2 = vld [vmem:[%s269_s1 + $0x8] sm:$0xff]   ;;  %v200_v3 = vld [vmem:[%s269_s1 + $0x10] sm:$0xff]  }
   0x2   :  { %177 = vmatpush3.bf16.msra.mxu0 %v198_v1  ;;  %v201_v4 = vld [vmem:[%s269_s1 + $0x18] sm:$0xff]   ;;  %v202_v5 = vld [vmem:[%s269_s1 + $0x20] sm:$0xff]   ;;  %v203_v6 = vld [vmem:[%s269_s1 + $0x28] sm:$0xff]  }
   0x3   :  { %178 = vmatprep.subr.bf16.mxu0 %v206_v0  ;;  %v204_v7 = vld [vmem:[%s269_s1 + $0x30] sm:$0xff]   ;;  %v205_v8 = vld [vmem:[%s269_s1 + $0x38] sm:$0xff]   ;;  %v24_v9 = vld [vmem:[%s270_s0] sm:$0xf] }
   0x4   :  { %v165_v10 = vld [vmem:[%s271_s2] ss:$0 sm:$0xff] }
   0x5   :  { %v166_v12 = vld [vmem:[%s272_s3] ss:$0 sm:$0xff] }
   0x6   :  { %179 = vmatpush3.bf16.msra.mxu0 %v199_v2 }
   0x7   :  { %180 = vmatprep.subr.bf16.mxu0 %v206_v0 }
   0xa   :  { %181 = vmatpush3.bf16.msra.mxu0 %v200_v3 }
   0xb   :  { %182 = vmatprep.subr.bf16.mxu0 %v206_v0 }
   0xe   :  { %183 = vmatpush3.bf16.msra.mxu0 %v201_v4 }
   0xf   :  { %184 = vmatprep.subr.bf16.mxu0 %v206_v0 }
  0x12   :  { %185 = vmatpush3.bf16.msra.mxu0 %v202_v5 }
  0x13   :  { %186 = vmatprep.subr.bf16.mxu0 %v206_v0 }
  0x16   :  { %187 = vmatpush3.bf16.msra.mxu0 %v203_v6 }
  0x17   :  { %188 = vmatprep.subr.bf16.mxu0 %v206_v0 }
  0x1a   :  { %189 = vmatpush3.bf16.msra.mxu0 %v204_v7 }
  0x1b   :  { %190 = vmatprep.subr.bf16.mxu0 %v206_v0 }
  0x1e   :  { %191 = vmatpush3.bf16.msra.mxu0 %v205_v8 }
  0x21   :  { %193 = vmatmul.mubr.bf16.vlgmr.msra.gmra.mrb[0].mxu0 %v24_v9 }
  0xf4   :  { %v123_v11 = vpop.f32.mrb[0].mxu0 }
  0xf5   :  { %v142_v13 = vmul.f32 %v165_v10, %v123_v11  ;;  %v194_v14 = vpop.f32.mrb[1].mxu0 }
  0xf6   :  { %v126_v15 = vpop.f32.mrb[2].mxu0 }
  0xf7   :  { %v150_v16 = vadd.f32 %v166_v12, %v142_v13  ;;  %v195_v17 = vpop.f32.mrb[3].mxu0 }
  0xf9   :  { %v151_v18 = vpack.c.bf16 %v150_v16, %v150_v16 }
  0xfb   :  { %152 = vst [vmem:[%s273_s4] sm:$0xf] %v151_v18 }

// kernel: resnet_simclr_forward.35
= control target key start
LH: loop header
LB: loop body
LE: loop exit
PB: predicated region body
PF: predicated region fallthrough
CT: control target
= control target key end

     0   :  { %vm1156_vm0 = vmmov 0   ;;  %s1430_s1 = inlined_call_operand.vmem [shape: bf16[1152,128], index: 1, kind: input, shape index: {}]   ;;  %s1431_s0 = inlined_call_operand.vmem [shape: bf16[8,1152], index: 0, kind: input, shape index: {}]   ;;  %s1432_s2 = inlined_call_operand.vmem [shape: f32[1,128], index: 2, kind: input, shape index: {}]   ;;  %s1433_s4 = inlined_call_operand.vmem [shape: bf16[8,128], index: 4, kind: input, shape index: {}]   ;;  %s1434_s3 = inlined_call_operand.vmem [shape: f32[1,128], index: 3, kind: input, shape index: {}]   ;;  %s1435_s5 = inlined_call_operand.vmem [shape: bf16[8,128], index: 5, kind: output, shape index: {}]  }
   0x1   :  { %v1074_v0 = vld [vmem:[%s1430_s1 + $0x40] sm:$0xff]   ;;  %v1078_v4 = vld [vmem:[%s1430_s1 + $0x48] sm:$0xff]   ;;  %v1082_v8 = vld [vmem:[%s1430_s1 + $0x50] sm:$0xff]  }
   0x2   :  { %v1075_v1 = vld [vmem:[%s1430_s1 + $0xc0] sm:$0xff]   ;;  %955 = vmatprep.subr.bf16.mxu0 %v1074_v0  ;;  %v1079_v5 = vld [vmem:[%s1430_s1 + $0xc8] sm:$0xff]   ;;  %v1083_v9 = vld [vmem:[%s1430_s1 + $0xd0] sm:$0xff]  }
   0x3   :  { %v1076_v2 = vld [vmem:[%s1430_s1] sm:$0xff]   ;;  %977 = vmatprep.subr.bf16.mxu1 %v1075_v1  ;;  %v1080_v6 = vld [vmem:[%s1430_s1 + $0x8] sm:$0xff]   ;;  %v1084_v10 = vld [vmem:[%s1430_s1 + $0x10] sm:$0xff]  }
   0x4   :  { %v1077_v3 = vld [vmem:[%s1430_s1 + $0x80] sm:$0xff]   ;;  %956 = vmatpush3.bf16.msra.mxu0 %v1076_v2  ;;  %v1081_v7 = vld [vmem:[%s1430_s1 + $0x88] sm:$0xff]   ;;  %v1085_v11 = vld [vmem:[%s1430_s1 + $0x90] sm:$0xff]  }
   0x5   :  { %978 = vmatpush3.bf16.msra.mxu1 %v1077_v3  ;;  %957 = vmatprep.subr.bf16.mxu0 %v1078_v4  ;;  %v1086_v12 = vld [vmem:[%s1430_s1 + $0x58] sm:$0xff]   ;;  %v1090_v16 = vld [vmem:[%s1430_s1 + $0x60] sm:$0xff]   ;;  %v1094_v20 = vld [vmem:[%s1430_s1 + $0x68] sm:$0xff]  }
   0x6   :  { %979 = vmatprep.subr.bf16.mxu1 %v1079_v5  ;;  %v1087_v13 = vld [vmem:[%s1430_s1 + $0xd8] sm:$0xff]   ;;  %v1091_v17 = vld [vmem:[%s1430_s1 + $0xe0] sm:$0xff]   ;;  %v1095_v21 = vld [vmem:[%s1430_s1 + $0xe8] sm:$0xff]  }
   0x7   :  { %v1088_v14 = vld [vmem:[%s1430_s1 + $0x18] sm:$0xff]   ;;  %v1092_v18 = vld [vmem:[%s1430_s1 + $0x20] sm:$0xff]   ;;  %v1096_v22 = vld [vmem:[%s1430_s1 + $0x28] sm:$0xff]  }
   0x8   :  { %958 = vmatpush3.bf16.msra.mxu0 %v1080_v6  ;;  %v1089_v15 = vld [vmem:[%s1430_s1 + $0x98] sm:$0xff]   ;;  %v1093_v19 = vld [vmem:[%s1430_s1 + $0xa0] sm:$0xff]   ;;  %v1097_v23 = vld [vmem:[%s1430_s1 + $0xa8] sm:$0xff]  }
   0x9   :  { %980 = vmatpush3.bf16.msra.mxu1 %v1081_v7  ;;  %959 = vmatprep.subr.bf16.mxu0 %v1082_v8  ;;  %v1098_v24 = vld [vmem:[%s1430_s1 + $0x70] sm:$0xff]   ;;  %v1102_v28 = vld [vmem:[%s1430_s1 + $0x78] sm:$0xff]   ;;  %v27_v32 = vld [vmem:[%s1431_s0] sm:$0xff] }
   0xa   :  { %981 = vmatprep.subr.bf16.mxu1 %v1083_v9  ;;  %v1099_v25 = vld [vmem:[%s1430_s1 + $0xf0] sm:$0xff]   ;;  %v1103_v29 = vld [vmem:[%s1430_s1 + $0xf8] sm:$0xff]   ;;  %v28_v33 = vld [vmem:[%s1431_s0 + $0x8] sm:$0xff]  ;;  %v872_v34 = vcombine.low %v27_v32, %v27_v32  ;;  %v873_v35 = vcombine.high %v27_v32, %v27_v32 }
   0xb   :  { %v1100_v26 = vld [vmem:[%s1430_s1 + $0x30] sm:$0xff]   ;;  %v1104_v30 = vld [vmem:[%s1430_s1 + $0x38] sm:$0xff]   ;;  %v874_v36 = vcombine.low %v28_v33, %v28_v33  ;;  %v875_v37 = vcombine.high %v28_v33, %v28_v33  ;;  %v1110_v38 = vld [vmem:[%s1430_s1 + $0x140] sm:$0xff]  }
   0xc   :  { %960 = vmatpush3.bf16.msra.mxu0 %v1084_v10  ;;  %v1101_v27 = vld [vmem:[%s1430_s1 + $0xb0] sm:$0xff]   ;;  %v1105_v31 = vld [vmem:[%s1430_s1 + $0xb8] sm:$0xff]   ;;  %v1111_v39 = vld [vmem:[%s1430_s1 + $0x100] sm:$0xff]   ;;  %672 = vmatprep.mubr.bf16.mxu0 %v873_v35 }
   0xd   :  { %982 = vmatpush3.bf16.msra.mxu1 %v1085_v11  ;;  %961 = vmatprep.subr.bf16.mxu0 %v1086_v12  ;;  %v1112_v40 = vld [vmem:[%s1430_s1 + $0x1c0] sm:$0xff]   ;;  %v1114_v42 = vld [vmem:[%s1430_s1 + $0x148] sm:$0xff]   ;;  %v1118_v46 = vld [vmem:[%s1430_s1 + $0x150] sm:$0xff]  }
   0xe   :  { %983 = vmatprep.subr.bf16.mxu1 %v1087_v13  ;;  %712 = vmatprep.mubr.bf16.mxu1 %v875_v37  ;;  %v1113_v41 = vld [vmem:[%s1430_s1 + $0x180] sm:$0xff]   ;;  %v1115_v43 = vld [vmem:[%s1430_s1 + $0x108] sm:$0xff]   ;;  %v1119_v47 = vld [vmem:[%s1430_s1 + $0x110] sm:$0xff]   ;;  %v1155_v13 = vmov 0.0  }
   0xf   :  { %v1116_v44 = vld [vmem:[%s1430_s1 + $0x1c8] sm:$0xff]   ;;  %v1120_v48 = vld [vmem:[%s1430_s1 + $0x1d0] sm:$0xff]   ;;  %v1122_v50 = vld [vmem:[%s1430_s1 + $0x158] sm:$0xff]  }
  0x10   :  { %962 = vmatpush3.bf16.msra.mxu0 %v1088_v14  ;;  %v1117_v45 = vld [vmem:[%s1430_s1 + $0x188] sm:$0xff]   ;;  %v1121_v49 = vld [vmem:[%s1430_s1 + $0x190] sm:$0xff]   ;;  %v1123_v51 = vld [vmem:[%s1430_s1 + $0x118] sm:$0xff]  }
  0x11   :  { %984 = vmatpush3.bf16.msra.mxu1 %v1089_v15  ;;  %963 = vmatprep.subr.bf16.mxu0 %v1090_v16  ;;  %v1124_v52 = vld [vmem:[%s1430_s1 + $0x1d8] sm:$0xff]   ;;  %v1126_v54 = vld [vmem:[%s1430_s1 + $0x160] sm:$0xff]   ;;  %v1130_v58 = vld [vmem:[%s1430_s1 + $0x168] sm:$0xff]  }
  0x12   :  { %985 = vmatprep.subr.bf16.mxu1 %v1091_v17  ;;  %v1125_v53 = vld [vmem:[%s1430_s1 + $0x198] sm:$0xff]   ;;  %v1127_v55 = vld [vmem:[%s1430_s1 + $0x120] sm:$0xff]   ;;  %v1131_v59 = vld [vmem:[%s1430_s1 + $0x128] sm:$0xff]  }
  0x13   :  { %v1128_v56 = vld [vmem:[%s1430_s1 + $0x1e0] sm:$0xff]   ;;  %v1132_v60 = vld [vmem:[%s1430_s1 + $0x1e8] sm:$0xff]   ;;  %v1134_v62 = vld [vmem:[%s1430_s1 + $0x170] sm:$0xff]  }
  0x14   :  { %964 = vmatpush3.bf16.msra.mxu0 %v1092_v18  ;;  %v1129_v57 = vld [vmem:[%s1430_s1 + $0x1a0] sm:$0xff]   ;;  %v1133_v61 = vld [vmem:[%s1430_s1 + $0x1a8] sm:$0xff]   ;;  %v1135_v63 = vld [vmem:[%s1430_s1 + $0x130] sm:$0xff]  }
  0x15   :  { %986 = vmatpush3.bf16.msra.mxu1 %v1093_v19  ;;  %965 = vmatprep.subr.bf16.mxu0 %v1094_v20  ;;  %v1136_v0 = vld [vmem:[%s1430_s1 + $0x1f0] sm:$0xff]   ;;  %v1138_v2 = vld [vmem:[%s1430_s1 + $0x178] sm:$0xff]   ;;  %v1146_v12 = vld [vmem:[%s1430_s1 + $0x200] sm:$0xff]  }
  0x16   :  { %987 = vmatprep.subr.bf16.mxu1 %v1095_v21  ;;  %v1137_v1 = vld [vmem:[%s1430_s1 + $0x1b0] sm:$0xff]   ;;  %v1139_v3 = vld [vmem:[%s1430_s1 + $0x138] sm:$0xff]   ;;  %v1147_v14 = vld [vmem:[%s1430_s1 + $0x208] sm:$0xff]  }
  0x17   :  { %v1140_v4 = vld [vmem:[%s1430_s1 + $0x1f8] sm:$0xff]   ;;  %v29_v5 = vld [vmem:[%s1431_s0 + $0x10] sm:$0xff]  ;;  %v1150_v17 = vld [vmem:[%s1430_s1 + $0x220] sm:$0xff]  }
  0x18   :  { %966 = vmatpush3.bf16.msra.mxu0 %v1096_v22  ;;  %v877_v6 = vcombine.high %v29_v5, %v29_v5  ;;  %v1143_v7 = vld [vmem:[%s1430_s1 + $0x1b8] sm:$0xff]   ;;  %v876_v8 = vcombine.low %v29_v5, %v29_v5  ;;  %v1148_v15 = vld [vmem:[%s1430_s1 + $0x210] sm:$0xff]   ;;  %v1151_v18 = vld [vmem:[%s1430_s1 + $0x228] sm:$0xff]  }
  0x19   :  { %988 = vmatpush3.bf16.msra.mxu1 %v1097_v23  ;;  %967 = vmatprep.subr.bf16.mxu0 %v1098_v24  ;;  %v30_v9 = vld [vmem:[%s1431_s0 + $0x18] sm:$0xff]  ;;  %v1152_v19 = vld [vmem:[%s1430_s1 + $0x230] sm:$0xff]   ;;  %v1154_v21 = vld [vmem:[%s1431_s0 + $0x20] ss:$0 sps:$4 sm:$0xff]  }
  0x1a   :  { %989 = vmatprep.subr.bf16.mxu1 %v1099_v25  ;;  %v878_v10 = vcombine.low %v30_v9, %v30_v9  ;;  %v879_v11 = vcombine.high %v30_v9, %v30_v9  ;;  %v1149_v16 = vld [vmem:[%s1430_s1 + $0x218] sm:$0xff]  }
  0x1b   :  { %v1153_v20 = vld [vmem:[%s1430_s1 + $0x238] sm:$0xff]  }
  0x1c   :  { %968 = vmatpush3.bf16.msra.mxu0 %v1100_v26 }
  0x1d   :  { %990 = vmatpush3.bf16.msra.mxu1 %v1101_v27  ;;  %969 = vmatprep.subr.bf16.mxu0 %v1102_v28 }
  0x1e   :  { %991 = vmatprep.subr.bf16.mxu1 %v1103_v29 }
  0x20   :  { %970 = vmatpush3.bf16.msra.mxu0 %v1104_v30 }
  0x21   :  { %992 = vmatpush3.bf16.msra.mxu1 %v1105_v31  ;;  %999 = vmatprep.subr.bf16.mxu0 %v1110_v38 }
  0x22   :  { %1021 = vmatprep.subr.bf16.mxu1 %v1112_v40 }
  0x23   :  { %673 = vmatmul.mubr.bf16.vlgmr.msra.gmra.mrb[0].mxu0 %v872_v34 }
  0x24   :  { %713 = vmatmul.mubr.bf16.vlgmr.msra.gmra.mrb[0].mxu1 %v874_v36  ;;  %1000 = vmatpush3.bf16.msra.mxu0 %v1111_v39 }
  0x25   :  { %1022 = vmatpush3.bf16.msra.mxu1 %v1113_v41  ;;  %1001 = vmatprep.subr.bf16.mxu0 %v1114_v42 }
  0x26   :  { %1023 = vmatprep.subr.bf16.mxu1 %v1116_v44  ;;  %752 = vmatprep.mubr.bf16.mxu0 %v877_v6 }
  0x27   :  { %792 = vmatprep.mubr.bf16.mxu1 %v879_v11 }
  0x28   :  { %1002 = vmatpush3.bf16.msra.mxu0 %v1115_v43 }
  0x29   :  { %1024 = vmatpush3.bf16.msra.mxu1 %v1117_v45  ;;  %1003 = vmatprep.subr.bf16.mxu0 %v1118_v46  ;;  %v953_v46 = vld [vmem:[%s1432_s2] ss:$0 sm:$0xff] }
  0x2a   :  { %1025 = vmatprep.subr.bf16.mxu1 %v1120_v48 }
  0x2c   :  { %1004 = vmatpush3.bf16.msra.mxu0 %v1119_v47  ;;  %v862_v47 = vld [vmem:[%s1433_s4] sm:$0xf] }
  0x2d   :  { %1026 = vmatpush3.bf16.msra.mxu1 %v1121_v49  ;;  %1005 = vmatprep.subr.bf16.mxu0 %v1122_v50  ;;  %v954_v50 = vld [vmem:[%s1434_s3] ss:$0 sm:$0xff] }
  0x2e   :  { %1027 = vmatprep.subr.bf16.mxu1 %v1124_v52 }
  0x30   :  { %1006 = vmatpush3.bf16.msra.mxu0 %v1123_v51 }
  0x31   :  { %1028 = vmatpush3.bf16.msra.mxu1 %v1125_v53  ;;  %1007 = vmatprep.subr.bf16.mxu0 %v1126_v54  ;;  %v863_v53 = vunpack.c.l.bf16 %v862_v47 }
  0x32   :  { %1029 = vmatprep.subr.bf16.mxu1 %v1128_v56 }
  0x34   :  { %1008 = vmatpush3.bf16.msra.mxu0 %v1127_v55 }
  0x35   :  { %1030 = vmatpush3.bf16.msra.mxu1 %v1129_v57  ;;  %1009 = vmatprep.subr.bf16.mxu0 %v1130_v58 }
  0x36   :  { %1031 = vmatprep.subr.bf16.mxu1 %v1132_v60 }
  0x38   :  { %1010 = vmatpush3.bf16.msra.mxu0 %v1131_v59 }
  0x39   :  { %1032 = vmatpush3.bf16.msra.mxu1 %v1133_v61  ;;  %1011 = vmatprep.subr.bf16.mxu0 %v1134_v62 }
  0x3a   :  { %1033 = vmatprep.subr.bf16.mxu1 %v1136_v0 }
  0x3c   :  { %1012 = vmatpush3.bf16.msra.mxu0 %v1135_v63 }
  0x3d   :  { %1034 = vmatpush3.bf16.msra.mxu1 %v1137_v1  ;;  %1013 = vmatprep.subr.bf16.mxu0 %v1138_v2 }
  0x3e   :  { %1035 = vmatprep.subr.bf16.mxu1 %v1140_v4 }
  0x40   :  { %1014 = vmatpush3.bf16.msra.mxu0 %v1139_v3 }
  0x41   :  { %1036 = vmatpush3.bf16.msra.mxu1 %v1143_v7  ;;  %1052 = vmatprep.subr.bf16.mxu0 %v1155_v13 }
  0x43   :  { %753 = vmatmul.mubr.bf16.vlgmr.msra.gmra.mrb[4].mxu0 %v876_v8 }
  0x44   :  { %1053 = vmatpush3.bf16.msra.mxu0 %v1146_v12  ;;  %793 = vmatmul.mubr.bf16.vlgmr.msra.gmra.mrb[4].mxu1 %v878_v10 }
  0x45   :  { %1054 = vmatprep.subr.bf16.mxu0 %v1155_v13  ;;  %1068 = vmatprep.mubr.msk.bf16.mxu0 %vm1156_vm0, %v1155_v13 }
  0x48   :  { %1055 = vmatpush3.bf16.msra.mxu0 %v1147_v14 }
  0x49   :  { %1056 = vmatprep.subr.bf16.mxu0 %v1155_v13 }
  0x4c   :  { %1057 = vmatpush3.bf16.msra.mxu0 %v1148_v15 }
  0x4d   :  { %1058 = vmatprep.subr.bf16.mxu0 %v1155_v13 }
  0x50   :  { %1059 = vmatpush3.bf16.msra.mxu0 %v1149_v16 }
  0x51   :  { %1060 = vmatprep.subr.bf16.mxu0 %v1155_v13 }
  0x54   :  { %1061 = vmatpush3.bf16.msra.mxu0 %v1150_v17 }
  0x55   :  { %1062 = vmatprep.subr.bf16.mxu0 %v1155_v13 }
  0x58   :  { %1063 = vmatpush3.bf16.msra.mxu0 %v1151_v18 }
  0x59   :  { %1064 = vmatprep.subr.bf16.mxu0 %v1155_v13 }
  0x5c   :  { %1065 = vmatpush3.bf16.msra.mxu0 %v1152_v19 }
  0x5d   :  { %1066 = vmatprep.subr.bf16.mxu0 %v1155_v13 }
  0x60   :  { %1067 = vmatpush3.bf16.msra.mxu0 %v1153_v20 }
  0x63   :  { %1069 = vmatmul.mubr.bf16.vlgmr.msra.gmra.mrb[8].mxu0 %v1154_v21 }
  0xf6   :  { %v971_v22 = vpop.f32.mrb[0].mxu0 }
  0xf7   :  { %v993_v23 = vpop.f32.mrb[0].mxu1  ;;  %v972_v24 = vpop.f32.mrb[1].mxu0 }
  0xf8   :  { %v994_v25 = vpop.f32.mrb[1].mxu1  ;;  %v973_v26 = vadd.f32 %v972_v24, %v971_v22  ;;  %v974_v28 = vpop.f32.mrb[2].mxu0 }
  0xf9   :  { %v995_v27 = vadd.f32 %v994_v25, %v993_v23  ;;  %v996_v29 = vpop.f32.mrb[2].mxu1  ;;  %v975_v30 = vpop.f32.mrb[3].mxu0 }
  0xfa   :  { %v997_v31 = vpop.f32.mrb[3].mxu1 }
  0xfb   :  { %v715_v32 = vadd.f32 %v995_v27, %v973_v26 }
 0x116   :  { %v1015_v33 = vpop.f32.mrb[4].mxu0 }
 0x117   :  { %v1016_v34 = vpop.f32.mrb[5].mxu0  ;;  %v1037_v35 = vpop.f32.mrb[4].mxu1 }
 0x118   :  { %v1017_v36 = vadd.f32 %v1016_v34, %v1015_v33  ;;  %v1018_v37 = vpop.f32.mrb[6].mxu0  ;;  %v1038_v38 = vpop.f32.mrb[5].mxu1 }
 0x119   :  { %v1019_v39 = vpop.f32.mrb[7].mxu0  ;;  %v1039_v40 = vadd.f32 %v1038_v38, %v1037_v35  ;;  %v1040_v41 = vpop.f32.mrb[6].mxu1 }
 0x11a   :  { %v755_v42 = vadd.f32 %v1017_v36, %v715_v32  ;;  %v1041_v43 = vpop.f32.mrb[7].mxu1 }
 0x11c   :  { %v795_v44 = vadd.f32 %v1039_v40, %v755_v42 }
 0x136   :  { %v834_v45 = vpop.f32.mrb[8].mxu0 }
 0x137   :  { %v835_v48 = vadd.f32 %v834_v45, %v795_v44  ;;  %v1070_v49 = vpop.f32.mrb[9].mxu0 }
 0x138   :  { %v837_v51 = vpop.f32.mrb[10].mxu0 }
 0x139   :  { %v853_v52 = vmul.f32 %v953_v46, %v835_v48  ;;  %v1071_v54 = vpop.f32.mrb[11].mxu0 }
 0x13b   :  { %v861_v55 = vadd.f32 %v954_v50, %v853_v52 }
 0x13d   :  { %v864_v56 = vadd.f32 %v863_v53, %v861_v55 }
 0x13f   :  { %v865_v57 = vmax.f32 %v864_v56, 0.0 }
 0x141   :  { %v866_v58 = vpack.c.bf16 %v865_v57, %v865_v57 }
 0x143   :  { %867 = vst [vmem:[%s1435_s5] sm:$0xf] %v866_v58 }

// kernel: resnet_simclr_forward.38
= control target key start
LH: loop header
LB: loop body
LE: loop exit
PB: predicated region body
PF: predicated region fallthrough
CT: control target
= control target key end

     0   :  { %v206_v0 = vmov 0.0   ;;  %vm207_vm0 = vmmov 0   ;;  %s269_s1 = inlined_call_operand.vmem [shape: bf16[128,128], index: 1, kind: input, shape index: {}]   ;;  %s270_s0 = inlined_call_operand.vmem [shape: bf16[2,128], index: 0, kind: input, shape index: {}]   ;;  %s271_s2 = inlined_call_operand.vmem [shape: f32[1,128], index: 2, kind: input, shape index: {}]   ;;  %s272_s3 = inlined_call_operand.vmem [shape: f32[1,128], index: 3, kind: input, shape index: {}]   ;;  %s273_s4 = inlined_call_operand.vmem [shape: bf16[2,128], index: 4, kind: output, shape index: {}]  }
   0x1   :  { %176 = vmatprep.subr.bf16.mxu0 %v206_v0  ;;  %22 = vst [vmem:[#allocation2] sm:$0x3] %v206_v0  ;;  %v198_v1 = vld [vmem:[%s269_s1] sm:$0xff]   ;;  %192 = vmatprep.mubr.msk.bf16.mxu0 %vm207_vm0, %v206_v0  ;;  %v199_v2 = vld [vmem:[%s269_s1 + $0x8] sm:$0xff]   ;;  %v200_v3 = vld [vmem:[%s269_s1 + $0x10] sm:$0xff]  }
   0x2   :  { %177 = vmatpush3.bf16.msra.mxu0 %v198_v1  ;;  %v201_v4 = vld [vmem:[%s269_s1 + $0x18] sm:$0xff]   ;;  %v202_v5 = vld [vmem:[%s269_s1 + $0x20] sm:$0xff]   ;;  %v203_v6 = vld [vmem:[%s269_s1 + $0x28] sm:$0xff]  }
   0x3   :  { %178 = vmatprep.subr.bf16.mxu0 %v206_v0  ;;  %v204_v7 = vld [vmem:[%s269_s1 + $0x30] sm:$0xff]   ;;  %v205_v8 = vld [vmem:[%s269_s1 + $0x38] sm:$0xff]   ;;  %v24_v9 = vld [vmem:[%s270_s0] sm:$0x1] }
   0x4   :  { %v165_v16 = vld [vmem:[%s271_s2] ss:$0 sm:$0xff] }
   0x5   :  { %v166_v18 = vld [vmem:[%s272_s3] ss:$0 sm:$0xff] }
   0x6   :  { %179 = vmatpush3.bf16.msra.mxu0 %v199_v2 }
   0x7   :  { %180 = vmatprep.subr.bf16.mxu0 %v206_v0 }
   0x8   :  { %v23_v10 = vld [vmem:[#allocation2] sm:$0x3] }
   0xa   :  { %181 = vmatpush3.bf16.msra.mxu0 %v200_v3 }
   0xb   :  { %182 = vmatprep.subr.bf16.mxu0 %v206_v0 }
   0xe   :  { %183 = vmatpush3.bf16.msra.mxu0 %v201_v4 }
   0xf   :  { %184 = vmatprep.subr.bf16.mxu0 %v206_v0 }
  0x12   :  { %185 = vmatpush3.bf16.msra.mxu0 %v202_v5 }
  0x13   :  { %186 = vmatprep.subr.bf16.mxu0 %v206_v0 }
  0x16   :  { %187 = vmatpush3.bf16.msra.mxu0 %v203_v6 }
  0x17   :  { %188 = vmatprep.subr.bf16.mxu0 %v206_v0 }
  0x1a   :  { %189 = vmatpush3.bf16.msra.mxu0 %v204_v7 }
  0x1b   :  { %190 = vmatprep.subr.bf16.mxu0 %v206_v0 }
  0x1e   :  { %191 = vmatpush3.bf16.msra.mxu0 %v205_v8 }
  0x21   :  { %193 = vmatmul.mubr.bf16.vlgmr.msra.gmra.mrb[0].mxu0 %v24_v9 }
  0xf4   :  { %v123_v11 = vpop.f32.mrb[0].mxu0 }
  0xf5   :  { %v129_v12 = vadd.f32 %v123_v11, %v23_v10  ;;  %v194_v13 = vpop.f32.mrb[1].mxu0 }
  0xf6   :  { %v126_v14 = vpop.f32.mrb[2].mxu0 }
  0xf7   :  { %130 = vst [vmem:[#allocation2] sm:$0x3] %v129_v12  ;;  %v195_v15 = vpop.f32.mrb[3].mxu0 }
  0xfe   :  { %v134_v17 = vld [vmem:[#allocation2] sm:$0x3] }
  0xff   :  { %v142_v19 = vmul.f32 %v165_v16, %v134_v17 }
 0x101   :  { %v150_v20 = vadd.f32 %v166_v18, %v142_v19 }
 0x103   :  { %v151_v21 = vpack.c.bf16 %v150_v20, %v150_v20 }
 0x105   :  { %152 = vst [vmem:[%s273_s4] sm:$0x1] %v151_v21 }

// kernel: resnet_simclr_forward.39
= control target key start
LH: loop header
LB: loop body
LE: loop exit
PB: predicated region body
PF: predicated region fallthrough
CT: control target
= control target key end

     0   :  { %v1173_v1 = vmov 0.0   ;;  %v1174_v23 = vmov 1966171168   ;;  %v176_v25 = vlaneseq  ;;  %vm1175_vm0 = vmmov 0   ;;  %s1456_s1 = inlined_call_operand.vmem [shape: bf16[1152,128], index: 1, kind: input, shape index: {}]   ;;  %s1457_s0 = inlined_call_operand.vmem [shape: bf16[2,1152], index: 0, kind: input, shape index: {}]   ;;  %s1458_s2 = inlined_call_operand.vmem [shape: f32[1,128], index: 2, kind: input, shape index: {}]   ;;  %s1459_s3 = inlined_call_operand.vmem [shape: f32[1,128], index: 3, kind: input, shape index: {}]   ;;  %s1460_s4 = inlined_call_operand.vmem [shape: bf16[2,128], index: 4, kind: output, shape index: {}]  }
   0x1   :  { %v1100_v0 = vld [vmem:[%s1456_s1 + $0x40] sm:$0xff]   ;;  %22 = vst [vmem:[#allocation2] sm:$0x3] %v1173_v1  ;;  %v1104_v5 = vld [vmem:[%s1456_s1 + $0x48] sm:$0xff]   ;;  %v1108_v9 = vld [vmem:[%s1456_s1 + $0x50] sm:$0xff]   ;;  %v174_v24 = vunpack.c.l.s4 %v1174_v23 }
   0x2   :  { %v1101_v2 = vld [vmem:[%s1456_s1 + $0xc0] sm:$0xff]   ;;  %980 = vmatprep.subr.bf16.mxu0 %v1100_v0  ;;  %v1105_v6 = vld [vmem:[%s1456_s1 + $0xc8] sm:$0xff]   ;;  %v1109_v10 = vld [vmem:[%s1456_s1 + $0xd0] sm:$0xff]   ;;  %v177_v31 = vshrl.u32 %v176_v25, 7 }
   0x3   :  { %v1102_v3 = vld [vmem:[%s1456_s1] sm:$0xff]   ;;  %1002 = vmatprep.subr.bf16.mxu1 %v1101_v2  ;;  %v1106_v7 = vld [vmem:[%s1456_s1 + $0x8] sm:$0xff]   ;;  %v1110_v11 = vld [vmem:[%s1456_s1 + $0x10] sm:$0xff]   ;;  %v175_v30 = vunpack.c.0.s8 %v174_v24 }
   0x4   :  { %v1103_v4 = vld [vmem:[%s1456_s1 + $0x80] sm:$0xff]   ;;  %981 = vmatpush3.bf16.msra.mxu0 %v1102_v3  ;;  %v1107_v8 = vld [vmem:[%s1456_s1 + $0x88] sm:$0xff]   ;;  %v1111_v12 = vld [vmem:[%s1456_s1 + $0x90] sm:$0xff]  }
   0x5   :  { %1003 = vmatpush3.bf16.msra.mxu1 %v1103_v4  ;;  %982 = vmatprep.subr.bf16.mxu0 %v1104_v5  ;;  %v1112_v13 = vld [vmem:[%s1456_s1 + $0x58] sm:$0xff]   ;;  %v1116_v17 = vld [vmem:[%s1456_s1 + $0x60] sm:$0xff]   ;;  %v1120_v21 = vld [vmem:[%s1456_s1 + $0x68] sm:$0xff]   ;;  %v1292_v36 = vsub.s32 %v175_v30, %v177_v31 }
   0x6   :  { %1004 = vmatprep.subr.bf16.mxu1 %v1105_v6  ;;  %v1113_v14 = vld [vmem:[%s1456_s1 + $0xd8] sm:$0xff]   ;;  %v1117_v18 = vld [vmem:[%s1456_s1 + $0xe0] sm:$0xff]   ;;  %v1121_v22 = vld [vmem:[%s1456_s1 + $0xe8] sm:$0xff]  }
   0x7   :  { %v1114_v15 = vld [vmem:[%s1456_s1 + $0x18] sm:$0xff]   ;;  %v1118_v19 = vld [vmem:[%s1456_s1 + $0x20] sm:$0xff]   ;;  %v1122_v26 = vld [vmem:[%s1456_s1 + $0x28] sm:$0xff]  }
   0x8   :  { %983 = vmatpush3.bf16.msra.mxu0 %v1106_v7  ;;  %v1115_v16 = vld [vmem:[%s1456_s1 + $0x98] sm:$0xff]   ;;  %v1119_v20 = vld [vmem:[%s1456_s1 + $0xa0] sm:$0xff]   ;;  %v1123_v27 = vld [vmem:[%s1456_s1 + $0xa8] sm:$0xff]  }
   0x9   :  { %1005 = vmatpush3.bf16.msra.mxu1 %v1107_v8  ;;  %984 = vmatprep.subr.bf16.mxu0 %v1108_v9  ;;  %v1124_v28 = vld [vmem:[%s1456_s1 + $0x70] sm:$0xff]   ;;  %v1128_v34 = vld [vmem:[%s1456_s1 + $0x78] sm:$0xff]   ;;  %v24_v39 = vld [vmem:[%s1457_s0] sm:$0xff] }
   0xa   :  { %1006 = vmatprep.subr.bf16.mxu1 %v1109_v10  ;;  %v1125_v29 = vld [vmem:[%s1456_s1 + $0xf0] sm:$0xff]   ;;  %v1129_v35 = vld [vmem:[%s1456_s1 + $0xf8] sm:$0xff]   ;;  %v172_v40 = vcombine.high %v24_v39, %v24_v39  ;;  %v179_v41 = vrot.slane %v24_v39, %v1292_v36  ;;  %v1133_v42 = vld [vmem:[%s1456_s1 + $0x140] sm:$0xff]  }
   0xb   :  { %v1126_v32 = vld [vmem:[%s1456_s1 + $0x30] sm:$0xff]   ;;  %v1130_v37 = vld [vmem:[%s1456_s1 + $0x38] sm:$0xff]   ;;  %v1135_v45 = vld [vmem:[%s1456_s1 + $0x1c0] sm:$0xff]  }
   0xc   :  { %985 = vmatpush3.bf16.msra.mxu0 %v1110_v11  ;;  %v1127_v33 = vld [vmem:[%s1456_s1 + $0xb0] sm:$0xff]   ;;  %v1131_v38 = vld [vmem:[%s1456_s1 + $0xb8] sm:$0xff]   ;;  %v187_v43 = vcombine.high %v179_v41, %v179_v41  ;;  %v195_v44 = vrot.slane %v179_v41, %v1292_v36  ;;  %v1312_v46 = vrot.slane %v172_v40, %v1292_v36  ;;  %v1134_v48 = vld [vmem:[%s1456_s1 + $0x100] sm:$0xff]  }
   0xd   :  { %1007 = vmatpush3.bf16.msra.mxu1 %v1111_v12  ;;  %986 = vmatprep.subr.bf16.mxu0 %v1112_v13  ;;  %v1137_v51 = vld [vmem:[%s1456_s1 + $0x148] sm:$0xff]   ;;  %v1136_v53 = vld [vmem:[%s1456_s1 + $0x180] sm:$0xff]   ;;  %v1141_v58 = vld [vmem:[%s1456_s1 + $0x150] sm:$0xff]  }
   0xe   :  { %1008 = vmatprep.subr.bf16.mxu1 %v1113_v14  ;;  %v209_v47 = vrot.slane %v187_v43, %v1292_v36  ;;  %v188_v49 = vcombine.high %v1312_v46, %v1312_v46  ;;  %v217_v50 = vcombine.high %v195_v44, %v195_v44  ;;  %v1139_v55 = vld [vmem:[%s1456_s1 + $0x1c8] sm:$0xff]   ;;  %v1143_v60 = vld [vmem:[%s1456_s1 + $0x1d0] sm:$0xff]   ;;  %v1145_v62 = vld [vmem:[%s1456_s1 + $0x158] sm:$0xff]  }
   0xf   :  { %v1138_v56 = vld [vmem:[%s1456_s1 + $0x108] sm:$0xff]   ;;  %v1142_v61 = vld [vmem:[%s1456_s1 + $0x110] sm:$0xff]   ;;  %v1147_v0 = vld [vmem:[%s1456_s1 + $0x1d8] sm:$0xff]  }
  0x10   :  { %987 = vmatpush3.bf16.msra.mxu0 %v1114_v15  ;;  %708 = vmatprep.mubr.bf16.mxu0 %v209_v47  ;;  %v219_v52 = vcombine.high %v209_v47, %v209_v47  ;;  %v216_v54 = vrot.slane %v188_v49, %v1292_v36  ;;  %v1140_v59 = vld [vmem:[%s1456_s1 + $0x188] sm:$0xff]   ;;  %v1144_v63 = vld [vmem:[%s1456_s1 + $0x190] sm:$0xff]   ;;  %v1146_v2 = vld [vmem:[%s1456_s1 + $0x118] sm:$0xff]  }
  0x11   :  { %1009 = vmatpush3.bf16.msra.mxu1 %v1115_v16  ;;  %988 = vmatprep.subr.bf16.mxu0 %v1116_v17  ;;  %v1149_v3 = vld [vmem:[%s1456_s1 + $0x160] sm:$0xff]   ;;  %v1148_v4 = vld [vmem:[%s1456_s1 + $0x198] sm:$0xff]   ;;  %v1153_v7 = vld [vmem:[%s1456_s1 + $0x168] sm:$0xff]  }
  0x12   :  { %1010 = vmatprep.subr.bf16.mxu1 %v1117_v18  ;;  %748 = vmatprep.mubr.bf16.mxu1 %v219_v52  ;;  %v220_v57 = vcombine.high %v216_v54, %v216_v54  ;;  %v1151_v5 = vld [vmem:[%s1456_s1 + $0x1e0] sm:$0xff]   ;;  %v1155_v9 = vld [vmem:[%s1456_s1 + $0x1e8] sm:$0xff]   ;;  %v1157_v11 = vld [vmem:[%s1456_s1 + $0x170] sm:$0xff]  }
  0x13   :  { %v1150_v6 = vld [vmem:[%s1456_s1 + $0x120] sm:$0xff]   ;;  %v1154_v10 = vld [vmem:[%s1456_s1 + $0x128] sm:$0xff]   ;;  %v1159_v13 = vld [vmem:[%s1456_s1 + $0x1f0] sm:$0xff]  }
  0x14   :  { %989 = vmatpush3.bf16.msra.mxu0 %v1118_v19  ;;  %v1152_v8 = vld [vmem:[%s1456_s1 + $0x1a0] sm:$0xff]   ;;  %v1156_v12 = vld [vmem:[%s1456_s1 + $0x1a8] sm:$0xff]   ;;  %v1158_v14 = vld [vmem:[%s1456_s1 + $0x130] sm:$0xff]   ;;  %v202_v19 = vrot.slane %v1312_v46, %v1292_v36 }
  0x15   :  { %1011 = vmatpush3.bf16.msra.mxu1 %v1119_v20  ;;  %990 = vmatprep.subr.bf16.mxu0 %v1120_v21  ;;  %v1161_v15 = vld [vmem:[%s1456_s1 + $0x178] sm:$0xff]   ;;  %v1160_v16 = vld [vmem:[%s1456_s1 + $0x1b0] sm:$0xff]   ;;  %v1165_v21 = vld [vmem:[%s1456_s1 + $0x200] sm:$0xff]  }
  0x16   :  { %1012 = vmatprep.subr.bf16.mxu1 %v1121_v22  ;;  %v1163_v17 = vld [vmem:[%s1456_s1 + $0x1f8] sm:$0xff]   ;;  %v218_v22 = vcombine.high %v202_v19, %v202_v19  ;;  %v905_v23 = vld.sshfl [vmem:[%s1457_s0 + $0x8] sm:$0x1 pattern:$0x75316420]  ;;  %v1171_v30 = vld [vmem:[%s1456_s1 + $0x230] sm:$0xff]  }
  0x17   :  { %v1162_v18 = vld [vmem:[%s1456_s1 + $0x138] sm:$0xff]   ;;  %v1166_v24 = vld [vmem:[%s1456_s1 + $0x208] sm:$0xff]   ;;  %v234_v25 = vrot.slane %v905_v23, %v1292_v36 }
  0x18   :  { %991 = vmatpush3.bf16.msra.mxu0 %v1122_v26  ;;  %v1164_v20 = vld [vmem:[%s1456_s1 + $0x1b8] sm:$0xff]   ;;  %v1167_v26 = vld [vmem:[%s1456_s1 + $0x210] sm:$0xff]  }
  0x19   :  { %1013 = vmatpush3.bf16.msra.mxu1 %v1123_v27  ;;  %992 = vmatprep.subr.bf16.mxu0 %v1124_v28  ;;  %v1168_v27 = vld [vmem:[%s1456_s1 + $0x218] sm:$0xff]   ;;  %v1169_v28 = vld [vmem:[%s1456_s1 + $0x220] sm:$0xff]  }
  0x1a   :  { %1014 = vmatprep.subr.bf16.mxu1 %v1125_v29  ;;  %v1170_v29 = vld [vmem:[%s1456_s1 + $0x228] sm:$0xff]   ;;  %v1172_v31 = vld [vmem:[%s1456_s1 + $0x238] sm:$0xff]  }
  0x1c   :  { %993 = vmatpush3.bf16.msra.mxu0 %v1126_v32 }
  0x1d   :  { %1015 = vmatpush3.bf16.msra.mxu1 %v1127_v33  ;;  %994 = vmatprep.subr.bf16.mxu0 %v1128_v34 }
  0x1e   :  { %1016 = vmatprep.subr.bf16.mxu1 %v1129_v35 }
  0x20   :  { %995 = vmatpush3.bf16.msra.mxu0 %v1130_v37 }
  0x21   :  { %1017 = vmatpush3.bf16.msra.mxu1 %v1131_v38  ;;  %1024 = vmatprep.subr.bf16.mxu0 %v1133_v42 }
  0x22   :  { %1046 = vmatprep.subr.bf16.mxu1 %v1135_v45 }
  0x23   :  { %709 = vmatmul.mubr.bf16.vlgmr.msra.gmra.mrb[0].mxu0 %v195_v44 }
  0x24   :  { %1025 = vmatpush3.bf16.msra.mxu0 %v1134_v48  ;;  %749 = vmatmul.mubr.bf16.vlgmr.msra.gmra.mrb[0].mxu1 %v217_v50 }
  0x25   :  { %1026 = vmatprep.subr.bf16.mxu0 %v1137_v51  ;;  %1047 = vmatpush3.bf16.msra.mxu1 %v1136_v53 }
  0x26   :  { %788 = vmatprep.mubr.bf16.mxu0 %v216_v54  ;;  %1048 = vmatprep.subr.bf16.mxu1 %v1139_v55  ;;  %v23_v54 = vld [vmem:[#allocation2] sm:$0x3] }
  0x27   :  { %828 = vmatprep.mubr.bf16.mxu1 %v220_v57 }
  0x28   :  { %1027 = vmatpush3.bf16.msra.mxu0 %v1138_v56 }
  0x29   :  { %1028 = vmatprep.subr.bf16.mxu0 %v1141_v58  ;;  %1049 = vmatpush3.bf16.msra.mxu1 %v1140_v59 }
  0x2a   :  { %1050 = vmatprep.subr.bf16.mxu1 %v1143_v60 }
  0x2c   :  { %1029 = vmatpush3.bf16.msra.mxu0 %v1142_v61  ;;  %v978_v61 = vld [vmem:[%s1458_s2] ss:$0 sm:$0xff] }
  0x2d   :  { %1030 = vmatprep.subr.bf16.mxu0 %v1145_v62  ;;  %1051 = vmatpush3.bf16.msra.mxu1 %v1144_v63  ;;  %v979_v63 = vld [vmem:[%s1459_s3] ss:$0 sm:$0xff] }
  0x2e   :  { %1052 = vmatprep.subr.bf16.mxu1 %v1147_v0 }
  0x30   :  { %1031 = vmatpush3.bf16.msra.mxu0 %v1146_v2 }
  0x31   :  { %1032 = vmatprep.subr.bf16.mxu0 %v1149_v3  ;;  %1053 = vmatpush3.bf16.msra.mxu1 %v1148_v4 }
  0x32   :  { %1054 = vmatprep.subr.bf16.mxu1 %v1151_v5 }
  0x34   :  { %1033 = vmatpush3.bf16.msra.mxu0 %v1150_v6 }
  0x35   :  { %1034 = vmatprep.subr.bf16.mxu0 %v1153_v7  ;;  %1055 = vmatpush3.bf16.msra.mxu1 %v1152_v8 }
  0x36   :  { %1056 = vmatprep.subr.bf16.mxu1 %v1155_v9 }
  0x38   :  { %1035 = vmatpush3.bf16.msra.mxu0 %v1154_v10 }
  0x39   :  { %1036 = vmatprep.subr.bf16.mxu0 %v1157_v11  ;;  %1057 = vmatpush3.bf16.msra.mxu1 %v1156_v12 }
  0x3a   :  { %1058 = vmatprep.subr.bf16.mxu1 %v1159_v13 }
  0x3c   :  { %1037 = vmatpush3.bf16.msra.mxu0 %v1158_v14 }
  0x3d   :  { %1038 = vmatprep.subr.bf16.mxu0 %v1161_v15  ;;  %1059 = vmatpush3.bf16.msra.mxu1 %v1160_v16 }
  0x3e   :  { %1060 = vmatprep.subr.bf16.mxu1 %v1163_v17 }
  0x40   :  { %1039 = vmatpush3.bf16.msra.mxu0 %v1162_v18 }
  0x41   :  { %1077 = vmatprep.subr.bf16.mxu0 %v1173_v1  ;;  %1061 = vmatpush3.bf16.msra.mxu1 %v1164_v20 }
  0x43   :  { %789 = vmatmul.mubr.bf16.vlgmr.msra.gmra.mrb[4].mxu0 %v202_v19 }
  0x44   :  { %1078 = vmatpush3.bf16.msra.mxu0 %v1165_v21  ;;  %1093 = vmatprep.mubr.msk.bf16.mxu0 %vm1175_vm0, %v1173_v1 }
  0x45   :  { %829 = vmatmul.mubr.bf16.vlgmr.msra.gmra.mrb[4].mxu1 %v218_v22  ;;  %1079 = vmatprep.subr.bf16.mxu0 %v1173_v1 }
  0x48   :  { %1080 = vmatpush3.bf16.msra.mxu0 %v1166_v24 }
  0x49   :  { %1081 = vmatprep.subr.bf16.mxu0 %v1173_v1 }
  0x4c   :  { %1082 = vmatpush3.bf16.msra.mxu0 %v1167_v26 }
  0x4d   :  { %1083 = vmatprep.subr.bf16.mxu0 %v1173_v1 }
  0x50   :  { %1084 = vmatpush3.bf16.msra.mxu0 %v1168_v27 }
  0x51   :  { %1085 = vmatprep.subr.bf16.mxu0 %v1173_v1 }
  0x54   :  { %1086 = vmatpush3.bf16.msra.mxu0 %v1169_v28 }
  0x55   :  { %1087 = vmatprep.subr.bf16.mxu0 %v1173_v1 }
  0x58   :  { %1088 = vmatpush3.bf16.msra.mxu0 %v1170_v29 }
  0x59   :  { %1089 = vmatprep.subr.bf16.mxu0 %v1173_v1 }
  0x5c   :  { %1090 = vmatpush3.bf16.msra.mxu0 %v1171_v30 }
  0x5d   :  { %1091 = vmatprep.subr.bf16.mxu0 %v1173_v1 }
  0x60   :  { %1092 = vmatpush3.bf16.msra.mxu0 %v1172_v31 }
  0x63   :  { %1094 = vmatmul.mubr.bf16.vlgmr.msra.gmra.mrb[8].mxu0 %v234_v25 }
  0xf6   :  { %v996_v32 = vpop.f32.mrb[0].mxu0 }
  0xf7   :  { %v997_v33 = vpop.f32.mrb[1].mxu0  ;;  %v1018_v34 = vpop.f32.mrb[0].mxu1 }
  0xf8   :  { %v998_v35 = vadd.f32 %v997_v33, %v996_v32  ;;  %v999_v36 = vpop.f32.mrb[2].mxu0  ;;  %v1019_v37 = vpop.f32.mrb[1].mxu1 }
  0xf9   :  { %v1000_v38 = vpop.f32.mrb[3].mxu0  ;;  %v1020_v39 = vadd.f32 %v1019_v37, %v1018_v34  ;;  %v1021_v40 = vpop.f32.mrb[2].mxu1 }
  0xfa   :  { %v1022_v41 = vpop.f32.mrb[3].mxu1 }
  0xfb   :  { %v751_v42 = vadd.f32 %v1020_v39, %v998_v35 }
 0x116   :  { %v1040_v43 = vpop.f32.mrb[4].mxu0 }
 0x117   :  { %v1041_v44 = vpop.f32.mrb[5].mxu0 }
 0x118   :  { %v1042_v45 = vadd.f32 %v1041_v44, %v1040_v43  ;;  %v1043_v46 = vpop.f32.mrb[6].mxu0  ;;  %v1062_v47 = vpop.f32.mrb[4].mxu1 }
 0x119   :  { %v1044_v48 = vpop.f32.mrb[7].mxu0  ;;  %v1063_v1 = vpop.f32.mrb[5].mxu1 }
 0x11a   :  { %v791_v49 = vadd.f32 %v1042_v45, %v751_v42  ;;  %v1064_v50 = vadd.f32 %v1063_v1, %v1062_v47  ;;  %v1065_v51 = vpop.f32.mrb[6].mxu1 }
 0x11b   :  { %v1066_v52 = vpop.f32.mrb[7].mxu1 }
 0x11c   :  { %v831_v53 = vadd.f32 %v1064_v50, %v791_v49 }
 0x136   :  { %v870_v55 = vpop.f32.mrb[8].mxu0 }
 0x137   :  { %v871_v56 = vadd.f32 %v870_v55, %v831_v53  ;;  %v1095_v57 = vpop.f32.mrb[9].mxu0 }
 0x138   :  { %v873_v58 = vpop.f32.mrb[10].mxu0 }
 0x139   :  { %v876_v59 = vadd.f32 %v871_v56, %v23_v54  ;;  %v1096_v60 = vpop.f32.mrb[11].mxu0 }
 0x13b   :  { %877 = vst [vmem:[#allocation2] sm:$0x3] %v876_v59 }
 0x142   :  { %v881_v62 = vld [vmem:[#allocation2] sm:$0x3] }
 0x143   :  { %v889_v0 = vmul.f32 %v978_v61, %v881_v62 }
 0x145   :  { %v897_v2 = vadd.f32 %v979_v63, %v889_v0 }
 0x147   :  { %v898_v3 = vmax.f32 %v897_v2, 0.0 }
 0x149   :  { %v899_v4 = vpack.c.bf16 %v898_v3, %v898_v3 }
 0x14b   :  { %900 = vst [vmem:[%s1460_s4] sm:$0x1] %v899_v4 }

// kernel: resnet_simclr_forward.43
= control target key start
LH: loop header
LB: loop body
LE: loop exit
PB: predicated region body
PF: predicated region fallthrough
CT: control target
= control target key end

     0   :  { %v32_v2 = vlaneseq  ;;  %vm40_vm0 = vcmask 1041409   ;;  %v433_v7 = vmov 0.0   ;;  %vm43_vm1 = vcmask 1041408   ;;  %s573_s0 = inlined_call_operand.vmem [shape: bf16[2,1,128], index: 0, kind: input, shape index: {}]   ;;  %s574_s1 = inlined_call_operand.vmem [shape: bf16[128,128], index: 1, kind: input, shape index: {}]   ;;  %s575_s2 = inlined_call_operand.vmem [shape: f32[1,128], index: 2, kind: input, shape index: {}]   ;;  %s576_s3 = inlined_call_operand.vmem [shape: bf16[128,128], index: 3, kind: input, shape index: {}]   ;;  %s577_s4 = inlined_call_operand.vmem [shape: f32[1,128], index: 4, kind: input, shape index: {}]   ;;  %s578_s5 = inlined_call_operand.hbm [shape: f32[2,128], index: 5, kind: output, shape index: {}]  }
   0x1   :  { %v22_v0 = vld [vmem:[%s573_s0] sm:$0x1]  ;;  %v23_v1 = vld [vmem:[%s573_s0 + $0x1] sm:$0x1]  ;;  %347 = vmatprep.subr.bf16.mxu0 %v433_v7  ;;  %367 = vmatprep.subr.bf16.mxu1 %v433_v7 }
   0x2   :  { %v473_v3 = vunpack.c.l.bf16 %v22_v0  ;;  %v475_v4 = vunpack.c.l.bf16 %v23_v1  ;;  %v391_v5 = vld [vmem:[%s574_s1] sm:$0xff]   ;;  %v480_v6 = vshrl.u32 %v32_v2, 7 }
   0x3   :  { %348 = vmatpush3.bf16.msra.mxu0 %v391_v5 }
   0x4   :  { %v28_v8 = vmul.f32 %v473_v3, %v473_v3  ;;  %v29_v9 = vmul.f32 %v475_v4, %v475_v4  ;;  %v34_v10 = vsub.s32 0, %v480_v6  ;;  %349 = vmatprep.subr.bf16.mxu0 %v433_v7 }
   0x6   :  { %v35_v11 = vrot.slane %v28_v8, %v34_v10  ;;  %v39_v12 = vrot.slane %v29_v9, %v34_v10 }
   0x8   :  { %v41_v13 = vsel %vm40_vm0, %v39_v12, %v35_v11 }
   0x9   :  { %v44_v14 = vsel %vm43_vm1, %v41_v13, 0.0 }
   0xa   :  { %45 = vadd.xlane.f32.xlu0 %v44_v14 }
   0xb   :  { %10 = vsyncpa [#allocation3], 0  ;;  %v392_v15 = vld [vmem:[%s574_s1 + $0x8] sm:$0xff]   ;;  %v393_v16 = vld [vmem:[%s574_s1 + $0x10] sm:$0xff]   ;;  %vm434_vm2 = vmmov 0   ;;  %s436_s30 = smov [#allocation2]  }
   0xc   :  { %350 = vmatpush3.bf16.msra.mxu0 %v392_v15  ;;  %v394_v17 = vld [vmem:[%s574_s1 + $0x18] sm:$0xff]   ;;  %v395_v18 = vld [vmem:[%s574_s1 + $0x20] sm:$0xff]   ;;  %v396_v19 = vld [vmem:[%s574_s1 + $0x28] sm:$0xff]   ;;  %363 = vmatprep.mubr.msk.bf16.mxu0 %vm434_vm2, %v433_v7  ;;  %v435_v30 = vmov 269488144   ;;  %s303_s6 = sshll.u32 %s436_s30, 4  ;;  %s304_s6 = int_to_ptr.vmem [resolvable:$true] %s303_s6 }
   0xd   :  { %351 = vmatprep.subr.bf16.mxu0 %v433_v7  ;;  %383 = vmatprep.mubr.msk.bf16.mxu1 %vm434_vm2, %v433_v7  ;;  %v397_v20 = vld [vmem:[%s574_s1 + $0x30] sm:$0xff]   ;;  %v398_v21 = vld [vmem:[%s574_s1 + $0x38] sm:$0xff]   ;;  %v399_v22 = vld [vmem:[%s576_s3] sm:$0xff]   ;;  %v51_v31 = vunpack.c.l.s4 %v435_v30  ;;  %p414_p1 = scmp.lt.s32.totalorder %s304_s6, %s304_s6 }
   0xe   :  { %368 = vmatpush3.bf16.msra.mxu1 %v399_v22  ;;  %v400_v23 = vld [vmem:[%s576_s3 + $0x8] sm:$0xff]   ;;  %v401_v24 = vld [vmem:[%s576_s3 + $0x10] sm:$0xff]   ;;  %v402_v25 = vld [vmem:[%s576_s3 + $0x18] sm:$0xff]  }
   0xf   :  { %369 = vmatprep.subr.bf16.mxu1 %v433_v7  ;;  %v403_v26 = vld [vmem:[%s576_s3 + $0x20] sm:$0xff]   ;;  %v404_v27 = vld [vmem:[%s576_s3 + $0x28] sm:$0xff]   ;;  %v52_v32 = vunpack.c.0.s8 %v51_v31  ;;  %v405_v46 = vld [vmem:[%s576_s3 + $0x30] sm:$0xff]  }
  0x10   :  { %352 = vmatpush3.bf16.msra.mxu0 %v393_v16  ;;  %v406_v47 = vld [vmem:[%s576_s3 + $0x38] sm:$0xff]   ;;  %v311_v48 = vld [vmem:[%s575_s2] ss:$0 sm:$0xff]  ;;  %s409_s2 = scalar_lea.vmem %s304_s6, 32 }
  0x11   :  { %353 = vmatprep.subr.bf16.mxu0 %v433_v7  ;;  %v55_v33 = vsub.s32 %v52_v32, %v480_v6  ;;  %v320_v56 = vld [vmem:[%s577_s4] ss:$0 sm:$0xff]  ;;  %p410_p0 = scmp.ne.s32.totalorder %s304_s6, %s409_s2  ;;  %p415_p2 = scmp.lt.s32.totalorder %s409_s2, %s409_s2 }
  0x12   :  { %370 = vmatpush3.bf16.msra.mxu1 %v400_v23 }
  0x13   :  { %371 = vmatprep.subr.bf16.mxu1 %v433_v7  ;;  %p416_p3 = por %p415_p2, %p414_p1 }
  0x14   :  { %354 = vmatpush3.bf16.msra.mxu0 %v394_v17 }
  0x15   :  { %355 = vmatprep.subr.bf16.mxu0 %v433_v7  ;;  %p417_p4 = pnand %p416_p3, %p410_p0 }
  0x16   :  { %372 = vmatpush3.bf16.msra.mxu1 %v401_v24 }
  0x17   :  { %373 = vmatprep.subr.bf16.mxu1 %v433_v7 }
  0x18   :  { %356 = vmatpush3.bf16.msra.mxu0 %v395_v18 }
  0x19   :  { %357 = vmatprep.subr.bf16.mxu0 %v433_v7 }
  0x1a   :  { %374 = vmatpush3.bf16.msra.mxu1 %v402_v25 }
  0x1b   :  { %375 = vmatprep.subr.bf16.mxu1 %v433_v7 }
  0x1c   :  { %358 = vmatpush3.bf16.msra.mxu0 %v396_v19 }
  0x1d   :  { %359 = vmatprep.subr.bf16.mxu0 %v433_v7 }
  0x1e   :  { %376 = vmatpush3.bf16.msra.mxu1 %v403_v26 }
  0x1f   :  { %377 = vmatprep.subr.bf16.mxu1 %v433_v7 }
  0x20   :  { %360 = vmatpush3.bf16.msra.mxu0 %v397_v20 }
  0x21   :  { %361 = vmatprep.subr.bf16.mxu0 %v433_v7 }
  0x22   :  { %378 = vmatpush3.bf16.msra.mxu1 %v404_v27 }
  0x23   :  { %379 = vmatprep.subr.bf16.mxu1 %v433_v7 }
  0x24   :  { %362 = vmatpush3.bf16.msra.mxu0 %v398_v21 }
  0x26   :  { %380 = vmatpush3.bf16.msra.mxu1 %v405_v46 }
  0x27   :  { %381 = vmatprep.subr.bf16.mxu1 %v433_v7 }
  0x2a   :  { %382 = vmatpush3.bf16.msra.mxu1 %v406_v47 }
  0x97   :  { %v46_v28 = vpop.xlane.xlu0 %45 }
  0x98   :  { %v47_v29 = vmax.f32 %v46_v28, 1e-24 }
  0x9a   :  { %407 = vrsqrt.f32 %v47_v29 }
  0xa4   :  { %v408_v34 = vpop.eup %407 }
  0xa5   :  { %v56_v35 = vrot.slane %v408_v34, %v55_v33 }
  0xa7   :  { %v57_v36 = vrot.slane %v56_v35, 1  ;;  %v60_v37 = vmul.f32 %v56_v35, %v473_v3 }
  0xa9   :  { %v61_v38 = vmul.f32 %v57_v36, %v475_v4  ;;  %v62_v39 = vpack.c.bf16 %v60_v37, %v60_v37 }
  0xab   :  { %v63_v40 = vpack.c.bf16 %v61_v38, %v61_v38  ;;  %v89_v42 = vunpack.c.l.b16 %v62_v39 }
  0xad   :  { %v90_v41 = vunpack.c.l.b16 %v63_v40 }
  0xaf   :  { %v91_v43 = vrot.slane %v90_v41, 7 }
  0xb1   :  { %v92_v44 = vsel %vm40_vm0, %v91_v43, %v89_v42 }
  0xb2   :  { %v93_v45 = vpack.c.b16 %v92_v44, %v92_v44 }
  0xb4   :  { %364 = vmatmul.mubr.bf16.vlgmr.msra.gmra.mrb[0].mxu0 %v93_v45 }
 0x187   :  { %v177_v49 = vpop.f32.mrb[0].mxu0 }
 0x188   :  { %v178_v50 = vadd.f32 %v311_v48, %v177_v49  ;;  %v365_v51 = vpop.f32.mrb[1].mxu0 }
 0x189   :  { %v180_v52 = vpop.f32.mrb[2].mxu0 }
 0x18a   :  { %v183_v53 = vmax.f32 %v178_v50, 0.0  ;;  %v366_v54 = vpop.f32.mrb[3].mxu0 }
 0x18c   :  { %v184_v55 = vpack.c.bf16 %v183_v53, %v183_v53 }
 0x18e   :  { %384 = vmatmul.mubr.bf16.vlgmr.msra.gmra.mrb[0].mxu1 %v184_v55 }
 0x261   :  { %v290_v57 = vpop.f32.mrb[0].mxu1 }
 0x262   :  { %v291_v58 = vadd.f32 %v320_v56, %v290_v57  ;;  %v385_v59 = vpop.f32.mrb[1].mxu1 }
 0x263   :  { %v293_v60 = vpop.f32.mrb[2].mxu1 }
 0x264   :  { %296 = vst [vmem:[#allocation2] sm:$0x3] %v291_v58  ;;  %v386_v61 = vpop.f32.mrb[3].mxu1 }
 0x265   :  { %420 = shalt.err (!%p417_p4)
}
 0x266   :  { %s421_s4 = scalar_lea.hbm %s578_s5, 32 }
 0x267   :  { %p422_p5 = scmp.ne.s32.totalorder %s578_s5, %s421_s4  ;;  %p425_p6 = scmp.lt.u32.totalorder %s421_s4, %s578_s5 }
 0x269   :  { %p427_p7 = pnand %p425_p6, %p422_p5 }
 0x26b   :  { %430 = shalt.err (!%p427_p7)
}
 0x26c   :  { %306 = dma.vmem_to_hbm [thread:$0]  %s304_s6, 32, %s578_s5, [#allocation3]  }
 0x26d   :  { %431 = dma.done.wait [#allocation3], 32  }
 0x26e   :  { %432 = vsyncadd [#allocation3], 4294967264 }
 0x26f   :  { %310 = vsyncpa [#allocation3], 1 }

// kernel: resnet_simclr_forward.40
= control target key start
LH: loop header
LB: loop body
LE: loop exit
PB: predicated region body
PF: predicated region fallthrough
CT: control target
= control target key end

     0   :  { %v1179_v1 = vmov 0.0   ;;  %v1180_v23 = vmov 1966171168   ;;  %v179_v25 = vlaneseq  ;;  %vm1181_vm0 = vmmov 0   ;;  %s1470_s1 = inlined_call_operand.vmem [shape: bf16[1152,128], index: 1, kind: input, shape index: {}]   ;;  %s1471_s0 = inlined_call_operand.vmem [shape: bf16[2,1152], index: 0, kind: input, shape index: {}]   ;;  %s1472_s2 = inlined_call_operand.vmem [shape: f32[1,128], index: 2, kind: input, shape index: {}]   ;;  %s1473_s4 = inlined_call_operand.vmem [shape: bf16[2,128], index: 4, kind: input, shape index: {}]   ;;  %s1474_s3 = inlined_call_operand.vmem [shape: f32[1,128], index: 3, kind: input, shape index: {}]   ;;  %s1475_s5 = inlined_call_operand.vmem [shape: bf16[2,128], index: 5, kind: output, shape index: {}]  }
   0x1   :  { %v1106_v0 = vld [vmem:[%s1470_s1 + $0x40] sm:$0xff]   ;;  %25 = vst [vmem:[#allocation2] sm:$0x3] %v1179_v1  ;;  %v1110_v5 = vld [vmem:[%s1470_s1 + $0x48] sm:$0xff]   ;;  %v1114_v9 = vld [vmem:[%s1470_s1 + $0x50] sm:$0xff]   ;;  %v177_v24 = vunpack.c.l.s4 %v1180_v23 }
   0x2   :  { %v1107_v2 = vld [vmem:[%s1470_s1 + $0xc0] sm:$0xff]   ;;  %986 = vmatprep.subr.bf16.mxu0 %v1106_v0  ;;  %v1111_v6 = vld [vmem:[%s1470_s1 + $0xc8] sm:$0xff]   ;;  %v1115_v10 = vld [vmem:[%s1470_s1 + $0xd0] sm:$0xff]   ;;  %v180_v31 = vshrl.u32 %v179_v25, 7 }
   0x3   :  { %v1108_v3 = vld [vmem:[%s1470_s1] sm:$0xff]   ;;  %1008 = vmatprep.subr.bf16.mxu1 %v1107_v2  ;;  %v1112_v7 = vld [vmem:[%s1470_s1 + $0x8] sm:$0xff]   ;;  %v1116_v11 = vld [vmem:[%s1470_s1 + $0x10] sm:$0xff]   ;;  %v178_v30 = vunpack.c.0.s8 %v177_v24 }
   0x4   :  { %v1109_v4 = vld [vmem:[%s1470_s1 + $0x80] sm:$0xff]   ;;  %987 = vmatpush3.bf16.msra.mxu0 %v1108_v3  ;;  %v1113_v8 = vld [vmem:[%s1470_s1 + $0x88] sm:$0xff]   ;;  %v1117_v12 = vld [vmem:[%s1470_s1 + $0x90] sm:$0xff]  }
   0x5   :  { %1009 = vmatpush3.bf16.msra.mxu1 %v1109_v4  ;;  %988 = vmatprep.subr.bf16.mxu0 %v1110_v5  ;;  %v1118_v13 = vld [vmem:[%s1470_s1 + $0x58] sm:$0xff]   ;;  %v1122_v17 = vld [vmem:[%s1470_s1 + $0x60] sm:$0xff]   ;;  %v1126_v21 = vld [vmem:[%s1470_s1 + $0x68] sm:$0xff]   ;;  %v1303_v36 = vsub.s32 %v178_v30, %v180_v31 }
   0x6   :  { %1010 = vmatprep.subr.bf16.mxu1 %v1111_v6  ;;  %v1119_v14 = vld [vmem:[%s1470_s1 + $0xd8] sm:$0xff]   ;;  %v1123_v18 = vld [vmem:[%s1470_s1 + $0xe0] sm:$0xff]   ;;  %v1127_v22 = vld [vmem:[%s1470_s1 + $0xe8] sm:$0xff]  }
   0x7   :  { %v1120_v15 = vld [vmem:[%s1470_s1 + $0x18] sm:$0xff]   ;;  %v1124_v19 = vld [vmem:[%s1470_s1 + $0x20] sm:$0xff]   ;;  %v1128_v26 = vld [vmem:[%s1470_s1 + $0x28] sm:$0xff]  }
   0x8   :  { %989 = vmatpush3.bf16.msra.mxu0 %v1112_v7  ;;  %v1121_v16 = vld [vmem:[%s1470_s1 + $0x98] sm:$0xff]   ;;  %v1125_v20 = vld [vmem:[%s1470_s1 + $0xa0] sm:$0xff]   ;;  %v1129_v27 = vld [vmem:[%s1470_s1 + $0xa8] sm:$0xff]  }
   0x9   :  { %1011 = vmatpush3.bf16.msra.mxu1 %v1113_v8  ;;  %990 = vmatprep.subr.bf16.mxu0 %v1114_v9  ;;  %v1130_v28 = vld [vmem:[%s1470_s1 + $0x70] sm:$0xff]   ;;  %v1134_v34 = vld [vmem:[%s1470_s1 + $0x78] sm:$0xff]   ;;  %v27_v39 = vld [vmem:[%s1471_s0] sm:$0xff] }
   0xa   :  { %1012 = vmatprep.subr.bf16.mxu1 %v1115_v10  ;;  %v1131_v29 = vld [vmem:[%s1470_s1 + $0xf0] sm:$0xff]   ;;  %v1135_v35 = vld [vmem:[%s1470_s1 + $0xf8] sm:$0xff]   ;;  %v175_v40 = vcombine.high %v27_v39, %v27_v39  ;;  %v182_v41 = vrot.slane %v27_v39, %v1303_v36  ;;  %v1139_v42 = vld [vmem:[%s1470_s1 + $0x140] sm:$0xff]  }
   0xb   :  { %v1132_v32 = vld [vmem:[%s1470_s1 + $0x30] sm:$0xff]   ;;  %v1136_v37 = vld [vmem:[%s1470_s1 + $0x38] sm:$0xff]   ;;  %v1141_v45 = vld [vmem:[%s1470_s1 + $0x1c0] sm:$0xff]  }
   0xc   :  { %991 = vmatpush3.bf16.msra.mxu0 %v1116_v11  ;;  %v1133_v33 = vld [vmem:[%s1470_s1 + $0xb0] sm:$0xff]   ;;  %v1137_v38 = vld [vmem:[%s1470_s1 + $0xb8] sm:$0xff]   ;;  %v190_v43 = vcombine.high %v182_v41, %v182_v41  ;;  %v198_v44 = vrot.slane %v182_v41, %v1303_v36  ;;  %v1323_v46 = vrot.slane %v175_v40, %v1303_v36  ;;  %v1140_v48 = vld [vmem:[%s1470_s1 + $0x100] sm:$0xff]  }
   0xd   :  { %1013 = vmatpush3.bf16.msra.mxu1 %v1117_v12  ;;  %992 = vmatprep.subr.bf16.mxu0 %v1118_v13  ;;  %v1143_v51 = vld [vmem:[%s1470_s1 + $0x148] sm:$0xff]   ;;  %v1142_v53 = vld [vmem:[%s1470_s1 + $0x180] sm:$0xff]   ;;  %v1147_v58 = vld [vmem:[%s1470_s1 + $0x150] sm:$0xff]  }
   0xe   :  { %1014 = vmatprep.subr.bf16.mxu1 %v1119_v14  ;;  %v212_v47 = vrot.slane %v190_v43, %v1303_v36  ;;  %v191_v49 = vcombine.high %v1323_v46, %v1323_v46  ;;  %v220_v50 = vcombine.high %v198_v44, %v198_v44  ;;  %v1145_v55 = vld [vmem:[%s1470_s1 + $0x1c8] sm:$0xff]   ;;  %v1149_v60 = vld [vmem:[%s1470_s1 + $0x1d0] sm:$0xff]   ;;  %v1151_v62 = vld [vmem:[%s1470_s1 + $0x158] sm:$0xff]  }
   0xf   :  { %v1144_v56 = vld [vmem:[%s1470_s1 + $0x108] sm:$0xff]   ;;  %v1148_v61 = vld [vmem:[%s1470_s1 + $0x110] sm:$0xff]   ;;  %v1153_v0 = vld [vmem:[%s1470_s1 + $0x1d8] sm:$0xff]  }
  0x10   :  { %993 = vmatpush3.bf16.msra.mxu0 %v1120_v15  ;;  %711 = vmatprep.mubr.bf16.mxu0 %v212_v47  ;;  %v222_v52 = vcombine.high %v212_v47, %v212_v47  ;;  %v219_v54 = vrot.slane %v191_v49, %v1303_v36  ;;  %v1146_v59 = vld [vmem:[%s1470_s1 + $0x188] sm:$0xff]   ;;  %v1150_v63 = vld [vmem:[%s1470_s1 + $0x190] sm:$0xff]   ;;  %v1152_v2 = vld [vmem:[%s1470_s1 + $0x118] sm:$0xff]  }
  0x11   :  { %1015 = vmatpush3.bf16.msra.mxu1 %v1121_v16  ;;  %994 = vmatprep.subr.bf16.mxu0 %v1122_v17  ;;  %v1155_v3 = vld [vmem:[%s1470_s1 + $0x160] sm:$0xff]   ;;  %v1154_v4 = vld [vmem:[%s1470_s1 + $0x198] sm:$0xff]   ;;  %v1159_v7 = vld [vmem:[%s1470_s1 + $0x168] sm:$0xff]  }
  0x12   :  { %1016 = vmatprep.subr.bf16.mxu1 %v1123_v18  ;;  %751 = vmatprep.mubr.bf16.mxu1 %v222_v52  ;;  %v223_v57 = vcombine.high %v219_v54, %v219_v54  ;;  %v1157_v5 = vld [vmem:[%s1470_s1 + $0x1e0] sm:$0xff]   ;;  %v1161_v9 = vld [vmem:[%s1470_s1 + $0x1e8] sm:$0xff]   ;;  %v1163_v11 = vld [vmem:[%s1470_s1 + $0x170] sm:$0xff]  }
  0x13   :  { %v1156_v6 = vld [vmem:[%s1470_s1 + $0x120] sm:$0xff]   ;;  %v1160_v10 = vld [vmem:[%s1470_s1 + $0x128] sm:$0xff]   ;;  %v1165_v13 = vld [vmem:[%s1470_s1 + $0x1f0] sm:$0xff]  }
  0x14   :  { %995 = vmatpush3.bf16.msra.mxu0 %v1124_v19  ;;  %v1158_v8 = vld [vmem:[%s1470_s1 + $0x1a0] sm:$0xff]   ;;  %v1162_v12 = vld [vmem:[%s1470_s1 + $0x1a8] sm:$0xff]   ;;  %v1164_v14 = vld [vmem:[%s1470_s1 + $0x130] sm:$0xff]   ;;  %v205_v19 = vrot.slane %v1323_v46, %v1303_v36 }
  0x15   :  { %1017 = vmatpush3.bf16.msra.mxu1 %v1125_v20  ;;  %996 = vmatprep.subr.bf16.mxu0 %v1126_v21  ;;  %v1167_v15 = vld [vmem:[%s1470_s1 + $0x178] sm:$0xff]   ;;  %v1166_v16 = vld [vmem:[%s1470_s1 + $0x1b0] sm:$0xff]   ;;  %v1171_v21 = vld [vmem:[%s1470_s1 + $0x200] sm:$0xff]  }
  0x16   :  { %1018 = vmatprep.subr.bf16.mxu1 %v1127_v22  ;;  %v1169_v17 = vld [vmem:[%s1470_s1 + $0x1f8] sm:$0xff]   ;;  %v221_v22 = vcombine.high %v205_v19, %v205_v19  ;;  %v911_v23 = vld.sshfl [vmem:[%s1471_s0 + $0x8] sm:$0x1 pattern:$0x75316420]  ;;  %v1177_v30 = vld [vmem:[%s1470_s1 + $0x230] sm:$0xff]  }
  0x17   :  { %v1168_v18 = vld [vmem:[%s1470_s1 + $0x138] sm:$0xff]   ;;  %v1172_v24 = vld [vmem:[%s1470_s1 + $0x208] sm:$0xff]   ;;  %v237_v25 = vrot.slane %v911_v23, %v1303_v36 }
  0x18   :  { %997 = vmatpush3.bf16.msra.mxu0 %v1128_v26  ;;  %v1170_v20 = vld [vmem:[%s1470_s1 + $0x1b8] sm:$0xff]   ;;  %v1173_v26 = vld [vmem:[%s1470_s1 + $0x210] sm:$0xff]  }
  0x19   :  { %1019 = vmatpush3.bf16.msra.mxu1 %v1129_v27  ;;  %998 = vmatprep.subr.bf16.mxu0 %v1130_v28  ;;  %v1174_v27 = vld [vmem:[%s1470_s1 + $0x218] sm:$0xff]   ;;  %v1175_v28 = vld [vmem:[%s1470_s1 + $0x220] sm:$0xff]  }
  0x1a   :  { %1020 = vmatprep.subr.bf16.mxu1 %v1131_v29  ;;  %v1176_v29 = vld [vmem:[%s1470_s1 + $0x228] sm:$0xff]   ;;  %v1178_v31 = vld [vmem:[%s1470_s1 + $0x238] sm:$0xff]  }
  0x1c   :  { %999 = vmatpush3.bf16.msra.mxu0 %v1132_v32 }
  0x1d   :  { %1021 = vmatpush3.bf16.msra.mxu1 %v1133_v33  ;;  %1000 = vmatprep.subr.bf16.mxu0 %v1134_v34 }
  0x1e   :  { %1022 = vmatprep.subr.bf16.mxu1 %v1135_v35 }
  0x20   :  { %1001 = vmatpush3.bf16.msra.mxu0 %v1136_v37 }
  0x21   :  { %1023 = vmatpush3.bf16.msra.mxu1 %v1137_v38  ;;  %1030 = vmatprep.subr.bf16.mxu0 %v1139_v42 }
  0x22   :  { %1052 = vmatprep.subr.bf16.mxu1 %v1141_v45 }
  0x23   :  { %712 = vmatmul.mubr.bf16.vlgmr.msra.gmra.mrb[0].mxu0 %v198_v44 }
  0x24   :  { %1031 = vmatpush3.bf16.msra.mxu0 %v1140_v48  ;;  %752 = vmatmul.mubr.bf16.vlgmr.msra.gmra.mrb[0].mxu1 %v220_v50 }
  0x25   :  { %1032 = vmatprep.subr.bf16.mxu0 %v1143_v51  ;;  %1053 = vmatpush3.bf16.msra.mxu1 %v1142_v53 }
  0x26   :  { %791 = vmatprep.mubr.bf16.mxu0 %v219_v54  ;;  %1054 = vmatprep.subr.bf16.mxu1 %v1145_v55  ;;  %v26_v54 = vld [vmem:[#allocation2] sm:$0x3] }
  0x27   :  { %831 = vmatprep.mubr.bf16.mxu1 %v223_v57 }
  0x28   :  { %1033 = vmatpush3.bf16.msra.mxu0 %v1144_v56 }
  0x29   :  { %1034 = vmatprep.subr.bf16.mxu0 %v1147_v58  ;;  %1055 = vmatpush3.bf16.msra.mxu1 %v1146_v59 }
  0x2a   :  { %1056 = vmatprep.subr.bf16.mxu1 %v1149_v60 }
  0x2c   :  { %1035 = vmatpush3.bf16.msra.mxu0 %v1148_v61  ;;  %v984_v61 = vld [vmem:[%s1472_s2] ss:$0 sm:$0xff] }
  0x2d   :  { %1036 = vmatprep.subr.bf16.mxu0 %v1151_v62  ;;  %1057 = vmatpush3.bf16.msra.mxu1 %v1150_v63  ;;  %v901_v62 = vld [vmem:[%s1473_s4] sm:$0x1] }
  0x2e   :  { %1058 = vmatprep.subr.bf16.mxu1 %v1153_v0  ;;  %v985_v0 = vld [vmem:[%s1474_s3] ss:$0 sm:$0xff] }
  0x30   :  { %1037 = vmatpush3.bf16.msra.mxu0 %v1152_v2 }
  0x31   :  { %1038 = vmatprep.subr.bf16.mxu0 %v1155_v3  ;;  %1059 = vmatpush3.bf16.msra.mxu1 %v1154_v4  ;;  %v902_v3 = vunpack.c.l.bf16 %v901_v62 }
  0x32   :  { %1060 = vmatprep.subr.bf16.mxu1 %v1157_v5 }
  0x34   :  { %1039 = vmatpush3.bf16.msra.mxu0 %v1156_v6 }
  0x35   :  { %1040 = vmatprep.subr.bf16.mxu0 %v1159_v7  ;;  %1061 = vmatpush3.bf16.msra.mxu1 %v1158_v8 }
  0x36   :  { %1062 = vmatprep.subr.bf16.mxu1 %v1161_v9 }
  0x38   :  { %1041 = vmatpush3.bf16.msra.mxu0 %v1160_v10 }
  0x39   :  { %1042 = vmatprep.subr.bf16.mxu0 %v1163_v11  ;;  %1063 = vmatpush3.bf16.msra.mxu1 %v1162_v12 }
  0x3a   :  { %1064 = vmatprep.subr.bf16.mxu1 %v1165_v13 }
  0x3c   :  { %1043 = vmatpush3.bf16.msra.mxu0 %v1164_v14 }
  0x3d   :  { %1044 = vmatprep.subr.bf16.mxu0 %v1167_v15  ;;  %1065 = vmatpush3.bf16.msra.mxu1 %v1166_v16 }
  0x3e   :  { %1066 = vmatprep.subr.bf16.mxu1 %v1169_v17 }
  0x40   :  { %1045 = vmatpush3.bf16.msra.mxu0 %v1168_v18 }
  0x41   :  { %1083 = vmatprep.subr.bf16.mxu0 %v1179_v1  ;;  %1067 = vmatpush3.bf16.msra.mxu1 %v1170_v20 }
  0x43   :  { %792 = vmatmul.mubr.bf16.vlgmr.msra.gmra.mrb[4].mxu0 %v205_v19 }
  0x44   :  { %1084 = vmatpush3.bf16.msra.mxu0 %v1171_v21  ;;  %1099 = vmatprep.mubr.msk.bf16.mxu0 %vm1181_vm0, %v1179_v1 }
  0x45   :  { %832 = vmatmul.mubr.bf16.vlgmr.msra.gmra.mrb[4].mxu1 %v221_v22  ;;  %1085 = vmatprep.subr.bf16.mxu0 %v1179_v1 }
  0x48   :  { %1086 = vmatpush3.bf16.msra.mxu0 %v1172_v24 }
  0x49   :  { %1087 = vmatprep.subr.bf16.mxu0 %v1179_v1 }
  0x4c   :  { %1088 = vmatpush3.bf16.msra.mxu0 %v1173_v26 }
  0x4d   :  { %1089 = vmatprep.subr.bf16.mxu0 %v1179_v1 }
  0x50   :  { %1090 = vmatpush3.bf16.msra.mxu0 %v1174_v27 }
  0x51   :  { %1091 = vmatprep.subr.bf16.mxu0 %v1179_v1 }
  0x54   :  { %1092 = vmatpush3.bf16.msra.mxu0 %v1175_v28 }
  0x55   :  { %1093 = vmatprep.subr.bf16.mxu0 %v1179_v1 }
  0x58   :  { %1094 = vmatpush3.bf16.msra.mxu0 %v1176_v29 }
  0x59   :  { %1095 = vmatprep.subr.bf16.mxu0 %v1179_v1 }
  0x5c   :  { %1096 = vmatpush3.bf16.msra.mxu0 %v1177_v30 }
  0x5d   :  { %1097 = vmatprep.subr.bf16.mxu0 %v1179_v1 }
  0x60   :  { %1098 = vmatpush3.bf16.msra.mxu0 %v1178_v31 }
  0x63   :  { %1100 = vmatmul.mubr.bf16.vlgmr.msra.gmra.mrb[8].mxu0 %v237_v25 }
  0xf6   :  { %v1002_v32 = vpop.f32.mrb[0].mxu0 }
  0xf7   :  { %v1003_v33 = vpop.f32.mrb[1].mxu0  ;;  %v1024_v34 = vpop.f32.mrb[0].mxu1 }
  0xf8   :  { %v1004_v35 = vadd.f32 %v1003_v33, %v1002_v32  ;;  %v1005_v36 = vpop.f32.mrb[2].mxu0  ;;  %v1025_v37 = vpop.f32.mrb[1].mxu1 }
  0xf9   :  { %v1006_v38 = vpop.f32.mrb[3].mxu0  ;;  %v1026_v39 = vadd.f32 %v1025_v37, %v1024_v34  ;;  %v1027_v40 = vpop.f32.mrb[2].mxu1 }
  0xfa   :  { %v1028_v41 = vpop.f32.mrb[3].mxu1 }
  0xfb   :  { %v754_v42 = vadd.f32 %v1026_v39, %v1004_v35 }
 0x116   :  { %v1046_v43 = vpop.f32.mrb[4].mxu0 }
 0x117   :  { %v1047_v44 = vpop.f32.mrb[5].mxu0 }
 0x118   :  { %v1048_v45 = vadd.f32 %v1047_v44, %v1046_v43  ;;  %v1049_v46 = vpop.f32.mrb[6].mxu0  ;;  %v1068_v47 = vpop.f32.mrb[4].mxu1 }
 0x119   :  { %v1050_v48 = vpop.f32.mrb[7].mxu0  ;;  %v1069_v1 = vpop.f32.mrb[5].mxu1 }
 0x11a   :  { %v794_v49 = vadd.f32 %v1048_v45, %v754_v42  ;;  %v1070_v50 = vadd.f32 %v1069_v1, %v1068_v47  ;;  %v1071_v51 = vpop.f32.mrb[6].mxu1 }
 0x11b   :  { %v1072_v52 = vpop.f32.mrb[7].mxu1 }
 0x11c   :  { %v834_v53 = vadd.f32 %v1070_v50, %v794_v49 }
 0x136   :  { %v873_v55 = vpop.f32.mrb[8].mxu0 }
 0x137   :  { %v874_v56 = vadd.f32 %v873_v55, %v834_v53  ;;  %v1101_v57 = vpop.f32.mrb[9].mxu0 }
 0x138   :  { %v876_v58 = vpop.f32.mrb[10].mxu0 }
 0x139   :  { %v879_v59 = vadd.f32 %v874_v56, %v26_v54  ;;  %v1102_v60 = vpop.f32.mrb[11].mxu0 }
 0x13b   :  { %880 = vst [vmem:[#allocation2] sm:$0x3] %v879_v59 }
 0x142   :  { %v884_v63 = vld [vmem:[#allocation2] sm:$0x3] }
 0x143   :  { %v892_v2 = vmul.f32 %v984_v61, %v884_v63 }
 0x145   :  { %v900_v4 = vadd.f32 %v985_v0, %v892_v2 }
 0x147   :  { %v903_v5 = vadd.f32 %v902_v3, %v900_v4 }
 0x149   :  { %v904_v6 = vmax.f32 %v903_v5, 0.0 }
 0x14b   :  { %v905_v7 = vpack.c.bf16 %v904_v6, %v904_v6 }
 0x14d   :  { %906 = vst [vmem:[%s1475_s5] sm:$0x1] %v905_v7 }

</bundles_post_ra>
